<compile_context>
chip_gen: v7x
topology: tpu7x:2x2x1
jax: 0.10.0
libtpu: 0.0.40
codegen_flags: <defaults>
</compile_context>

<pallas_src>
import functools

import numpy as np
import jax
import jax.numpy as jnp
from jax import lax
from jax.experimental import pallas as pl
from jax.experimental.pallas import tpu as pltpu


# ---------------------------------------------------------------------------
# In-kernel building blocks
# ---------------------------------------------------------------------------
def _conv_cf(inputs, sel_ref, b_ref, relu=True):
    """Channels-first 3x3 conv:  y^T = sum_k W_k @ (x^T @ S_k^T) + b  (+ReLU).

    inputs : list of (xT, w_ref) pairs that share the same output geometry
             (used to fold the fusion-conv channel concat into two row blocks);
             xT is a (Cin_i, Ni) value, w_ref a (9, Cout, Cin_i) ref.
    sel_ref: (9, Ni, No) constant 0/1 tap-selection matrices (transposed).
    b_ref  : (Cout, 1) bias ref.
    """
    cout = inputs[0][1].shape[1]
    no = sel_ref.shape[2]
    acc = jnp.zeros((cout, no), jnp.float32)
    for k in range(9):                                    # unrolled at trace time
        sel_k = sel_ref[k]                                # (Ni, No)
        for xT, w_ref in inputs:
            # deep-contraction (Ni = 64/256) MXU dot does the window gather
            piece = jnp.dot(xT, sel_k, preferred_element_type=jnp.float32)
            acc = acc + jnp.dot(w_ref[k], piece, preferred_element_type=jnp.float32)
    acc = acc + b_ref[...]
    return jnp.maximum(acc, 0.0) if relu else acc


def _attention_cf(xT, wqk_ref, bqk_ref, wv_ref, bv_ref, gamma, cq_pad):
    """SAGAN Self_Attn, channels-first, fully in VMEM.  xT: (C, N)."""
    qk = jnp.dot(wqk_ref[...], xT, preferred_element_type=jnp.float32) + bqk_ref[...]
    qT = qk[:cq_pad, :]                                   # (cq_pad, N), aligned slice
    kT = qk[cq_pad:, :]                                   # zero-padded rows -> no effect
    # energy[i, j] = q_i . k_j
    energy = lax.dot_general(qT, kT, (((0,), (0,)), ((), ())),
                             preferred_element_type=jnp.float32)       # (N, N)
    energy = energy - jnp.max(energy, axis=-1, keepdims=True)
    p = jnp.exp(energy)
    att = p / jnp.sum(p, axis=-1, keepdims=True)          # exact divide (PyTorch parity)
    vT = jnp.dot(wv_ref[...], xT, preferred_element_type=jnp.float32) + bv_ref[...]
    # out[c, i] = sum_j v[c, j] * att[i, j]
    outT = lax.dot_general(vT, att, (((1,), (1,)), ((), ())),
                           preferred_element_type=jnp.float32)          # (C, N)
    return gamma * outT + xT


def _down_block_kernel(xsp_ref, xfq_ref,
                       sel_s2_ref, sel_s1_in_ref, sel_s1_ds_ref,
                       w_down_ref, b_down_ref,
                       w_dfreq_ref, b_dfreq_ref,
                       w_freq_ref, b_freq_ref,
                       w_fus_sp_ref, w_fus_fq_ref, b_fus_ref,
                       wqk_ref, bqk_ref, wv_ref, bv_ref, gamma_ref,
                       out_ref, *, cq_pad, cout):
    xsp = xsp_ref[0]                                      # (Cin, H*W)  e.g. (4, 256)
    xfq = xfq_ref[0]

    # down: stride-2 ConvBlock                       -> (Cout, N) = (16, 64)
    sp_outT = _conv_cf([(xsp, w_down_ref)], sel_s2_ref, b_down_ref)

    # Self_Attn on spatial_out (projections + softmax + gamma*out + residual)
    gamma = gamma_ref[0, 0]
    sp_attT = _attention_cf(sp_outT, wqk_ref, bqk_ref, wv_ref, bv_ref, gamma, cq_pad)

    # freq_block: stride-1 FreqBlock                 -> (Cin, H*W)
    fq_outT = _conv_cf([(xfq, w_freq_ref)], sel_s1_in_ref, b_freq_ref)

    # down_freq: stride-2 ConvBlock                  -> (Cout, N)
    fq_downT = _conv_cf([(fq_outT, w_dfreq_ref)], sel_s2_ref, b_dfreq_ref)

    # fusion ConvBlock over cat([spatial_att, freq_out_down], channels):
    # the concat is folded away by splitting the weight into two row blocks.
    fusedT = _conv_cf([(sp_attT, w_fus_sp_ref), (fq_downT, w_fus_fq_ref)],
                      sel_s1_ds_ref, b_fus_ref)

    # single lane-dense output block per batch element
    out_ref[0, 0:cout, :] = sp_outT
    out_ref[0, cout:2 * cout, :] = fq_downT
    out_ref[0, 2 * cout:3 * cout, :] = fusedT


# ---------------------------------------------------------------------------
# Wrapper
# ---------------------------------------------------------------------------
def down_block_with_freq(params, spatial_in_nchw, freq_in_nchw):
    b, cin, h, w = spatial_in_nchw.shape
    cout = params["w_down"].shape[1]
    cq_pad = params["wqk"].shape[0] // 2
    ho, wo = h // 2, w // 2
    n_out = ho * wo

    # channels-first flat layout: pure reshapes, no transposes
    xsp = spatial_in_nchw.reshape(b, cin, h * w)
    xfq = freq_in_nchw.reshape(b, cin, h * w)

    args = (xsp, xfq,
            params["sel_s2"], params["sel_s1_in"], params["sel_s1_ds"],
            params["w_down"], params["b_down"],
            params["w_dfreq"], params["b_dfreq"],
            params["w_freq"], params["b_freq"],
            params["w_fus_sp"], params["w_fus_fq"], params["b_fus"],
            params["wqk"], params["bqk"], params["wv"], params["bv"],
            params["gamma"])

    def full_spec(a):
        return pl.BlockSpec(a.shape, lambda i, nd=a.ndim: (0,) * nd)

    in_specs = [pl.BlockSpec((1, cin, h * w), lambda i: (i, 0, 0)),
                pl.BlockSpec((1, cin, h * w), lambda i: (i, 0, 0))]
    in_specs += [full_spec(a) for a in args[2:-1]]                # constants
    in_specs += [pl.BlockSpec((1, 1), lambda i: (0, 0),
                              memory_space=pltpu.MemorySpace.SMEM)]  # gamma

    kern = functools.partial(_down_block_kernel, cq_pad=cq_pad, cout=cout)
    out = pl.pallas_call(
        kern,
        out_shape=jax.ShapeDtypeStruct((b, 3 * cout, n_out), jnp.float32),
        grid=(b,),
        in_specs=in_specs,
        out_specs=pl.BlockSpec((1, 3 * cout, n_out), lambda i: (i, 0, 0)),
        compiler_params=pltpu.CompilerParams(
            dimension_semantics=("parallel",)),   # both TCs on v7x for B>=2
    )(*args)

    spatial_out = out[:, 0:cout, :].reshape(b, cout, ho, wo)
    freq_out_down = out[:, cout:2 * cout, :].reshape(b, cout, ho, wo)
    fused = out[:, 2 * cout:3 * cout, :].reshape(b, cout, ho, wo)
    return spatial_out, freq_out_down, fused


# ---------------------------------------------------------------------------
# Parameter init + one-time packing (all packing hoisted out of the forward)
# ---------------------------------------------------------------------------
def _make_tap_selection(hi, wi, ho, wo, stride):
    """(9, hi*wi, ho*wo): S_k^T[p, o] = 1 iff input pixel p is the k-th 3x3 tap
    (zero padding 1) of output pixel o."""
    sel = np.zeros((9, hi * wi, ho * wo), np.float32)
    for kh in range(3):
        for kw in range(3):
            k = kh * 3 + kw
            for i in range(ho):
                r = stride * i + kh - 1
                if r < 0 or r >= hi:
                    continue
                for j in range(wo):
                    c = stride * j + kw - 1
                    if c < 0 or c >= wi:
                        continue
                    sel[k, r * wi + c, i * wo + j] = 1.0
    return jnp.asarray(sel)


def _pack_conv(w_oihw, b):
    """PyTorch Conv2d weight (Cout, Cin, 3, 3) -> per-tap (9, Cout, Cin) + (Cout, 1)."""
    cout, cin = w_oihw.shape[0], w_oihw.shape[1]
    w = jnp.transpose(w_oihw, (2, 3, 0, 1)).reshape(9, cout, cin)
    return w, b.reshape(cout, 1)


def init_raw_params(key, cin, cout):
    """Raw parameters in PyTorch layouts (deterministic synthetic values)."""
    ks = jax.random.split(key, 12)
    cq = cout // 8
    n01 = lambda k, shp: 0.1 * jax.random.normal(k, shp, jnp.float32)
    return {
        "down_w": n01(ks[0], (cout, cin, 3, 3)),   "down_b": n01(ks[1], (cout,)),
        "dfreq_w": n01(ks[2], (cout, cin, 3, 3)),  "dfreq_b": n01(ks[3], (cout,)),
        "freq_w": n01(ks[4], (cin, cin, 3, 3)),    "freq_b": n01(ks[5], (cin,)),
        "fus_w": n01(ks[6], (cout, 2 * cout, 3, 3)), "fus_b": n01(ks[7], (cout,)),
        "wq": n01(ks[8], (cq, cout)), "bq": n01(ks[9], (cq,)),
        "wk": n01(ks[10], (cq, cout)), "bk": jnp.zeros((cq,), jnp.float32),
        "wv": n01(ks[11], (cout, cout)), "bv": jnp.zeros((cout,), jnp.float32),
        # PyTorch inits gamma to 0; use a nonzero value so the self-check below
        # actually exercises the attention math.
        "gamma": jnp.full((1,), 0.5, jnp.float32),
    }


def pack_params(raw, h, w):
    cout, cin = raw["down_w"].shape[0], raw["down_w"].shape[1]
    ho, wo = h // 2, w // 2
    cq = raw["wq"].shape[0]
    cq_pad = max(8, ((cq + 7) // 8) * 8)

    p = {
        "sel_s2": _make_tap_selection(h, w, ho, wo, 2),     # stride-2 (down, down_freq)
        "sel_s1_in": _make_tap_selection(h, w, h, w, 1),    # stride-1 @ input res
        "sel_s1_ds": _make_tap_selection(ho, wo, ho, wo, 1),  # stride-1 @ downsampled res
    }
    p["w_down"], p["b_down"] = _pack_conv(raw["down_w"], raw["down_b"])
    p["w_dfreq"], p["b_dfreq"] = _pack_conv(raw["dfreq_w"], raw["dfreq_b"])
    p["w_freq"], p["b_freq"] = _pack_conv(raw["freq_w"], raw["freq_b"])
    w_fus, p["b_fus"] = _pack_conv(raw["fus_w"], raw["fus_b"])     # (9, Cout, 2*Cout)
    p["w_fus_sp"] = w_fus[:, :, :cout]    # acts on spatial_att channels
    p["w_fus_fq"] = w_fus[:, :, cout:]    # acts on freq_out_down channels

    wqk = jnp.zeros((2 * cq_pad, cout), jnp.float32)
    wqk = wqk.at[0:cq, :].set(raw["wq"]).at[cq_pad:cq_pad + cq, :].set(raw["wk"])
    bqk = jnp.zeros((2 * cq_pad, 1), jnp.float32)
    bqk = bqk.at[0:cq, 0].set(raw["bq"]).at[cq_pad:cq_pad + cq, 0].set(raw["bk"])
    p.update({"wqk": wqk, "bqk": bqk, "wv": raw["wv"],
              "bv": raw["bv"].reshape(cout, 1),
              "gamma": raw["gamma"].reshape(1, 1)})
    return p


# ---------------------------------------------------------------------------
# Pure-JAX reference (for the self-check)
# ---------------------------------------------------------------------------
def _ref_convblock(x, w, b, stride):
    y = lax.conv_general_dilated(x, w, window_strides=(stride, stride),
                                 padding=((1, 1), (1, 1)),
                                 dimension_numbers=("NCHW", "OIHW", "NCHW"),
                                 precision=lax.Precision.HIGHEST)
    return jax.nn.relu(y + b.reshape(1, -1, 1, 1))


def _ref_self_attn(x, raw):
    hp = lax.Precision.HIGHEST
    bsz, c, h, w = x.shape
    xf = x.reshape(bsz, c, h * w)
    q = jnp.einsum("qc,bcn->bnq", raw["wq"], xf, precision=hp) + raw["bq"][None, None, :]
    k = jnp.einsum("qc,bcn->bqn", raw["wk"], xf, precision=hp) + raw["bk"][None, :, None]
    energy = jnp.einsum("biq,bqj->bij", q, k, precision=hp)
    att = jax.nn.softmax(energy, axis=-1)
    v = jnp.einsum("vc,bcn->bvn", raw["wv"], xf, precision=hp) + raw["bv"][None, :, None]
    out = jnp.einsum("bcj,bij->bci", v, att, precision=hp).reshape(bsz, c, h, w)
    return raw["gamma"][0] * out + x


def _ref_forward(raw, spatial_in, freq_in):
    spatial_out = _ref_convblock(spatial_in, raw["down_w"], raw["down_b"], 2)
    spatial_att = _ref_self_attn(spatial_out, raw)
    freq_out = _ref_convblock(freq_in, raw["freq_w"], raw["freq_b"], 1)
    freq_out_down = _ref_convblock(freq_out, raw["dfreq_w"], raw["dfreq_b"], 2)
    fused = _ref_convblock(jnp.concatenate([spatial_att, freq_out_down], axis=1),
                           raw["fus_w"], raw["fus_b"], 1)
    return spatial_out, freq_out_down, fused


# ---------------------------------------------------------------------------
if __name__ == "__main__":
    B, Cin, Cout, H, W = 2, 4, 16, 16, 16
    key = jax.random.PRNGKey(0)
    k_par, k_sp, k_fr = jax.random.split(key, 3)

    raw = init_raw_params(k_par, Cin, Cout)
    params = pack_params(raw, H, W)

    spatial_in = jax.random.normal(k_sp, (B, Cin, H, W), jnp.float32)
    freq_in = jax.random.normal(k_fr, (B, Cin, H, W), jnp.float32)

    fwd = jax.jit(down_block_with_freq)
    spatial_out, freq_out_down, fused = fwd(params, spatial_in, freq_in)
    jax.block_until_ready((spatial_out, freq_out_down, fused))

    assert spatial_out.shape == (B, Cout, H // 2, W // 2)
    assert freq_out_down.shape == (B, Cout, H // 2, W // 2)
    assert fused.shape == (B, Cout, H // 2, W // 2)

    # Self-check against a pure-JAX reference (generous tolerance covers MXU
    # accumulation-order / precision differences).
    r_sp, r_fq, r_fu = _ref_forward(raw, spatial_in, freq_in)
    for got, want in ((spatial_out, r_sp), (freq_out_down, r_fq), (fused, r_fu)):
        err = float(jnp.max(jnp.abs(got - want)))
        assert err < 2e-2, f"max abs error vs reference: {err}"

    print("KERNEL_OK")
</pallas_src>

<mosaic_0001>
module attributes {stable_mosaic.version = 11 : i64} {
  func.func @_down_block_kernel(%arg0: i32, %arg1: memref<1x4x256xf32, #tpu.memory_space<vmem>>, %arg2: memref<1x4x256xf32, #tpu.memory_space<vmem>>, %arg3: memref<9x256x64xf32, #tpu.memory_space<vmem>>, %arg4: memref<9x256x256xf32, #tpu.memory_space<vmem>>, %arg5: memref<9x64x64xf32, #tpu.memory_space<vmem>>, %arg6: memref<9x16x4xf32, #tpu.memory_space<vmem>>, %arg7: memref<16x1xf32, #tpu.memory_space<vmem>>, %arg8: memref<9x16x4xf32, #tpu.memory_space<vmem>>, %arg9: memref<16x1xf32, #tpu.memory_space<vmem>>, %arg10: memref<9x4x4xf32, #tpu.memory_space<vmem>>, %arg11: memref<4x1xf32, #tpu.memory_space<vmem>>, %arg12: memref<9x16x16xf32, #tpu.memory_space<vmem>>, %arg13: memref<9x16x16xf32, #tpu.memory_space<vmem>>, %arg14: memref<16x1xf32, #tpu.memory_space<vmem>>, %arg15: memref<16x16xf32, #tpu.memory_space<vmem>>, %arg16: memref<16x1xf32, #tpu.memory_space<vmem>>, %arg17: memref<16x16xf32, #tpu.memory_space<vmem>>, %arg18: memref<16x1xf32, #tpu.memory_space<vmem>>, %arg19: memref<1x1xf32, #tpu.memory_space<smem>>, %arg20: memref<1x48x64xf32, #tpu.memory_space<vmem>>) attributes {dimension_semantics = [#tpu.dimension_semantics<parallel>], iteration_bounds = array<i64: 2>, scalar_prefetch = 0 : i64, scratch_operands = 0 : i64, tpu.core_type = #tpu.core_type<tc>, window_params = [{transform_indices = @transform_0, window_bounds = array<i64: 1, 4, 256>}, {transform_indices = @transform_1, window_bounds = array<i64: 1, 4, 256>}, {pipeline_mode = #tpu.pipeline_mode<synchronous>, transform_indices = @transform_2, window_bounds = array<i64: 9, 256, 64>}, {pipeline_mode = #tpu.pipeline_mode<synchronous>, transform_indices = @transform_3, window_bounds = array<i64: 9, 256, 256>}, {pipeline_mode = #tpu.pipeline_mode<synchronous>, transform_indices = @transform_4, window_bounds = array<i64: 9, 64, 64>}, {pipeline_mode = #tpu.pipeline_mode<synchronous>, transform_indices = @transform_5, window_bounds = array<i64: 9, 16, 4>}, {pipeline_mode = #tpu.pipeline_mode<synchronous>, transform_indices = @transform_6, window_bounds = array<i64: 16, 1>}, {pipeline_mode = #tpu.pipeline_mode<synchronous>, transform_indices = @transform_7, window_bounds = array<i64: 9, 16, 4>}, {pipeline_mode = #tpu.pipeline_mode<synchronous>, transform_indices = @transform_8, window_bounds = array<i64: 16, 1>}, {pipeline_mode = #tpu.pipeline_mode<synchronous>, transform_indices = @transform_9, window_bounds = array<i64: 9, 4, 4>}, {pipeline_mode = #tpu.pipeline_mode<synchronous>, transform_indices = @transform_10, window_bounds = array<i64: 4, 1>}, {pipeline_mode = #tpu.pipeline_mode<synchronous>, transform_indices = @transform_11, window_bounds = array<i64: 9, 16, 16>}, {pipeline_mode = #tpu.pipeline_mode<synchronous>, transform_indices = @transform_12, window_bounds = array<i64: 9, 16, 16>}, {pipeline_mode = #tpu.pipeline_mode<synchronous>, transform_indices = @transform_13, window_bounds = array<i64: 16, 1>}, {pipeline_mode = #tpu.pipeline_mode<synchronous>, transform_indices = @transform_14, window_bounds = array<i64: 16, 16>}, {pipeline_mode = #tpu.pipeline_mode<synchronous>, transform_indices = @transform_15, window_bounds = array<i64: 16, 1>}, {pipeline_mode = #tpu.pipeline_mode<synchronous>, transform_indices = @transform_16, window_bounds = array<i64: 16, 16>}, {pipeline_mode = #tpu.pipeline_mode<synchronous>, transform_indices = @transform_17, window_bounds = array<i64: 16, 1>}, {transform_indices = @transform_18, window_bounds = array<i64: 1, 1>}, {transform_indices = @transform_19, window_bounds = array<i64: 1, 48, 64>}]} {
    %c0 = arith.constant 0 : index
    %c0_0 = arith.constant 0 : index
    %c0_1 = arith.constant 0 : index
    %0 = vector.load %arg1[%c0, %c0_0, %c0_1] : memref<1x4x256xf32, #tpu.memory_space<vmem>>, vector<1x4x256xf32>
    %1 = vector.shape_cast %0 : vector<1x4x256xf32> to vector<4x256xf32>
    %c0_2 = arith.constant 0 : index
    %c0_3 = arith.constant 0 : index
    %c0_4 = arith.constant 0 : index
    %2 = vector.load %arg2[%c0_2, %c0_3, %c0_4] : memref<1x4x256xf32, #tpu.memory_space<vmem>>, vector<1x4x256xf32>
    %3 = vector.shape_cast %2 : vector<1x4x256xf32> to vector<4x256xf32>
    %cst = arith.constant 0.000000e+00 : f32
    %4 = vector.broadcast %cst : f32 to vector<16x64xf32>
    %c0_5 = arith.constant 0 : index
    %c0_6 = arith.constant 0 : index
    %c0_7 = arith.constant 0 : index
    %5 = vector.load %arg3[%c0_5, %c0_6, %c0_7] : memref<9x256x64xf32, #tpu.memory_space<vmem>>, vector<1x256x64xf32>
    %6 = vector.shape_cast %5 : vector<1x256x64xf32> to vector<256x64xf32>
    %cst_8 = arith.constant dense<0.000000e+00> : vector<4x64xf32>
    %7 = tpu.matmul %1, %6, %cst_8 {dimension_numbers = #tpu.dot_dimension_numbers<[1], [0], [0], [1], [0, 0, 1, 1], [], []>} : vector<4x256xf32>, vector<256x64xf32>, vector<4x64xf32> -> vector<4x64xf32>
    %c0_9 = arith.constant 0 : index
    %c0_10 = arith.constant 0 : index
    %c0_11 = arith.constant 0 : index
    %8 = vector.load %arg6[%c0_9, %c0_10, %c0_11] : memref<9x16x4xf32, #tpu.memory_space<vmem>>, vector<1x16x4xf32>
    %9 = vector.shape_cast %8 : vector<1x16x4xf32> to vector<16x4xf32>
    %cst_12 = arith.constant dense<0.000000e+00> : vector<16x64xf32>
    %10 = tpu.matmul %9, %7, %cst_12 {dimension_numbers = #tpu.dot_dimension_numbers<[1], [0], [0], [1], [0, 0, 1, 1], [], []>} : vector<16x4xf32>, vector<4x64xf32>, vector<16x64xf32> -> vector<16x64xf32>
    %11 = arith.addf %4, %10 : vector<16x64xf32>
    %c1 = arith.constant 1 : index
    %c0_13 = arith.constant 0 : index
    %c0_14 = arith.constant 0 : index
    %12 = vector.load %arg3[%c1, %c0_13, %c0_14] : memref<9x256x64xf32, #tpu.memory_space<vmem>>, vector<1x256x64xf32>
    %13 = vector.shape_cast %12 : vector<1x256x64xf32> to vector<256x64xf32>
    %cst_15 = arith.constant dense<0.000000e+00> : vector<4x64xf32>
    %14 = tpu.matmul %1, %13, %cst_15 {dimension_numbers = #tpu.dot_dimension_numbers<[1], [0], [0], [1], [0, 0, 1, 1], [], []>} : vector<4x256xf32>, vector<256x64xf32>, vector<4x64xf32> -> vector<4x64xf32>
    %c1_16 = arith.constant 1 : index
    %c0_17 = arith.constant 0 : index
    %c0_18 = arith.constant 0 : index
    %15 = vector.load %arg6[%c1_16, %c0_17, %c0_18] : memref<9x16x4xf32, #tpu.memory_space<vmem>>, vector<1x16x4xf32>
    %16 = vector.shape_cast %15 : vector<1x16x4xf32> to vector<16x4xf32>
    %cst_19 = arith.constant dense<0.000000e+00> : vector<16x64xf32>
    %17 = tpu.matmul %16, %14, %cst_19 {dimension_numbers = #tpu.dot_dimension_numbers<[1], [0], [0], [1], [0, 0, 1, 1], [], []>} : vector<16x4xf32>, vector<4x64xf32>, vector<16x64xf32> -> vector<16x64xf32>
    %18 = arith.addf %11, %17 : vector<16x64xf32>
    %c2 = arith.constant 2 : index
    %c0_20 = arith.constant 0 : index
    %c0_21 = arith.constant 0 : index
    %19 = vector.load %arg3[%c2, %c0_20, %c0_21] : memref<9x256x64xf32, #tpu.memory_space<vmem>>, vector<1x256x64xf32>
    %20 = vector.shape_cast %19 : vector<1x256x64xf32> to vector<256x64xf32>
    %cst_22 = arith.constant dense<0.000000e+00> : vector<4x64xf32>
    %21 = tpu.matmul %1, %20, %cst_22 {dimension_numbers = #tpu.dot_dimension_numbers<[1], [0], [0], [1], [0, 0, 1, 1], [], []>} : vector<4x256xf32>, vector<256x64xf32>, vector<4x64xf32> -> vector<4x64xf32>
    %c2_23 = arith.constant 2 : index
    %c0_24 = arith.constant 0 : index
    %c0_25 = arith.constant 0 : index
    %22 = vector.load %arg6[%c2_23, %c0_24, %c0_25] : memref<9x16x4xf32, #tpu.memory_space<vmem>>, vector<1x16x4xf32>
    %23 = vector.shape_cast %22 : vector<1x16x4xf32> to vector<16x4xf32>
    %cst_26 = arith.constant dense<0.000000e+00> : vector<16x64xf32>
    %24 = tpu.matmul %23, %21, %cst_26 {dimension_numbers = #tpu.dot_dimension_numbers<[1], [0], [0], [1], [0, 0, 1, 1], [], []>} : vector<16x4xf32>, vector<4x64xf32>, vector<16x64xf32> -> vector<16x64xf32>
    %25 = arith.addf %18, %24 : vector<16x64xf32>
    %c3 = arith.constant 3 : index
    %c0_27 = arith.constant 0 : index
    %c0_28 = arith.constant 0 : index
    %26 = vector.load %arg3[%c3, %c0_27, %c0_28] : memref<9x256x64xf32, #tpu.memory_space<vmem>>, vector<1x256x64xf32>
    %27 = vector.shape_cast %26 : vector<1x256x64xf32> to vector<256x64xf32>
    %cst_29 = arith.constant dense<0.000000e+00> : vector<4x64xf32>
    %28 = tpu.matmul %1, %27, %cst_29 {dimension_numbers = #tpu.dot_dimension_numbers<[1], [0], [0], [1], [0, 0, 1, 1], [], []>} : vector<4x256xf32>, vector<256x64xf32>, vector<4x64xf32> -> vector<4x64xf32>
    %c3_30 = arith.constant 3 : index
    %c0_31 = arith.constant 0 : index
    %c0_32 = arith.constant 0 : index
    %29 = vector.load %arg6[%c3_30, %c0_31, %c0_32] : memref<9x16x4xf32, #tpu.memory_space<vmem>>, vector<1x16x4xf32>
    %30 = vector.shape_cast %29 : vector<1x16x4xf32> to vector<16x4xf32>
    %cst_33 = arith.constant dense<0.000000e+00> : vector<16x64xf32>
    %31 = tpu.matmul %30, %28, %cst_33 {dimension_numbers = #tpu.dot_dimension_numbers<[1], [0], [0], [1], [0, 0, 1, 1], [], []>} : vector<16x4xf32>, vector<4x64xf32>, vector<16x64xf32> -> vector<16x64xf32>
    %32 = arith.addf %25, %31 : vector<16x64xf32>
    %c4 = arith.constant 4 : index
    %c0_34 = arith.constant 0 : index
    %c0_35 = arith.constant 0 : index
    %33 = vector.load %arg3[%c4, %c0_34, %c0_35] : memref<9x256x64xf32, #tpu.memory_space<vmem>>, vector<1x256x64xf32>
    %34 = vector.shape_cast %33 : vector<1x256x64xf32> to vector<256x64xf32>
    %cst_36 = arith.constant dense<0.000000e+00> : vector<4x64xf32>
    %35 = tpu.matmul %1, %34, %cst_36 {dimension_numbers = #tpu.dot_dimension_numbers<[1], [0], [0], [1], [0, 0, 1, 1], [], []>} : vector<4x256xf32>, vector<256x64xf32>, vector<4x64xf32> -> vector<4x64xf32>
    %c4_37 = arith.constant 4 : index
    %c0_38 = arith.constant 0 : index
    %c0_39 = arith.constant 0 : index
    %36 = vector.load %arg6[%c4_37, %c0_38, %c0_39] : memref<9x16x4xf32, #tpu.memory_space<vmem>>, vector<1x16x4xf32>
    %37 = vector.shape_cast %36 : vector<1x16x4xf32> to vector<16x4xf32>
    %cst_40 = arith.constant dense<0.000000e+00> : vector<16x64xf32>
    %38 = tpu.matmul %37, %35, %cst_40 {dimension_numbers = #tpu.dot_dimension_numbers<[1], [0], [0], [1], [0, 0, 1, 1], [], []>} : vector<16x4xf32>, vector<4x64xf32>, vector<16x64xf32> -> vector<16x64xf32>
    %39 = arith.addf %32, %38 : vector<16x64xf32>
    %c5 = arith.constant 5 : index
    %c0_41 = arith.constant 0 : index
    %c0_42 = arith.constant 0 : index
    %40 = vector.load %arg3[%c5, %c0_41, %c0_42] : memref<9x256x64xf32, #tpu.memory_space<vmem>>, vector<1x256x64xf32>
    %41 = vector.shape_cast %40 : vector<1x256x64xf32> to vector<256x64xf32>
    %cst_43 = arith.constant dense<0.000000e+00> : vector<4x64xf32>
    %42 = tpu.matmul %1, %41, %cst_43 {dimension_numbers = #tpu.dot_dimension_numbers<[1], [0], [0], [1], [0, 0, 1, 1], [], []>} : vector<4x256xf32>, vector<256x64xf32>, vector<4x64xf32> -> vector<4x64xf32>
    %c5_44 = arith.constant 5 : index
    %c0_45 = arith.constant 0 : index
    %c0_46 = arith.constant 0 : index
    %43 = vector.load %arg6[%c5_44, %c0_45, %c0_46] : memref<9x16x4xf32, #tpu.memory_space<vmem>>, vector<1x16x4xf32>
    %44 = vector.shape_cast %43 : vector<1x16x4xf32> to vector<16x4xf32>
    %cst_47 = arith.constant dense<0.000000e+00> : vector<16x64xf32>
    %45 = tpu.matmul %44, %42, %cst_47 {dimension_numbers = #tpu.dot_dimension_numbers<[1], [0], [0], [1], [0, 0, 1, 1], [], []>} : vector<16x4xf32>, vector<4x64xf32>, vector<16x64xf32> -> vector<16x64xf32>
    %46 = arith.addf %39, %45 : vector<16x64xf32>
    %c6 = arith.constant 6 : index
    %c0_48 = arith.constant 0 : index
    %c0_49 = arith.constant 0 : index
    %47 = vector.load %arg3[%c6, %c0_48, %c0_49] : memref<9x256x64xf32, #tpu.memory_space<vmem>>, vector<1x256x64xf32>
    %48 = vector.shape_cast %47 : vector<1x256x64xf32> to vector<256x64xf32>
    %cst_50 = arith.constant dense<0.000000e+00> : vector<4x64xf32>
    %49 = tpu.matmul %1, %48, %cst_50 {dimension_numbers = #tpu.dot_dimension_numbers<[1], [0], [0], [1], [0, 0, 1, 1], [], []>} : vector<4x256xf32>, vector<256x64xf32>, vector<4x64xf32> -> vector<4x64xf32>
    %c6_51 = arith.constant 6 : index
    %c0_52 = arith.constant 0 : index
    %c0_53 = arith.constant 0 : index
    %50 = vector.load %arg6[%c6_51, %c0_52, %c0_53] : memref<9x16x4xf32, #tpu.memory_space<vmem>>, vector<1x16x4xf32>
    %51 = vector.shape_cast %50 : vector<1x16x4xf32> to vector<16x4xf32>
    %cst_54 = arith.constant dense<0.000000e+00> : vector<16x64xf32>
    %52 = tpu.matmul %51, %49, %cst_54 {dimension_numbers = #tpu.dot_dimension_numbers<[1], [0], [0], [1], [0, 0, 1, 1], [], []>} : vector<16x4xf32>, vector<4x64xf32>, vector<16x64xf32> -> vector<16x64xf32>
    %53 = arith.addf %46, %52 : vector<16x64xf32>
    %c7 = arith.constant 7 : index
    %c0_55 = arith.constant 0 : index
    %c0_56 = arith.constant 0 : index
    %54 = vector.load %arg3[%c7, %c0_55, %c0_56] : memref<9x256x64xf32, #tpu.memory_space<vmem>>, vector<1x256x64xf32>
    %55 = vector.shape_cast %54 : vector<1x256x64xf32> to vector<256x64xf32>
    %cst_57 = arith.constant dense<0.000000e+00> : vector<4x64xf32>
    %56 = tpu.matmul %1, %55, %cst_57 {dimension_numbers = #tpu.dot_dimension_numbers<[1], [0], [0], [1], [0, 0, 1, 1], [], []>} : vector<4x256xf32>, vector<256x64xf32>, vector<4x64xf32> -> vector<4x64xf32>
    %c7_58 = arith.constant 7 : index
    %c0_59 = arith.constant 0 : index
    %c0_60 = arith.constant 0 : index
    %57 = vector.load %arg6[%c7_58, %c0_59, %c0_60] : memref<9x16x4xf32, #tpu.memory_space<vmem>>, vector<1x16x4xf32>
    %58 = vector.shape_cast %57 : vector<1x16x4xf32> to vector<16x4xf32>
    %cst_61 = arith.constant dense<0.000000e+00> : vector<16x64xf32>
    %59 = tpu.matmul %58, %56, %cst_61 {dimension_numbers = #tpu.dot_dimension_numbers<[1], [0], [0], [1], [0, 0, 1, 1], [], []>} : vector<16x4xf32>, vector<4x64xf32>, vector<16x64xf32> -> vector<16x64xf32>
    %60 = arith.addf %53, %59 : vector<16x64xf32>
    %c8 = arith.constant 8 : index
    %c0_62 = arith.constant 0 : index
    %c0_63 = arith.constant 0 : index
    %61 = vector.load %arg3[%c8, %c0_62, %c0_63] : memref<9x256x64xf32, #tpu.memory_space<vmem>>, vector<1x256x64xf32>
    %62 = vector.shape_cast %61 : vector<1x256x64xf32> to vector<256x64xf32>
    %cst_64 = arith.constant dense<0.000000e+00> : vector<4x64xf32>
    %63 = tpu.matmul %1, %62, %cst_64 {dimension_numbers = #tpu.dot_dimension_numbers<[1], [0], [0], [1], [0, 0, 1, 1], [], []>} : vector<4x256xf32>, vector<256x64xf32>, vector<4x64xf32> -> vector<4x64xf32>
    %c8_65 = arith.constant 8 : index
    %c0_66 = arith.constant 0 : index
    %c0_67 = arith.constant 0 : index
    %64 = vector.load %arg6[%c8_65, %c0_66, %c0_67] : memref<9x16x4xf32, #tpu.memory_space<vmem>>, vector<1x16x4xf32>
    %65 = vector.shape_cast %64 : vector<1x16x4xf32> to vector<16x4xf32>
    %cst_68 = arith.constant dense<0.000000e+00> : vector<16x64xf32>
    %66 = tpu.matmul %65, %63, %cst_68 {dimension_numbers = #tpu.dot_dimension_numbers<[1], [0], [0], [1], [0, 0, 1, 1], [], []>} : vector<16x4xf32>, vector<4x64xf32>, vector<16x64xf32> -> vector<16x64xf32>
    %67 = arith.addf %60, %66 : vector<16x64xf32>
    %c0_69 = arith.constant 0 : index
    %c0_70 = arith.constant 0 : index
    %68 = vector.load %arg7[%c0_69, %c0_70] : memref<16x1xf32, #tpu.memory_space<vmem>>, vector<16x1xf32>
    %69 = vector.broadcast %68 : vector<16x1xf32> to vector<16x64xf32>
    %70 = arith.addf %67, %69 : vector<16x64xf32>
    %cst_71 = arith.constant 0.000000e+00 : f32
    %71 = vector.broadcast %cst_71 : f32 to vector<16x64xf32>
    %72 = arith.maximumf %70, %71 : vector<16x64xf32>
    %c0_72 = arith.constant 0 : index
    %c0_73 = arith.constant 0 : index
    %73 = memref.load %arg19[%c0_72, %c0_73] : memref<1x1xf32, #tpu.memory_space<smem>>
    %c0_74 = arith.constant 0 : index
    %c0_75 = arith.constant 0 : index
    %74 = vector.load %arg15[%c0_74, %c0_75] : memref<16x16xf32, #tpu.memory_space<vmem>>, vector<16x16xf32>
    %cst_76 = arith.constant dense<0.000000e+00> : vector<16x64xf32>
    %75 = tpu.matmul %74, %72, %cst_76 {dimension_numbers = #tpu.dot_dimension_numbers<[1], [0], [0], [1], [0, 0, 1, 1], [], []>} : vector<16x16xf32>, vector<16x64xf32>, vector<16x64xf32> -> vector<16x64xf32>
    %c0_77 = arith.constant 0 : index
    %c0_78 = arith.constant 0 : index
    %76 = vector.load %arg16[%c0_77, %c0_78] : memref<16x1xf32, #tpu.memory_space<vmem>>, vector<16x1xf32>
    %77 = vector.broadcast %76 : vector<16x1xf32> to vector<16x64xf32>
    %78 = arith.addf %75, %77 : vector<16x64xf32>
    %79 = vector.extract_strided_slice %78 {offsets = [0, 0], sizes = [8, 64], strides = [1, 1]} : vector<16x64xf32> to vector<8x64xf32>
    %80 = vector.extract_strided_slice %78 {offsets = [8, 0], sizes = [8, 64], strides = [1, 1]} : vector<16x64xf32> to vector<8x64xf32>
    %cst_79 = arith.constant dense<0.000000e+00> : vector<64x64xf32>
    %81 = tpu.matmul %79, %80, %cst_79 {dimension_numbers = #tpu.dot_dimension_numbers<[0], [0], [1], [1], [0, 1, 1, 1], [], []>} : vector<8x64xf32>, vector<8x64xf32>, vector<64x64xf32> -> vector<64x64xf32>
    %cst_80 = arith.constant dense<0xFF800000> : vector<64xf32>
    %82 = vector.multi_reduction <maximumf>, %81, %cst_80 [1] : vector<64x64xf32> to vector<64xf32>
    %83 = vector.shape_cast %82 : vector<64xf32> to vector<64x1xf32>
    %84 = vector.broadcast %83 : vector<64x1xf32> to vector<64x64xf32>
    %85 = arith.subf %81, %84 : vector<64x64xf32>
    %86 = math.exp %85 : vector<64x64xf32>
    %cst_81 = arith.constant dense<0.000000e+00> : vector<64xf32>
    %87 = vector.multi_reduction <add>, %86, %cst_81 [1] : vector<64x64xf32> to vector<64xf32>
    %88 = vector.shape_cast %87 : vector<64xf32> to vector<64x1xf32>
    %89 = vector.broadcast %88 : vector<64x1xf32> to vector<64x64xf32>
    %90 = arith.divf %86, %89 : vector<64x64xf32>
    %c0_82 = arith.constant 0 : index
    %c0_83 = arith.constant 0 : index
    %91 = vector.load %arg17[%c0_82, %c0_83] : memref<16x16xf32, #tpu.memory_space<vmem>>, vector<16x16xf32>
    %cst_84 = arith.constant dense<0.000000e+00> : vector<16x64xf32>
    %92 = tpu.matmul %91, %72, %cst_84 {dimension_numbers = #tpu.dot_dimension_numbers<[1], [0], [0], [1], [0, 0, 1, 1], [], []>} : vector<16x16xf32>, vector<16x64xf32>, vector<16x64xf32> -> vector<16x64xf32>
    %c0_85 = arith.constant 0 : index
    %c0_86 = arith.constant 0 : index
    %93 = vector.load %arg18[%c0_85, %c0_86] : memref<16x1xf32, #tpu.memory_space<vmem>>, vector<16x1xf32>
    %94 = vector.broadcast %93 : vector<16x1xf32> to vector<16x64xf32>
    %95 = arith.addf %92, %94 : vector<16x64xf32>
    %cst_87 = arith.constant dense<0.000000e+00> : vector<16x64xf32>
    %96 = tpu.matmul %95, %90, %cst_87 {dimension_numbers = #tpu.dot_dimension_numbers<[1], [1], [0], [0], [0, 0, 1, 0], [], []>} : vector<16x64xf32>, vector<64x64xf32>, vector<16x64xf32> -> vector<16x64xf32>
    %97 = vector.broadcast %73 : f32 to vector<16x64xf32>
    %98 = arith.mulf %97, %96 : vector<16x64xf32>
    %99 = arith.addf %98, %72 : vector<16x64xf32>
    %cst_88 = arith.constant 0.000000e+00 : f32
    %100 = vector.broadcast %cst_88 : f32 to vector<4x256xf32>
    %c0_89 = arith.constant 0 : index
    %c0_90 = arith.constant 0 : index
    %c0_91 = arith.constant 0 : index
    %101 = vector.load %arg4[%c0_89, %c0_90, %c0_91] : memref<9x256x256xf32, #tpu.memory_space<vmem>>, vector<1x256x256xf32>
    %102 = vector.shape_cast %101 : vector<1x256x256xf32> to vector<256x256xf32>
    %cst_92 = arith.constant dense<0.000000e+00> : vector<4x256xf32>
    %103 = tpu.matmul %3, %102, %cst_92 {dimension_numbers = #tpu.dot_dimension_numbers<[1], [0], [0], [1], [0, 0, 1, 1], [], []>} : vector<4x256xf32>, vector<256x256xf32>, vector<4x256xf32> -> vector<4x256xf32>
    %c0_93 = arith.constant 0 : index
    %c0_94 = arith.constant 0 : index
    %c0_95 = arith.constant 0 : index
    %104 = vector.load %arg10[%c0_93, %c0_94, %c0_95] : memref<9x4x4xf32, #tpu.memory_space<vmem>>, vector<1x4x4xf32>
    %105 = vector.shape_cast %104 : vector<1x4x4xf32> to vector<4x4xf32>
    %cst_96 = arith.constant dense<0.000000e+00> : vector<4x256xf32>
    %106 = tpu.matmul %105, %103, %cst_96 {dimension_numbers = #tpu.dot_dimension_numbers<[1], [0], [0], [1], [0, 0, 1, 1], [], []>} : vector<4x4xf32>, vector<4x256xf32>, vector<4x256xf32> -> vector<4x256xf32>
    %107 = arith.addf %100, %106 : vector<4x256xf32>
    %c1_97 = arith.constant 1 : index
    %c0_98 = arith.constant 0 : index
    %c0_99 = arith.constant 0 : index
    %108 = vector.load %arg4[%c1_97, %c0_98, %c0_99] : memref<9x256x256xf32, #tpu.memory_space<vmem>>, vector<1x256x256xf32>
    %109 = vector.shape_cast %108 : vector<1x256x256xf32> to vector<256x256xf32>
    %cst_100 = arith.constant dense<0.000000e+00> : vector<4x256xf32>
    %110 = tpu.matmul %3, %109, %cst_100 {dimension_numbers = #tpu.dot_dimension_numbers<[1], [0], [0], [1], [0, 0, 1, 1], [], []>} : vector<4x256xf32>, vector<256x256xf32>, vector<4x256xf32> -> vector<4x256xf32>
    %c1_101 = arith.constant 1 : index
    %c0_102 = arith.constant 0 : index
    %c0_103 = arith.constant 0 : index
    %111 = vector.load %arg10[%c1_101, %c0_102, %c0_103] : memref<9x4x4xf32, #tpu.memory_space<vmem>>, vector<1x4x4xf32>
    %112 = vector.shape_cast %111 : vector<1x4x4xf32> to vector<4x4xf32>
    %cst_104 = arith.constant dense<0.000000e+00> : vector<4x256xf32>
    %113 = tpu.matmul %112, %110, %cst_104 {dimension_numbers = #tpu.dot_dimension_numbers<[1], [0], [0], [1], [0, 0, 1, 1], [], []>} : vector<4x4xf32>, vector<4x256xf32>, vector<4x256xf32> -> vector<4x256xf32>
    %114 = arith.addf %107, %113 : vector<4x256xf32>
    %c2_105 = arith.constant 2 : index
    %c0_106 = arith.constant 0 : index
    %c0_107 = arith.constant 0 : index
    %115 = vector.load %arg4[%c2_105, %c0_106, %c0_107] : memref<9x256x256xf32, #tpu.memory_space<vmem>>, vector<1x256x256xf32>
    %116 = vector.shape_cast %115 : vector<1x256x256xf32> to vector<256x256xf32>
    %cst_108 = arith.constant dense<0.000000e+00> : vector<4x256xf32>
    %117 = tpu.matmul %3, %116, %cst_108 {dimension_numbers = #tpu.dot_dimension_numbers<[1], [0], [0], [1], [0, 0, 1, 1], [], []>} : vector<4x256xf32>, vector<256x256xf32>, vector<4x256xf32> -> vector<4x256xf32>
    %c2_109 = arith.constant 2 : index
    %c0_110 = arith.constant 0 : index
    %c0_111 = arith.constant 0 : index
    %118 = vector.load %arg10[%c2_109, %c0_110, %c0_111] : memref<9x4x4xf32, #tpu.memory_space<vmem>>, vector<1x4x4xf32>
    %119 = vector.shape_cast %118 : vector<1x4x4xf32> to vector<4x4xf32>
    %cst_112 = arith.constant dense<0.000000e+00> : vector<4x256xf32>
    %120 = tpu.matmul %119, %117, %cst_112 {dimension_numbers = #tpu.dot_dimension_numbers<[1], [0], [0], [1], [0, 0, 1, 1], [], []>} : vector<4x4xf32>, vector<4x256xf32>, vector<4x256xf32> -> vector<4x256xf32>
    %121 = arith.addf %114, %120 : vector<4x256xf32>
    %c3_113 = arith.constant 3 : index
    %c0_114 = arith.constant 0 : index
    %c0_115 = arith.constant 0 : index
    %122 = vector.load %arg4[%c3_113, %c0_114, %c0_115] : memref<9x256x256xf32, #tpu.memory_space<vmem>>, vector<1x256x256xf32>
    %123 = vector.shape_cast %122 : vector<1x256x256xf32> to vector<256x256xf32>
    %cst_116 = arith.constant dense<0.000000e+00> : vector<4x256xf32>
    %124 = tpu.matmul %3, %123, %cst_116 {dimension_numbers = #tpu.dot_dimension_numbers<[1], [0], [0], [1], [0, 0, 1, 1], [], []>} : vector<4x256xf32>, vector<256x256xf32>, vector<4x256xf32> -> vector<4x256xf32>
    %c3_117 = arith.constant 3 : index
    %c0_118 = arith.constant 0 : index
    %c0_119 = arith.constant 0 : index
    %125 = vector.load %arg10[%c3_117, %c0_118, %c0_119] : memref<9x4x4xf32, #tpu.memory_space<vmem>>, vector<1x4x4xf32>
    %126 = vector.shape_cast %125 : vector<1x4x4xf32> to vector<4x4xf32>
    %cst_120 = arith.constant dense<0.000000e+00> : vector<4x256xf32>
    %127 = tpu.matmul %126, %124, %cst_120 {dimension_numbers = #tpu.dot_dimension_numbers<[1], [0], [0], [1], [0, 0, 1, 1], [], []>} : vector<4x4xf32>, vector<4x256xf32>, vector<4x256xf32> -> vector<4x256xf32>
    %128 = arith.addf %121, %127 : vector<4x256xf32>
    %c4_121 = arith.constant 4 : index
    %c0_122 = arith.constant 0 : index
    %c0_123 = arith.constant 0 : index
    %129 = vector.load %arg4[%c4_121, %c0_122, %c0_123] : memref<9x256x256xf32, #tpu.memory_space<vmem>>, vector<1x256x256xf32>
    %130 = vector.shape_cast %129 : vector<1x256x256xf32> to vector<256x256xf32>
    %cst_124 = arith.constant dense<0.000000e+00> : vector<4x256xf32>
    %131 = tpu.matmul %3, %130, %cst_124 {dimension_numbers = #tpu.dot_dimension_numbers<[1], [0], [0], [1], [0, 0, 1, 1], [], []>} : vector<4x256xf32>, vector<256x256xf32>, vector<4x256xf32> -> vector<4x256xf32>
    %c4_125 = arith.constant 4 : index
    %c0_126 = arith.constant 0 : index
    %c0_127 = arith.constant 0 : index
    %132 = vector.load %arg10[%c4_125, %c0_126, %c0_127] : memref<9x4x4xf32, #tpu.memory_space<vmem>>, vector<1x4x4xf32>
    %133 = vector.shape_cast %132 : vector<1x4x4xf32> to vector<4x4xf32>
    %cst_128 = arith.constant dense<0.000000e+00> : vector<4x256xf32>
    %134 = tpu.matmul %133, %131, %cst_128 {dimension_numbers = #tpu.dot_dimension_numbers<[1], [0], [0], [1], [0, 0, 1, 1], [], []>} : vector<4x4xf32>, vector<4x256xf32>, vector<4x256xf32> -> vector<4x256xf32>
    %135 = arith.addf %128, %134 : vector<4x256xf32>
    %c5_129 = arith.constant 5 : index
    %c0_130 = arith.constant 0 : index
    %c0_131 = arith.constant 0 : index
    %136 = vector.load %arg4[%c5_129, %c0_130, %c0_131] : memref<9x256x256xf32, #tpu.memory_space<vmem>>, vector<1x256x256xf32>
    %137 = vector.shape_cast %136 : vector<1x256x256xf32> to vector<256x256xf32>
    %cst_132 = arith.constant dense<0.000000e+00> : vector<4x256xf32>
    %138 = tpu.matmul %3, %137, %cst_132 {dimension_numbers = #tpu.dot_dimension_numbers<[1], [0], [0], [1], [0, 0, 1, 1], [], []>} : vector<4x256xf32>, vector<256x256xf32>, vector<4x256xf32> -> vector<4x256xf32>
    %c5_133 = arith.constant 5 : index
    %c0_134 = arith.constant 0 : index
    %c0_135 = arith.constant 0 : index
    %139 = vector.load %arg10[%c5_133, %c0_134, %c0_135] : memref<9x4x4xf32, #tpu.memory_space<vmem>>, vector<1x4x4xf32>
    %140 = vector.shape_cast %139 : vector<1x4x4xf32> to vector<4x4xf32>
    %cst_136 = arith.constant dense<0.000000e+00> : vector<4x256xf32>
    %141 = tpu.matmul %140, %138, %cst_136 {dimension_numbers = #tpu.dot_dimension_numbers<[1], [0], [0], [1], [0, 0, 1, 1], [], []>} : vector<4x4xf32>, vector<4x256xf32>, vector<4x256xf32> -> vector<4x256xf32>
    %142 = arith.addf %135, %141 : vector<4x256xf32>
    %c6_137 = arith.constant 6 : index
    %c0_138 = arith.constant 0 : index
    %c0_139 = arith.constant 0 : index
    %143 = vector.load %arg4[%c6_137, %c0_138, %c0_139] : memref<9x256x256xf32, #tpu.memory_space<vmem>>, vector<1x256x256xf32>
    %144 = vector.shape_cast %143 : vector<1x256x256xf32> to vector<256x256xf32>
    %cst_140 = arith.constant dense<0.000000e+00> : vector<4x256xf32>
    %145 = tpu.matmul %3, %144, %cst_140 {dimension_numbers = #tpu.dot_dimension_numbers<[1], [0], [0], [1], [0, 0, 1, 1], [], []>} : vector<4x256xf32>, vector<256x256xf32>, vector<4x256xf32> -> vector<4x256xf32>
    %c6_141 = arith.constant 6 : index
    %c0_142 = arith.constant 0 : index
    %c0_143 = arith.constant 0 : index
    %146 = vector.load %arg10[%c6_141, %c0_142, %c0_143] : memref<9x4x4xf32, #tpu.memory_space<vmem>>, vector<1x4x4xf32>
    %147 = vector.shape_cast %146 : vector<1x4x4xf32> to vector<4x4xf32>
    %cst_144 = arith.constant dense<0.000000e+00> : vector<4x256xf32>
    %148 = tpu.matmul %147, %145, %cst_144 {dimension_numbers = #tpu.dot_dimension_numbers<[1], [0], [0], [1], [0, 0, 1, 1], [], []>} : vector<4x4xf32>, vector<4x256xf32>, vector<4x256xf32> -> vector<4x256xf32>
    %149 = arith.addf %142, %148 : vector<4x256xf32>
    %c7_145 = arith.constant 7 : index
    %c0_146 = arith.constant 0 : index
    %c0_147 = arith.constant 0 : index
    %150 = vector.load %arg4[%c7_145, %c0_146, %c0_147] : memref<9x256x256xf32, #tpu.memory_space<vmem>>, vector<1x256x256xf32>
    %151 = vector.shape_cast %150 : vector<1x256x256xf32> to vector<256x256xf32>
    %cst_148 = arith.constant dense<0.000000e+00> : vector<4x256xf32>
    %152 = tpu.matmul %3, %151, %cst_148 {dimension_numbers = #tpu.dot_dimension_numbers<[1], [0], [0], [1], [0, 0, 1, 1], [], []>} : vector<4x256xf32>, vector<256x256xf32>, vector<4x256xf32> -> vector<4x256xf32>
    %c7_149 = arith.constant 7 : index
    %c0_150 = arith.constant 0 : index
    %c0_151 = arith.constant 0 : index
    %153 = vector.load %arg10[%c7_149, %c0_150, %c0_151] : memref<9x4x4xf32, #tpu.memory_space<vmem>>, vector<1x4x4xf32>
    %154 = vector.shape_cast %153 : vector<1x4x4xf32> to vector<4x4xf32>
    %cst_152 = arith.constant dense<0.000000e+00> : vector<4x256xf32>
    %155 = tpu.matmul %154, %152, %cst_152 {dimension_numbers = #tpu.dot_dimension_numbers<[1], [0], [0], [1], [0, 0, 1, 1], [], []>} : vector<4x4xf32>, vector<4x256xf32>, vector<4x256xf32> -> vector<4x256xf32>
    %156 = arith.addf %149, %155 : vector<4x256xf32>
    %c8_153 = arith.constant 8 : index
    %c0_154 = arith.constant 0 : index
    %c0_155 = arith.constant 0 : index
    %157 = vector.load %arg4[%c8_153, %c0_154, %c0_155] : memref<9x256x256xf32, #tpu.memory_space<vmem>>, vector<1x256x256xf32>
    %158 = vector.shape_cast %157 : vector<1x256x256xf32> to vector<256x256xf32>
    %cst_156 = arith.constant dense<0.000000e+00> : vector<4x256xf32>
    %159 = tpu.matmul %3, %158, %cst_156 {dimension_numbers = #tpu.dot_dimension_numbers<[1], [0], [0], [1], [0, 0, 1, 1], [], []>} : vector<4x256xf32>, vector<256x256xf32>, vector<4x256xf32> -> vector<4x256xf32>
    %c8_157 = arith.constant 8 : index
    %c0_158 = arith.constant 0 : index
    %c0_159 = arith.constant 0 : index
    %160 = vector.load %arg10[%c8_157, %c0_158, %c0_159] : memref<9x4x4xf32, #tpu.memory_space<vmem>>, vector<1x4x4xf32>
    %161 = vector.shape_cast %160 : vector<1x4x4xf32> to vector<4x4xf32>
    %cst_160 = arith.constant dense<0.000000e+00> : vector<4x256xf32>
    %162 = tpu.matmul %161, %159, %cst_160 {dimension_numbers = #tpu.dot_dimension_numbers<[1], [0], [0], [1], [0, 0, 1, 1], [], []>} : vector<4x4xf32>, vector<4x256xf32>, vector<4x256xf32> -> vector<4x256xf32>
    %163 = arith.addf %156, %162 : vector<4x256xf32>
    %c0_161 = arith.constant 0 : index
    %c0_162 = arith.constant 0 : index
    %164 = vector.load %arg11[%c0_161, %c0_162] : memref<4x1xf32, #tpu.memory_space<vmem>>, vector<4x1xf32>
    %165 = vector.broadcast %164 : vector<4x1xf32> to vector<4x256xf32>
    %166 = arith.addf %163, %165 : vector<4x256xf32>
    %cst_163 = arith.constant 0.000000e+00 : f32
    %167 = vector.broadcast %cst_163 : f32 to vector<4x256xf32>
    %168 = arith.maximumf %166, %167 : vector<4x256xf32>
    %cst_164 = arith.constant 0.000000e+00 : f32
    %169 = vector.broadcast %cst_164 : f32 to vector<16x64xf32>
    %c0_165 = arith.constant 0 : index
    %c0_166 = arith.constant 0 : index
    %c0_167 = arith.constant 0 : index
    %170 = vector.load %arg3[%c0_165, %c0_166, %c0_167] : memref<9x256x64xf32, #tpu.memory_space<vmem>>, vector<1x256x64xf32>
    %171 = vector.shape_cast %170 : vector<1x256x64xf32> to vector<256x64xf32>
    %cst_168 = arith.constant dense<0.000000e+00> : vector<4x64xf32>
    %172 = tpu.matmul %168, %171, %cst_168 {dimension_numbers = #tpu.dot_dimension_numbers<[1], [0], [0], [1], [0, 0, 1, 1], [], []>} : vector<4x256xf32>, vector<256x64xf32>, vector<4x64xf32> -> vector<4x64xf32>
    %c0_169 = arith.constant 0 : index
    %c0_170 = arith.constant 0 : index
    %c0_171 = arith.constant 0 : index
    %173 = vector.load %arg8[%c0_169, %c0_170, %c0_171] : memref<9x16x4xf32, #tpu.memory_space<vmem>>, vector<1x16x4xf32>
    %174 = vector.shape_cast %173 : vector<1x16x4xf32> to vector<16x4xf32>
    %cst_172 = arith.constant dense<0.000000e+00> : vector<16x64xf32>
    %175 = tpu.matmul %174, %172, %cst_172 {dimension_numbers = #tpu.dot_dimension_numbers<[1], [0], [0], [1], [0, 0, 1, 1], [], []>} : vector<16x4xf32>, vector<4x64xf32>, vector<16x64xf32> -> vector<16x64xf32>
    %176 = arith.addf %169, %175 : vector<16x64xf32>
    %c1_173 = arith.constant 1 : index
    %c0_174 = arith.constant 0 : index
    %c0_175 = arith.constant 0 : index
    %177 = vector.load %arg3[%c1_173, %c0_174, %c0_175] : memref<9x256x64xf32, #tpu.memory_space<vmem>>, vector<1x256x64xf32>
    %178 = vector.shape_cast %177 : vector<1x256x64xf32> to vector<256x64xf32>
    %cst_176 = arith.constant dense<0.000000e+00> : vector<4x64xf32>
    %179 = tpu.matmul %168, %178, %cst_176 {dimension_numbers = #tpu.dot_dimension_numbers<[1], [0], [0], [1], [0, 0, 1, 1], [], []>} : vector<4x256xf32>, vector<256x64xf32>, vector<4x64xf32> -> vector<4x64xf32>
    %c1_177 = arith.constant 1 : index
    %c0_178 = arith.constant 0 : index
    %c0_179 = arith.constant 0 : index
    %180 = vector.load %arg8[%c1_177, %c0_178, %c0_179] : memref<9x16x4xf32, #tpu.memory_space<vmem>>, vector<1x16x4xf32>
    %181 = vector.shape_cast %180 : vector<1x16x4xf32> to vector<16x4xf32>
    %cst_180 = arith.constant dense<0.000000e+00> : vector<16x64xf32>
    %182 = tpu.matmul %181, %179, %cst_180 {dimension_numbers = #tpu.dot_dimension_numbers<[1], [0], [0], [1], [0, 0, 1, 1], [], []>} : vector<16x4xf32>, vector<4x64xf32>, vector<16x64xf32> -> vector<16x64xf32>
    %183 = arith.addf %176, %182 : vector<16x64xf32>
    %c2_181 = arith.constant 2 : index
    %c0_182 = arith.constant 0 : index
    %c0_183 = arith.constant 0 : index
    %184 = vector.load %arg3[%c2_181, %c0_182, %c0_183] : memref<9x256x64xf32, #tpu.memory_space<vmem>>, vector<1x256x64xf32>
    %185 = vector.shape_cast %184 : vector<1x256x64xf32> to vector<256x64xf32>
    %cst_184 = arith.constant dense<0.000000e+00> : vector<4x64xf32>
    %186 = tpu.matmul %168, %185, %cst_184 {dimension_numbers = #tpu.dot_dimension_numbers<[1], [0], [0], [1], [0, 0, 1, 1], [], []>} : vector<4x256xf32>, vector<256x64xf32>, vector<4x64xf32> -> vector<4x64xf32>
    %c2_185 = arith.constant 2 : index
    %c0_186 = arith.constant 0 : index
    %c0_187 = arith.constant 0 : index
    %187 = vector.load %arg8[%c2_185, %c0_186, %c0_187] : memref<9x16x4xf32, #tpu.memory_space<vmem>>, vector<1x16x4xf32>
    %188 = vector.shape_cast %187 : vector<1x16x4xf32> to vector<16x4xf32>
    %cst_188 = arith.constant dense<0.000000e+00> : vector<16x64xf32>
    %189 = tpu.matmul %188, %186, %cst_188 {dimension_numbers = #tpu.dot_dimension_numbers<[1], [0], [0], [1], [0, 0, 1, 1], [], []>} : vector<16x4xf32>, vector<4x64xf32>, vector<16x64xf32> -> vector<16x64xf32>
    %190 = arith.addf %183, %189 : vector<16x64xf32>
    %c3_189 = arith.constant 3 : index
    %c0_190 = arith.constant 0 : index
    %c0_191 = arith.constant 0 : index
    %191 = vector.load %arg3[%c3_189, %c0_190, %c0_191] : memref<9x256x64xf32, #tpu.memory_space<vmem>>, vector<1x256x64xf32>
    %192 = vector.shape_cast %191 : vector<1x256x64xf32> to vector<256x64xf32>
    %cst_192 = arith.constant dense<0.000000e+00> : vector<4x64xf32>
    %193 = tpu.matmul %168, %192, %cst_192 {dimension_numbers = #tpu.dot_dimension_numbers<[1], [0], [0], [1], [0, 0, 1, 1], [], []>} : vector<4x256xf32>, vector<256x64xf32>, vector<4x64xf32> -> vector<4x64xf32>
    %c3_193 = arith.constant 3 : index
    %c0_194 = arith.constant 0 : index
    %c0_195 = arith.constant 0 : index
    %194 = vector.load %arg8[%c3_193, %c0_194, %c0_195] : memref<9x16x4xf32, #tpu.memory_space<vmem>>, vector<1x16x4xf32>
    %195 = vector.shape_cast %194 : vector<1x16x4xf32> to vector<16x4xf32>
    %cst_196 = arith.constant dense<0.000000e+00> : vector<16x64xf32>
    %196 = tpu.matmul %195, %193, %cst_196 {dimension_numbers = #tpu.dot_dimension_numbers<[1], [0], [0], [1], [0, 0, 1, 1], [], []>} : vector<16x4xf32>, vector<4x64xf32>, vector<16x64xf32> -> vector<16x64xf32>
    %197 = arith.addf %190, %196 : vector<16x64xf32>
    %c4_197 = arith.constant 4 : index
    %c0_198 = arith.constant 0 : index
    %c0_199 = arith.constant 0 : index
    %198 = vector.load %arg3[%c4_197, %c0_198, %c0_199] : memref<9x256x64xf32, #tpu.memory_space<vmem>>, vector<1x256x64xf32>
    %199 = vector.shape_cast %198 : vector<1x256x64xf32> to vector<256x64xf32>
    %cst_200 = arith.constant dense<0.000000e+00> : vector<4x64xf32>
    %200 = tpu.matmul %168, %199, %cst_200 {dimension_numbers = #tpu.dot_dimension_numbers<[1], [0], [0], [1], [0, 0, 1, 1], [], []>} : vector<4x256xf32>, vector<256x64xf32>, vector<4x64xf32> -> vector<4x64xf32>
    %c4_201 = arith.constant 4 : index
    %c0_202 = arith.constant 0 : index
    %c0_203 = arith.constant 0 : index
    %201 = vector.load %arg8[%c4_201, %c0_202, %c0_203] : memref<9x16x4xf32, #tpu.memory_space<vmem>>, vector<1x16x4xf32>
    %202 = vector.shape_cast %201 : vector<1x16x4xf32> to vector<16x4xf32>
    %cst_204 = arith.constant dense<0.000000e+00> : vector<16x64xf32>
    %203 = tpu.matmul %202, %200, %cst_204 {dimension_numbers = #tpu.dot_dimension_numbers<[1], [0], [0], [1], [0, 0, 1, 1], [], []>} : vector<16x4xf32>, vector<4x64xf32>, vector<16x64xf32> -> vector<16x64xf32>
    %204 = arith.addf %197, %203 : vector<16x64xf32>
    %c5_205 = arith.constant 5 : index
    %c0_206 = arith.constant 0 : index
    %c0_207 = arith.constant 0 : index
    %205 = vector.load %arg3[%c5_205, %c0_206, %c0_207] : memref<9x256x64xf32, #tpu.memory_space<vmem>>, vector<1x256x64xf32>
    %206 = vector.shape_cast %205 : vector<1x256x64xf32> to vector<256x64xf32>
    %cst_208 = arith.constant dense<0.000000e+00> : vector<4x64xf32>
    %207 = tpu.matmul %168, %206, %cst_208 {dimension_numbers = #tpu.dot_dimension_numbers<[1], [0], [0], [1], [0, 0, 1, 1], [], []>} : vector<4x256xf32>, vector<256x64xf32>, vector<4x64xf32> -> vector<4x64xf32>
    %c5_209 = arith.constant 5 : index
    %c0_210 = arith.constant 0 : index
    %c0_211 = arith.constant 0 : index
    %208 = vector.load %arg8[%c5_209, %c0_210, %c0_211] : memref<9x16x4xf32, #tpu.memory_space<vmem>>, vector<1x16x4xf32>
    %209 = vector.shape_cast %208 : vector<1x16x4xf32> to vector<16x4xf32>
    %cst_212 = arith.constant dense<0.000000e+00> : vector<16x64xf32>
    %210 = tpu.matmul %209, %207, %cst_212 {dimension_numbers = #tpu.dot_dimension_numbers<[1], [0], [0], [1], [0, 0, 1, 1], [], []>} : vector<16x4xf32>, vector<4x64xf32>, vector<16x64xf32> -> vector<16x64xf32>
    %211 = arith.addf %204, %210 : vector<16x64xf32>
    %c6_213 = arith.constant 6 : index
    %c0_214 = arith.constant 0 : index
    %c0_215 = arith.constant 0 : index
    %212 = vector.load %arg3[%c6_213, %c0_214, %c0_215] : memref<9x256x64xf32, #tpu.memory_space<vmem>>, vector<1x256x64xf32>
    %213 = vector.shape_cast %212 : vector<1x256x64xf32> to vector<256x64xf32>
    %cst_216 = arith.constant dense<0.000000e+00> : vector<4x64xf32>
    %214 = tpu.matmul %168, %213, %cst_216 {dimension_numbers = #tpu.dot_dimension_numbers<[1], [0], [0], [1], [0, 0, 1, 1], [], []>} : vector<4x256xf32>, vector<256x64xf32>, vector<4x64xf32> -> vector<4x64xf32>
    %c6_217 = arith.constant 6 : index
    %c0_218 = arith.constant 0 : index
    %c0_219 = arith.constant 0 : index
    %215 = vector.load %arg8[%c6_217, %c0_218, %c0_219] : memref<9x16x4xf32, #tpu.memory_space<vmem>>, vector<1x16x4xf32>
    %216 = vector.shape_cast %215 : vector<1x16x4xf32> to vector<16x4xf32>
    %cst_220 = arith.constant dense<0.000000e+00> : vector<16x64xf32>
    %217 = tpu.matmul %216, %214, %cst_220 {dimension_numbers = #tpu.dot_dimension_numbers<[1], [0], [0], [1], [0, 0, 1, 1], [], []>} : vector<16x4xf32>, vector<4x64xf32>, vector<16x64xf32> -> vector<16x64xf32>
    %218 = arith.addf %211, %217 : vector<16x64xf32>
    %c7_221 = arith.constant 7 : index
    %c0_222 = arith.constant 0 : index
    %c0_223 = arith.constant 0 : index
    %219 = vector.load %arg3[%c7_221, %c0_222, %c0_223] : memref<9x256x64xf32, #tpu.memory_space<vmem>>, vector<1x256x64xf32>
    %220 = vector.shape_cast %219 : vector<1x256x64xf32> to vector<256x64xf32>
    %cst_224 = arith.constant dense<0.000000e+00> : vector<4x64xf32>
    %221 = tpu.matmul %168, %220, %cst_224 {dimension_numbers = #tpu.dot_dimension_numbers<[1], [0], [0], [1], [0, 0, 1, 1], [], []>} : vector<4x256xf32>, vector<256x64xf32>, vector<4x64xf32> -> vector<4x64xf32>
    %c7_225 = arith.constant 7 : index
    %c0_226 = arith.constant 0 : index
    %c0_227 = arith.constant 0 : index
    %222 = vector.load %arg8[%c7_225, %c0_226, %c0_227] : memref<9x16x4xf32, #tpu.memory_space<vmem>>, vector<1x16x4xf32>
    %223 = vector.shape_cast %222 : vector<1x16x4xf32> to vector<16x4xf32>
    %cst_228 = arith.constant dense<0.000000e+00> : vector<16x64xf32>
    %224 = tpu.matmul %223, %221, %cst_228 {dimension_numbers = #tpu.dot_dimension_numbers<[1], [0], [0], [1], [0, 0, 1, 1], [], []>} : vector<16x4xf32>, vector<4x64xf32>, vector<16x64xf32> -> vector<16x64xf32>
    %225 = arith.addf %218, %224 : vector<16x64xf32>
    %c8_229 = arith.constant 8 : index
    %c0_230 = arith.constant 0 : index
    %c0_231 = arith.constant 0 : index
    %226 = vector.load %arg3[%c8_229, %c0_230, %c0_231] : memref<9x256x64xf32, #tpu.memory_space<vmem>>, vector<1x256x64xf32>
    %227 = vector.shape_cast %226 : vector<1x256x64xf32> to vector<256x64xf32>
    %cst_232 = arith.constant dense<0.000000e+00> : vector<4x64xf32>
    %228 = tpu.matmul %168, %227, %cst_232 {dimension_numbers = #tpu.dot_dimension_numbers<[1], [0], [0], [1], [0, 0, 1, 1], [], []>} : vector<4x256xf32>, vector<256x64xf32>, vector<4x64xf32> -> vector<4x64xf32>
    %c8_233 = arith.constant 8 : index
    %c0_234 = arith.constant 0 : index
    %c0_235 = arith.constant 0 : index
    %229 = vector.load %arg8[%c8_233, %c0_234, %c0_235] : memref<9x16x4xf32, #tpu.memory_space<vmem>>, vector<1x16x4xf32>
    %230 = vector.shape_cast %229 : vector<1x16x4xf32> to vector<16x4xf32>
    %cst_236 = arith.constant dense<0.000000e+00> : vector<16x64xf32>
    %231 = tpu.matmul %230, %228, %cst_236 {dimension_numbers = #tpu.dot_dimension_numbers<[1], [0], [0], [1], [0, 0, 1, 1], [], []>} : vector<16x4xf32>, vector<4x64xf32>, vector<16x64xf32> -> vector<16x64xf32>
    %232 = arith.addf %225, %231 : vector<16x64xf32>
    %c0_237 = arith.constant 0 : index
    %c0_238 = arith.constant 0 : index
    %233 = vector.load %arg9[%c0_237, %c0_238] : memref<16x1xf32, #tpu.memory_space<vmem>>, vector<16x1xf32>
    %234 = vector.broadcast %233 : vector<16x1xf32> to vector<16x64xf32>
    %235 = arith.addf %232, %234 : vector<16x64xf32>
    %cst_239 = arith.constant 0.000000e+00 : f32
    %236 = vector.broadcast %cst_239 : f32 to vector<16x64xf32>
    %237 = arith.maximumf %235, %236 : vector<16x64xf32>
    %cst_240 = arith.constant 0.000000e+00 : f32
    %238 = vector.broadcast %cst_240 : f32 to vector<16x64xf32>
    %c0_241 = arith.constant 0 : index
    %c0_242 = arith.constant 0 : index
    %c0_243 = arith.constant 0 : index
    %239 = vector.load %arg5[%c0_241, %c0_242, %c0_243] : memref<9x64x64xf32, #tpu.memory_space<vmem>>, vector<1x64x64xf32>
    %240 = vector.shape_cast %239 : vector<1x64x64xf32> to vector<64x64xf32>
    %cst_244 = arith.constant dense<0.000000e+00> : vector<16x64xf32>
    %241 = tpu.matmul %99, %240, %cst_244 {dimension_numbers = #tpu.dot_dimension_numbers<[1], [0], [0], [1], [0, 0, 1, 1], [], []>} : vector<16x64xf32>, vector<64x64xf32>, vector<16x64xf32> -> vector<16x64xf32>
    %c0_245 = arith.constant 0 : index
    %c0_246 = arith.constant 0 : index
    %c0_247 = arith.constant 0 : index
    %242 = vector.load %arg12[%c0_245, %c0_246, %c0_247] : memref<9x16x16xf32, #tpu.memory_space<vmem>>, vector<1x16x16xf32>
    %243 = vector.shape_cast %242 : vector<1x16x16xf32> to vector<16x16xf32>
    %cst_248 = arith.constant dense<0.000000e+00> : vector<16x64xf32>
    %244 = tpu.matmul %243, %241, %cst_248 {dimension_numbers = #tpu.dot_dimension_numbers<[1], [0], [0], [1], [0, 0, 1, 1], [], []>} : vector<16x16xf32>, vector<16x64xf32>, vector<16x64xf32> -> vector<16x64xf32>
    %245 = arith.addf %238, %244 : vector<16x64xf32>
    %cst_249 = arith.constant dense<0.000000e+00> : vector<16x64xf32>
    %246 = tpu.matmul %237, %240, %cst_249 {dimension_numbers = #tpu.dot_dimension_numbers<[1], [0], [0], [1], [0, 0, 1, 1], [], []>} : vector<16x64xf32>, vector<64x64xf32>, vector<16x64xf32> -> vector<16x64xf32>
    %c0_250 = arith.constant 0 : index
    %c0_251 = arith.constant 0 : index
    %c0_252 = arith.constant 0 : index
    %247 = vector.load %arg13[%c0_250, %c0_251, %c0_252] : memref<9x16x16xf32, #tpu.memory_space<vmem>>, vector<1x16x16xf32>
    %248 = vector.shape_cast %247 : vector<1x16x16xf32> to vector<16x16xf32>
    %cst_253 = arith.constant dense<0.000000e+00> : vector<16x64xf32>
    %249 = tpu.matmul %248, %246, %cst_253 {dimension_numbers = #tpu.dot_dimension_numbers<[1], [0], [0], [1], [0, 0, 1, 1], [], []>} : vector<16x16xf32>, vector<16x64xf32>, vector<16x64xf32> -> vector<16x64xf32>
    %250 = arith.addf %245, %249 : vector<16x64xf32>
    %c1_254 = arith.constant 1 : index
    %c0_255 = arith.constant 0 : index
    %c0_256 = arith.constant 0 : index
    %251 = vector.load %arg5[%c1_254, %c0_255, %c0_256] : memref<9x64x64xf32, #tpu.memory_space<vmem>>, vector<1x64x64xf32>
    %252 = vector.shape_cast %251 : vector<1x64x64xf32> to vector<64x64xf32>
    %cst_257 = arith.constant dense<0.000000e+00> : vector<16x64xf32>
    %253 = tpu.matmul %99, %252, %cst_257 {dimension_numbers = #tpu.dot_dimension_numbers<[1], [0], [0], [1], [0, 0, 1, 1], [], []>} : vector<16x64xf32>, vector<64x64xf32>, vector<16x64xf32> -> vector<16x64xf32>
    %c1_258 = arith.constant 1 : index
    %c0_259 = arith.constant 0 : index
    %c0_260 = arith.constant 0 : index
    %254 = vector.load %arg12[%c1_258, %c0_259, %c0_260] : memref<9x16x16xf32, #tpu.memory_space<vmem>>, vector<1x16x16xf32>
    %255 = vector.shape_cast %254 : vector<1x16x16xf32> to vector<16x16xf32>
    %cst_261 = arith.constant dense<0.000000e+00> : vector<16x64xf32>
    %256 = tpu.matmul %255, %253, %cst_261 {dimension_numbers = #tpu.dot_dimension_numbers<[1], [0], [0], [1], [0, 0, 1, 1], [], []>} : vector<16x16xf32>, vector<16x64xf32>, vector<16x64xf32> -> vector<16x64xf32>
    %257 = arith.addf %250, %256 : vector<16x64xf32>
    %cst_262 = arith.constant dense<0.000000e+00> : vector<16x64xf32>
    %258 = tpu.matmul %237, %252, %cst_262 {dimension_numbers = #tpu.dot_dimension_numbers<[1], [0], [0], [1], [0, 0, 1, 1], [], []>} : vector<16x64xf32>, vector<64x64xf32>, vector<16x64xf32> -> vector<16x64xf32>
    %c1_263 = arith.constant 1 : index
    %c0_264 = arith.constant 0 : index
    %c0_265 = arith.constant 0 : index
    %259 = vector.load %arg13[%c1_263, %c0_264, %c0_265] : memref<9x16x16xf32, #tpu.memory_space<vmem>>, vector<1x16x16xf32>
    %260 = vector.shape_cast %259 : vector<1x16x16xf32> to vector<16x16xf32>
    %cst_266 = arith.constant dense<0.000000e+00> : vector<16x64xf32>
    %261 = tpu.matmul %260, %258, %cst_266 {dimension_numbers = #tpu.dot_dimension_numbers<[1], [0], [0], [1], [0, 0, 1, 1], [], []>} : vector<16x16xf32>, vector<16x64xf32>, vector<16x64xf32> -> vector<16x64xf32>
    %262 = arith.addf %257, %261 : vector<16x64xf32>
    %c2_267 = arith.constant 2 : index
    %c0_268 = arith.constant 0 : index
    %c0_269 = arith.constant 0 : index
    %263 = vector.load %arg5[%c2_267, %c0_268, %c0_269] : memref<9x64x64xf32, #tpu.memory_space<vmem>>, vector<1x64x64xf32>
    %264 = vector.shape_cast %263 : vector<1x64x64xf32> to vector<64x64xf32>
    %cst_270 = arith.constant dense<0.000000e+00> : vector<16x64xf32>
    %265 = tpu.matmul %99, %264, %cst_270 {dimension_numbers = #tpu.dot_dimension_numbers<[1], [0], [0], [1], [0, 0, 1, 1], [], []>} : vector<16x64xf32>, vector<64x64xf32>, vector<16x64xf32> -> vector<16x64xf32>
    %c2_271 = arith.constant 2 : index
    %c0_272 = arith.constant 0 : index
    %c0_273 = arith.constant 0 : index
    %266 = vector.load %arg12[%c2_271, %c0_272, %c0_273] : memref<9x16x16xf32, #tpu.memory_space<vmem>>, vector<1x16x16xf32>
    %267 = vector.shape_cast %266 : vector<1x16x16xf32> to vector<16x16xf32>
    %cst_274 = arith.constant dense<0.000000e+00> : vector<16x64xf32>
    %268 = tpu.matmul %267, %265, %cst_274 {dimension_numbers = #tpu.dot_dimension_numbers<[1], [0], [0], [1], [0, 0, 1, 1], [], []>} : vector<16x16xf32>, vector<16x64xf32>, vector<16x64xf32> -> vector<16x64xf32>
    %269 = arith.addf %262, %268 : vector<16x64xf32>
    %cst_275 = arith.constant dense<0.000000e+00> : vector<16x64xf32>
    %270 = tpu.matmul %237, %264, %cst_275 {dimension_numbers = #tpu.dot_dimension_numbers<[1], [0], [0], [1], [0, 0, 1, 1], [], []>} : vector<16x64xf32>, vector<64x64xf32>, vector<16x64xf32> -> vector<16x64xf32>
    %c2_276 = arith.constant 2 : index
    %c0_277 = arith.constant 0 : index
    %c0_278 = arith.constant 0 : index
    %271 = vector.load %arg13[%c2_276, %c0_277, %c0_278] : memref<9x16x16xf32, #tpu.memory_space<vmem>>, vector<1x16x16xf32>
    %272 = vector.shape_cast %271 : vector<1x16x16xf32> to vector<16x16xf32>
    %cst_279 = arith.constant dense<0.000000e+00> : vector<16x64xf32>
    %273 = tpu.matmul %272, %270, %cst_279 {dimension_numbers = #tpu.dot_dimension_numbers<[1], [0], [0], [1], [0, 0, 1, 1], [], []>} : vector<16x16xf32>, vector<16x64xf32>, vector<16x64xf32> -> vector<16x64xf32>
    %274 = arith.addf %269, %273 : vector<16x64xf32>
    %c3_280 = arith.constant 3 : index
    %c0_281 = arith.constant 0 : index
    %c0_282 = arith.constant 0 : index
    %275 = vector.load %arg5[%c3_280, %c0_281, %c0_282] : memref<9x64x64xf32, #tpu.memory_space<vmem>>, vector<1x64x64xf32>
    %276 = vector.shape_cast %275 : vector<1x64x64xf32> to vector<64x64xf32>
    %cst_283 = arith.constant dense<0.000000e+00> : vector<16x64xf32>
    %277 = tpu.matmul %99, %276, %cst_283 {dimension_numbers = #tpu.dot_dimension_numbers<[1], [0], [0], [1], [0, 0, 1, 1], [], []>} : vector<16x64xf32>, vector<64x64xf32>, vector<16x64xf32> -> vector<16x64xf32>
    %c3_284 = arith.constant 3 : index
    %c0_285 = arith.constant 0 : index
    %c0_286 = arith.constant 0 : index
    %278 = vector.load %arg12[%c3_284, %c0_285, %c0_286] : memref<9x16x16xf32, #tpu.memory_space<vmem>>, vector<1x16x16xf32>
    %279 = vector.shape_cast %278 : vector<1x16x16xf32> to vector<16x16xf32>
    %cst_287 = arith.constant dense<0.000000e+00> : vector<16x64xf32>
    %280 = tpu.matmul %279, %277, %cst_287 {dimension_numbers = #tpu.dot_dimension_numbers<[1], [0], [0], [1], [0, 0, 1, 1], [], []>} : vector<16x16xf32>, vector<16x64xf32>, vector<16x64xf32> -> vector<16x64xf32>
    %281 = arith.addf %274, %280 : vector<16x64xf32>
    %cst_288 = arith.constant dense<0.000000e+00> : vector<16x64xf32>
    %282 = tpu.matmul %237, %276, %cst_288 {dimension_numbers = #tpu.dot_dimension_numbers<[1], [0], [0], [1], [0, 0, 1, 1], [], []>} : vector<16x64xf32>, vector<64x64xf32>, vector<16x64xf32> -> vector<16x64xf32>
    %c3_289 = arith.constant 3 : index
    %c0_290 = arith.constant 0 : index
    %c0_291 = arith.constant 0 : index
    %283 = vector.load %arg13[%c3_289, %c0_290, %c0_291] : memref<9x16x16xf32, #tpu.memory_space<vmem>>, vector<1x16x16xf32>
    %284 = vector.shape_cast %283 : vector<1x16x16xf32> to vector<16x16xf32>
    %cst_292 = arith.constant dense<0.000000e+00> : vector<16x64xf32>
    %285 = tpu.matmul %284, %282, %cst_292 {dimension_numbers = #tpu.dot_dimension_numbers<[1], [0], [0], [1], [0, 0, 1, 1], [], []>} : vector<16x16xf32>, vector<16x64xf32>, vector<16x64xf32> -> vector<16x64xf32>
    %286 = arith.addf %281, %285 : vector<16x64xf32>
    %c4_293 = arith.constant 4 : index
    %c0_294 = arith.constant 0 : index
    %c0_295 = arith.constant 0 : index
    %287 = vector.load %arg5[%c4_293, %c0_294, %c0_295] : memref<9x64x64xf32, #tpu.memory_space<vmem>>, vector<1x64x64xf32>
    %288 = vector.shape_cast %287 : vector<1x64x64xf32> to vector<64x64xf32>
    %cst_296 = arith.constant dense<0.000000e+00> : vector<16x64xf32>
    %289 = tpu.matmul %99, %288, %cst_296 {dimension_numbers = #tpu.dot_dimension_numbers<[1], [0], [0], [1], [0, 0, 1, 1], [], []>} : vector<16x64xf32>, vector<64x64xf32>, vector<16x64xf32> -> vector<16x64xf32>
    %c4_297 = arith.constant 4 : index
    %c0_298 = arith.constant 0 : index
    %c0_299 = arith.constant 0 : index
    %290 = vector.load %arg12[%c4_297, %c0_298, %c0_299] : memref<9x16x16xf32, #tpu.memory_space<vmem>>, vector<1x16x16xf32>
    %291 = vector.shape_cast %290 : vector<1x16x16xf32> to vector<16x16xf32>
    %cst_300 = arith.constant dense<0.000000e+00> : vector<16x64xf32>
    %292 = tpu.matmul %291, %289, %cst_300 {dimension_numbers = #tpu.dot_dimension_numbers<[1], [0], [0], [1], [0, 0, 1, 1], [], []>} : vector<16x16xf32>, vector<16x64xf32>, vector<16x64xf32> -> vector<16x64xf32>
    %293 = arith.addf %286, %292 : vector<16x64xf32>
    %cst_301 = arith.constant dense<0.000000e+00> : vector<16x64xf32>
    %294 = tpu.matmul %237, %288, %cst_301 {dimension_numbers = #tpu.dot_dimension_numbers<[1], [0], [0], [1], [0, 0, 1, 1], [], []>} : vector<16x64xf32>, vector<64x64xf32>, vector<16x64xf32> -> vector<16x64xf32>
    %c4_302 = arith.constant 4 : index
    %c0_303 = arith.constant 0 : index
    %c0_304 = arith.constant 0 : index
    %295 = vector.load %arg13[%c4_302, %c0_303, %c0_304] : memref<9x16x16xf32, #tpu.memory_space<vmem>>, vector<1x16x16xf32>
    %296 = vector.shape_cast %295 : vector<1x16x16xf32> to vector<16x16xf32>
    %cst_305 = arith.constant dense<0.000000e+00> : vector<16x64xf32>
    %297 = tpu.matmul %296, %294, %cst_305 {dimension_numbers = #tpu.dot_dimension_numbers<[1], [0], [0], [1], [0, 0, 1, 1], [], []>} : vector<16x16xf32>, vector<16x64xf32>, vector<16x64xf32> -> vector<16x64xf32>
    %298 = arith.addf %293, %297 : vector<16x64xf32>
    %c5_306 = arith.constant 5 : index
    %c0_307 = arith.constant 0 : index
    %c0_308 = arith.constant 0 : index
    %299 = vector.load %arg5[%c5_306, %c0_307, %c0_308] : memref<9x64x64xf32, #tpu.memory_space<vmem>>, vector<1x64x64xf32>
    %300 = vector.shape_cast %299 : vector<1x64x64xf32> to vector<64x64xf32>
    %cst_309 = arith.constant dense<0.000000e+00> : vector<16x64xf32>
    %301 = tpu.matmul %99, %300, %cst_309 {dimension_numbers = #tpu.dot_dimension_numbers<[1], [0], [0], [1], [0, 0, 1, 1], [], []>} : vector<16x64xf32>, vector<64x64xf32>, vector<16x64xf32> -> vector<16x64xf32>
    %c5_310 = arith.constant 5 : index
    %c0_311 = arith.constant 0 : index
    %c0_312 = arith.constant 0 : index
    %302 = vector.load %arg12[%c5_310, %c0_311, %c0_312] : memref<9x16x16xf32, #tpu.memory_space<vmem>>, vector<1x16x16xf32>
    %303 = vector.shape_cast %302 : vector<1x16x16xf32> to vector<16x16xf32>
    %cst_313 = arith.constant dense<0.000000e+00> : vector<16x64xf32>
    %304 = tpu.matmul %303, %301, %cst_313 {dimension_numbers = #tpu.dot_dimension_numbers<[1], [0], [0], [1], [0, 0, 1, 1], [], []>} : vector<16x16xf32>, vector<16x64xf32>, vector<16x64xf32> -> vector<16x64xf32>
    %305 = arith.addf %298, %304 : vector<16x64xf32>
    %cst_314 = arith.constant dense<0.000000e+00> : vector<16x64xf32>
    %306 = tpu.matmul %237, %300, %cst_314 {dimension_numbers = #tpu.dot_dimension_numbers<[1], [0], [0], [1], [0, 0, 1, 1], [], []>} : vector<16x64xf32>, vector<64x64xf32>, vector<16x64xf32> -> vector<16x64xf32>
    %c5_315 = arith.constant 5 : index
    %c0_316 = arith.constant 0 : index
    %c0_317 = arith.constant 0 : index
    %307 = vector.load %arg13[%c5_315, %c0_316, %c0_317] : memref<9x16x16xf32, #tpu.memory_space<vmem>>, vector<1x16x16xf32>
    %308 = vector.shape_cast %307 : vector<1x16x16xf32> to vector<16x16xf32>
    %cst_318 = arith.constant dense<0.000000e+00> : vector<16x64xf32>
    %309 = tpu.matmul %308, %306, %cst_318 {dimension_numbers = #tpu.dot_dimension_numbers<[1], [0], [0], [1], [0, 0, 1, 1], [], []>} : vector<16x16xf32>, vector<16x64xf32>, vector<16x64xf32> -> vector<16x64xf32>
    %310 = arith.addf %305, %309 : vector<16x64xf32>
    %c6_319 = arith.constant 6 : index
    %c0_320 = arith.constant 0 : index
    %c0_321 = arith.constant 0 : index
    %311 = vector.load %arg5[%c6_319, %c0_320, %c0_321] : memref<9x64x64xf32, #tpu.memory_space<vmem>>, vector<1x64x64xf32>
    %312 = vector.shape_cast %311 : vector<1x64x64xf32> to vector<64x64xf32>
    %cst_322 = arith.constant dense<0.000000e+00> : vector<16x64xf32>
    %313 = tpu.matmul %99, %312, %cst_322 {dimension_numbers = #tpu.dot_dimension_numbers<[1], [0], [0], [1], [0, 0, 1, 1], [], []>} : vector<16x64xf32>, vector<64x64xf32>, vector<16x64xf32> -> vector<16x64xf32>
    %c6_323 = arith.constant 6 : index
    %c0_324 = arith.constant 0 : index
    %c0_325 = arith.constant 0 : index
    %314 = vector.load %arg12[%c6_323, %c0_324, %c0_325] : memref<9x16x16xf32, #tpu.memory_space<vmem>>, vector<1x16x16xf32>
    %315 = vector.shape_cast %314 : vector<1x16x16xf32> to vector<16x16xf32>
    %cst_326 = arith.constant dense<0.000000e+00> : vector<16x64xf32>
    %316 = tpu.matmul %315, %313, %cst_326 {dimension_numbers = #tpu.dot_dimension_numbers<[1], [0], [0], [1], [0, 0, 1, 1], [], []>} : vector<16x16xf32>, vector<16x64xf32>, vector<16x64xf32> -> vector<16x64xf32>
    %317 = arith.addf %310, %316 : vector<16x64xf32>
    %cst_327 = arith.constant dense<0.000000e+00> : vector<16x64xf32>
    %318 = tpu.matmul %237, %312, %cst_327 {dimension_numbers = #tpu.dot_dimension_numbers<[1], [0], [0], [1], [0, 0, 1, 1], [], []>} : vector<16x64xf32>, vector<64x64xf32>, vector<16x64xf32> -> vector<16x64xf32>
    %c6_328 = arith.constant 6 : index
    %c0_329 = arith.constant 0 : index
    %c0_330 = arith.constant 0 : index
    %319 = vector.load %arg13[%c6_328, %c0_329, %c0_330] : memref<9x16x16xf32, #tpu.memory_space<vmem>>, vector<1x16x16xf32>
    %320 = vector.shape_cast %319 : vector<1x16x16xf32> to vector<16x16xf32>
    %cst_331 = arith.constant dense<0.000000e+00> : vector<16x64xf32>
    %321 = tpu.matmul %320, %318, %cst_331 {dimension_numbers = #tpu.dot_dimension_numbers<[1], [0], [0], [1], [0, 0, 1, 1], [], []>} : vector<16x16xf32>, vector<16x64xf32>, vector<16x64xf32> -> vector<16x64xf32>
    %322 = arith.addf %317, %321 : vector<16x64xf32>
    %c7_332 = arith.constant 7 : index
    %c0_333 = arith.constant 0 : index
    %c0_334 = arith.constant 0 : index
    %323 = vector.load %arg5[%c7_332, %c0_333, %c0_334] : memref<9x64x64xf32, #tpu.memory_space<vmem>>, vector<1x64x64xf32>
    %324 = vector.shape_cast %323 : vector<1x64x64xf32> to vector<64x64xf32>
    %cst_335 = arith.constant dense<0.000000e+00> : vector<16x64xf32>
    %325 = tpu.matmul %99, %324, %cst_335 {dimension_numbers = #tpu.dot_dimension_numbers<[1], [0], [0], [1], [0, 0, 1, 1], [], []>} : vector<16x64xf32>, vector<64x64xf32>, vector<16x64xf32> -> vector<16x64xf32>
    %c7_336 = arith.constant 7 : index
    %c0_337 = arith.constant 0 : index
    %c0_338 = arith.constant 0 : index
    %326 = vector.load %arg12[%c7_336, %c0_337, %c0_338] : memref<9x16x16xf32, #tpu.memory_space<vmem>>, vector<1x16x16xf32>
    %327 = vector.shape_cast %326 : vector<1x16x16xf32> to vector<16x16xf32>
    %cst_339 = arith.constant dense<0.000000e+00> : vector<16x64xf32>
    %328 = tpu.matmul %327, %325, %cst_339 {dimension_numbers = #tpu.dot_dimension_numbers<[1], [0], [0], [1], [0, 0, 1, 1], [], []>} : vector<16x16xf32>, vector<16x64xf32>, vector<16x64xf32> -> vector<16x64xf32>
    %329 = arith.addf %322, %328 : vector<16x64xf32>
    %cst_340 = arith.constant dense<0.000000e+00> : vector<16x64xf32>
    %330 = tpu.matmul %237, %324, %cst_340 {dimension_numbers = #tpu.dot_dimension_numbers<[1], [0], [0], [1], [0, 0, 1, 1], [], []>} : vector<16x64xf32>, vector<64x64xf32>, vector<16x64xf32> -> vector<16x64xf32>
    %c7_341 = arith.constant 7 : index
    %c0_342 = arith.constant 0 : index
    %c0_343 = arith.constant 0 : index
    %331 = vector.load %arg13[%c7_341, %c0_342, %c0_343] : memref<9x16x16xf32, #tpu.memory_space<vmem>>, vector<1x16x16xf32>
    %332 = vector.shape_cast %331 : vector<1x16x16xf32> to vector<16x16xf32>
    %cst_344 = arith.constant dense<0.000000e+00> : vector<16x64xf32>
    %333 = tpu.matmul %332, %330, %cst_344 {dimension_numbers = #tpu.dot_dimension_numbers<[1], [0], [0], [1], [0, 0, 1, 1], [], []>} : vector<16x16xf32>, vector<16x64xf32>, vector<16x64xf32> -> vector<16x64xf32>
    %334 = arith.addf %329, %333 : vector<16x64xf32>
    %c8_345 = arith.constant 8 : index
    %c0_346 = arith.constant 0 : index
    %c0_347 = arith.constant 0 : index
    %335 = vector.load %arg5[%c8_345, %c0_346, %c0_347] : memref<9x64x64xf32, #tpu.memory_space<vmem>>, vector<1x64x64xf32>
    %336 = vector.shape_cast %335 : vector<1x64x64xf32> to vector<64x64xf32>
    %cst_348 = arith.constant dense<0.000000e+00> : vector<16x64xf32>
    %337 = tpu.matmul %99, %336, %cst_348 {dimension_numbers = #tpu.dot_dimension_numbers<[1], [0], [0], [1], [0, 0, 1, 1], [], []>} : vector<16x64xf32>, vector<64x64xf32>, vector<16x64xf32> -> vector<16x64xf32>
    %c8_349 = arith.constant 8 : index
    %c0_350 = arith.constant 0 : index
    %c0_351 = arith.constant 0 : index
    %338 = vector.load %arg12[%c8_349, %c0_350, %c0_351] : memref<9x16x16xf32, #tpu.memory_space<vmem>>, vector<1x16x16xf32>
    %339 = vector.shape_cast %338 : vector<1x16x16xf32> to vector<16x16xf32>
    %cst_352 = arith.constant dense<0.000000e+00> : vector<16x64xf32>
    %340 = tpu.matmul %339, %337, %cst_352 {dimension_numbers = #tpu.dot_dimension_numbers<[1], [0], [0], [1], [0, 0, 1, 1], [], []>} : vector<16x16xf32>, vector<16x64xf32>, vector<16x64xf32> -> vector<16x64xf32>
    %341 = arith.addf %334, %340 : vector<16x64xf32>
    %cst_353 = arith.constant dense<0.000000e+00> : vector<16x64xf32>
    %342 = tpu.matmul %237, %336, %cst_353 {dimension_numbers = #tpu.dot_dimension_numbers<[1], [0], [0], [1], [0, 0, 1, 1], [], []>} : vector<16x64xf32>, vector<64x64xf32>, vector<16x64xf32> -> vector<16x64xf32>
    %c8_354 = arith.constant 8 : index
    %c0_355 = arith.constant 0 : index
    %c0_356 = arith.constant 0 : index
    %343 = vector.load %arg13[%c8_354, %c0_355, %c0_356] : memref<9x16x16xf32, #tpu.memory_space<vmem>>, vector<1x16x16xf32>
    %344 = vector.shape_cast %343 : vector<1x16x16xf32> to vector<16x16xf32>
    %cst_357 = arith.constant dense<0.000000e+00> : vector<16x64xf32>
    %345 = tpu.matmul %344, %342, %cst_357 {dimension_numbers = #tpu.dot_dimension_numbers<[1], [0], [0], [1], [0, 0, 1, 1], [], []>} : vector<16x16xf32>, vector<16x64xf32>, vector<16x64xf32> -> vector<16x64xf32>
    %346 = arith.addf %341, %345 : vector<16x64xf32>
    %c0_358 = arith.constant 0 : index
    %c0_359 = arith.constant 0 : index
    %347 = vector.load %arg14[%c0_358, %c0_359] : memref<16x1xf32, #tpu.memory_space<vmem>>, vector<16x1xf32>
    %348 = vector.broadcast %347 : vector<16x1xf32> to vector<16x64xf32>
    %349 = arith.addf %346, %348 : vector<16x64xf32>
    %cst_360 = arith.constant 0.000000e+00 : f32
    %350 = vector.broadcast %cst_360 : f32 to vector<16x64xf32>
    %351 = arith.maximumf %349, %350 : vector<16x64xf32>
    %c0_361 = arith.constant 0 : index
    %c0_362 = arith.constant 0 : index
    %c0_363 = arith.constant 0 : index
    %352 = vector.load %arg20[%c0_361, %c0_362, %c0_363] : memref<1x48x64xf32, #tpu.memory_space<vmem>>, vector<1x16x64xf32>
    %353 = vector.shape_cast %352 : vector<1x16x64xf32> to vector<16x64xf32>
    %354 = vector.shape_cast %72 : vector<16x64xf32> to vector<1x16x64xf32>
    tpu.vector_store %arg20[%c0_361, %c0_362, %c0_363], %354 {strides = array<i32>} : memref<1x48x64xf32, #tpu.memory_space<vmem>>, vector<1x16x64xf32>,
    %c0_364 = arith.constant 0 : index
    %c16 = arith.constant 16 : index
    %c0_365 = arith.constant 0 : index
    %355 = vector.load %arg20[%c0_364, %c16, %c0_365] : memref<1x48x64xf32, #tpu.memory_space<vmem>>, vector<1x16x64xf32>
    %356 = vector.shape_cast %355 : vector<1x16x64xf32> to vector<16x64xf32>
    %357 = vector.shape_cast %237 : vector<16x64xf32> to vector<1x16x64xf32>
    tpu.vector_store %arg20[%c0_364, %c16, %c0_365], %357 {strides = array<i32>} : memref<1x48x64xf32, #tpu.memory_space<vmem>>, vector<1x16x64xf32>,
    %c0_366 = arith.constant 0 : index
    %c32 = arith.constant 32 : index
    %c0_367 = arith.constant 0 : index
    %358 = vector.load %arg20[%c0_366, %c32, %c0_367] : memref<1x48x64xf32, #tpu.memory_space<vmem>>, vector<1x16x64xf32>
    %359 = vector.shape_cast %358 : vector<1x16x64xf32> to vector<16x64xf32>
    %360 = vector.shape_cast %351 : vector<16x64xf32> to vector<1x16x64xf32>
    tpu.vector_store %arg20[%c0_366, %c32, %c0_367], %360 {strides = array<i32>} : memref<1x48x64xf32, #tpu.memory_space<vmem>>, vector<1x16x64xf32>,
    return
  }
  func.func @transform_0(%arg0: i32) -> (i32, i32, i32) {
    %c0_i32 = arith.constant 0 : i32
    %c0_i32_0 = arith.constant 0 : i32
    %c0_i32_1 = arith.constant 0 : i32
    return %arg0, %c0_i32, %c0_i32_0 : i32, i32, i32
  }
  func.func @transform_1(%arg0: i32) -> (i32, i32, i32) {
    %c0_i32 = arith.constant 0 : i32
    %c0_i32_0 = arith.constant 0 : i32
    %c0_i32_1 = arith.constant 0 : i32
    return %arg0, %c0_i32, %c0_i32_0 : i32, i32, i32
  }
  func.func @transform_2(%arg0: i32) -> (i32, i32, i32) {
    %c0_i32 = arith.constant 0 : i32
    %c0_i32_0 = arith.constant 0 : i32
    %c0_i32_1 = arith.constant 0 : i32
    %c0_i32_2 = arith.constant 0 : i32
    return %c0_i32, %c0_i32_0, %c0_i32_1 : i32, i32, i32
  }
  func.func @transform_3(%arg0: i32) -> (i32, i32, i32) {
    %c0_i32 = arith.constant 0 : i32
    %c0_i32_0 = arith.constant 0 : i32
    %c0_i32_1 = arith.constant 0 : i32
    %c0_i32_2 = arith.constant 0 : i32
    return %c0_i32, %c0_i32_0, %c0_i32_1 : i32, i32, i32
  }
  func.func @transform_4(%arg0: i32) -> (i32, i32, i32) {
    %c0_i32 = arith.constant 0 : i32
    %c0_i32_0 = arith.constant 0 : i32
    %c0_i32_1 = arith.constant 0 : i32
    %c0_i32_2 = arith.constant 0 : i32
    return %c0_i32, %c0_i32_0, %c0_i32_1 : i32, i32, i32
  }
  func.func @transform_5(%arg0: i32) -> (i32, i32, i32) {
    %c0_i32 = arith.constant 0 : i32
    %c0_i32_0 = arith.constant 0 : i32
    %c0_i32_1 = arith.constant 0 : i32
    %c0_i32_2 = arith.constant 0 : i32
    return %c0_i32, %c0_i32_0, %c0_i32_1 : i32, i32, i32
  }
  func.func @transform_6(%arg0: i32) -> (i32, i32) {
    %c0_i32 = arith.constant 0 : i32
    %c0_i32_0 = arith.constant 0 : i32
    %c0_i32_1 = arith.constant 0 : i32
    return %c0_i32, %c0_i32_0 : i32, i32
  }
  func.func @transform_7(%arg0: i32) -> (i32, i32, i32) {
    %c0_i32 = arith.constant 0 : i32
    %c0_i32_0 = arith.constant 0 : i32
    %c0_i32_1 = arith.constant 0 : i32
    %c0_i32_2 = arith.constant 0 : i32
    return %c0_i32, %c0_i32_0, %c0_i32_1 : i32, i32, i32
  }
  func.func @transform_8(%arg0: i32) -> (i32, i32) {
    %c0_i32 = arith.constant 0 : i32
    %c0_i32_0 = arith.constant 0 : i32
    %c0_i32_1 = arith.constant 0 : i32
    return %c0_i32, %c0_i32_0 : i32, i32
  }
  func.func @transform_9(%arg0: i32) -> (i32, i32, i32) {
    %c0_i32 = arith.constant 0 : i32
    %c0_i32_0 = arith.constant 0 : i32
    %c0_i32_1 = arith.constant 0 : i32
    %c0_i32_2 = arith.constant 0 : i32
    return %c0_i32, %c0_i32_0, %c0_i32_1 : i32, i32, i32
  }
  func.func @transform_10(%arg0: i32) -> (i32, i32) {
    %c0_i32 = arith.constant 0 : i32
    %c0_i32_0 = arith.constant 0 : i32
    %c0_i32_1 = arith.constant 0 : i32
    return %c0_i32, %c0_i32_0 : i32, i32
  }
  func.func @transform_11(%arg0: i32) -> (i32, i32, i32) {
    %c0_i32 = arith.constant 0 : i32
    %c0_i32_0 = arith.constant 0 : i32
    %c0_i32_1 = arith.constant 0 : i32
    %c0_i32_2 = arith.constant 0 : i32
    return %c0_i32, %c0_i32_0, %c0_i32_1 : i32, i32, i32
  }
  func.func @transform_12(%arg0: i32) -> (i32, i32, i32) {
    %c0_i32 = arith.constant 0 : i32
    %c0_i32_0 = arith.constant 0 : i32
    %c0_i32_1 = arith.constant 0 : i32
    %c0_i32_2 = arith.constant 0 : i32
    return %c0_i32, %c0_i32_0, %c0_i32_1 : i32, i32, i32
  }
  func.func @transform_13(%arg0: i32) -> (i32, i32) {
    %c0_i32 = arith.constant 0 : i32
    %c0_i32_0 = arith.constant 0 : i32
    %c0_i32_1 = arith.constant 0 : i32
    return %c0_i32, %c0_i32_0 : i32, i32
  }
  func.func @transform_14(%arg0: i32) -> (i32, i32) {
    %c0_i32 = arith.constant 0 : i32
    %c0_i32_0 = arith.constant 0 : i32
    %c0_i32_1 = arith.constant 0 : i32
    return %c0_i32, %c0_i32_0 : i32, i32
  }
  func.func @transform_15(%arg0: i32) -> (i32, i32) {
    %c0_i32 = arith.constant 0 : i32
    %c0_i32_0 = arith.constant 0 : i32
    %c0_i32_1 = arith.constant 0 : i32
    return %c0_i32, %c0_i32_0 : i32, i32
  }
  func.func @transform_16(%arg0: i32) -> (i32, i32) {
    %c0_i32 = arith.constant 0 : i32
    %c0_i32_0 = arith.constant 0 : i32
    %c0_i32_1 = arith.constant 0 : i32
    return %c0_i32, %c0_i32_0 : i32, i32
  }
  func.func @transform_17(%arg0: i32) -> (i32, i32) {
    %c0_i32 = arith.constant 0 : i32
    %c0_i32_0 = arith.constant 0 : i32
    %c0_i32_1 = arith.constant 0 : i32
    return %c0_i32, %c0_i32_0 : i32, i32
  }
  func.func @transform_18(%arg0: i32) -> (i32, i32) {
    %c0_i32 = arith.constant 0 : i32
    %c0_i32_0 = arith.constant 0 : i32
    %c0_i32_1 = arith.constant 0 : i32
    return %c0_i32, %c0_i32_0 : i32, i32
  }
  func.func @transform_19(%arg0: i32) -> (i32, i32, i32) {
    %c0_i32 = arith.constant 0 : i32
    %c0_i32_0 = arith.constant 0 : i32
    %c0_i32_1 = arith.constant 0 : i32
    return %arg0, %c0_i32, %c0_i32_0 : i32, i32, i32
  }
}

</mosaic_0001>

<bundles_post_ra>
// kernel: down_block_with_freq.1
= control target key start
LH: loop header
LB: loop body
LE: loop exit
PB: predicated region body
PF: predicated region fallthrough
CT: control target
= control target key end

     0   :  { %s16334_s0 = inlined_call_operand.vmem [shape: f32[2,4,256], index: 0, kind: input, shape index: {}]   ;;  %s16335_s1 = inlined_call_operand.vmem [shape: f32[2,4,256], index: 1, kind: input, shape index: {}]   ;;  %s16336_s2 = inlined_call_operand.vmem [shape: f32[9,256,64], index: 2, kind: input, shape index: {}]   ;;  %s16337_s3 = inlined_call_operand.hbm [shape: f32[9,256,256], index: 3, kind: input, shape index: {}]   ;;  %s16338_s4 = inlined_call_operand.vmem [shape: f32[9,64,64], index: 4, kind: input, shape index: {}]   ;;  %s16339_s5 = inlined_call_operand.vmem [shape: f32[9,16,4], index: 5, kind: input, shape index: {}]   ;;  %s16340_s6 = inlined_call_operand.vmem [shape: f32[16,1], index: 6, kind: input, shape index: {}]   ;;  %s16341_s7 = inlined_call_operand.vmem [shape: f32[9,16,4], index: 7, kind: input, shape index: {}]   ;;  %s16342_s8 = inlined_call_operand.vmem [shape: f32[16,1], index: 8, kind: input, shape index: {}]   ;;  %s16343_s9 = inlined_call_operand.vmem [shape: f32[9,4,4], index: 9, kind: input, shape index: {}]   ;;  %s16344_s10 = inlined_call_operand.vmem [shape: f32[4,1], index: 10, kind: input, shape index: {}]   ;;  %s16345_s11 = inlined_call_operand.hbm [shape: f32[9,16,16], index: 11, kind: input, shape index: {}]   ;;  %s16346_s12 = inlined_call_operand.hbm [shape: f32[9,16,16], index: 12, kind: input, shape index: {}]   ;;  %s16347_s13 = inlined_call_operand.vmem [shape: f32[16,1], index: 13, kind: input, shape index: {}]   ;;  %s16348_s14 = inlined_call_operand.hbm [shape: f32[16,16], index: 14, kind: input, shape index: {}]   ;;  %s16349_s15 = inlined_call_operand.vmem [shape: f32[16,1], index: 15, kind: input, shape index: {}]   ;;  %s16350_s16 = inlined_call_operand.hbm [shape: f32[16,16], index: 16, kind: input, shape index: {}]   ;;  %s16351_s17 = inlined_call_operand.vmem [shape: f32[16,1], index: 17, kind: input, shape index: {}]   ;;  %s16352_s18 = inlined_call_operand.<no memory space> [shape: f32[1,1], index: 18, kind: input, shape index: {}]   ;;  %s16353_s19 = inlined_call_operand.vmem [shape: f32[2,48,64], index: 19, kind: output, shape index: {}]  }
   0x1   :  { %16475 = sst [smem:[#allocation125_spill]] %s16334_s0 }
   0x2   :  { %16476 = sst [smem:[#allocation126_spill]] %s16335_s1 }
   0x3   :  { %16477 = sst [smem:[#allocation127_spill]] %s16336_s2 }
   0x4   :  { %16478 = sst [smem:[#allocation128_spill]] %s16337_s3 }
   0x5   :  { %16479 = sst [smem:[#allocation129_spill]] %s16338_s4 }
   0x6   :  { %16480 = sst [smem:[#allocation130_spill]] %s16341_s7 }
   0x7   :  { %16481 = sst [smem:[#allocation131_spill]] %s16345_s11 }
   0x8   :  { %24 = sst [smem:[#allocation2]] %s16352_s18 }
   0x9   :  { %25 = vsyncpa [#allocation4], 0 }
   0xa   :  { %26 = vsyncpa [#allocation6], 0 }
   0xb   :  { %27 = vsyncpa [#allocation9], 0  ;;  %s13679_s20 = smov 0  }
   0xc LB: > { %16482 = sst [smem:[#allocation14_spill]] %s13563_s20  ;;  %s13565_s21 = smov [#allocation5]   ;;  %s13563_s20 = sphi %s13679_s20, %s33_s20  }
   0xd   : > { %s522_s1 = sshll.u32 %s13565_s21, 4  ;;  %s13685_s22 = sadd.s32 4294967295, %s13563_s20   ;;  %s13690_s1 = int_to_ptr.vmem [resolvable:$true] %s522_s1 }
   0xe   : > { %p9549_p0 = scmp.ge.s32.totalorder %s13563_s20, 1  ;;  %p473_p1 = scmp.lt.s32.totalorder %s13563_s20, 3 }
   0xf   : > { %p16363_p2 = scmp.eq.s32.totalorder %s13685_s22, 0  ;;  %s13566_s2 = smov [#allocation8]  }
  0x10   : > { %p13692_p3 = pnand %p9549_p0, %p473_p1  ;;  %s551_s23 = sshll.u32 %s13566_s2, 4  ;;  %s13698_s23 = int_to_ptr.vmem [resolvable:$true] %s551_s23 }
  0x11   : > { %s13567_s25 = smov [#allocation3]   ;;  %s16485_s11 = sld [smem:[#allocation131_spill]] }
  0x12   : > { %s16483_s18 = scalar_select %p13692_p3, 1, 0 }
  0x13   : > { %p13321_p4 = pneg %p13692_p3  ;;  %s488_s3 = sshll.u32 %s13567_s25, 4  ;;  %s13706_s3 = int_to_ptr.vmem [resolvable:$true] %s488_s3 }
  0x15   : > { %p13702_p5 = pnand %p16363_p2, %p13321_p4 }
  0x17   : > { %s13405_s28 = scalar_lea.hbm %s16485_s11, 2304  ;;  %p13716_p7 = pneg %p13702_p5 }
  0x18   : > { %p13406_p6 = scmp.ne.s32.totalorder %s16485_s11, %s13405_s28  ;;  %p13412_p10 = scmp.lt.u32.totalorder %s13405_s28, %s16485_s11 }
  0x1a   : > { %p13408_p8 = pnand %p13716_p7, %p13406_p6 }
  0x1c   : > { %p13409_p9 = pneg %p13408_p8 }
  0x1e   : > { %p13414_p11 = pnand %p13412_p10, %p13409_p9 }
  0x20   : > { %13417 = shalt.err (!%p13414_p11)
}
  0x21   : > { %s13418_s25 = scalar_lea.vmem %s13690_s1, 2304  ;;  %p13426_p1 = scmp.lt.s32.totalorder %s13690_s1, %s13690_s1 }
  0x22   : > { %p13419_p12 = scmp.ne.s32.totalorder %s13690_s1, %s13418_s25  ;;  %p13427_p4 = scmp.lt.s32.totalorder %s13418_s25, %s13418_s25 }
  0x24   : > { %p13421_p13 = pnand %p13419_p12, %p13716_p7  ;;  %p13428_p6 = por %p13427_p4, %p13426_p1 }
  0x26   : > { %p13422_p0 = pneg %p13421_p13 }
  0x28   : > { %p13429_p8 = pnand %p13428_p6, %p13422_p0 }
  0x2a   : > { %13432 = shalt.err (!%p13429_p8)
}
  0x2b   : > { %s16359_s26 = smov 128   ;;  %s16361_s27 = smov 8  }
  0x2c   : > { %13327 = dma.hbm_to_vmem [thread:$0]  (!%p13702_p5), %s16485_s11, 2304, %s13690_s1, [#allocation6], %s16359_s26, %s16359_s26, %s16361_s27  }
  0x2d   : > { %s13433_s2 = scalar_lea.hbm %s16348_s14, 256 }
  0x2e   : > { %p13434_p9 = scmp.ne.s32.totalorder %s16348_s14, %s13433_s2  ;;  %p13440_p12 = scmp.lt.u32.totalorder %s13433_s2, %s16348_s14 }
  0x30   : > { %p13436_p10 = pnand %p13434_p9, %p13716_p7 }
  0x32   : > { %p13437_p11 = pneg %p13436_p10 }
  0x34   : > { %p13442_p13 = pnand %p13440_p12, %p13437_p11 }
  0x36   : > { %13445 = shalt.err (!%p13442_p13)
}
  0x37   : > { %s13446_s1 = scalar_lea.vmem %s13698_s23, 256  ;;  %p13454_p6 = scmp.lt.s32.totalorder %s13698_s23, %s13698_s23 }
  0x38   : > { %p13447_p0 = scmp.ne.s32.totalorder %s13698_s23, %s13446_s1  ;;  %p13455_p8 = scmp.lt.s32.totalorder %s13446_s1, %s13446_s1 }
  0x3a   : > { %p13449_p1 = pnand %p13447_p0, %p13716_p7  ;;  %p13456_p9 = por %p13455_p8, %p13454_p6 }
  0x3c   : > { %p13450_p4 = pneg %p13449_p1 }
  0x3e   : > { %p13457_p10 = pnand %p13456_p9, %p13450_p4 }
  0x40   : > { %13460 = shalt.err (!%p13457_p10)
}
  0x41   : > { %13333 = dma.hbm_to_vmem [thread:$0]  (!%p13702_p5), %s16348_s14, 256, %s13698_s23, [#allocation9], %s16359_s26, %s16359_s26, %s16361_s27  }
  0x42   : > { %s16487_s29 = sld [smem:[#allocation128_spill]] }
  0x48   : > { %s13461_s0 = scalar_lea.hbm %s16487_s29, 73728 }
  0x49   : > { %p13462_p11 = scmp.ne.s32.totalorder %s16487_s29, %s13461_s0  ;;  %p13468_p0 = scmp.lt.u32.totalorder %s13461_s0, %s16487_s29 }
  0x4b   : > { %p13464_p12 = pnand %p13462_p11, %p13716_p7 }
  0x4d   : > { %p13465_p13 = pneg %p13464_p12 }
  0x4f   : > { %p13470_p1 = pnand %p13468_p0, %p13465_p13 }
  0x51   : > { %13473 = shalt.err (!%p13470_p1)
}
  0x52   : > { %s13474_s23 = scalar_lea.vmem %s13706_s3, 73728  ;;  %p13482_p9 = scmp.lt.s32.totalorder %s13706_s3, %s13706_s3 }
  0x53   : > { %p13475_p4 = scmp.ne.s32.totalorder %s13706_s3, %s13474_s23  ;;  %p13483_p10 = scmp.lt.s32.totalorder %s13474_s23, %s13474_s23 }
  0x55   : > { %p13477_p6 = pnand %p13475_p4, %p13716_p7  ;;  %p13484_p11 = por %p13483_p10, %p13482_p9 }
  0x57   : > { %p13478_p8 = pneg %p13477_p6 }
  0x59   : > { %p13485_p12 = pnand %p13484_p11, %p13478_p8 }
  0x5b   : > { %13488 = shalt.err (!%p13485_p12)
}
  0x5c   : > { %s13570_s4 = smov 256   ;;  %s13571_s7 = smov 16  }
  0x5d   : > { %13324 = dma.hbm_to_vmem [thread:$0]  (!%p13702_p5), %s16487_s29, 73728, %s13706_s3, [#allocation4], %s13570_s4, %s13570_s4, %s13571_s7  }
  0x5e   : > { %s13572_s0 = smov [#allocation7]   ;;  %s13573_s2 = smov [#allocation10]  }
  0x5f   : > { %s535_s21 = sshll.u32 %s13572_s0, 4  ;;  %s567_s25 = sshll.u32 %s13573_s2, 4  ;;  %s536_s21 = int_to_ptr.vmem [resolvable:$true] %s535_s21  ;;  %s13789_s25 = int_to_ptr.vmem [resolvable:$true] %s567_s25 }
  0x60   : > { %s13489_s26 = scalar_lea.hbm %s16346_s12, 2304 }
  0x61   : > { %p13490_p13 = scmp.ne.s32.totalorder %s16346_s12, %s13489_s26  ;;  %p13496_p4 = scmp.lt.u32.totalorder %s13489_s26, %s16346_s12 }
  0x63   : > { %p13492_p0 = pnand %p13490_p13, %p13716_p7 }
  0x65   : > { %p13493_p1 = pneg %p13492_p0 }
  0x67   : > { %p13498_p6 = pnand %p13496_p4, %p13493_p1 }
  0x69   : > { %13501 = shalt.err (!%p13498_p6)
}
  0x6a   : > { %s13502_s4 = scalar_lea.vmem %s536_s21, 2304  ;;  %p13510_p11 = scmp.lt.s32.totalorder %s536_s21, %s536_s21 }
  0x6b   : > { %p13503_p8 = scmp.ne.s32.totalorder %s536_s21, %s13502_s4  ;;  %p13511_p12 = scmp.lt.s32.totalorder %s13502_s4, %s13502_s4 }
  0x6d   : > { %p13505_p9 = pnand %p13503_p8, %p13716_p7  ;;  %p13512_p2 = por %p13511_p12, %p13510_p11 }
  0x6f   : > { %p13506_p10 = pneg %p13505_p9 }
  0x71   : > { %p13513_p3 = pnand %p13512_p2, %p13506_p10 }
  0x73   : > { %13516 = shalt.err (!%p13513_p3)
}
  0x74   : > { %s16488_s11 = smov 8   ;;  %s16489_s27 = smov 128  }
  0x75   : > { %13330 = dma.hbm_to_vmem [thread:$0]  (!%p13702_p5), %s16346_s12, 2304, %s536_s21, [#allocation6], %s16489_s27, %s16489_s27, %s16488_s11  }
  0x76   : > { %s13517_s2 = scalar_lea.hbm %s16350_s16, 256 }
  0x77   : > { %p13518_p13 = scmp.ne.s32.totalorder %s16350_s16, %s13517_s2  ;;  %p13524_p0 = scmp.lt.u32.totalorder %s13517_s2, %s16350_s16 }
  0x79   : > { %p13520_p2 = pnand %p13518_p13, %p13716_p7 }
  0x7b   : > { %p13521_p3 = pneg %p13520_p2 }
  0x7d   : > { %p13526_p1 = pnand %p13524_p0, %p13521_p3 }
  0x7f   : > { %13529 = shalt.err (!%p13526_p1)
}
  0x80   : > { %s13530_s21 = scalar_lea.vmem %s13789_s25, 256  ;;  %p13538_p9 = scmp.lt.s32.totalorder %s13789_s25, %s13789_s25 }
  0x81   : > { %p13531_p4 = scmp.ne.s32.totalorder %s13789_s25, %s13530_s21  ;;  %p13539_p10 = scmp.lt.s32.totalorder %s13530_s21, %s13530_s21 }
  0x83   : > { %p13533_p6 = pnand %p13531_p4, %p13716_p7  ;;  %p13540_p11 = por %p13539_p10, %p13538_p9 }
  0x85   : > { %p13534_p8 = pneg %p13533_p6 }
  0x87   : > { %p13541_p12 = pnand %p13540_p11, %p13534_p8 }
  0x89   : > { %13544 = shalt.err (!%p13541_p12)
}
  0x8a   : > { %13336 = dma.hbm_to_vmem [thread:$0]  (!%p13702_p5), %s16350_s16, 256, %s13789_s25, [#allocation9], %s16489_s27, %s16489_s27, %s16488_s11  }
  0x8b   : > { %p16490_p13 = scmp.ne.s32.totalorder %s16483_s18, 0 }
  0x8d   : > { %605 = sbr.rel (%p16490_p13) target bundleno = 7157 (0x1bf5), region = 96 }
  0x94   : > { %p16491_p7 = scmp.eq.s32.totalorder %s13685_s22, 0 }
  0x96   : > { %13550 = dma.done.wait (%p16491_p7), [#allocation4], 73728   ;;  %p16492_p2 = pmov %p16491_p7 }
  0x98   : > { %13552 = vsyncadd (%p16492_p2), [#allocation4], 4294893568  ;;  %p16493_p3 = pmov %p16492_p2 }
  0x99   : > { %p16494_p0 = pmov %p16492_p2 }
  0x9a   : > { %13554 = dma.done.wait (%p16493_p3), [#allocation6], 4608  }
  0x9b   : > { %13556 = vsyncadd (%p16494_p0), [#allocation6], 4294962688  ;;  %p16495_p1 = pmov %p16494_p0 }
  0x9c   : > { %p16496_p5 = pmov %p16494_p0 }
  0x9d   : > { %13558 = dma.done.wait (%p16495_p1), [#allocation9], 512  }
  0x9e   : > { %13560 = vsyncadd (%p16496_p5), [#allocation9], 4294966784  ;;  %p682_p4 = scmp.lt.s32.totalorder %s13685_s22, 1  ;;  %s16497_s30 = sld [smem:[#allocation127_spill]]  ;;  %vm912_vm0 = vcmask 31744   ;;  %vm919_vm1 = vcmask 1043456  }
  0x9f   : > { %s16498_s7 = sld [smem:[#allocation125_spill]]  ;;  %vm2457_vm2 = vcmask 130048   ;;  %vm2701_vm3 = vcmask 523264   ;;  %vm2571_vm4 = vcmask 64512   ;;  %s16609_s28 = sld [smem:[#allocation126_spill]] }
  0xa0   : > { %s16726_s22 = smov (!%p682_p4, %s13685_s22), 1  ;;  %vm15419_vm5 = vmpackc.low %vm2701_vm3, %vm2701_vm3  ;;  %s16721_s23 = sld [smem:[#allocation129_spill]] }
  0xa1   : > { %s10104_s27 = sshll.u32 %s16726_s22, 3  ;;  %s13300_s4 = smul.u32 48, %s16726_s22 }
  0xa2   : > { %s2442_s20 = sld [smem:[#allocation2]] }
  0xa3   : > { %s15309_s25 = scalar_lea.vmem %s16353_s19, %s13300_s4 }
  0xa4   : > { %v9583_v0 = vld [vmem:[%s16497_s30 + $0x180] sm:$0xff]  ;;  %v9584_v1 = vld [vmem:[%s16497_s30 + $0x188] sm:$0xff]  ;;  %v9585_v5 = vld [vmem:[%s16497_s30 + $0x190] sm:$0xff] }
  0xa5   : > { %v9567_v2 = vld [vmem:[%s16497_s30 + $0x100] sm:$0xff]  ;;  %v13865_v3 = vpack.c.bf16 %v9584_v1, %v9583_v0  ;;  %v9568_v4 = vld [vmem:[%s16497_s30 + $0x108] sm:$0xff]  ;;  %v9586_v6 = vld [vmem:[%s16497_s30 + $0x198] sm:$0xff]  ;;  %s13917_s18 = scalar_lea.vmem %s16498_s7, %s10104_s27  ;;  %s15404_s0 = scalar_lea.vmem %s16609_s28, %s10104_s27 }
  0xa6   : > { %v13876_v7 = vpack.c.bf16 %v9568_v4, %v9567_v2  ;;  %v13878_v8 = vpack.c.bf16 %v9586_v6, %v9585_v5  ;;  %v9569_v9 = vld [vmem:[%s16497_s30 + $0x110] sm:$0xff]  ;;  %v9570_v10 = vld [vmem:[%s16497_s30 + $0x118] sm:$0xff]  ;;  %v9587_v11 = vld [vmem:[%s16497_s30 + $0x1a0] sm:$0xff] }
  0xa7   : > { %11707 = vmatprep.subr.bf16.mxu1 %v13865_v3  ;;  %v9588_v12 = vld [vmem:[%s16497_s30 + $0x1a8] sm:$0xff]  ;;  %v13894_v13 = vpack.c.bf16 %v9570_v10, %v9569_v9  ;;  %v9571_v15 = vld [vmem:[%s16497_s30 + $0x120] sm:$0xff]  ;;  %v9589_v17 = vld [vmem:[%s16497_s30 + $0x1b0] sm:$0xff] }
  0xa8   : > { %11709 = vmatpush3.bf16.msra.mxu1 %v13876_v7  ;;  %v13898_v14 = vpack.c.bf16 %v9588_v12, %v9587_v11  ;;  %v9572_v16 = vld [vmem:[%s16497_s30 + $0x128] sm:$0xff]  ;;  %v9590_v18 = vld [vmem:[%s16497_s30 + $0x1b8] sm:$0xff]  ;;  %v9573_v21 = vld [vmem:[%s16497_s30 + $0x130] sm:$0xff] }
  0xa9   : > { %11711 = vmatprep.subr.bf16.mxu1 %v13878_v8  ;;  %v13920_v19 = vpack.c.bf16 %v9572_v16, %v9571_v15  ;;  %v13923_v20 = vpack.c.bf16 %v9590_v18, %v9589_v17  ;;  %v9574_v22 = vld [vmem:[%s16497_s30 + $0x138] sm:$0xff]  ;;  %v9591_v23 = vld [vmem:[%s16497_s30 + $0x1c0] sm:$0xff]  ;;  %v9592_v24 = vld [vmem:[%s16497_s30 + $0x1c8] sm:$0xff] }
  0xaa   : > { %v13938_v25 = vld [vmem:[%s13917_s18] sm:$0xff]  ;;  %v716_v28 = vld [vmem:[%s16497_s30 + $0x88] sm:$0xff]  ;;  %v13954_v30 = vpack.c.bf16 %v9574_v22, %v9573_v21  ;;  %v13962_v33 = vpack.c.bf16 %v9592_v24, %v9591_v23  ;;  %v9593_v37 = vld [vmem:[%s16497_s30 + $0x1d0] sm:$0xff] }
  0xab   : > { %v13942_v26 = vcombine.high %v13938_v25, %v13938_v25  ;;  %v715_v27 = vld [vmem:[%s16497_s30 + $0x80] sm:$0xff]  ;;  %v700_v32 = vld [vmem:[%s16497_s30 + $0x8] sm:$0xff]  ;;  %v9594_v38 = vld [vmem:[%s16497_s30 + $0x1d8] sm:$0xff] }
  0xac   : > { %11713 = vmatpush3.bf16.msra.mxu1 %v13894_v13  ;;  %v699_v29 = vld [vmem:[%s16497_s30] sm:$0xff]  ;;  %v13956_v31 = vpack.c.bf16 %v716_v28, %v715_v27  ;;  %v9576_v35 = vld [vmem:[%s16497_s30 + $0x148] sm:$0xff]  ;;  %v13986_v40 = vpack.c.bf16 %v9594_v38, %v9593_v37  ;;  %v9577_v41 = vld [vmem:[%s16497_s30 + $0x150] sm:$0xff] }
  0xad   : > { %11715 = vmatprep.subr.bf16.mxu1 %v13898_v14  ;;  %v9575_v34 = vld [vmem:[%s16497_s30 + $0x140] sm:$0xff]  ;;  %903 = vmatprep.mubr.f32.mxu1 %v13942_v26  ;;  %v13971_v36 = vpack.c.bf16 %v700_v32, %v699_v29  ;;  %v9578_v42 = vld [vmem:[%s16497_s30 + $0x158] sm:$0xff]  ;;  %v9596_v44 = vld [vmem:[%s16497_s30 + $0x1e8] sm:$0xff] }
  0xae   : > { %11675 = vmatprep.subr.bf16.mxu0 %v13956_v31  ;;  %798 = vmatprep.mubr.f32.mxu0 %v13942_v26  ;;  %v13983_v39 = vpack.c.bf16 %v9576_v35, %v9575_v34  ;;  %v9595_v43 = vld [vmem:[%s16497_s30 + $0x1e0] sm:$0xff]  ;;  %v14001_v45 = vpack.c.bf16 %v9578_v42, %v9577_v41  ;;  %v9580_v48 = vld [vmem:[%s16497_s30 + $0x168] sm:$0xff]  ;;  %v9597_v49 = vld [vmem:[%s16497_s30 + $0x1f0] sm:$0xff] }
  0xaf   : > { %11677 = vmatpush3.bf16.msra.mxu0 %v13971_v36  ;;  %v14004_v46 = vpack.c.bf16 %v9596_v44, %v9595_v43  ;;  %v9579_v47 = vld [vmem:[%s16497_s30 + $0x160] sm:$0xff]  ;;  %v9598_v50 = vld [vmem:[%s16497_s30 + $0x1f8] sm:$0xff]  ;;  %v9581_v53 = vld [vmem:[%s16497_s30 + $0x170] sm:$0xff] }
  0xb0   : > { %11717 = vmatpush3.bf16.msra.mxu1 %v13920_v19  ;;  %v14019_v51 = vpack.c.bf16 %v9580_v48, %v9579_v47  ;;  %v14022_v52 = vpack.c.bf16 %v9598_v50, %v9597_v49  ;;  %v9582_v54 = vld [vmem:[%s16497_s30 + $0x178] sm:$0xff]  ;;  %v717_v56 = vld [vmem:[%s16497_s30 + $0x90] sm:$0xff]  ;;  %v719_v62 = vld [vmem:[%s16497_s30 + $0xa0] sm:$0xff] }
  0xb1   : > { %11719 = vmatprep.subr.bf16.mxu1 %v13923_v20  ;;  %v14031_v55 = vpack.c.bf16 %v9582_v54, %v9581_v53  ;;  %v718_v57 = vld [vmem:[%s16497_s30 + $0x98] sm:$0xff]  ;;  %v701_v59 = vld [vmem:[%s16497_s30 + $0x10] sm:$0xff]  ;;  %v720_v63 = vld [vmem:[%s16497_s30 + $0xa8] sm:$0xff] }
  0xb2   : > { %v14042_v58 = vpack.c.bf16 %v718_v57, %v717_v56  ;;  %v702_v60 = vld [vmem:[%s16497_s30 + $0x18] sm:$0xff]  ;;  %v14060_v0 = vpack.c.bf16 %v720_v63, %v719_v62  ;;  %v703_v1 = vld [vmem:[%s16497_s30 + $0x20] sm:$0xff]  ;;  %v704_v2 = vld [vmem:[%s16497_s30 + $0x28] sm:$0xff] }
  0xb3   : > { %v14050_v61 = vpack.c.bf16 %v702_v60, %v701_v59  ;;  %v9599_v4 = vld [vmem:[%s16339_s5 + $0x10] sm:$0xff]  ;;  %v14071_v5 = vpack.c.bf16 %v704_v2, %v703_v1  ;;  %v722_v9 = vld [vmem:[%s16497_s30 + $0xb8] sm:$0xff]  ;;  %v723_v16 = vld [vmem:[%s16497_s30 + $0xc0] sm:$0xff] }
  0xb4   : > { %11721 = vmatpush3.bf16.msra.mxu1 %v13954_v30  ;;  %11679 = vmatprep.subr.bf16.mxu0 %v14042_v58  ;;  %v721_v6 = vld [vmem:[%s16497_s30 + $0xb0] sm:$0xff]  ;;  %v706_v12 = vld [vmem:[%s16497_s30 + $0x38] sm:$0xff]  ;;  %v724_v17 = vld [vmem:[%s16497_s30 + $0xc8] sm:$0xff] }
  0xb5   : > { %11723 = vmatprep.subr.bf16.mxu1 %v13962_v33  ;;  %11681 = vmatpush3.bf16.msra.mxu0 %v14050_v61  ;;  %v14082_v10 = vpack.c.bf16 %v722_v9, %v721_v6  ;;  %v705_v11 = vld [vmem:[%s16497_s30 + $0x30] sm:$0xff]  ;;  %v14100_v18 = vpack.c.bf16 %v724_v17, %v723_v16  ;;  %v707_v21 = vld [vmem:[%s16497_s30 + $0x40] sm:$0xff]  ;;  %v708_v22 = vld [vmem:[%s16497_s30 + $0x48] sm:$0xff] }
  0xb6   : > { %11683 = vmatprep.subr.bf16.mxu0 %v14060_v0  ;;  %v14090_v15 = vpack.c.bf16 %v706_v12, %v705_v11  ;;  %v14108_v23 = vpack.c.bf16 %v708_v22, %v707_v21  ;;  %v725_v24 = vld [vmem:[%s16497_s30 + $0xd0] sm:$0xff]  ;;  %v726_v27 = vld [vmem:[%s16497_s30 + $0xd8] sm:$0xff]  ;;  %v727_v35 = vld [vmem:[%s16497_s30 + $0xe0] sm:$0xff] }
  0xb7   : > { %v14118_v28 = vpack.c.bf16 %v726_v27, %v725_v24  ;;  %v709_v29 = vld [vmem:[%s16497_s30 + $0x50] sm:$0xff]  ;;  %v710_v32 = vld [vmem:[%s16497_s30 + $0x58] sm:$0xff]  ;;  %v728_v37 = vld [vmem:[%s16497_s30 + $0xe8] sm:$0xff] }
  0xb8   : > { %11725 = vmatpush3.bf16.msra.mxu1 %v13983_v39  ;;  %v14126_v34 = vpack.c.bf16 %v710_v32, %v709_v29  ;;  %v14136_v38 = vpack.c.bf16 %v728_v37, %v727_v35  ;;  %v711_v41 = vld [vmem:[%s16497_s30 + $0x60] sm:$0xff]  ;;  %v712_v42 = vld [vmem:[%s16497_s30 + $0x68] sm:$0xff]  ;;  %v729_v44 = vld [vmem:[%s16497_s30 + $0xf0] sm:$0xff] }
  0xb9   : > { %11727 = vmatprep.subr.bf16.mxu1 %v13986_v40  ;;  %11685 = vmatpush3.bf16.msra.mxu0 %v14071_v5  ;;  %v14144_v43 = vpack.c.bf16 %v712_v42, %v711_v41  ;;  %v730_v47 = vld [vmem:[%s16497_s30 + $0xf8] sm:$0xff]  ;;  %v713_v49 = vld [vmem:[%s16497_s30 + $0x70] sm:$0xff]  ;;  %v9623_v54 = vld [vmem:[%s16497_s30 + $0x280] sm:$0xff] }
  0xba   : > { %11687 = vmatprep.subr.bf16.mxu0 %v14082_v10  ;;  %v14154_v48 = vpack.c.bf16 %v730_v47, %v729_v44  ;;  %v714_v50 = vld [vmem:[%s16497_s30 + $0x78] sm:$0xff]  ;;  %v9624_v56 = vld [vmem:[%s16497_s30 + $0x288] sm:$0xff]  ;;  %v9607_v59 = vld [vmem:[%s16497_s30 + $0x200] sm:$0xff] }
  0xbb   : > { %v14162_v53 = vpack.c.bf16 %v714_v50, %v713_v49  ;;  %v9608_v60 = vld [vmem:[%s16497_s30 + $0x208] sm:$0xff]  ;;  %v9625_v63 = vld [vmem:[%s16497_s30 + $0x290] sm:$0xff]  ;;  %v9626_v1 = vld [vmem:[%s16497_s30 + $0x298] sm:$0xff] }
  0xbc   : > { %11729 = vmatpush3.bf16.msra.mxu1 %v14001_v45  ;;  %v9600_v6 = vld [vmem:[%s16339_s5 + $0x18] sm:$0xff]  ;;  %v14190_v9 = vpack.c.bf16 %v9608_v60, %v9607_v59  ;;  %v14193_v11 = vpack.c.bf16 %v9626_v1, %v9625_v63  ;;  %v9609_v12 = vld [vmem:[%s16497_s30 + $0x210] sm:$0xff]  ;;  %v9627_v17 = vld [vmem:[%s16497_s30 + $0x2a0] sm:$0xff] }
  0xbd   : > { %11731 = vmatprep.subr.bf16.mxu1 %v14004_v46  ;;  %11689 = vmatpush3.bf16.msra.mxu0 %v14090_v15  ;;  %v9610_v16 = vld [vmem:[%s16497_s30 + $0x218] sm:$0xff]  ;;  %v9628_v21 = vld [vmem:[%s16497_s30 + $0x2a8] sm:$0xff]  ;;  %v9611_v27 = vld [vmem:[%s16497_s30 + $0x220] sm:$0xff] }
  0xbe   : > { %11691 = vmatprep.subr.bf16.mxu0 %v14100_v18  ;;  %v14211_v22 = vpack.c.bf16 %v9610_v16, %v9609_v12  ;;  %v14215_v24 = vpack.c.bf16 %v9628_v21, %v9627_v17  ;;  %v9612_v29 = vld [vmem:[%s16497_s30 + $0x228] sm:$0xff]  ;;  %v9629_v32 = vld [vmem:[%s16497_s30 + $0x2b0] sm:$0xff]  ;;  %v9630_v35 = vld [vmem:[%s16497_s30 + $0x2b8] sm:$0xff] }
  0xbf   : > { %v14230_v37 = vpack.c.bf16 %v9612_v29, %v9611_v27  ;;  %v14233_v41 = vpack.c.bf16 %v9630_v35, %v9629_v32  ;;  %v9613_v42 = vld [vmem:[%s16497_s30 + $0x230] sm:$0xff]  ;;  %v9614_v44 = vld [vmem:[%s16497_s30 + $0x238] sm:$0xff]  ;;  %v9631_v47 = vld [vmem:[%s16497_s30 + $0x2c0] sm:$0xff] }
  0xc0   : > { %11733 = vmatpush3.bf16.msra.mxu1 %v14019_v51  ;;  %16499 = vst [vmem:[#allocation15_spill] sm:$0xff] %v14215_v24  ;;  %v9632_v49 = vld [vmem:[%s16497_s30 + $0x2c8] sm:$0xff]  ;;  %v14248_v50 = vpack.c.bf16 %v9614_v44, %v9613_v42  ;;  %v9633_v59 = vld [vmem:[%s16497_s30 + $0x2d0] sm:$0xff]  ;;  %v9634_v60 = vld [vmem:[%s16497_s30 + $0x2d8] sm:$0xff] }
  0xc1   : > { %11735 = vmatprep.subr.bf16.mxu1 %v14022_v52  ;;  %11693 = vmatpush3.bf16.msra.mxu0 %v14108_v23  ;;  %16500 = vst [vmem:[#allocation16_spill] sm:$0xff] %v14230_v37  ;;  %16501 = vst [vmem:[#allocation17_spill] sm:$0xff] %v14233_v41  ;;  %v14269_v63 = vpack.c.bf16 %v9634_v60, %v9633_v59  ;;  %v9617_v1 = vld [vmem:[%s16497_s30 + $0x250] sm:$0xff]  ;;  %v9636_v12 = vld [vmem:[%s16497_s30 + $0x2e8] sm:$0xff] }
  0xc2   : > { %11695 = vmatprep.subr.bf16.mxu0 %v14118_v28  ;;  %16502 = vst [vmem:[#allocation18_spill] sm:$0xff] %v14248_v50  ;;  %v9619_v21 = vld [vmem:[%s16497_s30 + $0x260] sm:$0xff]  ;;  %v9620_v27 = vld [vmem:[%s16497_s30 + $0x268] sm:$0xff]  ;;  %v9637_v29 = vld [vmem:[%s16497_s30 + $0x2f0] sm:$0xff] }
  0xc3   : > { %16505 = vst [vmem:[#allocation21_spill] sm:$0xff] %v14269_v63  ;;  %v9638_v32 = vld [vmem:[%s16497_s30 + $0x2f8] sm:$0xff]  ;;  %v14302_v35 = vpack.c.bf16 %v9620_v27, %v9619_v21  ;;  %v9621_v44 = vld [vmem:[%s16497_s30 + $0x270] sm:$0xff]  ;;  %v9681_v21 = vld [vmem:[%s16497_s30 + $0x400] sm:$0xff] }
  0xc4   : > { %11737 = vmatpush3.bf16.msra.mxu1 %v14031_v55  ;;  %v14305_v42 = vpack.c.bf16 %v9638_v32, %v9637_v29  ;;  %v9682_v27 = vld [vmem:[%s16497_s30 + $0x408] sm:$0xff] }
  0xc5   : > { %11697 = vmatpush3.bf16.msra.mxu0 %v14126_v34  ;;  %16508 = vst [vmem:[#allocation24_spill] sm:$0xff] %v14302_v35  ;;  %v14348_v32 = vpack.c.bf16 %v9682_v27, %v9681_v21 }
  0xc6   : > { %11699 = vmatprep.subr.bf16.mxu0 %v14136_v38  ;;  %16509 = vst [vmem:[#allocation25_spill] sm:$0xff] %v14305_v42 }
  0xc7   : > { %904 = vmatmul.mubr.f32.vlgmr.msra.gmra.mrb[0].mxu1 %v13938_v25  ;;  %16512 = vst [vmem:[#allocation28_spill] sm:$0xff] %v14348_v32 }
  0xc8   : > { %11071 = vmatprep.mubr.msk.f32.mxu1 %vm912_vm0, %v9599_v4  ;;  %v14185_v4 = vpack.c.bf16 %v9624_v56, %v9623_v54  ;;  %v14251_v54 = vpack.c.bf16 %v9632_v49, %v9631_v47  ;;  %v9615_v56 = vld [vmem:[%s16497_s30 + $0x240] sm:$0xff]  ;;  %v9622_v47 = vld [vmem:[%s16497_s30 + $0x278] sm:$0xff] }
  0xc9   : > { %11701 = vmatpush3.bf16.msra.mxu0 %v14144_v43  ;;  %v14314_v49 = vpack.c.bf16 %v9622_v47, %v9621_v44  ;;  %v9699_v44 = vld [vmem:[%s16497_s30 + $0x490] sm:$0xff]  ;;  %v9700_v47 = vld [vmem:[%s16497_s30 + $0x498] sm:$0xff] }
  0xca   : > { %11703 = vmatprep.subr.bf16.mxu0 %v14154_v48  ;;  %16503 = vst [vmem:[#allocation19_spill] sm:$0xff] %v14251_v54 }
  0xcb   : > { %16510 = vst [vmem:[#allocation26_spill] sm:$0xff] %v14314_v49 }
  0xcd   : > { %11705 = vmatpush3.bf16.msra.mxu0 %v14162_v53 }
  0xd0   : > { %799 = vmatmul.mubr.f32.vlgmr.msra.gmra.mrb[0].mxu0 %v13938_v25 }
 0x19a   : > { %v10173_v57 = vpop.f32.mrb[0].mxu1 }
 0x19b   : > { %v10174_v62 = vpop.f32.mrb[1].mxu1 }
 0x19c   : > { %v10175_v2 = vadd.f32 %v10174_v62, %v10173_v57  ;;  %v9616_v57 = vld [vmem:[%s16497_s30 + $0x248] sm:$0xff] }
 0x19d   : > { %v14266_v62 = vpack.c.bf16 %v9616_v57, %v9615_v56  ;;  %v804_v56 = vld [vmem:[%s16339_s5] sm:$0xff] }
 0x19e   : > { %11069 = vmatprep.subr.msk.mxu1 %vm919_vm1, %v10175_v2  ;;  %11076 = vmatprep.mubr.msk.f32.mxu0 %vm912_vm0, %v804_v56  ;;  %v9683_v56 = vld [vmem:[%s16497_s30 + $0x410] sm:$0xff] }
 0x19f   : > { %11070 = vmatpush3.msk.msra.mxu1 %vm919_vm1, %v10175_v2  ;;  %16504 = vst [vmem:[#allocation20_spill] sm:$0xff] %v14266_v62  ;;  %v9618_v2 = vld [vmem:[%s16497_s30 + $0x258] sm:$0xff] }
 0x1a0   : > { %11072 = vmatmul.mubr.msk.f32.vlgmr.msra.gmra.mrb[2].mxu1 %vm912_vm0, %v9600_v6  ;;  %11739 = vmatprep.subr.bf16.mxu1 %v14185_v4  ;;  %v9635_v6 = vld [vmem:[%s16497_s30 + $0x2e0] sm:$0xff]  ;;  %v14284_v16 = vpack.c.bf16 %v9618_v2, %v9617_v1  ;;  %v805_v1 = vld [vmem:[%s16339_s5 + $0x8] sm:$0xff] }
 0x1a1   : > { %11741 = vmatpush3.bf16.msra.mxu1 %v14190_v9  ;;  %1179 = vmatprep.mubr.f32.mxu1 %v13942_v26  ;;  %v14287_v17 = vpack.c.bf16 %v9636_v12, %v9635_v6  ;;  %v9639_v2 = vld [vmem:[%s16339_s5 + $0x20] sm:$0xff]  ;;  %v9698_v12 = vld [vmem:[%s16497_s30 + $0x488] sm:$0xff] }
 0x1a2   : > { %11743 = vmatprep.subr.bf16.mxu1 %v14193_v11  ;;  %16506 = vst [vmem:[#allocation22_spill] sm:$0xff] %v14284_v16  ;;  %v9697_v6 = vld [vmem:[%s16497_s30 + $0x480] sm:$0xff] }
 0x1a3   : > { %16507 = vst [vmem:[#allocation23_spill] sm:$0xff] %v14287_v17  ;;  %v10138_v57 = vpop.f32.mrb[0].mxu0  ;;  %v14346_v29 = vpack.c.bf16 %v9698_v12, %v9697_v6  ;;  %v9685_v6 = vld [vmem:[%s16497_s30 + $0x420] sm:$0xff]  ;;  %v9686_v12 = vld [vmem:[%s16497_s30 + $0x428] sm:$0xff] }
 0x1a4   : > { %v10139_v59 = vpop.f32.mrb[1].mxu0  ;;  %v14384_v27 = vpack.c.bf16 %v9686_v12, %v9685_v6  ;;  %v9705_v6 = vld [vmem:[%s16497_s30 + $0x4c0] sm:$0xff]  ;;  %v9706_v12 = vld [vmem:[%s16497_s30 + $0x4c8] sm:$0xff] }
 0x1a5   : > { %11745 = vmatpush3.bf16.msra.mxu1 %v14211_v22  ;;  %v10140_v60 = vadd.f32 %v10139_v59, %v10138_v57  ;;  %16511 = vst [vmem:[#allocation27_spill] sm:$0xff] %v14346_v29  ;;  %v9684_v57 = vld [vmem:[%s16497_s30 + $0x418] sm:$0xff]  ;;  %v14364_v59 = vpack.c.bf16 %v9700_v47, %v9699_v44  ;;  %v9703_v44 = vld [vmem:[%s16497_s30 + $0x4b0] sm:$0xff] }
 0x1a6   : > { %11747 = vmatprep.subr.bf16.mxu1 %v14215_v24  ;;  %16516 = vst [vmem:[#allocation32_spill] sm:$0xff] %v14384_v27  ;;  %v9704_v47 = vld [vmem:[%s16497_s30 + $0x4b8] sm:$0xff] }
 0x1a7   : > { %11074 = vmatprep.subr.msk.mxu0 %vm919_vm1, %v10140_v60  ;;  %16513 = vst [vmem:[#allocation29_spill] sm:$0xff] %v14364_v59 }
 0x1a8   : > { %11075 = vmatpush3.msk.msra.mxu0 %vm919_vm1, %v10140_v60  ;;  %v14366_v60 = vpack.c.bf16 %v9684_v57, %v9683_v56  ;;  %v9687_v56 = vld [vmem:[%s16497_s30 + $0x430] sm:$0xff]  ;;  %v9688_v57 = vld [vmem:[%s16497_s30 + $0x438] sm:$0xff] }
 0x1a9   : > { %11749 = vmatpush3.bf16.msra.mxu1 %v14230_v37  ;;  %11077 = vmatmul.mubr.msk.f32.vlgmr.msra.gmra.mrb[2].mxu0 %vm912_vm0, %v805_v1  ;;  %v9701_v1 = vld [vmem:[%s16497_s30 + $0x4a0] sm:$0xff]  ;;  %v3005_v37 = vld [vmem:[#allocation3 + $0x50] sm:$0xff] }
 0x1aa   : > { %11751 = vmatprep.subr.bf16.mxu1 %v14233_v41  ;;  %11081 = vmatprep.mubr.msk.f32.mxu0 %vm912_vm0, %v9639_v2  ;;  %16514 = vst [vmem:[#allocation30_spill] sm:$0xff] %v14366_v60  ;;  %v9702_v2 = vld [vmem:[%s16497_s30 + $0x4a8] sm:$0xff] }
 0x1ab   : > { %v14382_v21 = vpack.c.bf16 %v9702_v2, %v9701_v1  ;;  %v14400_v1 = vpack.c.bf16 %v9704_v47, %v9703_v44  ;;  %v14402_v2 = vpack.c.bf16 %v9688_v57, %v9687_v56  ;;  %v9690_v44 = vld [vmem:[%s16497_s30 + $0x448] sm:$0xff]  ;;  %v14418_v47 = vpack.c.bf16 %v9706_v12, %v9705_v6  ;;  %v9707_v57 = vld [vmem:[%s16497_s30 + $0x4d0] sm:$0xff] }
 0x1ad   : > { %11753 = vmatpush3.bf16.msra.mxu1 %v14248_v50  ;;  %16515 = vst [vmem:[#allocation31_spill] sm:$0xff] %v14382_v21  ;;  %16517 = vst [vmem:[#allocation33_spill] sm:$0xff] %v14400_v1  ;;  %v3006_v50 = vld [vmem:[#allocation3 + $0x58] sm:$0xff] }
 0x1ae   : > { %11755 = vmatprep.subr.bf16.mxu1 %v14251_v54  ;;  %16518 = vst [vmem:[#allocation34_spill] sm:$0xff] %v14402_v2  ;;  %16519 = vst [vmem:[#allocation35_spill] sm:$0xff] %v14418_v47 }
 0x1b1   : > { %11757 = vmatpush3.bf16.msra.mxu1 %v14266_v62 }
 0x1b2   : > { %11759 = vmatprep.subr.bf16.mxu1 %v14269_v63 }
 0x1b5   : > { %11761 = vmatpush3.bf16.msra.mxu1 %v14284_v16 }
 0x1b6   : > { %11763 = vmatprep.subr.bf16.mxu1 %v14287_v17 }
 0x1b9   : > { %11765 = vmatpush3.bf16.msra.mxu1 %v14302_v35 }
 0x1ba   : > { %11767 = vmatprep.subr.bf16.mxu1 %v14305_v42  ;;  %v9646_v42 = vld [vmem:[%s16497_s30 + $0x310] sm:$0xff] }
 0x1bd   : > { %11769 = vmatpush3.bf16.msra.mxu1 %v14314_v49 }
 0x1be   : > { %11803 = vmatprep.subr.bf16.mxu1 %v14346_v29 }
 0x1c0   : > { %1180 = vmatmul.mubr.f32.vlgmr.msra.gmra.mrb[4].mxu1 %v13938_v25 }
 0x1c1   : > { %1563 = vmatprep.mubr.f32.mxu1 %v13942_v26  ;;  %11805 = vmatpush3.bf16.msra.mxu1 %v14348_v32  ;;  %v9640_v32 = vld [vmem:[%s16339_s5 + $0x28] sm:$0xff] }
 0x1c2   : > { %11807 = vmatprep.subr.bf16.mxu1 %v14364_v59 }
 0x1c5   : > { %11809 = vmatpush3.bf16.msra.mxu1 %v14366_v60 }
 0x1c6   : > { %11811 = vmatprep.subr.bf16.mxu1 %v14382_v21  ;;  %v9663_v21 = vld [vmem:[%s16497_s30 + $0x398] sm:$0xff] }
 0x1c9   : > { %11813 = vmatpush3.bf16.msra.mxu1 %v14384_v27  ;;  %v9689_v27 = vld [vmem:[%s16497_s30 + $0x440] sm:$0xff] }
 0x1ca   : > { %11815 = vmatprep.subr.bf16.mxu1 %v14400_v1  ;;  %v14420_v56 = vpack.c.bf16 %v9690_v44, %v9689_v27  ;;  %v9691_v1 = vld [vmem:[%s16497_s30 + $0x450] sm:$0xff]  ;;  %v9692_v27 = vld [vmem:[%s16497_s30 + $0x458] sm:$0xff]  ;;  %v9709_v44 = vld [vmem:[%s16497_s30 + $0x4e0] sm:$0xff] }
 0x1cb   : > { %v14438_v12 = vpack.c.bf16 %v9692_v27, %v9691_v1  ;;  %v9694_v1 = vld [vmem:[%s16497_s30 + $0x468] sm:$0xff]  ;;  %v9711_v27 = vld [vmem:[%s16497_s30 + $0x4f0] sm:$0xff] }
 0x1cc   : > { %16520 = vst [vmem:[#allocation36_spill] sm:$0xff] %v14420_v56 }
 0x1cd   : > { %11817 = vmatpush3.bf16.msra.mxu1 %v14402_v2  ;;  %v9708_v2 = vld [vmem:[%s16497_s30 + $0x4d8] sm:$0xff]  ;;  %16522 = vst [vmem:[#allocation38_spill] sm:$0xff] %v14438_v12 }
 0x1ce   : > { %11819 = vmatprep.subr.bf16.mxu1 %v14418_v47  ;;  %v14436_v6 = vpack.c.bf16 %v9708_v2, %v9707_v57  ;;  %v9693_v47 = vld [vmem:[%s16497_s30 + $0x460] sm:$0xff] }
 0x1cf   : > { %v14456_v57 = vpack.c.bf16 %v9694_v1, %v9693_v47  ;;  %v9696_v47 = vld [vmem:[%s16497_s30 + $0x478] sm:$0xff] }
 0x1d0   : > { %16521 = vst [vmem:[#allocation37_spill] sm:$0xff] %v14436_v6 }
 0x1d1   : > { %11821 = vmatpush3.bf16.msra.mxu1 %v14420_v56  ;;  %v9710_v56 = vld [vmem:[%s16497_s30 + $0x4e8] sm:$0xff]  ;;  %16524 = vst [vmem:[#allocation40_spill] sm:$0xff] %v14456_v57 }
 0x1d2   : > { %11823 = vmatprep.subr.bf16.mxu1 %v14436_v6  ;;  %v14454_v2 = vpack.c.bf16 %v9710_v56, %v9709_v44  ;;  %v9695_v56 = vld [vmem:[%s16497_s30 + $0x470] sm:$0xff] }
 0x1d3   : > { %v14474_v44 = vpack.c.bf16 %v9696_v47, %v9695_v56  ;;  %v9661_v56 = vld [vmem:[%s16497_s30 + $0x388] sm:$0xff] }
 0x1d4   : > { %16523 = vst [vmem:[#allocation39_spill] sm:$0xff] %v14454_v2 }
 0x1d5   : > { %11825 = vmatpush3.bf16.msra.mxu1 %v14438_v12  ;;  %v9712_v12 = vld [vmem:[%s16497_s30 + $0x4f8] sm:$0xff]  ;;  %16526 = vst [vmem:[#allocation42_spill] sm:$0xff] %v14474_v44 }
 0x1d6   : > { %11827 = vmatprep.subr.bf16.mxu1 %v14454_v2  ;;  %v14466_v6 = vpack.c.bf16 %v9712_v12, %v9711_v27  ;;  %v9660_v27 = vld [vmem:[%s16497_s30 + $0x380] sm:$0xff]  ;;  %v9662_v2 = vld [vmem:[%s16497_s30 + $0x390] sm:$0xff] }
 0x1d7   : > { %v14502_v59 = vpack.c.bf16 %v9661_v56, %v9660_v27  ;;  %v14510_v49 = vpack.c.bf16 %v9663_v21, %v9662_v2  ;;  %v9664_v27 = vld [vmem:[%s16497_s30 + $0x3a0] sm:$0xff] }
 0x1d8   : > { %16525 = vst [vmem:[#allocation41_spill] sm:$0xff] %v14466_v6  ;;  %v9648_v2 = vld [vmem:[%s16497_s30 + $0x320] sm:$0xff] }
 0x1d9   : > { %11829 = vmatpush3.bf16.msra.mxu1 %v14456_v57  ;;  %16527 = vst [vmem:[#allocation43_spill] sm:$0xff] %v14502_v59  ;;  %16529 = vst [vmem:[#allocation45_spill] sm:$0xff] %v14510_v49 }
 0x1da   : > { %11831 = vmatprep.subr.bf16.mxu1 %v14466_v6  ;;  %v9645_v6 = vld [vmem:[%s16497_s30 + $0x308] sm:$0xff] }
 0x1dd   : > { %11833 = vmatpush3.bf16.msra.mxu1 %v14474_v44  ;;  %v9644_v44 = vld [vmem:[%s16497_s30 + $0x300] sm:$0xff] }
 0x1de   : > { %v14507_v29 = vpack.c.bf16 %v9645_v6, %v9644_v44  ;;  %v9665_v6 = vld [vmem:[%s16497_s30 + $0x3a8] sm:$0xff] }
 0x1df   : > { %v9649_v44 = vld [vmem:[%s16497_s30 + $0x328] sm:$0xff] }
 0x1e0   : > { %1564 = vmatmul.mubr.f32.vlgmr.msra.gmra.mrb[6].mxu1 %v13938_v25  ;;  %16528 = vst [vmem:[#allocation44_spill] sm:$0xff] %v14507_v29  ;;  %v14547_v56 = vpack.c.bf16 %v9649_v44, %v9648_v2  ;;  %v9669_v2 = vld [vmem:[%s16497_s30 + $0x3c8] sm:$0xff] }
 0x1e1   : > { %1947 = vmatprep.mubr.f32.mxu1 %v13942_v26 }
 0x1e2   : > { %16532 = vst [vmem:[#allocation48_spill] sm:$0xff] %v14547_v56 }
 0x273   : > { %v14480_v12 = vpop.f32.mrb[2].mxu1 }
 0x274   : > { %v14482_v1 = vpop.f32.mrb[3].mxu1 }
 0x293   : > { %v10214_v47 = vpop.f32.mrb[4].mxu1 }
 0x294   : > { %v10215_v57 = vpop.f32.mrb[5].mxu1 }
 0x295   : > { %v10216_v60 = vadd.f32 %v10215_v57, %v10214_v47  ;;  %v9647_v57 = vld [vmem:[%s16497_s30 + $0x318] sm:$0xff] }
 0x296   : > { %v14528_v21 = vpack.c.bf16 %v9647_v57, %v9646_v42  ;;  %v9667_v42 = vld [vmem:[%s16497_s30 + $0x3b8] sm:$0xff]  ;;  %v9650_v57 = vld [vmem:[%s16497_s30 + $0x330] sm:$0xff] }
 0x297   : > { %11079 = vmatprep.subr.msk.mxu0 %vm919_vm1, %v10216_v60 }
 0x298   : > { %11080 = vmatpush3.msk.msra.mxu0 %vm919_vm1, %v10216_v60  ;;  %16530 = vst [vmem:[#allocation46_spill] sm:$0xff] %v14528_v21  ;;  %v14532_v60 = vpack.c.bf16 %v9665_v6, %v9664_v27  ;;  %v9651_v27 = vld [vmem:[%s16497_s30 + $0x338] sm:$0xff]  ;;  %v9668_v6 = vld [vmem:[%s16497_s30 + $0x3c0] sm:$0xff] }
 0x299   : > { %11771 = vmatprep.subr.bf16.mxu0 %v14502_v59  ;;  %11082 = vmatmul.mubr.msk.f32.vlgmr.msra.gmra.mrb[2].mxu0 %vm912_vm0, %v9640_v32  ;;  %v9666_v32 = vld [vmem:[%s16497_s30 + $0x3b0] sm:$0xff]  ;;  %v14565_v44 = vpack.c.bf16 %v9651_v27, %v9650_v57  ;;  %v9671_v57 = vld [vmem:[%s16497_s30 + $0x3d8] sm:$0xff] }
 0x29a   : > { %11773 = vmatpush3.bf16.msra.mxu0 %v14507_v29  ;;  %1371 = vmatprep.mubr.f32.mxu0 %v13942_v26  ;;  %16531 = vst [vmem:[#allocation47_spill] sm:$0xff] %v14532_v60  ;;  %v14550_v47 = vpack.c.bf16 %v9667_v42, %v9666_v32  ;;  %v14568_v32 = vpack.c.bf16 %v9669_v2, %v9668_v6  ;;  %v9652_v42 = vld [vmem:[%s16497_s30 + $0x340] sm:$0xff]  ;;  %v9654_v2 = vld [vmem:[%s16497_s30 + $0x350] sm:$0xff]  ;;  %v9778_v29 = vld [vmem:[%s16497_s30 + $0x6b8] sm:$0xff] }
 0x29b   : > { %11775 = vmatprep.subr.bf16.mxu0 %v14510_v49  ;;  %16534 = vst [vmem:[#allocation50_spill] sm:$0xff] %v14565_v44  ;;  %v9759_v49 = vld [vmem:[%s16497_s30 + $0x620] sm:$0xff]  ;;  %v9761_v59 = vld [vmem:[%s16497_s30 + $0x630] sm:$0xff] }
 0x29c   : > { %16533 = vst [vmem:[#allocation49_spill] sm:$0xff] %v14550_v47  ;;  %16535 = vst [vmem:[#allocation51_spill] sm:$0xff] %v14568_v32 }
 0x29e   : > { %11777 = vmatpush3.bf16.msra.mxu0 %v14528_v21  ;;  %v9670_v21 = vld [vmem:[%s16497_s30 + $0x3d0] sm:$0xff] }
 0x29f   : > { %11779 = vmatprep.subr.bf16.mxu0 %v14532_v60  ;;  %v9653_v60 = vld [vmem:[%s16497_s30 + $0x348] sm:$0xff]  ;;  %v14586_v6 = vpack.c.bf16 %v9671_v57, %v9670_v21  ;;  %v9656_v57 = vld [vmem:[%s16497_s30 + $0x360] sm:$0xff] }
 0x2a0   : > { %v14583_v27 = vpack.c.bf16 %v9653_v60, %v9652_v42  ;;  %v9673_v60 = vld [vmem:[%s16497_s30 + $0x3e8] sm:$0xff] }
 0x2a1   : > { %16537 = vst [vmem:[#allocation53_spill] sm:$0xff] %v14586_v6 }
 0x2a2   : > { %11781 = vmatpush3.bf16.msra.mxu0 %v14547_v56  ;;  %16536 = vst [vmem:[#allocation52_spill] sm:$0xff] %v14583_v27  ;;  %v9672_v56 = vld [vmem:[%s16497_s30 + $0x3e0] sm:$0xff] }
 0x2a3   : > { %11783 = vmatprep.subr.bf16.mxu0 %v14550_v47  ;;  %v9655_v47 = vld [vmem:[%s16497_s30 + $0x358] sm:$0xff]  ;;  %v14604_v42 = vpack.c.bf16 %v9673_v60, %v9672_v56  ;;  %v9658_v60 = vld [vmem:[%s16497_s30 + $0x370] sm:$0xff] }
 0x2a4   : > { %v14601_v21 = vpack.c.bf16 %v9655_v47, %v9654_v2  ;;  %v9675_v47 = vld [vmem:[%s16497_s30 + $0x3f8] sm:$0xff] }
 0x2a5   : > { %16539 = vst [vmem:[#allocation55_spill] sm:$0xff] %v14604_v42 }
 0x2a6   : > { %11785 = vmatpush3.bf16.msra.mxu0 %v14565_v44  ;;  %16538 = vst [vmem:[#allocation54_spill] sm:$0xff] %v14601_v21  ;;  %v9674_v44 = vld [vmem:[%s16497_s30 + $0x3f0] sm:$0xff] }
 0x2a7   : > { %11787 = vmatprep.subr.bf16.mxu0 %v14568_v32  ;;  %v9657_v32 = vld [vmem:[%s16497_s30 + $0x368] sm:$0xff]  ;;  %v14622_v2 = vpack.c.bf16 %v9675_v47, %v9674_v44  ;;  %v9676_v44 = vld [vmem:[%s16339_s5 + $0x30] sm:$0xff] }
 0x2a8   : > { %v14619_v56 = vpack.c.bf16 %v9657_v32, %v9656_v57 }
 0x2a9   : > { %16541 = vst [vmem:[#allocation57_spill] sm:$0xff] %v14622_v2 }
 0x2aa   : > { %11789 = vmatpush3.bf16.msra.mxu0 %v14583_v27  ;;  %16540 = vst [vmem:[#allocation56_spill] sm:$0xff] %v14619_v56 }
 0x2ab   : > { %11791 = vmatprep.subr.bf16.mxu0 %v14586_v6  ;;  %v9659_v6 = vld [vmem:[%s16497_s30 + $0x378] sm:$0xff] }
 0x2ac   : > { %v14631_v27 = vpack.c.bf16 %v9659_v6, %v9658_v60  ;;  %v9771_v6 = vld [vmem:[%s16497_s30 + $0x680] sm:$0xff]  ;;  %v9772_v60 = vld [vmem:[%s16497_s30 + $0x688] sm:$0xff] }
 0x2ae   : > { %11793 = vmatpush3.bf16.msra.mxu0 %v14601_v21  ;;  %16542 = vst [vmem:[#allocation58_spill] sm:$0xff] %v14631_v27  ;;  %v9776_v21 = vld [vmem:[%s16497_s30 + $0x6a8] sm:$0xff] }
 0x2af   : > { %11795 = vmatprep.subr.bf16.mxu0 %v14604_v42  ;;  %v9757_v42 = vld [vmem:[%s16497_s30 + $0x610] sm:$0xff] }
 0x2b2   : > { %11797 = vmatpush3.bf16.msra.mxu0 %v14619_v56  ;;  %v9774_v56 = vld [vmem:[%s16497_s30 + $0x698] sm:$0xff] }
 0x2b3   : > { %11799 = vmatprep.subr.bf16.mxu0 %v14622_v2  ;;  %v10290_v32 = vpop.f32.mrb[6].mxu1  ;;  %v14654_v2 = vpack.c.bf16 %v9772_v60, %v9771_v6 }
 0x2b4   : > { %v10291_v57 = vpop.f32.mrb[7].mxu1 }
 0x2b5   : > { %v14640_v47 = vadd.f32 %v10291_v57, %v10290_v32  ;;  %16543 = vst [vmem:[#allocation59_spill] sm:$0xff] %v14654_v2  ;;  %11867 = vmatprep.subr.bf16.mxu1 %v14654_v2  ;;  %v9773_v57 = vld [vmem:[%s16497_s30 + $0x690] sm:$0xff] }
 0x2b6   : > { %11801 = vmatpush3.bf16.msra.mxu0 %v14631_v27  ;;  %v9755_v27 = vld [vmem:[%s16497_s30 + $0x600] sm:$0xff]  ;;  %v14672_v6 = vpack.c.bf16 %v9774_v56, %v9773_v57 }
 0x2b8   : > { %16545 = vst [vmem:[#allocation61_spill] sm:$0xff] %v14672_v6 }
 0x2b9   : > { %1372 = vmatmul.mubr.f32.vlgmr.msra.gmra.mrb[4].mxu0 %v13938_v25 }
 0x2ba   : > { %11086 = vmatprep.mubr.msk.f32.mxu0 %vm912_vm0, %v9676_v44  ;;  %v9756_v44 = vld [vmem:[%s16497_s30 + $0x608] sm:$0xff] }
 0x2bb   : > { %v14656_v32 = vpack.c.bf16 %v9756_v44, %v9755_v27  ;;  %v9758_v27 = vld [vmem:[%s16497_s30 + $0x618] sm:$0xff]  ;;  %v9775_v44 = vld [vmem:[%s16497_s30 + $0x6a0] sm:$0xff] }
 0x2bc   : > { %v14674_v60 = vpack.c.bf16 %v9758_v27, %v9757_v42  ;;  %v9760_v42 = vld [vmem:[%s16497_s30 + $0x628] sm:$0xff]  ;;  %v14690_v56 = vpack.c.bf16 %v9776_v21, %v9775_v44  ;;  %v9777_v27 = vld [vmem:[%s16497_s30 + $0x6b0] sm:$0xff] }
 0x2bd   : > { %16544 = vst [vmem:[#allocation60_spill] sm:$0xff] %v14656_v32  ;;  %11869 = vmatpush3.bf16.msra.mxu1 %v14656_v32  ;;  %v14692_v57 = vpack.c.bf16 %v9760_v42, %v9759_v49  ;;  %v9762_v49 = vld [vmem:[%s16497_s30 + $0x638] sm:$0xff]  ;;  %v14708_v21 = vpack.c.bf16 %v9778_v29, %v9777_v27  ;;  %v9779_v42 = vld [vmem:[%s16497_s30 + $0x6c0] sm:$0xff]  ;;  %v9764_v29 = vld [vmem:[%s16497_s30 + $0x648] sm:$0xff] }
 0x2be   : > { %16546 = vst [vmem:[#allocation62_spill] sm:$0xff] %v14674_v60  ;;  %11871 = vmatprep.subr.bf16.mxu1 %v14672_v6  ;;  %16547 = vst [vmem:[#allocation63_spill] sm:$0xff] %v14690_v56  ;;  %v14710_v44 = vpack.c.bf16 %v9762_v49, %v9761_v59  ;;  %v9781_v49 = vld [vmem:[%s16497_s30 + $0x6d0] sm:$0xff] }
 0x2bf   : > { %16548 = vst [vmem:[#allocation64_spill] sm:$0xff] %v14692_v57  ;;  %16549 = vst [vmem:[#allocation65_spill] sm:$0xff] %v14708_v21 }
 0x2c0   : > { %16550 = vst [vmem:[#allocation66_spill] sm:$0xff] %v14710_v44 }
 0x2c1   : > { %11873 = vmatpush3.bf16.msra.mxu1 %v14674_v60  ;;  %v9739_v60 = vld [vmem:[%s16497_s30 + $0x5a8] sm:$0xff] }
 0x2c2   : > { %11875 = vmatprep.subr.bf16.mxu1 %v14690_v56  ;;  %v9763_v56 = vld [vmem:[%s16497_s30 + $0x640] sm:$0xff] }
 0x2c3   : > { %v14728_v27 = vpack.c.bf16 %v9764_v29, %v9763_v56  ;;  %v9766_v56 = vld [vmem:[%s16497_s30 + $0x658] sm:$0xff]  ;;  %v9783_v29 = vld [vmem:[%s16497_s30 + $0x6e0] sm:$0xff] }
 0x2c5   : > { %11877 = vmatpush3.bf16.msra.mxu1 %v14692_v57  ;;  %v9780_v57 = vld [vmem:[%s16497_s30 + $0x6c8] sm:$0xff]  ;;  %16552 = vst [vmem:[#allocation68_spill] sm:$0xff] %v14728_v27 }
 0x2c6   : > { %11879 = vmatprep.subr.bf16.mxu1 %v14708_v21  ;;  %v14726_v59 = vpack.c.bf16 %v9780_v57, %v9779_v42  ;;  %v9765_v21 = vld [vmem:[%s16497_s30 + $0x650] sm:$0xff] }
 0x2c7   : > { %v14746_v42 = vpack.c.bf16 %v9766_v56, %v9765_v21  ;;  %v9768_v21 = vld [vmem:[%s16497_s30 + $0x668] sm:$0xff]  ;;  %v9785_v56 = vld [vmem:[%s16497_s30 + $0x6f0] sm:$0xff] }
 0x2c8   : > { %16551 = vst [vmem:[#allocation67_spill] sm:$0xff] %v14726_v59 }
 0x2c9   : > { %11881 = vmatpush3.bf16.msra.mxu1 %v14710_v44  ;;  %v9782_v44 = vld [vmem:[%s16497_s30 + $0x6d8] sm:$0xff]  ;;  %16554 = vst [vmem:[#allocation70_spill] sm:$0xff] %v14746_v42 }
 0x2ca   : > { %11883 = vmatprep.subr.bf16.mxu1 %v14726_v59  ;;  %v14744_v57 = vpack.c.bf16 %v9782_v44, %v9781_v49  ;;  %v9767_v59 = vld [vmem:[%s16497_s30 + $0x660] sm:$0xff] }
 0x2cb   : > { %v14764_v49 = vpack.c.bf16 %v9768_v21, %v9767_v59  ;;  %v9770_v59 = vld [vmem:[%s16497_s30 + $0x678] sm:$0xff] }
 0x2cc   : > { %16553 = vst [vmem:[#allocation69_spill] sm:$0xff] %v14744_v57 }
 0x2cd   : > { %11885 = vmatpush3.bf16.msra.mxu1 %v14728_v27  ;;  %v9784_v27 = vld [vmem:[%s16497_s30 + $0x6e8] sm:$0xff]  ;;  %16556 = vst [vmem:[#allocation72_spill] sm:$0xff] %v14764_v49 }
 0x2ce   : > { %11887 = vmatprep.subr.bf16.mxu1 %v14744_v57  ;;  %v14762_v44 = vpack.c.bf16 %v9784_v27, %v9783_v29  ;;  %v9769_v27 = vld [vmem:[%s16497_s30 + $0x670] sm:$0xff] }
 0x2cf   : > { %v14782_v29 = vpack.c.bf16 %v9770_v59, %v9769_v27  ;;  %v9677_v59 = vld [vmem:[%s16339_s5 + $0x38] sm:$0xff] }
 0x2d0   : > { %16555 = vst [vmem:[#allocation71_spill] sm:$0xff] %v14762_v44 }
 0x2d1   : > { %11889 = vmatpush3.bf16.msra.mxu1 %v14746_v42  ;;  %v9786_v42 = vld [vmem:[%s16497_s30 + $0x6f8] sm:$0xff]  ;;  %16558 = vst [vmem:[#allocation74_spill] sm:$0xff] %v14782_v29 }
 0x2d2   : > { %11891 = vmatprep.subr.bf16.mxu1 %v14762_v44  ;;  %v14774_v57 = vpack.c.bf16 %v9786_v42, %v9785_v56  ;;  %v9734_v56 = vld [vmem:[%s16497_s30 + $0x580] sm:$0xff] }
 0x2d3   : > { %v9738_v44 = vld [vmem:[%s16497_s30 + $0x5a0] sm:$0xff] }
 0x2d4   : > { %16557 = vst [vmem:[#allocation73_spill] sm:$0xff] %v14774_v57 }
 0x2d5   : > { %11893 = vmatpush3.bf16.msra.mxu1 %v14764_v49  ;;  %v9735_v49 = vld [vmem:[%s16497_s30 + $0x588] sm:$0xff] }
 0x2d6   : > { %11895 = vmatprep.subr.bf16.mxu1 %v14774_v57  ;;  %v14801_v57 = vpack.c.bf16 %v9735_v49, %v9734_v56  ;;  %v9719_v49 = vld [vmem:[%s16497_s30 + $0x508] sm:$0xff] }
 0x2d8   : > { %16559 = vst [vmem:[#allocation75_spill] sm:$0xff] %v14801_v57 }
 0x2d9   : > { %11897 = vmatpush3.bf16.msra.mxu1 %v14782_v29  ;;  %v9713_v29 = vld [vmem:[%s16339_s5 + $0x40] sm:$0xff] }
 0x2dc   : > { %1948 = vmatmul.mubr.f32.vlgmr.msra.gmra.mrb[8].mxu1 %v13938_v25 }
 0x2dd   : > { %2331 = vmatprep.mubr.f32.mxu1 %v13942_v26 }
 0x38c   : > { %v10252_v42 = vpop.f32.mrb[4].mxu0 }
 0x38d   : > { %v10253_v21 = vpop.f32.mrb[5].mxu0 }
 0x38e   : > { %v10254_v27 = vadd.f32 %v10253_v21, %v10252_v42  ;;  %v9718_v42 = vld [vmem:[%s16497_s30 + $0x500] sm:$0xff]  ;;  %v9736_v21 = vld [vmem:[%s16497_s30 + $0x590] sm:$0xff] }
 0x38f   : > { %v14826_v56 = vpack.c.bf16 %v9719_v49, %v9718_v42  ;;  %v14848_v49 = vpack.c.bf16 %v9739_v60, %v9738_v44 }
 0x390   : > { %11084 = vmatprep.subr.msk.mxu0 %vm919_vm1, %v10254_v27 }
 0x391   : > { %11085 = vmatpush3.msk.msra.mxu0 %vm919_vm1, %v10254_v27  ;;  %16560 = vst [vmem:[#allocation76_spill] sm:$0xff] %v14826_v56  ;;  %16563 = vst [vmem:[#allocation79_spill] sm:$0xff] %v14848_v49 }
 0x392   : > { %11087 = vmatmul.mubr.msk.f32.vlgmr.msra.gmra.mrb[2].mxu0 %vm912_vm0, %v9677_v59  ;;  %11089 = vmatprep.subr.msk.mxu0 %vm919_vm1, %v14640_v47  ;;  %v9720_v59 = vld [vmem:[%s16497_s30 + $0x510] sm:$0xff] }
 0x393   : > { %11090 = vmatpush3.msk.msra.mxu0 %vm919_vm1, %v14640_v47  ;;  %11091 = vmatprep.mubr.msk.f32.mxu0 %vm912_vm0, %v9713_v29  ;;  %v9737_v47 = vld [vmem:[%s16497_s30 + $0x598] sm:$0xff]  ;;  %v9714_v29 = vld [vmem:[%s16339_s5 + $0x48] sm:$0xff] }
 0x394   : > { %11835 = vmatprep.subr.bf16.mxu0 %v14801_v57  ;;  %v14828_v27 = vpack.c.bf16 %v9737_v47, %v9736_v21  ;;  %v9721_v57 = vld [vmem:[%s16497_s30 + $0x518] sm:$0xff]  ;;  %v9722_v21 = vld [vmem:[%s16497_s30 + $0x520] sm:$0xff]  ;;  %v9723_v47 = vld [vmem:[%s16497_s30 + $0x528] sm:$0xff] }
 0x395   : > { %v14844_v42 = vpack.c.bf16 %v9721_v57, %v9720_v59  ;;  %v9741_v57 = vld [vmem:[%s16497_s30 + $0x5b8] sm:$0xff]  ;;  %v14863_v60 = vpack.c.bf16 %v9723_v47, %v9722_v21  ;;  %v9724_v59 = vld [vmem:[%s16497_s30 + $0x530] sm:$0xff]  ;;  %v9743_v21 = vld [vmem:[%s16497_s30 + $0x5c8] sm:$0xff] }
 0x396   : > { %16561 = vst [vmem:[#allocation77_spill] sm:$0xff] %v14828_v27 }
 0x397   : > { %16562 = vst [vmem:[#allocation78_spill] sm:$0xff] %v14844_v42  ;;  %16564 = vst [vmem:[#allocation80_spill] sm:$0xff] %v14863_v60 }
 0x39a   : > { %11092 = vmatmul.mubr.msk.f32.vlgmr.msra.gmra.mrb[2].mxu0 %vm912_vm0, %v9714_v29  ;;  %v9740_v29 = vld [vmem:[%s16497_s30 + $0x5b0] sm:$0xff] }
 0x39b   : > { %11837 = vmatpush3.bf16.msra.mxu0 %v14826_v56  ;;  %1755 = vmatprep.mubr.f32.mxu0 %v13942_v26  ;;  %v14866_v44 = vpack.c.bf16 %v9741_v57, %v9740_v29  ;;  %v9742_v56 = vld [vmem:[%s16497_s30 + $0x5c0] sm:$0xff] }
 0x39c   : > { %11839 = vmatprep.subr.bf16.mxu0 %v14828_v27  ;;  %v9725_v27 = vld [vmem:[%s16497_s30 + $0x538] sm:$0xff]  ;;  %v14884_v29 = vpack.c.bf16 %v9743_v21, %v9742_v56  ;;  %v9726_v57 = vld [vmem:[%s16497_s30 + $0x540] sm:$0xff]  ;;  %v9728_v21 = vld [vmem:[%s16497_s30 + $0x550] sm:$0xff] }
 0x39d   : > { %16565 = vst [vmem:[#allocation81_spill] sm:$0xff] %v14866_v44  ;;  %v14881_v47 = vpack.c.bf16 %v9725_v27, %v9724_v59  ;;  %v9745_v27 = vld [vmem:[%s16497_s30 + $0x5d8] sm:$0xff] }
 0x39e   : > { %16567 = vst [vmem:[#allocation83_spill] sm:$0xff] %v14884_v29 }
 0x39f   : > { %11841 = vmatpush3.bf16.msra.mxu0 %v14844_v42  ;;  %16566 = vst [vmem:[#allocation82_spill] sm:$0xff] %v14881_v47  ;;  %v9744_v42 = vld [vmem:[%s16497_s30 + $0x5d0] sm:$0xff] }
 0x3a0   : > { %11843 = vmatprep.subr.bf16.mxu0 %v14848_v49  ;;  %v9727_v49 = vld [vmem:[%s16497_s30 + $0x548] sm:$0xff]  ;;  %v14902_v59 = vpack.c.bf16 %v9745_v27, %v9744_v42  ;;  %v9730_v27 = vld [vmem:[%s16497_s30 + $0x560] sm:$0xff] }
 0x3a1   : > { %v14899_v56 = vpack.c.bf16 %v9727_v49, %v9726_v57  ;;  %v9747_v49 = vld [vmem:[%s16497_s30 + $0x5e8] sm:$0xff] }
 0x3a2   : > { %16569 = vst [vmem:[#allocation85_spill] sm:$0xff] %v14902_v59 }
 0x3a3   : > { %11845 = vmatpush3.bf16.msra.mxu0 %v14863_v60  ;;  %16568 = vst [vmem:[#allocation84_spill] sm:$0xff] %v14899_v56  ;;  %v9746_v60 = vld [vmem:[%s16497_s30 + $0x5e0] sm:$0xff] }
 0x3a4   : > { %11847 = vmatprep.subr.bf16.mxu0 %v14866_v44  ;;  %v9729_v44 = vld [vmem:[%s16497_s30 + $0x558] sm:$0xff]  ;;  %v14920_v57 = vpack.c.bf16 %v9747_v49, %v9746_v60  ;;  %v9732_v49 = vld [vmem:[%s16497_s30 + $0x570] sm:$0xff] }
 0x3a5   : > { %v14917_v42 = vpack.c.bf16 %v9729_v44, %v9728_v21  ;;  %v9749_v44 = vld [vmem:[%s16497_s30 + $0x5f8] sm:$0xff] }
 0x3a6   : > { %16571 = vst [vmem:[#allocation87_spill] sm:$0xff] %v14920_v57 }
 0x3a7   : > { %11849 = vmatpush3.bf16.msra.mxu0 %v14881_v47  ;;  %16570 = vst [vmem:[#allocation86_spill] sm:$0xff] %v14917_v42  ;;  %v9748_v47 = vld [vmem:[%s16497_s30 + $0x5f0] sm:$0xff] }
 0x3a8   : > { %11851 = vmatprep.subr.bf16.mxu0 %v14884_v29  ;;  %v9731_v29 = vld [vmem:[%s16497_s30 + $0x568] sm:$0xff]  ;;  %v14938_v21 = vpack.c.bf16 %v9749_v44, %v9748_v47  ;;  %v9750_v47 = vld [vmem:[%s16339_s5 + $0x50] sm:$0xff] }
 0x3a9   : > { %v14935_v60 = vpack.c.bf16 %v9731_v29, %v9730_v27 }
 0x3aa   : > { %16573 = vst [vmem:[#allocation89_spill] sm:$0xff] %v14938_v21 }
 0x3ab   : > { %11853 = vmatpush3.bf16.msra.mxu0 %v14899_v56  ;;  %16572 = vst [vmem:[#allocation88_spill] sm:$0xff] %v14935_v60 }
 0x3ac   : > { %11855 = vmatprep.subr.bf16.mxu0 %v14902_v59  ;;  %v9733_v59 = vld [vmem:[%s16497_s30 + $0x578] sm:$0xff] }
 0x3ad   : > { %v14947_v56 = vpack.c.bf16 %v9733_v59, %v9732_v49  ;;  %v9845_v59 = vld [vmem:[%s16497_s30 + $0x880] sm:$0xff]  ;;  %v9846_v49 = vld [vmem:[%s16497_s30 + $0x888] sm:$0xff] }
 0x3af   : > { %11857 = vmatpush3.bf16.msra.mxu0 %v14917_v42  ;;  %16574 = vst [vmem:[#allocation90_spill] sm:$0xff] %v14947_v56  ;;  %v10366_v29 = vpop.f32.mrb[8].mxu1  ;;  %v9851_v42 = vld [vmem:[%s16497_s30 + $0x8b0] sm:$0xff] }
 0x3b0   : > { %11859 = vmatprep.subr.bf16.mxu0 %v14920_v57  ;;  %v10367_v27 = vpop.f32.mrb[9].mxu1  ;;  %v9833_v57 = vld [vmem:[%s16497_s30 + $0x820] sm:$0xff] }
 0x3b1   : > { %v14956_v44 = vadd.f32 %v10367_v27, %v10366_v29  ;;  %v9847_v27 = vld [vmem:[%s16497_s30 + $0x890] sm:$0xff] }
 0x3b3   : > { %11861 = vmatpush3.bf16.msra.mxu0 %v14935_v60  ;;  %v9849_v60 = vld [vmem:[%s16497_s30 + $0x8a0] sm:$0xff] }
 0x3b4   : > { %11863 = vmatprep.subr.bf16.mxu0 %v14938_v21  ;;  %v9831_v21 = vld [vmem:[%s16497_s30 + $0x810] sm:$0xff] }
 0x3b7   : > { %11865 = vmatpush3.bf16.msra.mxu0 %v14947_v56  ;;  %v14964_v56 = vpack.c.bf16 %v9846_v49, %v9845_v59  ;;  %v9848_v59 = vld [vmem:[%s16497_s30 + $0x898] sm:$0xff] }
 0x3b8   : > { %v14982_v49 = vpack.c.bf16 %v9848_v59, %v9847_v27  ;;  %v9850_v27 = vld [vmem:[%s16497_s30 + $0x8a8] sm:$0xff] }
 0x3b9   : > { %16575 = vst [vmem:[#allocation91_spill] sm:$0xff] %v14964_v56  ;;  %11931 = vmatprep.subr.bf16.mxu1 %v14964_v56  ;;  %v15000_v59 = vpack.c.bf16 %v9850_v27, %v9849_v60  ;;  %v9852_v60 = vld [vmem:[%s16497_s30 + $0x8b8] sm:$0xff]  ;;  %v9813_v56 = vld [vmem:[%s16497_s30 + $0x7a8] sm:$0xff] }
 0x3ba   : > { %1756 = vmatmul.mubr.f32.vlgmr.msra.gmra.mrb[6].mxu0 %v13938_v25  ;;  %v9829_v25 = vld [vmem:[%s16497_s30 + $0x800] sm:$0xff]  ;;  %16577 = vst [vmem:[#allocation93_spill] sm:$0xff] %v14982_v49  ;;  %v15018_v27 = vpack.c.bf16 %v9852_v60, %v9851_v42  ;;  %v9854_v42 = vld [vmem:[%s16497_s30 + $0x8c8] sm:$0xff] }
 0x3bb   : > { %11096 = vmatprep.mubr.msk.f32.mxu0 %vm912_vm0, %v9750_v47  ;;  %v9830_v47 = vld [vmem:[%s16497_s30 + $0x808] sm:$0xff]  ;;  %16579 = vst [vmem:[#allocation95_spill] sm:$0xff] %v15000_v59 }
 0x3bc   : > { %v14972_v29 = vpack.c.bf16 %v9830_v47, %v9829_v25  ;;  %v9832_v25 = vld [vmem:[%s16497_s30 + $0x818] sm:$0xff]  ;;  %16581 = vst [vmem:[#allocation97_spill] sm:$0xff] %v15018_v27 }
 0x3bd   : > { %v14990_v47 = vpack.c.bf16 %v9832_v25, %v9831_v21  ;;  %v9834_v21 = vld [vmem:[%s16497_s30 + $0x828] sm:$0xff] }
 0x3be   : > { %16576 = vst [vmem:[#allocation92_spill] sm:$0xff] %v14972_v29  ;;  %11933 = vmatpush3.bf16.msra.mxu1 %v14972_v29  ;;  %v15008_v25 = vpack.c.bf16 %v9834_v21, %v9833_v57  ;;  %v9836_v57 = vld [vmem:[%s16497_s30 + $0x838] sm:$0xff]  ;;  %v9812_v29 = vld [vmem:[%s16497_s30 + $0x7a0] sm:$0xff] }
 0x3bf   : > { %16578 = vst [vmem:[#allocation94_spill] sm:$0xff] %v14990_v47  ;;  %11935 = vmatprep.subr.bf16.mxu1 %v14982_v49  ;;  %v9809_v49 = vld [vmem:[%s16497_s30 + $0x788] sm:$0xff] }
 0x3c0   : > { %16580 = vst [vmem:[#allocation96_spill] sm:$0xff] %v15008_v25 }
 0x3c2   : > { %11937 = vmatpush3.bf16.msra.mxu1 %v14990_v47  ;;  %v9835_v47 = vld [vmem:[%s16497_s30 + $0x830] sm:$0xff] }
 0x3c3   : > { %11939 = vmatprep.subr.bf16.mxu1 %v15000_v59  ;;  %v15026_v21 = vpack.c.bf16 %v9836_v57, %v9835_v47  ;;  %v9837_v59 = vld [vmem:[%s16497_s30 + $0x840] sm:$0xff]  ;;  %v9838_v47 = vld [vmem:[%s16497_s30 + $0x848] sm:$0xff] }
 0x3c4   : > { %v15044_v57 = vpack.c.bf16 %v9838_v47, %v9837_v59  ;;  %v9840_v59 = vld [vmem:[%s16497_s30 + $0x858] sm:$0xff] }
 0x3c5   : > { %16582 = vst [vmem:[#allocation98_spill] sm:$0xff] %v15026_v21 }
 0x3c6   : > { %11941 = vmatpush3.bf16.msra.mxu1 %v15008_v25  ;;  %v9853_v25 = vld [vmem:[%s16497_s30 + $0x8c0] sm:$0xff]  ;;  %16584 = vst [vmem:[#allocation100_spill] sm:$0xff] %v15044_v57 }
 0x3c7   : > { %11943 = vmatprep.subr.bf16.mxu1 %v15018_v27  ;;  %v15036_v60 = vpack.c.bf16 %v9854_v42, %v9853_v25  ;;  %v9856_v25 = vld [vmem:[%s16497_s30 + $0x8d8] sm:$0xff]  ;;  %v9839_v27 = vld [vmem:[%s16497_s30 + $0x850] sm:$0xff] }
 0x3c8   : > { %v15062_v47 = vpack.c.bf16 %v9840_v59, %v9839_v27  ;;  %v9841_v27 = vld [vmem:[%s16497_s30 + $0x860] sm:$0xff]  ;;  %v9842_v59 = vld [vmem:[%s16497_s30 + $0x868] sm:$0xff] }
 0x3c9   : > { %16583 = vst [vmem:[#allocation99_spill] sm:$0xff] %v15036_v60 }
 0x3ca   : > { %11945 = vmatpush3.bf16.msra.mxu1 %v15026_v21  ;;  %v9855_v21 = vld [vmem:[%s16497_s30 + $0x8d0] sm:$0xff]  ;;  %16586 = vst [vmem:[#allocation102_spill] sm:$0xff] %v15062_v47 }
 0x3cb   : > { %11947 = vmatprep.subr.bf16.mxu1 %v15036_v60  ;;  %v15054_v42 = vpack.c.bf16 %v9856_v25, %v9855_v21  ;;  %v9858_v21 = vld [vmem:[%s16497_s30 + $0x8e8] sm:$0xff]  ;;  %v9843_v60 = vld [vmem:[%s16497_s30 + $0x870] sm:$0xff] }
 0x3cd   : > { %16585 = vst [vmem:[#allocation101_spill] sm:$0xff] %v15054_v42 }
 0x3ce   : > { %11949 = vmatpush3.bf16.msra.mxu1 %v15044_v57  ;;  %v9857_v57 = vld [vmem:[%s16497_s30 + $0x8e0] sm:$0xff] }
 0x3cf   : > { %11951 = vmatprep.subr.bf16.mxu1 %v15054_v42  ;;  %v15072_v25 = vpack.c.bf16 %v9858_v21, %v9857_v57  ;;  %v9859_v42 = vld [vmem:[%s16497_s30 + $0x8f0] sm:$0xff]  ;;  %v9860_v57 = vld [vmem:[%s16497_s30 + $0x8f8] sm:$0xff] }
 0x3d0   : > { %v15090_v21 = vpack.c.bf16 %v9860_v57, %v9859_v42 }
 0x3d1   : > { %16587 = vst [vmem:[#allocation103_spill] sm:$0xff] %v15072_v25 }
 0x3d2   : > { %11953 = vmatpush3.bf16.msra.mxu1 %v15062_v47  ;;  %v15080_v47 = vpack.c.bf16 %v9842_v59, %v9841_v27  ;;  %16589 = vst [vmem:[#allocation105_spill] sm:$0xff] %v15090_v21  ;;  %v9844_v27 = vld [vmem:[%s16497_s30 + $0x878] sm:$0xff] }
 0x3d3   : > { %11955 = vmatprep.subr.bf16.mxu1 %v15072_v25  ;;  %v15098_v59 = vpack.c.bf16 %v9844_v27, %v9843_v60  ;;  %v9808_v25 = vld [vmem:[%s16497_s30 + $0x780] sm:$0xff]  ;;  %v9751_v27 = vld [vmem:[%s16339_s5 + $0x58] sm:$0xff] }
 0x3d4   : > { %16588 = vst [vmem:[#allocation104_spill] sm:$0xff] %v15080_v47 }
 0x3d5   : > { %16590 = vst [vmem:[#allocation106_spill] sm:$0xff] %v15098_v59 }
 0x3d6   : > { %11957 = vmatpush3.bf16.msra.mxu1 %v15080_v47  ;;  %v15103_v47 = vld [vmem:[%s13917_s18] sm:$0xff]  ;;  %s16653_s18 = sld [smem:[#allocation130_spill]] }
 0x3d7   : > { %11959 = vmatprep.subr.bf16.mxu1 %v15090_v21  ;;  %v15119_v21 = vpack.c.bf16 %v9809_v49, %v9808_v25  ;;  %v9793_v49 = vld [vmem:[%s16497_s30 + $0x708] sm:$0xff]  ;;  %v9810_v25 = vld [vmem:[%s16497_s30 + $0x790] sm:$0xff] }
 0x3d9   : > { %16591 = vst [vmem:[#allocation107_spill] sm:$0xff] %v15119_v21 }
 0x3da   : > { %11961 = vmatpush3.bf16.msra.mxu1 %v15098_v59  ;;  %v9787_v59 = vld [vmem:[%s16339_s5 + $0x60] sm:$0xff] }
 0x3dd   : > { %2332 = vmatmul.mubr.f32.vlgmr.msra.gmra.mrb[10].mxu1 %v15103_v47 }
 0x48d   : > { %v10328_v42 = vpop.f32.mrb[6].mxu0 }
 0x48e   : > { %v10329_v57 = vpop.f32.mrb[7].mxu0 }
 0x48f   : > { %v10330_v60 = vadd.f32 %v10329_v57, %v10328_v42  ;;  %v9792_v42 = vld [vmem:[%s16497_s30 + $0x700] sm:$0xff] }
 0x490   : > { %v15144_v57 = vpack.c.bf16 %v9793_v49, %v9792_v42  ;;  %v15166_v49 = vpack.c.bf16 %v9813_v56, %v9812_v29 }
 0x491   : > { %11094 = vmatprep.subr.msk.mxu0 %vm919_vm1, %v10330_v60 }
 0x492   : > { %11095 = vmatpush3.msk.msra.mxu0 %vm919_vm1, %v10330_v60  ;;  %16592 = vst [vmem:[#allocation108_spill] sm:$0xff] %v15144_v57  ;;  %16595 = vst [vmem:[#allocation111_spill] sm:$0xff] %v15166_v49 }
 0x493   : > { %11097 = vmatmul.mubr.msk.f32.vlgmr.msra.gmra.mrb[2].mxu0 %vm912_vm0, %v9751_v27  ;;  %11099 = vmatprep.subr.msk.mxu0 %vm919_vm1, %v14956_v44  ;;  %v9794_v27 = vld [vmem:[%s16497_s30 + $0x710] sm:$0xff] }
 0x494   : > { %11100 = vmatpush3.msk.msra.mxu0 %vm919_vm1, %v14956_v44  ;;  %11101 = vmatprep.mubr.msk.f32.mxu0 %vm912_vm0, %v9787_v59  ;;  %v9811_v44 = vld [vmem:[%s16497_s30 + $0x798] sm:$0xff]  ;;  %v9788_v59 = vld [vmem:[%s16339_s5 + $0x68] sm:$0xff] }
 0x495   : > { %11899 = vmatprep.subr.bf16.mxu0 %v15119_v21  ;;  %v15146_v60 = vpack.c.bf16 %v9811_v44, %v9810_v25  ;;  %v9795_v21 = vld [vmem:[%s16497_s30 + $0x718] sm:$0xff]  ;;  %v9796_v25 = vld [vmem:[%s16497_s30 + $0x720] sm:$0xff]  ;;  %v9797_v44 = vld [vmem:[%s16497_s30 + $0x728] sm:$0xff] }
 0x496   : > { %v15162_v42 = vpack.c.bf16 %v9795_v21, %v9794_v27  ;;  %v15181_v56 = vpack.c.bf16 %v9797_v44, %v9796_v25  ;;  %v9798_v21 = vld [vmem:[%s16497_s30 + $0x730] sm:$0xff]  ;;  %v9799_v27 = vld [vmem:[%s16497_s30 + $0x738] sm:$0xff]  ;;  %v9817_v25 = vld [vmem:[%s16497_s30 + $0x7c8] sm:$0xff] }
 0x497   : > { %16593 = vst [vmem:[#allocation109_spill] sm:$0xff] %v15146_v60  ;;  %v15199_v44 = vpack.c.bf16 %v9799_v27, %v9798_v21  ;;  %v9819_v21 = vld [vmem:[%s16497_s30 + $0x7d8] sm:$0xff] }
 0x498   : > { %16594 = vst [vmem:[#allocation110_spill] sm:$0xff] %v15162_v42  ;;  %16596 = vst [vmem:[#allocation112_spill] sm:$0xff] %v15181_v56 }
 0x499   : > { %16598 = vst [vmem:[#allocation114_spill] sm:$0xff] %v15199_v44 }
 0x49b   : > { %11102 = vmatmul.mubr.msk.f32.vlgmr.msra.gmra.mrb[2].mxu0 %vm912_vm0, %v9788_v59  ;;  %v9814_v59 = vld [vmem:[%s16497_s30 + $0x7b0] sm:$0xff] }
 0x49c   : > { %11901 = vmatpush3.bf16.msra.mxu0 %v15144_v57  ;;  %2139 = vmatprep.mubr.f32.mxu0 %v13942_v26  ;;  %v9815_v26 = vld [vmem:[%s16497_s30 + $0x7b8] sm:$0xff] }
 0x49d   : > { %11903 = vmatprep.subr.bf16.mxu0 %v15146_v60  ;;  %v15184_v29 = vpack.c.bf16 %v9815_v26, %v9814_v59  ;;  %v9816_v60 = vld [vmem:[%s16497_s30 + $0x7c0] sm:$0xff] }
 0x49e   : > { %v15202_v59 = vpack.c.bf16 %v9817_v25, %v9816_v60  ;;  %v9800_v26 = vld [vmem:[%s16497_s30 + $0x740] sm:$0xff]  ;;  %v9802_v25 = vld [vmem:[%s16497_s30 + $0x750] sm:$0xff] }
 0x49f   : > { %16597 = vst [vmem:[#allocation113_spill] sm:$0xff] %v15184_v29 }
 0x4a0   : > { %11905 = vmatpush3.bf16.msra.mxu0 %v15162_v42  ;;  %16599 = vst [vmem:[#allocation115_spill] sm:$0xff] %v15202_v59  ;;  %v9818_v42 = vld [vmem:[%s16497_s30 + $0x7d0] sm:$0xff] }
 0x4a1   : > { %11907 = vmatprep.subr.bf16.mxu0 %v15166_v49  ;;  %v9801_v49 = vld [vmem:[%s16497_s30 + $0x748] sm:$0xff]  ;;  %v15220_v27 = vpack.c.bf16 %v9819_v21, %v9818_v42  ;;  %v9804_v21 = vld [vmem:[%s16497_s30 + $0x760] sm:$0xff] }
 0x4a2   : > { %v15217_v60 = vpack.c.bf16 %v9801_v49, %v9800_v26  ;;  %v9821_v49 = vld [vmem:[%s16497_s30 + $0x7e8] sm:$0xff] }
 0x4a3   : > { %16601 = vst [vmem:[#allocation117_spill] sm:$0xff] %v15220_v27 }
 0x4a4   : > { %11909 = vmatpush3.bf16.msra.mxu0 %v15181_v56  ;;  %16600 = vst [vmem:[#allocation116_spill] sm:$0xff] %v15217_v60  ;;  %v9820_v56 = vld [vmem:[%s16497_s30 + $0x7e0] sm:$0xff] }
 0x4a5   : > { %11911 = vmatprep.subr.bf16.mxu0 %v15184_v29  ;;  %v9803_v29 = vld [vmem:[%s16497_s30 + $0x758] sm:$0xff]  ;;  %v15238_v26 = vpack.c.bf16 %v9821_v49, %v9820_v56  ;;  %v9806_v49 = vld [vmem:[%s16497_s30 + $0x770] sm:$0xff] }
 0x4a6   : > { %v15235_v42 = vpack.c.bf16 %v9803_v29, %v9802_v25  ;;  %v9823_v29 = vld [vmem:[%s16497_s30 + $0x7f8] sm:$0xff] }
 0x4a7   : > { %16603 = vst [vmem:[#allocation119_spill] sm:$0xff] %v15238_v26 }
 0x4a8   : > { %11913 = vmatpush3.bf16.msra.mxu0 %v15199_v44  ;;  %16602 = vst [vmem:[#allocation118_spill] sm:$0xff] %v15235_v42  ;;  %v9822_v44 = vld [vmem:[%s16497_s30 + $0x7f0] sm:$0xff] }
 0x4a9   : > { %11915 = vmatprep.subr.bf16.mxu0 %v15202_v59  ;;  %v9805_v59 = vld [vmem:[%s16497_s30 + $0x768] sm:$0xff]  ;;  %v15256_v25 = vpack.c.bf16 %v9823_v29, %v9822_v44  ;;  %v9824_v44 = vld [vmem:[%s16339_s5 + $0x70] sm:$0xff] }
 0x4aa   : > { %v15253_v56 = vpack.c.bf16 %v9805_v59, %v9804_v21 }
 0x4ab   : > { %16605 = vst [vmem:[#allocation121_spill] sm:$0xff] %v15256_v25 }
 0x4ac   : > { %11917 = vmatpush3.bf16.msra.mxu0 %v15217_v60  ;;  %16604 = vst [vmem:[#allocation120_spill] sm:$0xff] %v15253_v56 }
 0x4ad   : > { %11919 = vmatprep.subr.bf16.mxu0 %v15220_v27  ;;  %v9807_v27 = vld [vmem:[%s16497_s30 + $0x778] sm:$0xff] }
 0x4ae   : > { %v15265_v60 = vpack.c.bf16 %v9807_v27, %v9806_v49  ;;  %v2426_v27 = vld [vmem:[%s16340_s6] sm:$0xff]  ;;  %v13574_v49 = vmov 0  }
 0x4af   : > { %13366 = vset.pattern.permute.xlu0 %v13574_v49  ;;  %13367 = vset.pattern.permute.xlu1 %v13574_v49 }
 0x4b0   : > { %11921 = vmatpush3.bf16.msra.mxu0 %v15235_v42  ;;  %16606 = vst [vmem:[#allocation122_spill] sm:$0xff] %v15265_v60  ;;  %v10442_v59 = vpop.f32.mrb[10].mxu1  ;;  %2430 = vperm.xlu0 %13366, %v2426_v27  }
 0x4b1   : > { %11923 = vmatprep.subr.bf16.mxu0 %v15238_v26  ;;  %v10443_v21 = vpop.f32.mrb[11].mxu1 }
 0x4b2   : > { %v10444_v29 = vadd.f32 %v10443_v21, %v10442_v59  ;;  %v9861_v59 = vld [vmem:[%s16339_s5 + $0x80] sm:$0xff]  ;;  %v2446_v21 = vld [vmem:[%s16349_s15 + $0x8] sm:$0xff] }
 0x4b4   : > { %11925 = vmatpush3.bf16.msra.mxu0 %v15253_v56 }
 0x4b5   : > { %11927 = vmatprep.subr.bf16.mxu0 %v15256_v25 }
 0x4b8   : > { %11929 = vmatpush3.bf16.msra.mxu0 %v15265_v60 }
 0x4bb   : > { %2140 = vmatmul.mubr.f32.vlgmr.msra.gmra.mrb[8].mxu0 %v15103_v47  ;;  %v2427_v47 = vld [vmem:[%s16340_s6 + $0x8] sm:$0xff] }
 0x4bc   : > { %11106 = vmatprep.mubr.msk.f32.mxu0 %vm912_vm0, %v9824_v44  ;;  %2435 = vperm.xlu0 %13366, %v2427_v47   ;;  %v9825_v44 = vld [vmem:[%s16339_s5 + $0x78] sm:$0xff] }
 0x58e   : > { %v10404_v60 = vpop.f32.mrb[8].mxu0 }
 0x58f   : > { %v10405_v25 = vpop.f32.mrb[9].mxu0 }
 0x590   : > { %v10406_v56 = vadd.f32 %v10405_v25, %v10404_v60  ;;  %v9862_v60 = vld [vmem:[%s16339_s5 + $0x88] sm:$0xff]  ;;  %v2443_v25 = vld [vmem:[#allocation8] sm:$0xff] }
 0x591   : > { %11118 = vmatprep.mubr.msk.f32.mxu1 %vm2457_vm2, %v2443_v25 }
 0x592   : > { %11104 = vmatprep.subr.msk.mxu0 %vm919_vm1, %v10406_v56 }
 0x593   : > { %11105 = vmatpush3.msk.msra.mxu0 %vm919_vm1, %v10406_v56  ;;  %v2445_v56 = vld [vmem:[%s16349_s15] sm:$0xff] }
 0x594   : > { %11107 = vmatmul.mubr.msk.f32.vlgmr.msra.gmra.mrb[2].mxu0 %vm912_vm0, %v9825_v44  ;;  %11109 = vmatprep.subr.msk.mxu0 %vm919_vm1, %v10444_v29 }
 0x595   : > { %11110 = vmatpush3.msk.msra.mxu0 %vm919_vm1, %v10444_v29  ;;  %11111 = vmatprep.mubr.msk.f32.mxu0 %vm912_vm0, %v9861_v59  ;;  %v2431_v29 = vpop.permute.xlu0 %2430 }
 0x596   : > { %2449 = vperm.xlu1 %13367, %v2445_v56  }
 0x599   : > { %v2436_v44 = vpop.permute.xlu0 %2435 }
 0x59a   : > { %2454 = vperm.xlu1 %13367, %v2446_v21  }
 0x59c   : > { %11112 = vmatmul.mubr.msk.f32.vlgmr.msra.gmra.mrb[2].mxu0 %vm912_vm0, %v9862_v60 }
 0x66f   : > { %v11113_v27 = vpop.f32.mrb[2].mxu0 }
 0x670   : > { %v13218_v49 = vadd.f32 %v11113_v27, %v14480_v12  ;;  %v2415_v47 = vpop.f32.mrb[3].mxu0 }
 0x671   : > { %v13219_v59 = vadd.f32 %v2415_v47, %v14482_v1  ;;  %v2444_v1 = vld [vmem:[#allocation8 + $0x8] sm:$0xff] }
 0x672   : > { %v2439_v60 = vadd.f32 %v13218_v49, %v2436_v44 }
 0x673   : > { %v2438_v25 = vadd.f32 %v13219_v59, %v2431_v29  ;;  %v2450_v29 = vpop.permute.xlu1 %2449 }
 0x674   : > { %v15311_v56 = vmax.f32 %v2439_v60, 0.0  ;;  %v2790_v60 = vld [vmem:[#allocation10] sm:$0xff] }
 0x675   : > { %v15313_v21 = vmax.f32 %v2438_v25, 0.0  ;;  %v2791_v25 = vld [vmem:[#allocation10 + $0x8] sm:$0xff] }
 0x676   : > { %16607 = vst [vmem:[#allocation123_spill] sm:$0xff] %v15311_v56  ;;  %9425 = vst.msk [vmem:[%s15309_s25 + $0x8] sm:$0xff] %vm2701_vm3, %v15311_v56 }
 0x677   : > { %16608 = vst [vmem:[#allocation124_spill] sm:$0xff] %v15313_v21  ;;  %9424 = vst.msk [vmem:[%s15309_s25] sm:$0xff] %vm2701_vm3, %v15313_v21  ;;  %v11962_v12 = vpack.c.bf16 %v15311_v56, %v15313_v21  ;;  %v2455_v27 = vpop.permute.xlu1 %2454 }
 0x679   : > { %11963 = vmatprep.subr.bf16.mxu1 %v11962_v12 }
 0x67a   : > { %11965 = vmatpush3.bf16.msra.mxu1 %v11962_v12 }
 0x67b   : > { %11967 = vmatprep.subr.bf16.mxu1 %v11962_v12 }
 0x67d   : > { %11119 = vmatmul.mubr.msk.f32.vlgmr.msra.gmra.mrb[12].mxu1 %vm2457_vm2, %v2444_v1 }
 0x67e   : > { %11969 = vmatpush3.bf16.msra.mxu1 %v11962_v12  ;;  %11139 = vmatprep.mubr.msk.f32.mxu1 %vm2457_vm2, %v2790_v60 }
 0x681   : > { %11140 = vmatmul.mubr.msk.f32.vlgmr.msra.gmra.mrb[14].mxu1 %vm2457_vm2, %v2791_v25 }
 0x750   : > { %v11120_v49 = vpop.f32.mrb[12].mxu1 }
 0x751   : > { %v2536_v47 = vadd.f32 %v11120_v49, %v2455_v27  ;;  %v2530_v44 = vpop.f32.mrb[13].mxu1 }
 0x752   : > { %v2531_v59 = vadd.f32 %v2530_v44, %v2450_v29 }
 0x753   : > { %11121 = vmatprep.subr.mxu0 %v2536_v47 }
 0x754   : > { %11122 = vmatpush3.msra.mxu0 %v2536_v47  ;;  %2539 = vxpose.xlu0.b32.start.end [1/1] (short) (narrow) %v2531_v59, 64 }
 0x7d4   : > { %v2555_v56 = vpop.trf.xlu0 }
 0x7d5   : > { %11123 = vmatprep.mubr.msk.f32.mxu0 %vm2571_vm4, %v2555_v56 }
 0x7d8   : > { %v2556_v12 = vpop.trf.xlu0 }
 0x7d9   : > { %11124 = vmatmul.mubr.msk.f32.vlgmr.msra.gmra.mrb[10].mxu0 %vm2571_vm4, %v2556_v12 }
 0x7dc   : > { %v2557_v1 = vpop.trf.xlu0 }
 0x7dd   : > { %11126 = vmatprep.mubr.msk.f32.mxu0 %vm2571_vm4, %v2557_v1 }
 0x7e0   : > { %v2558_v29 = vpop.trf.xlu0 }
 0x7e1   : > { %11127 = vmatmul.mubr.msk.f32.gmra.mrb[12].mxu0 %vm2571_vm4, %v2558_v29 }
 0x7e4   : > { %v2559_v27 = vpop.trf.xlu0 }
 0x7e5   : > { %11129 = vmatprep.mubr.msk.f32.mxu0 %vm2571_vm4, %v2559_v27 }
 0x7e8   : > { %v2560_v49 = vpop.trf.xlu0 }
 0x7e9   : > { %11130 = vmatmul.mubr.msk.f32.gmra.mrb[14].mxu0 %vm2571_vm4, %v2560_v49 }
 0x7ec   : > { %v2561_v47 = vpop.trf.xlu0 }
 0x7ed   : > { %11132 = vmatprep.mubr.msk.f32.mxu0 %vm2571_vm4, %v2561_v47 }
 0x7f0   : > { %v2562_v44 = vpop.trf.xlu0 }
 0x7f1   : > { %11133 = vmatmul.mubr.msk.f32.gmra.mrb[16].mxu0 %vm2571_vm4, %v2562_v44 }
 0x8ac   : > { %v11125_v56 = vpop.f32.mrb[10].mxu0 }
 0x8ad   : > { %v2662_v59 = vpop.f32.mrb[11].mxu0  ;;  %v2705_v60 = vsel %vm2701_vm3, %v11125_v56, -inf }
 0x8ae   : > { %2706 = vmax.xlane.f32.xlu0 %v2705_v60  ;;  %v2702_v25 = vsel %vm2701_vm3, %v2662_v59, -inf  ;;  %v2793_v60 = vld [vmem:[%s16351_s17 + $0x8] sm:$0xff] }
 0x8af   : > { %2703 = vmax.xlane.f32.xlu1 %v2702_v25  ;;  %v15343_v25 = vpop.f32.mrb[14].mxu1 }
 0x8b4   : > { %v11128_v12 = vpop.f32.mrb[12].mxu0 }
 0x8b5   : > { %v2672_v1 = vpop.f32.mrb[13].mxu0  ;;  %v2711_v29 = vsel %vm2701_vm3, %v11128_v12, -inf }
 0x8b6   : > { %2712 = vmax.xlane.f32.xlu1 %v2711_v29  ;;  %v2708_v27 = vsel %vm2701_vm3, %v2672_v1, -inf }
 0x8ba   : > { %2709 = vmax.xlane.f32.xlu1 %v2708_v27  ;;  %v9409_v27 = vld [vmem:[%s16347_s13 + $0x8] sm:$0xff] }
 0x8bc   : > { %v11131_v49 = vpop.f32.mrb[14].mxu0 }
 0x8bd   : > { %v2682_v47 = vpop.f32.mrb[15].mxu0  ;;  %v2717_v44 = vsel %vm2701_vm3, %v11131_v49, -inf }
 0x8be   : > { %2718 = vmax.xlane.f32.xlu1 %v2717_v44  ;;  %v2714_v21 = vsel %vm2701_vm3, %v2682_v47, -inf }
 0x8c2   : > { %2715 = vmax.xlane.f32.xlu1 %v2714_v21 }
 0x8c4   : > { %2801 = vperm.xlu0 %13366, %v2793_v60   ;;  %v11134_v26 = vpop.f32.mrb[16].mxu0 }
 0x8c5   : > { %v2692_v29 = vpop.f32.mrb[17].mxu0  ;;  %v2723_v44 = vsel %vm2701_vm3, %v11134_v26, -inf }
 0x8c6   : > { %v2720_v42 = vsel %vm2701_vm3, %v2692_v29, -inf }
 0x8c7   : > { %2721 = vmax.xlane.f32.xlu1 %v2720_v42 }
 0x8c8   : > { %9417 = vperm.xlu0 %13366, %v9409_v27  }
 0x8cb   : > { %2724 = vmax.xlane.f32.xlu1 %v2723_v44 }
 0x93b   : > { %v2707_v57 = vpop.xlane.xlu0 %2706 }
 0x93c   : > { %v2727_v6 = vsub.f32 %v11125_v56, %v2707_v57  ;;  %v2704_v32 = vpop.xlane.xlu1 %2703 }
 0x93d   : > { %v2726_v2 = vsub.f32 %v2662_v59, %v2704_v32 }
 0x93e   : > { %v2736_v35 = vmul.f32 1.442695, %v2727_v6 }
 0x93f   : > { %v2734_v21 = vmul.f32 1.442695, %v2726_v2 }
 0x940   : > { %13370 = vpow2.f32 %v2736_v35 }
 0x941   : > { %13372 = vpow2.f32 %v2734_v21 }
 0x943   : > { %v2713_v60 = vpop.xlane.xlu1 %2712 }
 0x944   : > { %v2729_v17 = vsub.f32 %v11128_v12, %v2713_v60 }
 0x946   : > { %v2740_v16 = vmul.f32 1.442695, %v2729_v17 }
 0x947   : > { %v2710_v63 = vpop.xlane.xlu1 %2709 }
 0x948   : > { %13374 = vpow2.f32 %v2740_v16  ;;  %v2728_v62 = vsub.f32 %v2672_v1, %v2710_v63 }
 0x94a   : > { %v15350_v54 = vpop.eup %13370  ;;  %v2738_v42 = vmul.f32 1.442695, %v2728_v62 }
 0x94b   : > { %v2719_v27 = vpop.xlane.xlu1 %2718  ;;  %v2753_v44 = vsel %vm2701_vm3, %v15350_v54, 0.0  ;;  %v15354_v57 = vpop.eup %13372 }
 0x94c   : > { %13376 = vpow2.f32 %v2738_v42  ;;  %v2731_v32 = vsub.f32 %v11131_v49, %v2719_v27  ;;  %2754 = vadd.xlane.f32.xlu1 %v2753_v44  ;;  %v2750_v17 = vsel %vm2701_vm3, %v15354_v57, 0.0 }
 0x94e   : > { %v2744_v35 = vmul.f32 1.442695, %v2731_v32 }
 0x94f   : > { %v2716_v2 = vpop.xlane.xlu1 %2715 }
 0x950   : > { %13378 = vpow2.f32 %v2744_v35  ;;  %v2730_v16 = vsub.f32 %v2682_v47, %v2716_v2  ;;  %2751 = vadd.xlane.f32.xlu1 %v2750_v17  ;;  %v2792_v17 = vld [vmem:[%s16351_s17] sm:$0xff] }
 0x952   : > { %v15358_v63 = vpop.eup %13374  ;;  %v2742_v62 = vmul.f32 1.442695, %v2730_v16  ;;  %v15385_v16 = vpop.f32.mrb[15].mxu1 }
 0x953   : > { %v2759_v6 = vsel %vm2701_vm3, %v15358_v63, 0.0 }
 0x954   : > { %13380 = vpow2.f32 %v2742_v62  ;;  %v2722_v56 = vpop.xlane.xlu1 %2721  ;;  %2760 = vadd.xlane.f32.xlu1 %v2759_v6  ;;  %v4972_v62 = vld [vmem:[%s16344_s10] sm:$0xf] }
 0x955   : > { %v2732_v12 = vsub.f32 %v2692_v29, %v2722_v56  ;;  %v6408_v6 = vld [vmem:[%s16342_s8] sm:$0xff]  ;;  %v6409_v56 = vld [vmem:[%s16342_s8 + $0x8] sm:$0xff] }
 0x956   : > { %v15362_v59 = vpop.eup %13376 }
 0x957   : > { %v2756_v1 = vsel %vm2701_vm3, %v15362_v59, 0.0  ;;  %v2746_v60 = vmul.f32 1.442695, %v2732_v12  ;;  %v9408_v12 = vld [vmem:[%s16347_s13] sm:$0xff] }
 0x958   : > { %v2725_v49 = vpop.xlane.xlu1 %2724  ;;  %2757 = vadd.xlane.f32.xlu1 %v2756_v1  ;;  %v2996_v1 = vld [vmem:[#allocation3 + $0x8] sm:$0xff] }
 0x959   : > { %v2733_v21 = vsub.f32 %v11134_v26, %v2725_v49  ;;  %v2998_v49 = vld [vmem:[#allocation3 + $0x18] sm:$0xff] }
 0x95a   : > { %v15366_v47 = vpop.eup %13378 }
 0x95b   : > { %v2748_v42 = vmul.f32 1.442695, %v2733_v21  ;;  %v2765_v27 = vsel %vm2701_vm3, %v15366_v47, 0.0  ;;  %v11994_v21 = vpack.c.bf16 %v2998_v49, %v2996_v1  ;;  %v3008_v1 = vld [vmem:[#allocation3 + $0x68] sm:$0xff]  ;;  %v3010_v49 = vld [vmem:[#allocation3 + $0x78] sm:$0xff] }
 0x95c   : > { %2766 = vadd.xlane.f32.xlu1 %v2765_v27 }
 0x95d   : > { %13382 = vpow2.f32 %v2748_v42  ;;  %v2997_v42 = vld [vmem:[#allocation3 + $0x10] sm:$0xff]  ;;  %11995 = vmatprep.subr.bf16.mxu1 %v11994_v21  ;;  %v12006_v21 = vpack.c.bf16 %v3010_v49, %v3008_v1  ;;  %v3020_v1 = vld [vmem:[#allocation3 + $0xc8] sm:$0xff]  ;;  %v3022_v49 = vld [vmem:[#allocation3 + $0xd8] sm:$0xff] }
 0x95e   : > { %v15370_v44 = vpop.eup %13380  ;;  %13384 = vpow2.f32 %v2746_v60  ;;  %v2995_v60 = vld [vmem:[#allocation3] sm:$0xff] }
 0x95f   : > { %v2762_v29 = vsel %vm2701_vm3, %v15370_v44, 0.0  ;;  %v11996_v27 = vpack.c.bf16 %v2997_v42, %v2995_v60  ;;  %v3007_v60 = vld [vmem:[#allocation3 + $0x60] sm:$0xff]  ;;  %v3009_v42 = vld [vmem:[#allocation3 + $0x70] sm:$0xff] }
 0x960   : > { %2763 = vadd.xlane.f32.xlu1 %v2762_v29  ;;  %v3000_v29 = vld [vmem:[#allocation3 + $0x28] sm:$0xff] }
 0x961   : > { %11997 = vmatpush1.bf16.msra.mxu1 %v11996_v27  ;;  %v12008_v27 = vpack.c.bf16 %v3009_v42, %v3007_v60  ;;  %v3019_v60 = vld [vmem:[#allocation3 + $0xc0] sm:$0xff]  ;;  %v3021_v42 = vld [vmem:[#allocation3 + $0xd0] sm:$0xff] }
 0x967   : > { %v15374_v32 = vpop.eup %13382 }
 0x968   : > { %v2771_v26 = vsel %vm2701_vm3, %v15374_v32, 0.0  ;;  %v15378_v35 = vpop.eup %13384 }
 0x969   : > { %2772 = vadd.xlane.f32.xlu1 %v2771_v26  ;;  %v2768_v2 = vsel %vm2701_vm3, %v15378_v35, 0.0  ;;  %v3002_v26 = vld [vmem:[#allocation3 + $0x38] sm:$0xff] }
 0x96d   : > { %2769 = vadd.xlane.f32.xlu1 %v2768_v2  ;;  %v11998_v2 = vpack.c.bf16 %v3002_v26, %v3000_v29  ;;  %v3012_v29 = vld [vmem:[#allocation3 + $0x88] sm:$0xff]  ;;  %v3014_v26 = vld [vmem:[#allocation3 + $0x98] sm:$0xff] }
 0x96f   : > { %11999 = vmatprep.subr.bf16.mxu1 %v11998_v2  ;;  %v12010_v2 = vpack.c.bf16 %v3014_v26, %v3012_v29  ;;  %v3024_v29 = vld [vmem:[#allocation3 + $0xe8] sm:$0xff]  ;;  %v3026_v26 = vld [vmem:[#allocation3 + $0xf8] sm:$0xff] }
 0x97e   : > { %2796 = vperm.xlu1 %13367, %v2792_v17   ;;  %v2999_v17 = vld [vmem:[#allocation3 + $0x20] sm:$0xff] }
 0x982   : > { %4975 = vperm.xlu1 %13367, %v4972_v62   ;;  %v3001_v62 = vld [vmem:[#allocation3 + $0x30] sm:$0xff] }
 0x986   : > { %6412 = vperm.xlu1 %13367, %v6408_v6   ;;  %v12000_v6 = vpack.c.bf16 %v3001_v62, %v2999_v17  ;;  %v3011_v17 = vld [vmem:[#allocation3 + $0x80] sm:$0xff]  ;;  %v3013_v62 = vld [vmem:[#allocation3 + $0x90] sm:$0xff] }
 0x988   : > { %12001 = vmatpush1.bf16.msra.mxu1 %v12000_v6  ;;  %v12012_v6 = vpack.c.bf16 %v3013_v62, %v3011_v17  ;;  %v3023_v17 = vld [vmem:[#allocation3 + $0xe0] sm:$0xff]  ;;  %v3025_v62 = vld [vmem:[#allocation3 + $0xf0] sm:$0xff] }
 0x98a   : > { %6417 = vperm.xlu1 %13367, %v6409_v56   ;;  %v3004_v56 = vld [vmem:[#allocation3 + $0x48] sm:$0xff] }
 0x98b   : > { %v12002_v41 = vpack.c.bf16 %v3006_v50, %v3004_v56  ;;  %v3016_v50 = vld [vmem:[#allocation3 + $0xa8] sm:$0xff]  ;;  %v3017_v56 = vld [vmem:[#allocation3 + $0xb0] sm:$0xff] }
 0x98d   : > { %12003 = vmatprep.subr.bf16.mxu1 %v12002_v41 }
 0x98e   : > { %9412 = vperm.xlu1 %13367, %v9408_v12   ;;  %v3003_v12 = vld [vmem:[#allocation3 + $0x40] sm:$0xff] }
 0x98f   : > { %v12004_v24 = vpack.c.bf16 %v3005_v37, %v3003_v12  ;;  %v3018_v37 = vld [vmem:[#allocation3 + $0xb8] sm:$0xff] }
 0x990   : > { %v12014_v41 = vpack.c.bf16 %v3018_v37, %v3016_v50  ;;  %v3028_v50 = vld [vmem:[#allocation3 + $0x108] sm:$0xff]  ;;  %v3030_v37 = vld [vmem:[#allocation3 + $0x118] sm:$0xff] }
 0x991   : > { %12005 = vmatpush1.bf16.msra.mxu1 %v12004_v24  ;;  %v3015_v24 = vld [vmem:[#allocation3 + $0xa0] sm:$0xff] }
 0x992   : > { %12007 = vmatprep.subr.bf16.mxu1 %v12006_v21  ;;  %v12016_v12 = vpack.c.bf16 %v3017_v56, %v3015_v24  ;;  %v12018_v21 = vpack.c.bf16 %v3022_v49, %v3020_v1  ;;  %v3027_v24 = vld [vmem:[#allocation3 + $0x100] sm:$0xff]  ;;  %v3029_v56 = vld [vmem:[#allocation3 + $0x110] sm:$0xff]  ;;  %v3032_v1 = vld [vmem:[#allocation3 + $0x128] sm:$0xff] }
 0x993   : > { %v3034_v49 = vld [vmem:[#allocation3 + $0x138] sm:$0xff] }
 0x995   : > { %12009 = vmatpush1.bf16.msra.mxu1 %v12008_v27  ;;  %v12020_v27 = vpack.c.bf16 %v3021_v42, %v3019_v60  ;;  %v3031_v60 = vld [vmem:[#allocation3 + $0x120] sm:$0xff]  ;;  %v3033_v42 = vld [vmem:[#allocation3 + $0x130] sm:$0xff] }
 0x996   : > { %12011 = vmatprep.subr.bf16.mxu1 %v12010_v2  ;;  %v12022_v2 = vpack.c.bf16 %v3026_v26, %v3024_v29  ;;  %v3036_v29 = vld [vmem:[#allocation3 + $0x148] sm:$0xff]  ;;  %v3038_v26 = vld [vmem:[#allocation3 + $0x158] sm:$0xff] }
 0x999   : > { %12013 = vmatpush1.bf16.msra.mxu1 %v12012_v6  ;;  %v12024_v6 = vpack.c.bf16 %v3025_v62, %v3023_v17  ;;  %v3035_v17 = vld [vmem:[#allocation3 + $0x140] sm:$0xff]  ;;  %v3037_v62 = vld [vmem:[#allocation3 + $0x150] sm:$0xff] }
 0x99a   : > { %12015 = vmatprep.subr.bf16.mxu1 %v12014_v41  ;;  %v12026_v41 = vpack.c.bf16 %v3030_v37, %v3028_v50  ;;  %v3040_v50 = vld [vmem:[#allocation3 + $0x168] sm:$0xff]  ;;  %v3042_v37 = vld [vmem:[#allocation3 + $0x178] sm:$0xff] }
 0x99d   : > { %12017 = vmatpush1.bf16.msra.mxu1 %v12016_v12  ;;  %v12028_v12 = vpack.c.bf16 %v3029_v56, %v3027_v24  ;;  %v3039_v24 = vld [vmem:[#allocation3 + $0x160] sm:$0xff]  ;;  %v3041_v56 = vld [vmem:[#allocation3 + $0x170] sm:$0xff] }
 0x99e   : > { %12019 = vmatprep.subr.bf16.mxu1 %v12018_v21  ;;  %v12030_v21 = vpack.c.bf16 %v3034_v49, %v3032_v1  ;;  %v3044_v1 = vld [vmem:[#allocation3 + $0x188] sm:$0xff]  ;;  %v3046_v49 = vld [vmem:[#allocation3 + $0x198] sm:$0xff] }
 0x9a1   : > { %12021 = vmatpush1.bf16.msra.mxu1 %v12020_v27  ;;  %v12032_v27 = vpack.c.bf16 %v3033_v42, %v3031_v60  ;;  %v3043_v60 = vld [vmem:[#allocation3 + $0x180] sm:$0xff]  ;;  %v3045_v42 = vld [vmem:[#allocation3 + $0x190] sm:$0xff] }
 0x9a2   : > { %12023 = vmatprep.subr.bf16.mxu1 %v12022_v2  ;;  %v12034_v2 = vpack.c.bf16 %v3038_v26, %v3036_v29  ;;  %v3048_v29 = vld [vmem:[#allocation3 + $0x1a8] sm:$0xff]  ;;  %v3050_v26 = vld [vmem:[#allocation3 + $0x1b8] sm:$0xff] }
 0x9a5   : > { %12025 = vmatpush1.bf16.msra.mxu1 %v12024_v6  ;;  %v12036_v6 = vpack.c.bf16 %v3037_v62, %v3035_v17  ;;  %v3047_v17 = vld [vmem:[#allocation3 + $0x1a0] sm:$0xff]  ;;  %v3049_v62 = vld [vmem:[#allocation3 + $0x1b0] sm:$0xff] }
 0x9a6   : > { %12027 = vmatprep.subr.bf16.mxu1 %v12026_v41  ;;  %v12038_v41 = vpack.c.bf16 %v3042_v37, %v3040_v50  ;;  %v3052_v50 = vld [vmem:[#allocation3 + $0x1c8] sm:$0xff]  ;;  %v3054_v37 = vld [vmem:[#allocation3 + $0x1d8] sm:$0xff] }
 0x9a9   : > { %12029 = vmatpush1.bf16.msra.mxu1 %v12028_v12  ;;  %v12040_v12 = vpack.c.bf16 %v3041_v56, %v3039_v24  ;;  %v3051_v24 = vld [vmem:[#allocation3 + $0x1c0] sm:$0xff]  ;;  %v3053_v56 = vld [vmem:[#allocation3 + $0x1d0] sm:$0xff] }
 0x9aa   : > { %12031 = vmatprep.subr.bf16.mxu1 %v12030_v21  ;;  %v12042_v21 = vpack.c.bf16 %v3046_v49, %v3044_v1  ;;  %v15407_v1 = vld [vmem:[%s15404_s0] sm:$0xff] }
 0x9ab   : > { %v15411_v49 = vcombine.high %v15407_v1, %v15407_v1 }
 0x9ad   : > { %12033 = vmatpush1.bf16.msra.mxu1 %v12032_v27  ;;  %v12044_v27 = vpack.c.bf16 %v3045_v42, %v3043_v60  ;;  %v3058_v60 = vld [vmem:[#allocation3 + $0x1f8] sm:$0xff]  ;;  %3126 = vmatprep.mubr.f32.mxu1 %v15411_v49 }
 0x9ae   : > { %12035 = vmatprep.subr.bf16.mxu1 %v12034_v2  ;;  %v12046_v2 = vpack.c.bf16 %v3050_v26, %v3048_v29  ;;  %v3057_v29 = vld [vmem:[#allocation3 + $0x1f0] sm:$0xff] }
 0x9b1   : > { %12037 = vmatpush1.bf16.msra.mxu1 %v12036_v6  ;;  %v12048_v6 = vpack.c.bf16 %v3049_v62, %v3047_v17 }
 0x9b2   : > { %12039 = vmatprep.subr.bf16.mxu1 %v12038_v41  ;;  %v12050_v41 = vpack.c.bf16 %v3054_v37, %v3052_v50 }
 0x9b5   : > { %12041 = vmatpush1.bf16.msra.mxu1 %v12040_v12  ;;  %v12052_v12 = vpack.c.bf16 %v3053_v56, %v3051_v24 }
 0x9b6   : > { %12043 = vmatprep.subr.bf16.mxu1 %v12042_v21  ;;  %v3056_v21 = vld [vmem:[#allocation3 + $0x1e8] sm:$0xff] }
 0x9b7   : > { %v12054_v42 = vpack.c.bf16 %v3058_v60, %v3056_v21 }
 0x9b9   : > { %12045 = vmatpush1.bf16.msra.mxu1 %v12044_v27  ;;  %v3055_v27 = vld [vmem:[#allocation3 + $0x1e0] sm:$0xff] }
 0x9ba   : > { %12047 = vmatprep.subr.bf16.mxu1 %v12046_v2  ;;  %v12056_v26 = vpack.c.bf16 %v3057_v29, %v3055_v27 }
 0x9bd   : > { %12049 = vmatpush1.bf16.msra.mxu1 %v12048_v6 }
 0x9be   : > { %12051 = vmatprep.subr.bf16.mxu1 %v12050_v41 }
 0x9c1   : > { %12053 = vmatpush1.bf16.msra.mxu1 %v12052_v12 }
 0x9c2   : > { %12055 = vmatprep.subr.bf16.mxu1 %v12054_v42 }
 0x9c5   : > { %12057 = vmatpush1.bf16.msra.mxu1 %v12056_v26 }
 0x9c8   : > { %3127 = vmatmul.mubr.f32.vlgmr.msra.gmra.mrb[16].mxu1 %v15407_v1 }
 0x9d9   : > { %v2755_v2 = vpop.xlane.xlu1 %2754 }
 0x9da   : > { %13386 = vrcp.f32 %v2755_v2 }
 0x9dd   : > { %v2752_v17 = vpop.xlane.xlu1 %2751 }
 0x9de   : > { %13388 = vrcp.f32 %v2752_v17 }
 0x9e1   : > { %v2761_v62 = vpop.xlane.xlu1 %2760 }
 0x9e2   : > { %13390 = vrcp.f32 %v2761_v62 }
 0x9e4   : > { %v13387_v50 = vpop.eup %13386 }
 0x9e5   : > { %v2758_v6 = vpop.xlane.xlu1 %2757  ;;  %v2777_v56 = vmul.f32 %v13387_v50, %v15350_v54 }
 0x9e6   : > { %13392 = vrcp.f32 %v2758_v6 }
 0x9e8   : > { %v13389_v37 = vpop.eup %13388 }
 0x9e9   : > { %v2767_v41 = vpop.xlane.xlu1 %2766  ;;  %v2775_v24 = vmul.f32 %v13389_v37, %v15354_v57 }
 0x9ea   : > { %13394 = vrcp.f32 %v2767_v41 }
 0x9eb   : > { %v11970_v21 = vpack.c.bf16 %v2777_v56, %v2775_v24  ;;  %v3136_v56 = vld [vmem:[#allocation3 + $0x208] sm:$0xff] }
 0x9ec   : > { %v13391_v42 = vpop.eup %13390 }
 0x9ed   : > { %11972 = vmatprep.subr.msk.bf16.mxu0 %vm15419_vm5, %v11970_v21  ;;  %v2764_v60 = vpop.xlane.xlu1 %2763  ;;  %v2781_v27 = vmul.f32 %v13391_v42, %v15358_v63 }
 0x9ee   : > { %13396 = vrcp.f32 %v2764_v60  ;;  %11975 = vmatpush3.bf16.xpose.msk.msra.mxu0 %vm15419_vm5, %v11970_v21 }
 0x9f0   : > { %v13393_v57 = vpop.eup %13392 }
 0x9f1   : > { %v2779_v54 = vmul.f32 %v13393_v57, %v15362_v59  ;;  %v3137_v57 = vld [vmem:[#allocation3 + $0x210] sm:$0xff] }
 0x9f3   : > { %v11976_v29 = vpack.c.bf16 %v2781_v27, %v2779_v54  ;;  %v2802_v54 = vpop.permute.xlu0 %2801  ;;  %v3140_v27 = vld [vmem:[#allocation3 + $0x228] sm:$0xff] }
 0x9f4   : > { %v13395_v26 = vpop.eup %13394 }
 0x9f5   : > { %11978 = vmatprep.subr.msk.bf16.mxu0 %vm15419_vm5, %v11976_v29  ;;  %v2785_v6 = vmul.f32 %v13395_v26, %v15366_v47 }
 0x9f6   : > { %11981 = vmatpush3.bf16.xpose.msk.msra.mxu0 %vm15419_vm5, %v11976_v29  ;;  %v2773_v2 = vpop.xlane.xlu1 %2772  ;;  %v3142_v29 = vld [vmem:[#allocation3 + $0x238] sm:$0xff] }
 0x9f7   : > { %13398 = vrcp.f32 %v2773_v2  ;;  %v2882_v2 = vadd.f32 %v15343_v25, %v2802_v54  ;;  %v3156_v54 = vld [vmem:[#allocation3 + $0x2a8] sm:$0xff] }
 0x9f8   : > { %v13397_v17 = vpop.eup %13396 }
 0x9f9   : > { %v2783_v62 = vmul.f32 %v13397_v17, %v15370_v44  ;;  %v3138_v44 = vld [vmem:[#allocation3 + $0x218] sm:$0xff]  ;;  %v3139_v17 = vld [vmem:[#allocation3 + $0x220] sm:$0xff] }
 0x9fa   : > { %v2770_v50 = vpop.xlane.xlu1 %2769  ;;  %v12058_v42 = vpack.c.bf16 %v3138_v44, %v3136_v56  ;;  %v3147_v56 = vld [vmem:[#allocation3 + $0x260] sm:$0xff]  ;;  %v3149_v44 = vld [vmem:[#allocation3 + $0x270] sm:$0xff] }
 0x9fb   : > { %13400 = vrcp.f32 %v2770_v50  ;;  %v11982_v59 = vpack.c.bf16 %v2785_v6, %v2783_v62  ;;  %v3144_v62 = vld [vmem:[#allocation3 + $0x248] sm:$0xff]  ;;  %v3146_v6 = vld [vmem:[#allocation3 + $0x258] sm:$0xff] }
 0x9fc   : > { %v12066_v12 = vpack.c.bf16 %v3146_v6, %v3144_v62 }
 0x9fd   : > { %11984 = vmatprep.subr.msk.bf16.mxu0 %vm15419_vm5, %v11982_v59 }
 0x9fe   : > { %11987 = vmatpush3.bf16.xpose.msk.msra.mxu0 %vm15419_vm5, %v11982_v59  ;;  %v2797_v63 = vpop.permute.xlu1 %2796  ;;  %v3143_v59 = vld [vmem:[#allocation3 + $0x240] sm:$0xff] }
 0x9ff   : > { %v2877_v37 = vadd.f32 %v15385_v16, %v2797_v63  ;;  %v3135_v16 = vld [vmem:[#allocation3 + $0x200] sm:$0xff]  ;;  %v3145_v63 = vld [vmem:[#allocation3 + $0x250] sm:$0xff] }
 0xa00   : > { %v12060_v26 = vpack.c.bf16 %v3137_v57, %v3135_v16  ;;  %v3151_v16 = vld [vmem:[#allocation3 + $0x280] sm:$0xff]  ;;  %v3153_v57 = vld [vmem:[#allocation3 + $0x290] sm:$0xff] }
 0xa01   : > { %11158 = vmatprep.mubr.msk.f32.mxu0 %vm2701_vm3, %v2877_v37  ;;  %v13399_v41 = vpop.eup %13398  ;;  %v3148_v37 = vld [vmem:[#allocation3 + $0x268] sm:$0xff] }
 0xa02   : > { %v2789_v21 = vmul.f32 %v13399_v41, %v15374_v32  ;;  %v3141_v32 = vld [vmem:[#allocation3 + $0x230] sm:$0xff]  ;;  %v3150_v41 = vld [vmem:[#allocation3 + $0x278] sm:$0xff] }
 0xa03   : > { %v12064_v50 = vpack.c.bf16 %v3141_v32, %v3139_v17  ;;  %v12070_v25 = vpack.c.bf16 %v3150_v41, %v3148_v37  ;;  %v3160_v17 = vld [vmem:[#allocation3 + $0x2c8] sm:$0xff]  ;;  %v3162_v32 = vld [vmem:[#allocation3 + $0x2d8] sm:$0xff] }
 0xa04   : > { %v12082_v6 = vpack.c.bf16 %v3162_v32, %v3160_v17 }
 0xa05   : > { %v13401_v24 = vpop.eup %13400 }
 0xa06   : > { %v2787_v47 = vmul.f32 %v13401_v24, %v15378_v35  ;;  %v12062_v35 = vpack.c.bf16 %v3142_v29, %v3140_v27  ;;  %v12068_v24 = vpack.c.bf16 %v3145_v63, %v3143_v59  ;;  %v3158_v27 = vld [vmem:[#allocation3 + $0x2b8] sm:$0xff]  ;;  %v12076_v29 = vpack.c.bf16 %v3153_v57, %v3151_v16  ;;  %v3164_v59 = vld [vmem:[#allocation3 + $0x2e8] sm:$0xff] }
 0xa07   : > { %v3166_v63 = vld [vmem:[#allocation3 + $0x2f8] sm:$0xff]  ;;  %v3172_v16 = vld [vmem:[#allocation3 + $0x328] sm:$0xff] }
 0xa08   : > { %v11988_v60 = vpack.c.bf16 %v2789_v21, %v2787_v47  ;;  %v3152_v47 = vld [vmem:[#allocation3 + $0x288] sm:$0xff]  ;;  %v3154_v21 = vld [vmem:[#allocation3 + $0x298] sm:$0xff]  ;;  %v12086_v41 = vpack.c.bf16 %v3166_v63, %v3164_v59 }
 0xa09   : > { %v3174_v57 = vld [vmem:[#allocation3 + $0x338] sm:$0xff] }
 0xa0a   : > { %11990 = vmatprep.subr.msk.bf16.mxu0 %vm15419_vm5, %v11988_v60 }
 0xa0b   : > { %11993 = vmatpush3.bf16.xpose.msk.msra.mxu0 %vm15419_vm5, %v11988_v60  ;;  %v12072_v60 = vpack.c.bf16 %v3149_v44, %v3147_v56  ;;  %v3168_v56 = vld [vmem:[#allocation3 + $0x308] sm:$0xff]  ;;  %v3170_v44 = vld [vmem:[#allocation3 + $0x318] sm:$0xff] }
 0xa0c   : > { %12059 = vmatprep.subr.bf16.mxu0 %v12058_v42  ;;  %v12074_v42 = vpack.c.bf16 %v3154_v21, %v3152_v47  ;;  %v12090_v21 = vpack.c.bf16 %v3170_v44, %v3168_v56 }
 0xa12   : > { %11159 = vmatmul.mubr.msk.f32.vlgmr.msra.gmra.mrb[18].mxu0 %vm2701_vm3, %v2882_v2  ;;  %v3155_v2 = vld [vmem:[#allocation3 + $0x2a0] sm:$0xff] }
 0xa13   : > { %12061 = vmatpush1.bf16.msra.mxu0 %v12060_v26  ;;  %3263 = vmatprep.mubr.f32.mxu0 %v15411_v49  ;;  %v12078_v26 = vpack.c.bf16 %v3158_v27, %v3156_v54  ;;  %v12094_v27 = vpack.c.bf16 %v3174_v57, %v3172_v16 }
 0xa14   : > { %12063 = vmatprep.subr.bf16.mxu0 %v12062_v35  ;;  %v3157_v35 = vld [vmem:[#allocation3 + $0x2b0] sm:$0xff] }
 0xa15   : > { %v12080_v62 = vpack.c.bf16 %v3157_v35, %v3155_v2  ;;  %v3176_v2 = vld [vmem:[#allocation3 + $0x348] sm:$0xff]  ;;  %v3178_v35 = vld [vmem:[#allocation3 + $0x358] sm:$0xff] }
 0xa16   : > { %v12098_v32 = vpack.c.bf16 %v3178_v35, %v3176_v2 }
 0xa17   : > { %12065 = vmatpush1.bf16.msra.mxu0 %v12064_v50  ;;  %v3159_v50 = vld [vmem:[#allocation3 + $0x2c0] sm:$0xff] }
 0xa18   : > { %12067 = vmatprep.subr.bf16.mxu0 %v12066_v12  ;;  %v3161_v12 = vld [vmem:[#allocation3 + $0x2d0] sm:$0xff] }
 0xa19   : > { %v12084_v37 = vpack.c.bf16 %v3161_v12, %v3159_v50  ;;  %v3180_v50 = vld [vmem:[#allocation3 + $0x368] sm:$0xff]  ;;  %v3182_v12 = vld [vmem:[#allocation3 + $0x378] sm:$0xff] }
 0xa1a   : > { %v12102_v63 = vpack.c.bf16 %v3182_v12, %v3180_v50 }
 0xa1b   : > { %12069 = vmatpush1.bf16.msra.mxu0 %v12068_v24  ;;  %v3163_v24 = vld [vmem:[#allocation3 + $0x2e0] sm:$0xff] }
 0xa1c   : > { %12071 = vmatprep.subr.bf16.mxu0 %v12070_v25  ;;  %v3165_v25 = vld [vmem:[#allocation3 + $0x2f0] sm:$0xff] }
 0xa1d   : > { %v12088_v47 = vpack.c.bf16 %v3165_v25, %v3163_v24  ;;  %v3184_v24 = vld [vmem:[#allocation3 + $0x388] sm:$0xff]  ;;  %v3186_v25 = vld [vmem:[#allocation3 + $0x398] sm:$0xff] }
 0xa1e   : > { %v12106_v44 = vpack.c.bf16 %v3186_v25, %v3184_v24 }
 0xa1f   : > { %12073 = vmatpush1.bf16.msra.mxu0 %v12072_v60  ;;  %v3167_v60 = vld [vmem:[#allocation3 + $0x300] sm:$0xff] }
 0xa20   : > { %12075 = vmatprep.subr.bf16.mxu0 %v12074_v42  ;;  %v3169_v42 = vld [vmem:[#allocation3 + $0x310] sm:$0xff] }
 0xa21   : > { %v12092_v54 = vpack.c.bf16 %v3169_v42, %v3167_v60  ;;  %v3188_v60 = vld [vmem:[#allocation3 + $0x3a8] sm:$0xff]  ;;  %v3190_v42 = vld [vmem:[#allocation3 + $0x3b8] sm:$0xff] }
 0xa22   : > { %v12110_v57 = vpack.c.bf16 %v3190_v42, %v3188_v60 }
 0xa23   : > { %12077 = vmatpush1.bf16.msra.mxu0 %v12076_v29  ;;  %v3171_v29 = vld [vmem:[#allocation3 + $0x320] sm:$0xff] }
 0xa24   : > { %12079 = vmatprep.subr.bf16.mxu0 %v12078_v26  ;;  %v3173_v26 = vld [vmem:[#allocation3 + $0x330] sm:$0xff] }
 0xa25   : > { %v12096_v17 = vpack.c.bf16 %v3173_v26, %v3171_v29  ;;  %v3192_v29 = vld [vmem:[#allocation3 + $0x3c8] sm:$0xff]  ;;  %v3194_v26 = vld [vmem:[#allocation3 + $0x3d8] sm:$0xff] }
 0xa26   : > { %v12114_v35 = vpack.c.bf16 %v3194_v26, %v3192_v29 }
 0xa27   : > { %12081 = vmatpush1.bf16.msra.mxu0 %v12080_v62  ;;  %v3175_v62 = vld [vmem:[#allocation3 + $0x340] sm:$0xff] }
 0xa28   : > { %12083 = vmatprep.subr.bf16.mxu0 %v12082_v6  ;;  %v3177_v6 = vld [vmem:[#allocation3 + $0x350] sm:$0xff] }
 0xa29   : > { %v12100_v59 = vpack.c.bf16 %v3177_v6, %v3175_v62  ;;  %v3196_v62 = vld [vmem:[#allocation3 + $0x3e8] sm:$0xff]  ;;  %v3198_v6 = vld [vmem:[#allocation3 + $0x3f8] sm:$0xff] }
 0xa2a   : > { %v12118_v12 = vpack.c.bf16 %v3198_v6, %v3196_v62 }
 0xa2b   : > { %12085 = vmatpush1.bf16.msra.mxu0 %v12084_v37  ;;  %v3179_v37 = vld [vmem:[#allocation3 + $0x360] sm:$0xff] }
 0xa2c   : > { %12087 = vmatprep.subr.bf16.mxu0 %v12086_v41  ;;  %v3181_v41 = vld [vmem:[#allocation3 + $0x370] sm:$0xff] }
 0xa2d   : > { %v12104_v56 = vpack.c.bf16 %v3181_v41, %v3179_v37  ;;  %v13575_v41 = vmov 0.0  }
 0xa2e   : > { %3345 = vmatprep.mubr.f32.mxu1 %v13575_v41 }
 0xa2f   : > { %12089 = vmatpush1.bf16.msra.mxu0 %v12088_v47  ;;  %v3183_v47 = vld [vmem:[#allocation3 + $0x380] sm:$0xff] }
 0xa30   : > { %12091 = vmatprep.subr.bf16.mxu0 %v12090_v21  ;;  %v3185_v21 = vld [vmem:[#allocation3 + $0x390] sm:$0xff] }
 0xa31   : > { %v12108_v16 = vpack.c.bf16 %v3185_v21, %v3183_v47  ;;  %v3653_v47 = vld [vmem:[#allocation3 + $0x600] sm:$0xff]  ;;  %v3655_v21 = vld [vmem:[#allocation3 + $0x610] sm:$0xff] }
 0xa32   : > { %v12188_v42 = vpack.c.bf16 %v3655_v21, %v3653_v47  ;;  %v3672_v47 = vld [vmem:[#allocation3 + $0x698] sm:$0xff]  ;;  %v3669_v21 = vld [vmem:[#allocation3 + $0x680] sm:$0xff] }
 0xa33   : > { %12093 = vmatpush1.bf16.msra.mxu0 %v12092_v54  ;;  %v3187_v54 = vld [vmem:[#allocation3 + $0x3a0] sm:$0xff] }
 0xa34   : > { %12095 = vmatprep.subr.bf16.mxu0 %v12094_v27  ;;  %v3189_v27 = vld [vmem:[#allocation3 + $0x3b0] sm:$0xff] }
 0xa35   : > { %v12112_v2 = vpack.c.bf16 %v3189_v27, %v3187_v54  ;;  %v3657_v54 = vld [vmem:[#allocation3 + $0x620] sm:$0xff]  ;;  %v3659_v27 = vld [vmem:[#allocation3 + $0x630] sm:$0xff] }
 0xa36   : > { %v12192_v26 = vpack.c.bf16 %v3659_v27, %v3657_v54  ;;  %v3676_v54 = vld [vmem:[#allocation3 + $0x6b8] sm:$0xff]  ;;  %v3673_v27 = vld [vmem:[#allocation3 + $0x6a0] sm:$0xff] }
 0xa37   : > { %12097 = vmatpush1.bf16.msra.mxu0 %v12096_v17  ;;  %v3191_v17 = vld [vmem:[#allocation3 + $0x3c0] sm:$0xff] }
 0xa38   : > { %12099 = vmatprep.subr.bf16.mxu0 %v12098_v32  ;;  %v3193_v32 = vld [vmem:[#allocation3 + $0x3d0] sm:$0xff] }
 0xa39   : > { %v12116_v50 = vpack.c.bf16 %v3193_v32, %v3191_v17  ;;  %v3661_v17 = vld [vmem:[#allocation3 + $0x640] sm:$0xff]  ;;  %v3663_v32 = vld [vmem:[#allocation3 + $0x650] sm:$0xff] }
 0xa3a   : > { %v12196_v6 = vpack.c.bf16 %v3663_v32, %v3661_v17  ;;  %v3680_v17 = vld [vmem:[#allocation3 + $0x6d8] sm:$0xff]  ;;  %v3677_v32 = vld [vmem:[#allocation3 + $0x6c0] sm:$0xff] }
 0xa3b   : > { %12101 = vmatpush1.bf16.msra.mxu0 %v12100_v59  ;;  %v3195_v59 = vld [vmem:[#allocation3 + $0x3e0] sm:$0xff] }
 0xa3c   : > { %12103 = vmatprep.subr.bf16.mxu0 %v12102_v63  ;;  %v3197_v63 = vld [vmem:[#allocation3 + $0x3f0] sm:$0xff] }
 0xa3d   : > { %v12120_v37 = vpack.c.bf16 %v3197_v63, %v3195_v59  ;;  %v3665_v59 = vld [vmem:[#allocation3 + $0x660] sm:$0xff]  ;;  %v3667_v63 = vld [vmem:[#allocation3 + $0x670] sm:$0xff] }
 0xa3f   : > { %12105 = vmatpush1.bf16.msra.mxu0 %v12104_v56  ;;  %v3654_v56 = vld [vmem:[#allocation3 + $0x608] sm:$0xff] }
 0xa40   : > { %12107 = vmatprep.subr.bf16.mxu0 %v12106_v44  ;;  %v3656_v44 = vld [vmem:[#allocation3 + $0x618] sm:$0xff] }
 0xa41   : > { %v12186_v60 = vpack.c.bf16 %v3656_v44, %v3654_v56  ;;  %v12200_v56 = vpack.c.bf16 %v3667_v63, %v3665_v59  ;;  %v3670_v44 = vld [vmem:[#allocation3 + $0x688] sm:$0xff]  ;;  %v3684_v59 = vld [vmem:[#allocation3 + $0x6f8] sm:$0xff]  ;;  %v3681_v63 = vld [vmem:[#allocation3 + $0x6e0] sm:$0xff] }
 0xa43   : > { %12109 = vmatpush1.bf16.msra.mxu0 %v12108_v16  ;;  %v3658_v16 = vld [vmem:[#allocation3 + $0x628] sm:$0xff] }
 0xa44   : > { %12111 = vmatprep.subr.bf16.mxu0 %v12110_v57  ;;  %v3660_v57 = vld [vmem:[#allocation3 + $0x638] sm:$0xff] }
 0xa45   : > { %v12190_v29 = vpack.c.bf16 %v3660_v57, %v3658_v16  ;;  %v3674_v57 = vld [vmem:[#allocation3 + $0x6a8] sm:$0xff] }
 0xa47   : > { %12113 = vmatpush1.bf16.msra.mxu0 %v12112_v2  ;;  %v3662_v2 = vld [vmem:[#allocation3 + $0x648] sm:$0xff] }
 0xa48   : > { %12115 = vmatprep.subr.bf16.mxu0 %v12114_v35  ;;  %v3664_v35 = vld [vmem:[#allocation3 + $0x658] sm:$0xff] }
 0xa49   : > { %v12194_v62 = vpack.c.bf16 %v3664_v35, %v3662_v2  ;;  %v3678_v35 = vld [vmem:[#allocation3 + $0x6c8] sm:$0xff] }
 0xa4b   : > { %12117 = vmatpush1.bf16.msra.mxu0 %v12116_v50  ;;  %v3666_v50 = vld [vmem:[#allocation3 + $0x668] sm:$0xff] }
 0xa4c   : > { %12119 = vmatprep.subr.bf16.mxu0 %v12118_v12  ;;  %v3668_v12 = vld [vmem:[#allocation3 + $0x678] sm:$0xff] }
 0xa4f   : > { %12121 = vmatpush1.bf16.msra.mxu0 %v12120_v37  ;;  %v12198_v37 = vpack.c.bf16 %v3668_v12, %v3666_v50  ;;  %v3682_v12 = vld [vmem:[#allocation3 + $0x6e8] sm:$0xff] }
 0xa50   : > { %12187 = vmatprep.subr.bf16.mxu0 %v12186_v60  ;;  %v3671_v60 = vld [vmem:[#allocation3 + $0x690] sm:$0xff] }
 0xa51   : > { %v12204_v16 = vpack.c.bf16 %v3671_v60, %v3669_v21  ;;  %v3688_v21 = vld [vmem:[#allocation3 + $0x718] sm:$0xff]  ;;  %v3685_v60 = vld [vmem:[#allocation3 + $0x700] sm:$0xff] }
 0xa52   : > { %3264 = vmatmul.mubr.f32.vlgmr.msra.gmra.mrb[20].mxu0 %v15407_v1 }
 0xa53   : > { %3781 = vmatprep.mubr.f32.mxu0 %v15411_v49  ;;  %12189 = vmatpush1.bf16.msra.mxu0 %v12188_v42  ;;  %v12202_v42 = vpack.c.bf16 %v3672_v47, %v3670_v44  ;;  %v3686_v47 = vld [vmem:[#allocation3 + $0x708] sm:$0xff] }
 0xa54   : > { %12191 = vmatprep.subr.bf16.mxu0 %v12190_v29  ;;  %v3675_v29 = vld [vmem:[#allocation3 + $0x6b0] sm:$0xff] }
 0xa55   : > { %v12208_v2 = vpack.c.bf16 %v3675_v29, %v3673_v27  ;;  %v3692_v27 = vld [vmem:[#allocation3 + $0x738] sm:$0xff]  ;;  %v3689_v29 = vld [vmem:[#allocation3 + $0x720] sm:$0xff] }
 0xa57   : > { %12193 = vmatpush1.bf16.msra.mxu0 %v12192_v26  ;;  %v12206_v26 = vpack.c.bf16 %v3676_v54, %v3674_v57  ;;  %v3690_v54 = vld [vmem:[#allocation3 + $0x728] sm:$0xff] }
 0xa58   : > { %12195 = vmatprep.subr.bf16.mxu0 %v12194_v62  ;;  %v3679_v62 = vld [vmem:[#allocation3 + $0x6d0] sm:$0xff] }
 0xa59   : > { %v12212_v50 = vpack.c.bf16 %v3679_v62, %v3677_v32  ;;  %v3696_v32 = vld [vmem:[#allocation3 + $0x758] sm:$0xff]  ;;  %v3693_v62 = vld [vmem:[#allocation3 + $0x740] sm:$0xff] }
 0xa5b   : > { %12197 = vmatpush1.bf16.msra.mxu0 %v12196_v6  ;;  %v12210_v6 = vpack.c.bf16 %v3680_v17, %v3678_v35  ;;  %v3694_v17 = vld [vmem:[#allocation3 + $0x748] sm:$0xff] }
 0xa5c   : > { %12199 = vmatprep.subr.bf16.mxu0 %v12198_v37  ;;  %v3683_v37 = vld [vmem:[#allocation3 + $0x6f0] sm:$0xff] }
 0xa5d   : > { %v12216_v44 = vpack.c.bf16 %v3683_v37, %v3681_v63  ;;  %v3700_v63 = vld [vmem:[#allocation3 + $0x778] sm:$0xff]  ;;  %v3697_v37 = vld [vmem:[#allocation3 + $0x760] sm:$0xff] }
 0xa5f   : > { %12201 = vmatpush1.bf16.msra.mxu0 %v12200_v56  ;;  %v12214_v56 = vpack.c.bf16 %v3684_v59, %v3682_v12  ;;  %v3698_v59 = vld [vmem:[#allocation3 + $0x768] sm:$0xff] }
 0xa60   : > { %12203 = vmatprep.subr.bf16.mxu0 %v12202_v42  ;;  %v3687_v42 = vld [vmem:[#allocation3 + $0x710] sm:$0xff] }
 0xa61   : > { %v12220_v57 = vpack.c.bf16 %v3687_v42, %v3685_v60  ;;  %v3704_v60 = vld [vmem:[#allocation3 + $0x798] sm:$0xff]  ;;  %v3701_v42 = vld [vmem:[#allocation3 + $0x780] sm:$0xff] }
 0xa63   : > { %12205 = vmatpush1.bf16.msra.mxu0 %v12204_v16  ;;  %v12218_v16 = vpack.c.bf16 %v3688_v21, %v3686_v47  ;;  %v3702_v21 = vld [vmem:[#allocation3 + $0x788] sm:$0xff] }
 0xa64   : > { %12207 = vmatprep.subr.bf16.mxu0 %v12206_v26  ;;  %v3691_v26 = vld [vmem:[#allocation3 + $0x730] sm:$0xff] }
 0xa65   : > { %v12224_v35 = vpack.c.bf16 %v3691_v26, %v3689_v29  ;;  %v3706_v26 = vld [vmem:[#allocation3 + $0x7a8] sm:$0xff] }
 0xa67   : > { %12209 = vmatpush1.bf16.msra.mxu0 %v12208_v2  ;;  %v12222_v2 = vpack.c.bf16 %v3692_v27, %v3690_v54  ;;  %v12234_v54 = vpack.c.bf16 %v3704_v60, %v3702_v21  ;;  %v3713_v21 = vld [vmem:[#allocation3 + $0x7e0] sm:$0xff]  ;;  %v3715_v60 = vld [vmem:[#allocation3 + $0x7f0] sm:$0xff] }
 0xa68   : > { %12211 = vmatprep.subr.bf16.mxu0 %v12210_v6  ;;  %v3695_v6 = vld [vmem:[#allocation3 + $0x750] sm:$0xff] }
 0xa69   : > { %v12228_v12 = vpack.c.bf16 %v3695_v6, %v3693_v62  ;;  %v3710_v6 = vld [vmem:[#allocation3 + $0x7c8] sm:$0xff] }
 0xa6b   : > { %12213 = vmatpush1.bf16.msra.mxu0 %v12212_v50  ;;  %v12226_v50 = vpack.c.bf16 %v3696_v32, %v3694_v17  ;;  %v3707_v17 = vld [vmem:[#allocation3 + $0x7b0] sm:$0xff] }
 0xa6c   : > { %12215 = vmatprep.subr.bf16.mxu0 %v12214_v56  ;;  %v3699_v56 = vld [vmem:[#allocation3 + $0x770] sm:$0xff] }
 0xa6d   : > { %v12232_v47 = vpack.c.bf16 %v3699_v56, %v3697_v37  ;;  %v3714_v56 = vld [vmem:[#allocation3 + $0x7e8] sm:$0xff] }
 0xa6f   : > { %12217 = vmatpush1.bf16.msra.mxu0 %v12216_v44  ;;  %v12230_v44 = vpack.c.bf16 %v3700_v63, %v3698_v59  ;;  %v3711_v59 = vld [vmem:[#allocation3 + $0x7d0] sm:$0xff] }
 0xa70   : > { %12219 = vmatprep.subr.bf16.mxu0 %v12218_v16  ;;  %v3703_v16 = vld [vmem:[#allocation3 + $0x790] sm:$0xff] }
 0xa71   : > { %v12236_v27 = vpack.c.bf16 %v3703_v16, %v3701_v42  ;;  %v12248_v42 = vpack.c.bf16 %v3715_v60, %v3713_v21  ;;  %v3434_v16 = vld [vmem:[#allocation3 + $0x408] sm:$0xff]  ;;  %v3443_v21 = vld [vmem:[#allocation3 + $0x450] sm:$0xff] }
 0xa72   : > { %v3446_v60 = vld [vmem:[#allocation3 + $0x468] sm:$0xff] }
 0xa73   : > { %12221 = vmatpush1.bf16.msra.mxu0 %v12220_v57 }
 0xa74   : > { %12223 = vmatprep.subr.bf16.mxu0 %v12222_v2  ;;  %v3708_v2 = vld [vmem:[#allocation3 + $0x7b8] sm:$0xff] }
 0xa75   : > { %v12238_v32 = vpack.c.bf16 %v3708_v2, %v3706_v26  ;;  %v9888_v2 = vld [vmem:[%s16343_s9 + $0x4] sm:$0xf] }
 0xa77   : > { %12225 = vmatpush1.bf16.msra.mxu0 %v12224_v35  ;;  %v3705_v35 = vld [vmem:[#allocation3 + $0x7a0] sm:$0xff] }
 0xa78   : > { %12227 = vmatprep.subr.bf16.mxu0 %v12226_v50  ;;  %v12240_v62 = vpack.c.bf16 %v3707_v17, %v3705_v35  ;;  %v3712_v50 = vld [vmem:[#allocation3 + $0x7d8] sm:$0xff]  ;;  %v3433_v17 = vld [vmem:[#allocation3 + $0x400] sm:$0xff] }
 0xa79   : > { %v12242_v63 = vpack.c.bf16 %v3712_v50, %v3710_v6  ;;  %v3440_v6 = vld [vmem:[#allocation3 + $0x438] sm:$0xff]  ;;  %v3133_v50 = vld [vmem:[%s16343_s9] sm:$0xf] }
 0xa7b   : > { %12229 = vmatpush1.bf16.msra.mxu0 %v12228_v12  ;;  %v3709_v12 = vld [vmem:[#allocation3 + $0x7c0] sm:$0xff] }
 0xa7c   : > { %12231 = vmatprep.subr.bf16.mxu0 %v12230_v44  ;;  %v12244_v37 = vpack.c.bf16 %v3711_v59, %v3709_v12  ;;  %v3716_v44 = vld [vmem:[#allocation3 + $0x7f8] sm:$0xff] }
 0xa7f   : > { %12233 = vmatpush1.bf16.msra.mxu0 %v12232_v47  ;;  %v12246_v47 = vpack.c.bf16 %v3716_v44, %v3714_v56  ;;  %v3442_v56 = vld [vmem:[#allocation3 + $0x448] sm:$0xff] }
 0xa80   : > { %12235 = vmatprep.subr.bf16.mxu0 %v12234_v54  ;;  %v3436_v54 = vld [vmem:[#allocation3 + $0x418] sm:$0xff] }
 0xa81   : > { %v12122_v35 = vpack.c.bf16 %v3436_v54, %v3434_v16 }
 0xa83   : > { %12237 = vmatpush1.bf16.msra.mxu0 %v12236_v27 }
 0xa84   : > { %12239 = vmatprep.subr.bf16.mxu0 %v12238_v32  ;;  %v3435_v32 = vld [vmem:[#allocation3 + $0x410] sm:$0xff] }
 0xa85   : > { %v12124_v12 = vpack.c.bf16 %v3435_v32, %v3433_v17 }
 0xa87   : > { %12241 = vmatpush1.bf16.msra.mxu0 %v12240_v62  ;;  %v3438_v62 = vld [vmem:[#allocation3 + $0x428] sm:$0xff] }
 0xa88   : > { %12243 = vmatprep.subr.bf16.mxu0 %v12242_v63  ;;  %v12126_v59 = vpack.c.bf16 %v3440_v6, %v3438_v62  ;;  %v3437_v63 = vld [vmem:[#allocation3 + $0x420] sm:$0xff]  ;;  %v3451_v6 = vld [vmem:[#allocation3 + $0x490] sm:$0xff] }
 0xa89   : > { %v3449_v62 = vld [vmem:[#allocation3 + $0x480] sm:$0xff] }
 0xa8b   : > { %12245 = vmatpush1.bf16.msra.mxu0 %v12244_v37  ;;  %v3439_v37 = vld [vmem:[#allocation3 + $0x430] sm:$0xff] }
 0xa8c   : > { %12247 = vmatprep.subr.bf16.mxu0 %v12246_v47  ;;  %v3441_v47 = vld [vmem:[#allocation3 + $0x440] sm:$0xff] }
 0xa8d   : > { %v12132_v16 = vpack.c.bf16 %v3443_v21, %v3441_v47  ;;  %v3457_v21 = vld [vmem:[#allocation3 + $0x4c0] sm:$0xff] }
 0xa8f   : > { %12249 = vmatpush1.bf16.msra.mxu0 %v12248_v42  ;;  %v3448_v42 = vld [vmem:[#allocation3 + $0x478] sm:$0xff] }
 0xa90   : > { %v12134_v54 = vpack.c.bf16 %v3448_v42, %v3446_v60  ;;  %v3459_v60 = vld [vmem:[#allocation3 + $0x4d0] sm:$0xff]  ;;  %v3462_v42 = vld [vmem:[#allocation3 + $0x4e8] sm:$0xff] }
 0xa92   : > { %3782 = vmatmul.mubr.f32.vlgmr.msra.gmra.mrb[22].mxu0 %v15407_v1 }
 0xa93   : > { %4221 = vmatprep.mubr.f32.mxu0 %v15411_v49 }
 0xa9b   : > { %v15453_v24 = vpop.f32.mrb[16].mxu1 }
 0xa9c   : > { %v15455_v25 = vpop.f32.mrb[17].mxu1 }
 0xae5   : > { %v15457_v57 = vpop.f32.mrb[18].mxu0 }
 0xae6   : > { %v15459_v29 = vpop.f32.mrb[19].mxu0 }
 0xb25   : > { %v3265_v27 = vpop.f32.mrb[20].mxu0 }
 0xb26   : > { %v3267_v26 = vpop.f32.mrb[21].mxu0 }
 0xb27   : > { %9889 = vmatprep.subr.msk.mxu1 %vm919_vm1, %v3267_v26  ;;  %v3447_v26 = vld [vmem:[#allocation3 + $0x470] sm:$0xff] }
 0xb28   : > { %9890 = vmatpush1.msk.msra.mxu1 %vm919_vm1, %v3265_v27  ;;  %v3445_v27 = vld [vmem:[#allocation3 + $0x460] sm:$0xff] }
 0xb29   : > { %9891 = vmatmul.mubr.msk.f32.vlgmr.msra.gmra.mrb[18].mxu1 %vm912_vm0, %v9888_v2  ;;  %9892 = vmatprep.subr.msk.mxu1 %vm919_vm1, %v15455_v25  ;;  %v3444_v25 = vld [vmem:[#allocation3 + $0x458] sm:$0xff]  ;;  %v3450_v2 = vld [vmem:[#allocation3 + $0x488] sm:$0xff]  ;;  %v12136_v17 = vpack.c.bf16 %v3447_v26, %v3445_v27  ;;  %v3461_v26 = vld [vmem:[#allocation3 + $0x4e0] sm:$0xff] }
 0xb2a   : > { %9893 = vmatpush1.msk.msra.mxu1 %vm919_vm1, %v15453_v24  ;;  %3425 = vmatprep.mubr.f32.mxu1 %v13575_v41  ;;  %v12128_v24 = vpack.c.bf16 %v3439_v37, %v3437_v63  ;;  %v12130_v44 = vpack.c.bf16 %v3444_v25, %v3442_v56  ;;  %v3453_v37 = vld [vmem:[#allocation3 + $0x4a0] sm:$0xff]  ;;  %v3455_v56 = vld [vmem:[#allocation3 + $0x4b0] sm:$0xff]  ;;  %v3458_v25 = vld [vmem:[#allocation3 + $0x4c8] sm:$0xff] }
 0xb2b   : > { %12123 = vmatprep.subr.bf16.mxu1 %v12122_v35  ;;  %v3452_v35 = vld [vmem:[#allocation3 + $0x498] sm:$0xff] }
 0xb2c   : > { %v12138_v32 = vpack.c.bf16 %v3452_v35, %v3450_v2  ;;  %v3463_v2 = vld [vmem:[#allocation3 + $0x4f0] sm:$0xff]  ;;  %v3466_v35 = vld [vmem:[#allocation3 + $0x508] sm:$0xff] }
 0xb31   : > { %9894 = vmatmul.mubr.msk.f32.vlgmr.msra.gmra.mrb[18].mxu1 %vm912_vm0, %v3133_v50  ;;  %v3454_v50 = vld [vmem:[#allocation3 + $0x4a8] sm:$0xff] }
 0xb32   : > { %12125 = vmatpush1.bf16.msra.mxu1 %v12124_v12  ;;  %3561 = vmatprep.mubr.f32.mxu1 %v15411_v49  ;;  %v3456_v12 = vld [vmem:[#allocation3 + $0x4b8] sm:$0xff] }
 0xb33   : > { %12127 = vmatprep.subr.bf16.mxu1 %v12126_v59  ;;  %v12140_v59 = vpack.c.bf16 %v3451_v6, %v3449_v62  ;;  %v12142_v63 = vpack.c.bf16 %v3456_v12, %v3454_v50  ;;  %v3465_v6 = vld [vmem:[#allocation3 + $0x500] sm:$0xff]  ;;  %v3467_v50 = vld [vmem:[#allocation3 + $0x510] sm:$0xff]  ;;  %v3470_v12 = vld [vmem:[#allocation3 + $0x528] sm:$0xff] }
 0xb36   : > { %12129 = vmatpush1.bf16.msra.mxu1 %v12128_v24  ;;  %v3460_v24 = vld [vmem:[#allocation3 + $0x4d8] sm:$0xff] }
 0xb37   : > { %12131 = vmatprep.subr.bf16.mxu1 %v12130_v44  ;;  %v12144_v44 = vpack.c.bf16 %v3455_v56, %v3453_v37  ;;  %v12146_v47 = vpack.c.bf16 %v3460_v24, %v3458_v25  ;;  %v3469_v56 = vld [vmem:[#allocation3 + $0x520] sm:$0xff]  ;;  %v3471_v25 = vld [vmem:[#allocation3 + $0x530] sm:$0xff]  ;;  %v3474_v24 = vld [vmem:[#allocation3 + $0x548] sm:$0xff] }
 0xb3a   : > { %12133 = vmatpush1.bf16.msra.mxu1 %v12132_v16  ;;  %v3464_v16 = vld [vmem:[#allocation3 + $0x4f8] sm:$0xff] }
 0xb3b   : > { %12135 = vmatprep.subr.bf16.mxu1 %v12134_v54  ;;  %v12148_v54 = vpack.c.bf16 %v3459_v60, %v3457_v21  ;;  %v12150_v27 = vpack.c.bf16 %v3464_v16, %v3462_v42  ;;  %v3473_v60 = vld [vmem:[#allocation3 + $0x540] sm:$0xff]  ;;  %v3475_v42 = vld [vmem:[#allocation3 + $0x550] sm:$0xff]  ;;  %v3478_v16 = vld [vmem:[#allocation3 + $0x568] sm:$0xff] }
 0xb3e   : > { %12137 = vmatpush1.bf16.msra.mxu1 %v12136_v17  ;;  %v3468_v17 = vld [vmem:[#allocation3 + $0x518] sm:$0xff] }
 0xb3f   : > { %12139 = vmatprep.subr.bf16.mxu1 %v12138_v32  ;;  %v12152_v32 = vpack.c.bf16 %v3463_v2, %v3461_v26  ;;  %v12154_v62 = vpack.c.bf16 %v3468_v17, %v3466_v35  ;;  %v3477_v2 = vld [vmem:[#allocation3 + $0x560] sm:$0xff]  ;;  %v3479_v35 = vld [vmem:[#allocation3 + $0x570] sm:$0xff]  ;;  %v3482_v17 = vld [vmem:[#allocation3 + $0x588] sm:$0xff] }
 0xb42   : > { %12141 = vmatpush1.bf16.msra.mxu1 %v12140_v59  ;;  %v3472_v59 = vld [vmem:[#allocation3 + $0x538] sm:$0xff] }
 0xb43   : > { %12143 = vmatprep.subr.bf16.mxu1 %v12142_v63  ;;  %v12156_v63 = vpack.c.bf16 %v3467_v50, %v3465_v6  ;;  %v12158_v37 = vpack.c.bf16 %v3472_v59, %v3470_v12  ;;  %v3481_v50 = vld [vmem:[#allocation3 + $0x580] sm:$0xff]  ;;  %v3483_v12 = vld [vmem:[#allocation3 + $0x590] sm:$0xff]  ;;  %v3486_v59 = vld [vmem:[#allocation3 + $0x5a8] sm:$0xff] }
 0xb46   : > { %12145 = vmatpush1.bf16.msra.mxu1 %v12144_v44  ;;  %v3476_v44 = vld [vmem:[#allocation3 + $0x558] sm:$0xff] }
 0xb47   : > { %12147 = vmatprep.subr.bf16.mxu1 %v12146_v47  ;;  %v12160_v47 = vpack.c.bf16 %v3471_v25, %v3469_v56  ;;  %v12162_v21 = vpack.c.bf16 %v3476_v44, %v3474_v24  ;;  %v3485_v25 = vld [vmem:[#allocation3 + $0x5a0] sm:$0xff]  ;;  %v3487_v24 = vld [vmem:[#allocation3 + $0x5b0] sm:$0xff]  ;;  %v3490_v44 = vld [vmem:[#allocation3 + $0x5c8] sm:$0xff] }
 0xb4a   : > { %12149 = vmatpush1.bf16.msra.mxu1 %v12148_v54  ;;  %v3480_v54 = vld [vmem:[#allocation3 + $0x578] sm:$0xff] }
 0xb4b   : > { %12151 = vmatprep.subr.bf16.mxu1 %v12150_v27  ;;  %v12164_v27 = vpack.c.bf16 %v3475_v42, %v3473_v60  ;;  %v12166_v26 = vpack.c.bf16 %v3480_v54, %v3478_v16  ;;  %v3489_v42 = vld [vmem:[#allocation3 + $0x5c0] sm:$0xff]  ;;  %v3491_v16 = vld [vmem:[#allocation3 + $0x5d0] sm:$0xff]  ;;  %v3494_v54 = vld [vmem:[#allocation3 + $0x5e8] sm:$0xff] }
 0xb4e   : > { %12153 = vmatpush1.bf16.msra.mxu1 %v12152_v32  ;;  %v3484_v32 = vld [vmem:[#allocation3 + $0x598] sm:$0xff] }
 0xb4f   : > { %12155 = vmatprep.subr.bf16.mxu1 %v12154_v62  ;;  %v12168_v62 = vpack.c.bf16 %v3479_v35, %v3477_v2  ;;  %v12170_v6 = vpack.c.bf16 %v3484_v32, %v3482_v17  ;;  %v3493_v35 = vld [vmem:[#allocation3 + $0x5e0] sm:$0xff]  ;;  %v3495_v17 = vld [vmem:[#allocation3 + $0x5f0] sm:$0xff] }
 0xb50   : > { %v12184_v32 = vpack.c.bf16 %v3495_v17, %v3493_v35  ;;  %v4108_v35 = vld [vmem:[#allocation3 + $0xa78] sm:$0xff]  ;;  %v4105_v17 = vld [vmem:[#allocation3 + $0xa60] sm:$0xff] }
 0xb52   : > { %12157 = vmatpush1.bf16.msra.mxu1 %v12156_v63  ;;  %v3488_v63 = vld [vmem:[#allocation3 + $0x5b8] sm:$0xff] }
 0xb53   : > { %12159 = vmatprep.subr.bf16.mxu1 %v12158_v37  ;;  %v12172_v37 = vpack.c.bf16 %v3483_v12, %v3481_v50  ;;  %v12174_v56 = vpack.c.bf16 %v3488_v63, %v3486_v59  ;;  %v4094_v50 = vld [vmem:[#allocation3 + $0xa08] sm:$0xff]  ;;  %v4096_v12 = vld [vmem:[#allocation3 + $0xa18] sm:$0xff]  ;;  %v4093_v59 = vld [vmem:[#allocation3 + $0xa00] sm:$0xff] }
 0xb54   : > { %v4095_v63 = vld [vmem:[#allocation3 + $0xa10] sm:$0xff] }
 0xb56   : > { %12161 = vmatpush1.bf16.msra.mxu1 %v12160_v47  ;;  %v3492_v47 = vld [vmem:[#allocation3 + $0x5d8] sm:$0xff] }
 0xb57   : > { %12163 = vmatprep.subr.bf16.mxu1 %v12162_v21  ;;  %v12176_v21 = vpack.c.bf16 %v3487_v24, %v3485_v25  ;;  %v12178_v60 = vpack.c.bf16 %v3492_v47, %v3490_v44  ;;  %v4098_v25 = vld [vmem:[#allocation3 + $0xa28] sm:$0xff]  ;;  %v4100_v24 = vld [vmem:[#allocation3 + $0xa38] sm:$0xff]  ;;  %v4097_v44 = vld [vmem:[#allocation3 + $0xa20] sm:$0xff] }
 0xb58   : > { %v4099_v47 = vld [vmem:[#allocation3 + $0xa30] sm:$0xff] }
 0xb5a   : > { %12165 = vmatpush1.bf16.msra.mxu1 %v12164_v27  ;;  %v3496_v27 = vld [vmem:[#allocation3 + $0x5f8] sm:$0xff] }
 0xb5b   : > { %12167 = vmatprep.subr.bf16.mxu1 %v12166_v26  ;;  %v12180_v26 = vpack.c.bf16 %v3491_v16, %v3489_v42  ;;  %v12182_v2 = vpack.c.bf16 %v3496_v27, %v3494_v54  ;;  %v4104_v42 = vld [vmem:[#allocation3 + $0xa58] sm:$0xff]  ;;  %v4101_v16 = vld [vmem:[#allocation3 + $0xa40] sm:$0xff]  ;;  %v4103_v54 = vld [vmem:[#allocation3 + $0xa50] sm:$0xff] }
 0xb5e   : > { %12169 = vmatpush1.bf16.msra.mxu1 %v12168_v62 }
 0xb5f   : > { %12171 = vmatprep.subr.bf16.mxu1 %v12170_v6 }
 0xb62   : > { %12173 = vmatpush1.bf16.msra.mxu1 %v12172_v37  ;;  %v12314_v37 = vpack.c.bf16 %v4096_v12, %v4094_v50 }
 0xb63   : > { %12175 = vmatprep.subr.bf16.mxu1 %v12174_v56  ;;  %v12316_v56 = vpack.c.bf16 %v4095_v63, %v4093_v59  ;;  %v4110_v59 = vld [vmem:[#allocation3 + $0xa88] sm:$0xff]  ;;  %v4112_v63 = vld [vmem:[#allocation3 + $0xa98] sm:$0xff] }
 0xb64   : > { %12315 = vmatprep.subr.bf16.mxu0 %v12314_v37  ;;  %v4109_v37 = vld [vmem:[#allocation3 + $0xa80] sm:$0xff] }
 0xb65   : > { %v15481_v62 = vpop.f32.mrb[22].mxu0  ;;  %12317 = vmatpush1.bf16.msra.mxu0 %v12316_v56  ;;  %v4111_v56 = vld [vmem:[#allocation3 + $0xa90] sm:$0xff] }
 0xb66   : > { %12177 = vmatpush1.bf16.msra.mxu1 %v12176_v21  ;;  %v15483_v6 = vpop.f32.mrb[23].mxu0  ;;  %v12318_v21 = vpack.c.bf16 %v4100_v24, %v4098_v25  ;;  %v12330_v25 = vpack.c.bf16 %v4112_v63, %v4110_v59  ;;  %v12332_v24 = vpack.c.bf16 %v4111_v56, %v4109_v37  ;;  %v4126_v37 = vld [vmem:[#allocation3 + $0xb08] sm:$0xff]  ;;  %v4128_v56 = vld [vmem:[#allocation3 + $0xb18] sm:$0xff] }
 0xb67   : > { %12179 = vmatprep.subr.bf16.mxu1 %v12178_v60  ;;  %v4102_v60 = vld [vmem:[#allocation3 + $0xa48] sm:$0xff] }
 0xb68   : > { %12319 = vmatprep.subr.bf16.mxu0 %v12318_v21  ;;  %v12322_v27 = vpack.c.bf16 %v4104_v42, %v4102_v60  ;;  %v4113_v21 = vld [vmem:[#allocation3 + $0xaa0] sm:$0xff] }
 0xb6a   : > { %12181 = vmatpush1.bf16.msra.mxu1 %v12180_v26  ;;  %v12324_v26 = vpack.c.bf16 %v4103_v54, %v4101_v16  ;;  %v4118_v16 = vld [vmem:[#allocation3 + $0xac8] sm:$0xff]  ;;  %v4120_v54 = vld [vmem:[#allocation3 + $0xad8] sm:$0xff] }
 0xb6b   : > { %12183 = vmatprep.subr.bf16.mxu1 %v12182_v2  ;;  %v4106_v2 = vld [vmem:[#allocation3 + $0xa68] sm:$0xff] }
 0xb6c   : > { %v12326_v50 = vpack.c.bf16 %v4108_v35, %v4106_v2  ;;  %v12338_v2 = vpack.c.bf16 %v4120_v54, %v4118_v16 }
 0xb6e   : > { %12185 = vmatpush1.bf16.msra.mxu1 %v12184_v32  ;;  %v4107_v32 = vld [vmem:[#allocation3 + $0xa70] sm:$0xff] }
 0xb6f   : > { %v12328_v12 = vpack.c.bf16 %v4107_v32, %v4105_v17  ;;  %v4122_v17 = vld [vmem:[#allocation3 + $0xae8] sm:$0xff]  ;;  %v4124_v32 = vld [vmem:[#allocation3 + $0xaf8] sm:$0xff] }
 0xb70   : > { %v12342_v59 = vpack.c.bf16 %v4124_v32, %v4122_v17 }
 0xb71   : > { %3562 = vmatmul.mubr.f32.vlgmr.msra.gmra.mrb[20].mxu1 %v15407_v1  ;;  %v12320_v1 = vpack.c.bf16 %v4099_v47, %v4097_v44  ;;  %v4114_v44 = vld [vmem:[#allocation3 + $0xaa8] sm:$0xff]  ;;  %v4116_v47 = vld [vmem:[#allocation3 + $0xab8] sm:$0xff] }
 0xb72   : > { %3643 = vmatprep.mubr.f32.mxu1 %v13575_v41  ;;  %v12334_v60 = vpack.c.bf16 %v4116_v47, %v4114_v44  ;;  %v12346_v44 = vpack.c.bf16 %v4128_v56, %v4126_v37 }
 0xb73   : > { %12321 = vmatpush1.bf16.msra.mxu0 %v12320_v1  ;;  %v4115_v1 = vld [vmem:[#allocation3 + $0xab0] sm:$0xff] }
 0xb74   : > { %12323 = vmatprep.subr.bf16.mxu0 %v12322_v27  ;;  %v12336_v42 = vpack.c.bf16 %v4115_v1, %v4113_v21  ;;  %v4117_v27 = vld [vmem:[#allocation3 + $0xac0] sm:$0xff]  ;;  %v4130_v21 = vld [vmem:[#allocation3 + $0xb28] sm:$0xff]  ;;  %v4132_v1 = vld [vmem:[#allocation3 + $0xb38] sm:$0xff] }
 0xb75   : > { %v12350_v16 = vpack.c.bf16 %v4132_v1, %v4130_v21 }
 0xb77   : > { %12325 = vmatpush1.bf16.msra.mxu0 %v12324_v26  ;;  %v4119_v26 = vld [vmem:[#allocation3 + $0xad0] sm:$0xff] }
 0xb78   : > { %12327 = vmatprep.subr.bf16.mxu0 %v12326_v50  ;;  %v12340_v35 = vpack.c.bf16 %v4119_v26, %v4117_v27  ;;  %v4121_v50 = vld [vmem:[#allocation3 + $0xae0] sm:$0xff]  ;;  %v4134_v27 = vld [vmem:[#allocation3 + $0xb48] sm:$0xff]  ;;  %v4136_v26 = vld [vmem:[#allocation3 + $0xb58] sm:$0xff] }
 0xb79   : > { %v12354_v17 = vpack.c.bf16 %v4136_v26, %v4134_v27 }
 0xb7b   : > { %12329 = vmatpush1.bf16.msra.mxu0 %v12328_v12  ;;  %v4123_v12 = vld [vmem:[#allocation3 + $0xaf0] sm:$0xff] }
 0xb7c   : > { %12331 = vmatprep.subr.bf16.mxu0 %v12330_v25  ;;  %v12344_v63 = vpack.c.bf16 %v4123_v12, %v4121_v50  ;;  %v4125_v25 = vld [vmem:[#allocation3 + $0xb00] sm:$0xff]  ;;  %v4138_v50 = vld [vmem:[#allocation3 + $0xb68] sm:$0xff]  ;;  %v4140_v12 = vld [vmem:[#allocation3 + $0xb78] sm:$0xff] }
 0xb7d   : > { %v12358_v37 = vpack.c.bf16 %v4140_v12, %v4138_v50 }
 0xb7f   : > { %12333 = vmatpush1.bf16.msra.mxu0 %v12332_v24  ;;  %v4127_v24 = vld [vmem:[#allocation3 + $0xb10] sm:$0xff] }
 0xb80   : > { %12335 = vmatprep.subr.bf16.mxu0 %v12334_v60  ;;  %v12348_v47 = vpack.c.bf16 %v4127_v24, %v4125_v25  ;;  %v4129_v60 = vld [vmem:[#allocation3 + $0xb20] sm:$0xff]  ;;  %v4142_v25 = vld [vmem:[#allocation3 + $0xb88] sm:$0xff]  ;;  %v4144_v24 = vld [vmem:[#allocation3 + $0xb98] sm:$0xff] }
 0xb81   : > { %v12362_v21 = vpack.c.bf16 %v4144_v24, %v4142_v25  ;;  %v4155_v25 = vld [vmem:[#allocation3 + $0xbf0] sm:$0xff] }
 0xb83   : > { %12337 = vmatpush1.bf16.msra.mxu0 %v12336_v42  ;;  %v4131_v42 = vld [vmem:[#allocation3 + $0xb30] sm:$0xff] }
 0xb84   : > { %12339 = vmatprep.subr.bf16.mxu0 %v12338_v2  ;;  %v12352_v54 = vpack.c.bf16 %v4131_v42, %v4129_v60  ;;  %v4133_v2 = vld [vmem:[#allocation3 + $0xb40] sm:$0xff]  ;;  %v4146_v60 = vld [vmem:[#allocation3 + $0xba8] sm:$0xff]  ;;  %v4148_v42 = vld [vmem:[#allocation3 + $0xbb8] sm:$0xff] }
 0xb85   : > { %v12366_v27 = vpack.c.bf16 %v4148_v42, %v4146_v60  ;;  %v4535_v60 = vld [vmem:[#allocation3 + $0xe10] sm:$0xff]  ;;  %v4538_v42 = vld [vmem:[#allocation3 + $0xe28] sm:$0xff] }
 0xb87   : > { %12341 = vmatpush1.bf16.msra.mxu0 %v12340_v35  ;;  %v4135_v35 = vld [vmem:[#allocation3 + $0xb50] sm:$0xff] }
 0xb88   : > { %12343 = vmatprep.subr.bf16.mxu0 %v12342_v59  ;;  %v12356_v32 = vpack.c.bf16 %v4135_v35, %v4133_v2  ;;  %v4137_v59 = vld [vmem:[#allocation3 + $0xb60] sm:$0xff]  ;;  %v4150_v2 = vld [vmem:[#allocation3 + $0xbc8] sm:$0xff]  ;;  %v4152_v35 = vld [vmem:[#allocation3 + $0xbd8] sm:$0xff] }
 0xb89   : > { %v12370_v50 = vpack.c.bf16 %v4152_v35, %v4150_v2  ;;  %v4539_v2 = vld [vmem:[#allocation3 + $0xe30] sm:$0xff]  ;;  %v4542_v35 = vld [vmem:[#allocation3 + $0xe48] sm:$0xff] }
 0xb8b   : > { %12345 = vmatpush1.bf16.msra.mxu0 %v12344_v63  ;;  %v4139_v63 = vld [vmem:[#allocation3 + $0xb70] sm:$0xff] }
 0xb8c   : > { %12347 = vmatprep.subr.bf16.mxu0 %v12346_v44  ;;  %v12360_v56 = vpack.c.bf16 %v4139_v63, %v4137_v59  ;;  %v4141_v44 = vld [vmem:[#allocation3 + $0xb80] sm:$0xff]  ;;  %v4154_v59 = vld [vmem:[#allocation3 + $0xbe8] sm:$0xff]  ;;  %v4156_v63 = vld [vmem:[#allocation3 + $0xbf8] sm:$0xff] }
 0xb8f   : > { %12349 = vmatpush1.bf16.msra.mxu0 %v12348_v47  ;;  %v4143_v47 = vld [vmem:[#allocation3 + $0xb90] sm:$0xff] }
 0xb90   : > { %12351 = vmatprep.subr.bf16.mxu0 %v12350_v16  ;;  %v12364_v1 = vpack.c.bf16 %v4143_v47, %v4141_v44  ;;  %v4145_v16 = vld [vmem:[#allocation3 + $0xba0] sm:$0xff]  ;;  %v4534_v44 = vld [vmem:[#allocation3 + $0xe08] sm:$0xff]  ;;  %v4536_v47 = vld [vmem:[#allocation3 + $0xe18] sm:$0xff] }
 0xb93   : > { %12353 = vmatpush1.bf16.msra.mxu0 %v12352_v54  ;;  %v4147_v54 = vld [vmem:[#allocation3 + $0xbb0] sm:$0xff] }
 0xb94   : > { %12355 = vmatprep.subr.bf16.mxu0 %v12354_v17  ;;  %v12368_v26 = vpack.c.bf16 %v4147_v54, %v4145_v16  ;;  %v4149_v17 = vld [vmem:[#allocation3 + $0xbc0] sm:$0xff]  ;;  %v4540_v16 = vld [vmem:[#allocation3 + $0xe38] sm:$0xff] }
 0xb97   : > { %12357 = vmatpush1.bf16.msra.mxu0 %v12356_v32  ;;  %v4151_v32 = vld [vmem:[#allocation3 + $0xbd0] sm:$0xff] }
 0xb98   : > { %12359 = vmatprep.subr.bf16.mxu0 %v12358_v37  ;;  %v12372_v12 = vpack.c.bf16 %v4151_v32, %v4149_v17  ;;  %v12374_v37 = vpack.c.bf16 %v4156_v63, %v4154_v59  ;;  %v4544_v17 = vld [vmem:[#allocation3 + $0xe58] sm:$0xff]  ;;  %v15486_v32 = vld [vmem:[%s15404_s0] sm:$0xff]  ;;  %v4543_v63 = vld [vmem:[#allocation3 + $0xe50] sm:$0xff] }
 0xb99   : > { %v4541_v59 = vld [vmem:[#allocation3 + $0xe40] sm:$0xff] }
 0xb9b   : > { %12361 = vmatpush1.bf16.msra.mxu0 %v12360_v56  ;;  %v4153_v56 = vld [vmem:[#allocation3 + $0xbe0] sm:$0xff] }
 0xb9c   : > { %12363 = vmatprep.subr.bf16.mxu0 %v12362_v21  ;;  %v12376_v24 = vpack.c.bf16 %v4155_v25, %v4153_v56  ;;  %v4533_v21 = vld [vmem:[#allocation3 + $0xe00] sm:$0xff]  ;;  %v4548_v56 = vld [vmem:[#allocation3 + $0xe78] sm:$0xff]  ;;  %v12452_v25 = vpack.c.bf16 %v4543_v63, %v4541_v59 }
 0xb9d   : > { %v12444_v54 = vpack.c.bf16 %v4535_v60, %v4533_v21  ;;  %v4550_v21 = vld [vmem:[#allocation3 + $0xe88] sm:$0xff]  ;;  %v4560_v59 = vld [vmem:[#allocation3 + $0xed8] sm:$0xff] }
 0xb9f   : > { %12365 = vmatpush1.bf16.msra.mxu0 %v12364_v1  ;;  %v12442_v1 = vpack.c.bf16 %v4536_v47, %v4534_v44  ;;  %v4545_v44 = vld [vmem:[#allocation3 + $0xe60] sm:$0xff]  ;;  %v4547_v47 = vld [vmem:[#allocation3 + $0xe70] sm:$0xff] }
 0xba0   : > { %12367 = vmatprep.subr.bf16.mxu0 %v12366_v27  ;;  %v12446_v27 = vpack.c.bf16 %v4540_v16, %v4538_v42  ;;  %v12456_v60 = vpack.c.bf16 %v4547_v47, %v4545_v44  ;;  %v4549_v16 = vld [vmem:[#allocation3 + $0xe80] sm:$0xff]  ;;  %v4564_v44 = vld [vmem:[#allocation3 + $0xef8] sm:$0xff] }
 0xba3   : > { %12369 = vmatpush1.bf16.msra.mxu0 %v12368_v26  ;;  %v4537_v26 = vld [vmem:[#allocation3 + $0xe20] sm:$0xff] }
 0xba4   : > { %12371 = vmatprep.subr.bf16.mxu0 %v12370_v50  ;;  %v12448_v50 = vpack.c.bf16 %v4539_v2, %v4537_v26  ;;  %v4556_v26 = vld [vmem:[#allocation3 + $0xeb8] sm:$0xff] }
 0xba7   : > { %12373 = vmatpush1.bf16.msra.mxu0 %v12372_v12  ;;  %v12450_v12 = vpack.c.bf16 %v4544_v17, %v4542_v35  ;;  %v4553_v17 = vld [vmem:[#allocation3 + $0xea0] sm:$0xff] }
 0xba8   : > { %12375 = vmatprep.subr.bf16.mxu0 %v12374_v37  ;;  %v4546_v37 = vld [vmem:[#allocation3 + $0xe68] sm:$0xff] }
 0xbab   : > { %12377 = vmatpush1.bf16.msra.mxu0 %v12376_v24  ;;  %v12454_v24 = vpack.c.bf16 %v4548_v56, %v4546_v37  ;;  %v4557_v56 = vld [vmem:[#allocation3 + $0xec0] sm:$0xff] }
 0xbac   : > { %12443 = vmatprep.subr.bf16.mxu0 %v12442_v1  ;;  %v4552_v1 = vld [vmem:[#allocation3 + $0xe98] sm:$0xff] }
 0xbad   : > { %v12458_v42 = vpack.c.bf16 %v4552_v1, %v4550_v21  ;;  %v4561_v1 = vld [vmem:[#allocation3 + $0xee0] sm:$0xff] }
 0xbae   : > { %4222 = vmatmul.mubr.f32.vlgmr.msra.gmra.mrb[24].mxu0 %v15486_v32 }
 0xbaf   : > { %12445 = vmatpush1.bf16.msra.mxu0 %v12444_v54  ;;  %4661 = vmatprep.mubr.f32.mxu0 %v15411_v49  ;;  %v4551_v54 = vld [vmem:[#allocation3 + $0xe90] sm:$0xff] }
 0xbb0   : > { %12447 = vmatprep.subr.bf16.mxu0 %v12446_v27  ;;  %v4554_v27 = vld [vmem:[#allocation3 + $0xea8] sm:$0xff]  ;;  %v12460_v2 = vpack.c.bf16 %v4551_v54, %v4549_v16  ;;  %v4568_v16 = vld [vmem:[#allocation3 + $0xf18] sm:$0xff] }
 0xbb1   : > { %v12462_v35 = vpack.c.bf16 %v4556_v26, %v4554_v27  ;;  %v4565_v26 = vld [vmem:[#allocation3 + $0xf00] sm:$0xff] }
 0xbb3   : > { %12449 = vmatpush1.bf16.msra.mxu0 %v12448_v50  ;;  %v4555_v50 = vld [vmem:[#allocation3 + $0xeb0] sm:$0xff] }
 0xbb4   : > { %12451 = vmatprep.subr.bf16.mxu0 %v12450_v12  ;;  %v4558_v12 = vld [vmem:[#allocation3 + $0xec8] sm:$0xff]  ;;  %v12464_v63 = vpack.c.bf16 %v4555_v50, %v4553_v17  ;;  %v4572_v17 = vld [vmem:[#allocation3 + $0xf38] sm:$0xff] }
 0xbb5   : > { %v12466_v37 = vpack.c.bf16 %v4560_v59, %v4558_v12  ;;  %v4569_v59 = vld [vmem:[#allocation3 + $0xf20] sm:$0xff] }
 0xbb7   : > { %12453 = vmatpush1.bf16.msra.mxu0 %v12452_v25  ;;  %v4559_v25 = vld [vmem:[#allocation3 + $0xed0] sm:$0xff] }
 0xbb8   : > { %12455 = vmatprep.subr.bf16.mxu0 %v12454_v24  ;;  %v4562_v24 = vld [vmem:[#allocation3 + $0xee8] sm:$0xff]  ;;  %v12468_v47 = vpack.c.bf16 %v4559_v25, %v4557_v56  ;;  %v3876_v25 = vld [vmem:[#allocation3 + $0x818] sm:$0xff] }
 0xbb9   : > { %v12470_v21 = vpack.c.bf16 %v4564_v44, %v4562_v24  ;;  %v3874_v56 = vld [vmem:[#allocation3 + $0x808] sm:$0xff] }
 0xbbb   : > { %12457 = vmatpush1.bf16.msra.mxu0 %v12456_v60  ;;  %v4563_v60 = vld [vmem:[#allocation3 + $0xef0] sm:$0xff] }
 0xbbc   : > { %12459 = vmatprep.subr.bf16.mxu0 %v12458_v42  ;;  %v4566_v42 = vld [vmem:[#allocation3 + $0xf08] sm:$0xff]  ;;  %v12472_v54 = vpack.c.bf16 %v4563_v60, %v4561_v1  ;;  %v3873_v1 = vld [vmem:[#allocation3 + $0x800] sm:$0xff]  ;;  %v3875_v60 = vld [vmem:[#allocation3 + $0x810] sm:$0xff] }
 0xbbd   : > { %v12474_v27 = vpack.c.bf16 %v4568_v16, %v4566_v42  ;;  %v3878_v42 = vld [vmem:[#allocation3 + $0x828] sm:$0xff]  ;;  %v3880_v16 = vld [vmem:[#allocation3 + $0x838] sm:$0xff] }
 0xbbf   : > { %12461 = vmatpush1.bf16.msra.mxu0 %v12460_v2  ;;  %v4567_v2 = vld [vmem:[#allocation3 + $0xf10] sm:$0xff] }
 0xbc0   : > { %12463 = vmatprep.subr.bf16.mxu0 %v12462_v35  ;;  %v4570_v35 = vld [vmem:[#allocation3 + $0xf28] sm:$0xff]  ;;  %v12476_v50 = vpack.c.bf16 %v4567_v2, %v4565_v26  ;;  %v12254_v26 = vpack.c.bf16 %v3880_v16, %v3878_v42  ;;  %v3877_v2 = vld [vmem:[#allocation3 + $0x820] sm:$0xff]  ;;  %v3891_v16 = vld [vmem:[#allocation3 + $0x890] sm:$0xff] }
 0xbc1   : > { %v12478_v12 = vpack.c.bf16 %v4572_v17, %v4570_v35  ;;  %v3879_v35 = vld [vmem:[#allocation3 + $0x830] sm:$0xff]  ;;  %v3882_v17 = vld [vmem:[#allocation3 + $0x848] sm:$0xff]  ;;  %v3889_v42 = vld [vmem:[#allocation3 + $0x880] sm:$0xff] }
 0xbc3   : > { %12465 = vmatpush1.bf16.msra.mxu0 %v12464_v63  ;;  %v4571_v63 = vld [vmem:[#allocation3 + $0xf30] sm:$0xff] }
 0xbc4   : > { %12467 = vmatprep.subr.bf16.mxu0 %v12466_v37  ;;  %v12480_v37 = vpack.c.bf16 %v4571_v63, %v4569_v59  ;;  %v3883_v59 = vld [vmem:[#allocation3 + $0x850] sm:$0xff]  ;;  %v3886_v63 = vld [vmem:[#allocation3 + $0x868] sm:$0xff] }
 0xbc7   : > { %12469 = vmatpush1.bf16.msra.mxu0 %v12468_v47  ;;  %v9895_v47 = vld [vmem:[%s16343_s9 + $0x8] sm:$0xf] }
 0xbc8   : > { %12471 = vmatprep.subr.bf16.mxu0 %v12470_v21  ;;  %v12250_v21 = vpack.c.bf16 %v3876_v25, %v3874_v56 }
 0xbcb   : > { %12473 = vmatpush1.bf16.msra.mxu0 %v12472_v54  ;;  %v9899_v54 = vld [vmem:[%s16343_s9 + $0xc] sm:$0xf] }
 0xbcc   : > { %12475 = vmatprep.subr.bf16.mxu0 %v12474_v27  ;;  %v12252_v27 = vpack.c.bf16 %v3875_v60, %v3873_v1 }
 0xbcf   : > { %12477 = vmatpush1.bf16.msra.mxu0 %v12476_v50 }
 0xbd0   : > { %12479 = vmatprep.subr.bf16.mxu0 %v12478_v12  ;;  %v3881_v12 = vld [vmem:[#allocation3 + $0x840] sm:$0xff] }
 0xbd1   : > { %v12260_v56 = vpack.c.bf16 %v3883_v59, %v3881_v12  ;;  %v3897_v59 = vld [vmem:[#allocation3 + $0x8c0] sm:$0xff] }
 0xbd3   : > { %12481 = vmatpush1.bf16.msra.mxu0 %v12480_v37  ;;  %v3888_v37 = vld [vmem:[#allocation3 + $0x878] sm:$0xff] }
 0xbd4   : > { %v12262_v25 = vpack.c.bf16 %v3888_v37, %v3886_v63  ;;  %v3899_v63 = vld [vmem:[#allocation3 + $0x8d0] sm:$0xff]  ;;  %v3902_v37 = vld [vmem:[#allocation3 + $0x8e8] sm:$0xff] }
 0xc44   : > { %v3563_v24 = vpop.f32.mrb[20].mxu1 }
 0xc45   : > { %v3565_v44 = vpop.f32.mrb[21].mxu1 }
 0xc46   : > { %9896 = vmatprep.subr.msk.mxu1 %vm919_vm1, %v3565_v44  ;;  %v3887_v44 = vld [vmem:[#allocation3 + $0x870] sm:$0xff] }
 0xc47   : > { %9897 = vmatpush1.msk.msra.mxu1 %vm919_vm1, %v3563_v24  ;;  %v3885_v24 = vld [vmem:[#allocation3 + $0x860] sm:$0xff] }
 0xc48   : > { %9898 = vmatmul.mubr.msk.f32.vlgmr.msra.gmra.mrb[18].mxu1 %vm912_vm0, %v9895_v47  ;;  %9900 = vmatprep.subr.msk.mxu1 %vm919_vm1, %v15483_v6  ;;  %v3884_v6 = vld [vmem:[#allocation3 + $0x858] sm:$0xff]  ;;  %v3890_v47 = vld [vmem:[#allocation3 + $0x888] sm:$0xff]  ;;  %v12264_v1 = vpack.c.bf16 %v3887_v44, %v3885_v24  ;;  %v3901_v44 = vld [vmem:[#allocation3 + $0x8e0] sm:$0xff] }
 0xc49   : > { %9901 = vmatpush1.msk.msra.mxu1 %vm919_vm1, %v15481_v62  ;;  %3863 = vmatprep.mubr.f32.mxu1 %v13575_v41  ;;  %v12256_v62 = vpack.c.bf16 %v3879_v35, %v3877_v2  ;;  %v12258_v50 = vpack.c.bf16 %v3884_v6, %v3882_v17  ;;  %v3893_v35 = vld [vmem:[#allocation3 + $0x8a0] sm:$0xff]  ;;  %v3895_v17 = vld [vmem:[#allocation3 + $0x8b0] sm:$0xff]  ;;  %v3898_v6 = vld [vmem:[#allocation3 + $0x8c8] sm:$0xff] }
 0xc4a   : > { %12251 = vmatprep.subr.bf16.mxu1 %v12250_v21  ;;  %v3892_v21 = vld [vmem:[#allocation3 + $0x898] sm:$0xff] }
 0xc4b   : > { %v12266_v60 = vpack.c.bf16 %v3892_v21, %v3890_v47  ;;  %v3903_v47 = vld [vmem:[#allocation3 + $0x8f0] sm:$0xff]  ;;  %v3906_v21 = vld [vmem:[#allocation3 + $0x908] sm:$0xff] }
 0xc50   : > { %9902 = vmatmul.mubr.msk.f32.vlgmr.msra.gmra.mrb[18].mxu1 %vm912_vm0, %v9899_v54  ;;  %v3894_v54 = vld [vmem:[#allocation3 + $0x8a8] sm:$0xff] }
 0xc51   : > { %12253 = vmatpush1.bf16.msra.mxu1 %v12252_v27  ;;  %4001 = vmatprep.mubr.f32.mxu1 %v15411_v49  ;;  %v3896_v27 = vld [vmem:[#allocation3 + $0x8b8] sm:$0xff] }
 0xc52   : > { %12255 = vmatprep.subr.bf16.mxu1 %v12254_v26  ;;  %v12268_v26 = vpack.c.bf16 %v3891_v16, %v3889_v42  ;;  %v12270_v2 = vpack.c.bf16 %v3896_v27, %v3894_v54  ;;  %v3905_v16 = vld [vmem:[#allocation3 + $0x900] sm:$0xff]  ;;  %v3907_v54 = vld [vmem:[#allocation3 + $0x910] sm:$0xff]  ;;  %v3910_v27 = vld [vmem:[#allocation3 + $0x928] sm:$0xff] }
 0xc55   : > { %12257 = vmatpush1.bf16.msra.mxu1 %v12256_v62  ;;  %v3900_v62 = vld [vmem:[#allocation3 + $0x8d8] sm:$0xff] }
 0xc56   : > { %12259 = vmatprep.subr.bf16.mxu1 %v12258_v50  ;;  %v12272_v50 = vpack.c.bf16 %v3895_v17, %v3893_v35  ;;  %v12274_v12 = vpack.c.bf16 %v3900_v62, %v3898_v6  ;;  %v3909_v17 = vld [vmem:[#allocation3 + $0x920] sm:$0xff]  ;;  %v3911_v6 = vld [vmem:[#allocation3 + $0x930] sm:$0xff]  ;;  %v3914_v62 = vld [vmem:[#allocation3 + $0x948] sm:$0xff] }
 0xc59   : > { %12261 = vmatpush1.bf16.msra.mxu1 %v12260_v56  ;;  %v3904_v56 = vld [vmem:[#allocation3 + $0x8f8] sm:$0xff] }
 0xc5a   : > { %12263 = vmatprep.subr.bf16.mxu1 %v12262_v25  ;;  %v12276_v25 = vpack.c.bf16 %v3899_v63, %v3897_v59  ;;  %v12278_v24 = vpack.c.bf16 %v3904_v56, %v3902_v37  ;;  %v3913_v63 = vld [vmem:[#allocation3 + $0x940] sm:$0xff]  ;;  %v3915_v37 = vld [vmem:[#allocation3 + $0x950] sm:$0xff]  ;;  %v3918_v56 = vld [vmem:[#allocation3 + $0x968] sm:$0xff] }
 0xc5d   : > { %12265 = vmatpush1.bf16.msra.mxu1 %v12264_v1  ;;  %v3908_v1 = vld [vmem:[#allocation3 + $0x918] sm:$0xff] }
 0xc5e   : > { %12267 = vmatprep.subr.bf16.mxu1 %v12266_v60  ;;  %v12280_v60 = vpack.c.bf16 %v3903_v47, %v3901_v44  ;;  %v12282_v42 = vpack.c.bf16 %v3908_v1, %v3906_v21  ;;  %v3917_v47 = vld [vmem:[#allocation3 + $0x960] sm:$0xff]  ;;  %v3919_v21 = vld [vmem:[#allocation3 + $0x970] sm:$0xff]  ;;  %v3922_v1 = vld [vmem:[#allocation3 + $0x988] sm:$0xff] }
 0xc61   : > { %12269 = vmatpush1.bf16.msra.mxu1 %v12268_v26  ;;  %v3912_v26 = vld [vmem:[#allocation3 + $0x938] sm:$0xff] }
 0xc62   : > { %12271 = vmatprep.subr.bf16.mxu1 %v12270_v2  ;;  %v12284_v2 = vpack.c.bf16 %v3907_v54, %v3905_v16  ;;  %v12286_v35 = vpack.c.bf16 %v3912_v26, %v3910_v27  ;;  %v3921_v54 = vld [vmem:[#allocation3 + $0x980] sm:$0xff]  ;;  %v3923_v27 = vld [vmem:[#allocation3 + $0x990] sm:$0xff]  ;;  %v3926_v26 = vld [vmem:[#allocation3 + $0x9a8] sm:$0xff] }
 0xc65   : > { %12273 = vmatpush1.bf16.msra.mxu1 %v12272_v50  ;;  %v3916_v50 = vld [vmem:[#allocation3 + $0x958] sm:$0xff] }
 0xc66   : > { %12275 = vmatprep.subr.bf16.mxu1 %v12274_v12  ;;  %v12288_v12 = vpack.c.bf16 %v3911_v6, %v3909_v17  ;;  %v12290_v59 = vpack.c.bf16 %v3916_v50, %v3914_v62  ;;  %v3925_v6 = vld [vmem:[#allocation3 + $0x9a0] sm:$0xff]  ;;  %v3927_v62 = vld [vmem:[#allocation3 + $0x9b0] sm:$0xff]  ;;  %v3930_v50 = vld [vmem:[#allocation3 + $0x9c8] sm:$0xff] }
 0xc69   : > { %12277 = vmatpush1.bf16.msra.mxu1 %v12276_v25  ;;  %v3920_v25 = vld [vmem:[#allocation3 + $0x978] sm:$0xff] }
 0xc6a   : > { %12279 = vmatprep.subr.bf16.mxu1 %v12278_v24  ;;  %v12292_v24 = vpack.c.bf16 %v3915_v37, %v3913_v63  ;;  %v12294_v44 = vpack.c.bf16 %v3920_v25, %v3918_v56  ;;  %v3929_v37 = vld [vmem:[#allocation3 + $0x9c0] sm:$0xff]  ;;  %v3931_v56 = vld [vmem:[#allocation3 + $0x9d0] sm:$0xff]  ;;  %v3934_v25 = vld [vmem:[#allocation3 + $0x9e8] sm:$0xff] }
 0xc6d   : > { %12281 = vmatpush1.bf16.msra.mxu1 %v12280_v60  ;;  %v3924_v60 = vld [vmem:[#allocation3 + $0x998] sm:$0xff] }
 0xc6e   : > { %12283 = vmatprep.subr.bf16.mxu1 %v12282_v42  ;;  %v12296_v42 = vpack.c.bf16 %v3919_v21, %v3917_v47  ;;  %v12298_v16 = vpack.c.bf16 %v3924_v60, %v3922_v1  ;;  %v3933_v21 = vld [vmem:[#allocation3 + $0x9e0] sm:$0xff]  ;;  %v3935_v1 = vld [vmem:[#allocation3 + $0x9f0] sm:$0xff] }
 0xc6f   : > { %v12312_v60 = vpack.c.bf16 %v3935_v1, %v3933_v21  ;;  %v4586_v21 = vld [vmem:[#allocation3 + $0xfa8] sm:$0xff]  ;;  %v4588_v1 = vld [vmem:[#allocation3 + $0xfb8] sm:$0xff] }
 0xc71   : > { %12285 = vmatpush1.bf16.msra.mxu1 %v12284_v2  ;;  %v3928_v2 = vld [vmem:[#allocation3 + $0x9b8] sm:$0xff] }
 0xc72   : > { %12287 = vmatprep.subr.bf16.mxu1 %v12286_v35  ;;  %v12300_v35 = vpack.c.bf16 %v3923_v27, %v3921_v54  ;;  %v12302_v17 = vpack.c.bf16 %v3928_v2, %v3926_v26  ;;  %v4573_v27 = vld [vmem:[#allocation3 + $0xf40] sm:$0xff]  ;;  %v4575_v26 = vld [vmem:[#allocation3 + $0xf50] sm:$0xff] }
 0xc73   : > { %v12484_v2 = vpack.c.bf16 %v4575_v26, %v4573_v27  ;;  %v4590_v27 = vld [vmem:[#allocation3 + $0xfc8] sm:$0xff]  ;;  %v4592_v26 = vld [vmem:[#allocation3 + $0xfd8] sm:$0xff] }
 0xc75   : > { %12289 = vmatpush1.bf16.msra.mxu1 %v12288_v12  ;;  %v3932_v12 = vld [vmem:[#allocation3 + $0x9d8] sm:$0xff] }
 0xc76   : > { %12291 = vmatprep.subr.bf16.mxu1 %v12290_v59  ;;  %v12304_v59 = vpack.c.bf16 %v3927_v62, %v3925_v6  ;;  %v12306_v63 = vpack.c.bf16 %v3932_v12, %v3930_v50  ;;  %v4577_v62 = vld [vmem:[#allocation3 + $0xf60] sm:$0xff]  ;;  %v4579_v50 = vld [vmem:[#allocation3 + $0xf70] sm:$0xff] }
 0xc77   : > { %v12488_v12 = vpack.c.bf16 %v4579_v50, %v4577_v62  ;;  %v4594_v62 = vld [vmem:[#allocation3 + $0xfe8] sm:$0xff]  ;;  %v4596_v50 = vld [vmem:[#allocation3 + $0xff8] sm:$0xff] }
 0xc79   : > { %12293 = vmatpush1.bf16.msra.mxu1 %v12292_v24  ;;  %v3936_v24 = vld [vmem:[#allocation3 + $0x9f8] sm:$0xff] }
 0xc7a   : > { %12295 = vmatprep.subr.bf16.mxu1 %v12294_v44  ;;  %v12308_v44 = vpack.c.bf16 %v3931_v56, %v3929_v37  ;;  %v12310_v47 = vpack.c.bf16 %v3936_v24, %v3934_v25  ;;  %v4581_v37 = vld [vmem:[#allocation3 + $0xf80] sm:$0xff]  ;;  %v4583_v24 = vld [vmem:[#allocation3 + $0xf90] sm:$0xff] }
 0xc7d   : > { %12297 = vmatpush1.bf16.msra.mxu1 %v12296_v42  ;;  %v4574_v42 = vld [vmem:[#allocation3 + $0xf48] sm:$0xff] }
 0xc7e   : > { %12299 = vmatprep.subr.bf16.mxu1 %v12298_v16  ;;  %v4576_v16 = vld [vmem:[#allocation3 + $0xf58] sm:$0xff] }
 0xc7f   : > { %v12482_v54 = vpack.c.bf16 %v4576_v16, %v4574_v42  ;;  %v4585_v42 = vld [vmem:[#allocation3 + $0xfa0] sm:$0xff]  ;;  %v4587_v16 = vld [vmem:[#allocation3 + $0xfb0] sm:$0xff] }
 0xc81   : > { %12301 = vmatpush1.bf16.msra.mxu1 %v12300_v35  ;;  %12483 = vmatprep.subr.bf16.mxu0 %v12482_v54  ;;  %v4578_v35 = vld [vmem:[#allocation3 + $0xf68] sm:$0xff]  ;;  %v15508_v56 = vpop.f32.mrb[24].mxu0  ;;  %v12496_v54 = vpack.c.bf16 %v4587_v16, %v4585_v42  ;;  %v4760_v16 = vld [vmem:[#allocation3 + $0x1038] sm:$0xff] }
 0xc82   : > { %12303 = vmatprep.subr.bf16.mxu1 %v12302_v17  ;;  %12485 = vmatpush1.bf16.msra.mxu0 %v12484_v2  ;;  %v4580_v17 = vld [vmem:[#allocation3 + $0xf78] sm:$0xff]  ;;  %v12498_v2 = vpack.c.bf16 %v4592_v26, %v4590_v27  ;;  %v4758_v42 = vld [vmem:[#allocation3 + $0x1028] sm:$0xff]  ;;  %v4757_v27 = vld [vmem:[#allocation3 + $0x1020] sm:$0xff] }
 0xc83   : > { %v12486_v6 = vpack.c.bf16 %v4580_v17, %v4578_v35  ;;  %v4589_v35 = vld [vmem:[#allocation3 + $0xfc0] sm:$0xff]  ;;  %v4591_v17 = vld [vmem:[#allocation3 + $0xfd0] sm:$0xff] }
 0xc84   : > { %v4759_v26 = vld [vmem:[#allocation3 + $0x1030] sm:$0xff] }
 0xc85   : > { %12305 = vmatpush1.bf16.msra.mxu1 %v12304_v59  ;;  %12487 = vmatprep.subr.bf16.mxu0 %v12486_v6  ;;  %v4582_v59 = vld [vmem:[#allocation3 + $0xf88] sm:$0xff]  ;;  %v12500_v6 = vpack.c.bf16 %v4591_v17, %v4589_v35  ;;  %v4764_v17 = vld [vmem:[#allocation3 + $0x1058] sm:$0xff] }
 0xc86   : > { %12307 = vmatprep.subr.bf16.mxu1 %v12306_v63  ;;  %v4584_v63 = vld [vmem:[#allocation3 + $0xf98] sm:$0xff]  ;;  %12489 = vmatpush1.bf16.msra.mxu0 %v12488_v12  ;;  %v12502_v12 = vpack.c.bf16 %v4596_v50, %v4594_v62  ;;  %v4762_v35 = vld [vmem:[#allocation3 + $0x1048] sm:$0xff]  ;;  %v4761_v62 = vld [vmem:[#allocation3 + $0x1040] sm:$0xff] }
 0xc87   : > { %v12490_v25 = vpack.c.bf16 %v4584_v63, %v4582_v59  ;;  %v4593_v59 = vld [vmem:[#allocation3 + $0xfe0] sm:$0xff]  ;;  %v4595_v63 = vld [vmem:[#allocation3 + $0xff0] sm:$0xff] }
 0xc88   : > { %v4763_v50 = vld [vmem:[#allocation3 + $0x1050] sm:$0xff] }
 0xc89   : > { %12309 = vmatpush1.bf16.msra.mxu1 %v12308_v44  ;;  %v15510_v44 = vpop.f32.mrb[25].mxu0  ;;  %12491 = vmatprep.subr.bf16.mxu0 %v12490_v25  ;;  %v4754_v25 = vld [vmem:[#allocation3 + $0x1008] sm:$0xff] }
 0xc8a   : > { %12311 = vmatprep.subr.bf16.mxu1 %v12310_v47  ;;  %v12492_v47 = vpack.c.bf16 %v4583_v24, %v4581_v37  ;;  %v12504_v37 = vpack.c.bf16 %v4595_v63, %v4593_v59  ;;  %v4756_v24 = vld [vmem:[#allocation3 + $0x1018] sm:$0xff]  ;;  %v4766_v59 = vld [vmem:[#allocation3 + $0x1068] sm:$0xff] }
 0xc8b   : > { %v4768_v63 = vld [vmem:[#allocation3 + $0x1078] sm:$0xff] }
 0xc8c   : > { %12493 = vmatpush1.bf16.msra.mxu0 %v12492_v47  ;;  %v12506_v47 = vpack.c.bf16 %v4756_v24, %v4754_v25  ;;  %v4765_v25 = vld [vmem:[#allocation3 + $0x1060] sm:$0xff]  ;;  %v4767_v24 = vld [vmem:[#allocation3 + $0x1070] sm:$0xff] }
 0xc8d   : > { %12313 = vmatpush1.bf16.msra.mxu1 %v12312_v60  ;;  %v12494_v60 = vpack.c.bf16 %v4588_v1, %v4586_v21  ;;  %v4753_v21 = vld [vmem:[#allocation3 + $0x1000] sm:$0xff]  ;;  %v4755_v1 = vld [vmem:[#allocation3 + $0x1010] sm:$0xff] }
 0xc8f   : > { %12495 = vmatprep.subr.bf16.mxu0 %v12494_v60  ;;  %v12508_v60 = vpack.c.bf16 %v4755_v1, %v4753_v21  ;;  %v4770_v21 = vld [vmem:[#allocation3 + $0x1088] sm:$0xff]  ;;  %v4772_v1 = vld [vmem:[#allocation3 + $0x1098] sm:$0xff] }
 0xc90   : > { %4002 = vmatmul.mubr.f32.vlgmr.msra.gmra.mrb[22].mxu1 %v15486_v32  ;;  %12497 = vmatpush1.bf16.msra.mxu0 %v12496_v54  ;;  %v12510_v54 = vpack.c.bf16 %v4760_v16, %v4758_v42  ;;  %v4769_v42 = vld [vmem:[#allocation3 + $0x1080] sm:$0xff]  ;;  %v4771_v16 = vld [vmem:[#allocation3 + $0x1090] sm:$0xff] }
 0xc91   : > { %4083 = vmatprep.mubr.f32.mxu1 %v13575_v41  ;;  %12499 = vmatprep.subr.bf16.mxu0 %v12498_v2  ;;  %v12512_v2 = vpack.c.bf16 %v4759_v26, %v4757_v27  ;;  %v4774_v27 = vld [vmem:[#allocation3 + $0x10a8] sm:$0xff]  ;;  %v4776_v26 = vld [vmem:[#allocation3 + $0x10b8] sm:$0xff] }
 0xc94   : > { %12501 = vmatpush1.bf16.msra.mxu0 %v12500_v6  ;;  %v12514_v6 = vpack.c.bf16 %v4764_v17, %v4762_v35  ;;  %v4773_v35 = vld [vmem:[#allocation3 + $0x10a0] sm:$0xff]  ;;  %v4775_v17 = vld [vmem:[#allocation3 + $0x10b0] sm:$0xff] }
 0xc95   : > { %12503 = vmatprep.subr.bf16.mxu0 %v12502_v12  ;;  %v12516_v12 = vpack.c.bf16 %v4763_v50, %v4761_v62  ;;  %v4778_v62 = vld [vmem:[#allocation3 + $0x10c8] sm:$0xff]  ;;  %v4780_v50 = vld [vmem:[#allocation3 + $0x10d8] sm:$0xff] }
 0xc98   : > { %12505 = vmatpush1.bf16.msra.mxu0 %v12504_v37  ;;  %v12518_v37 = vpack.c.bf16 %v4768_v63, %v4766_v59  ;;  %v4777_v59 = vld [vmem:[#allocation3 + $0x10c0] sm:$0xff]  ;;  %v4779_v63 = vld [vmem:[#allocation3 + $0x10d0] sm:$0xff] }
 0xc99   : > { %12507 = vmatprep.subr.bf16.mxu0 %v12506_v47  ;;  %v12520_v47 = vpack.c.bf16 %v4767_v24, %v4765_v25  ;;  %v4782_v25 = vld [vmem:[#allocation3 + $0x10e8] sm:$0xff]  ;;  %v4784_v24 = vld [vmem:[#allocation3 + $0x10f8] sm:$0xff] }
 0xc9b   : > { %4662 = vmatmul.mubr.f32.vlgmr.msra.gmra.mrb[26].mxu0 %v15486_v32 }
 0xc9c   : > { %12509 = vmatpush1.bf16.msra.mxu0 %v12508_v60  ;;  %4881 = vmatprep.mubr.f32.mxu0 %v15411_v49  ;;  %v12522_v60 = vpack.c.bf16 %v4772_v1, %v4770_v21  ;;  %v4781_v21 = vld [vmem:[#allocation3 + $0x10e0] sm:$0xff]  ;;  %v4783_v1 = vld [vmem:[#allocation3 + $0x10f0] sm:$0xff] }
 0xc9d   : > { %12511 = vmatprep.subr.bf16.mxu0 %v12510_v54  ;;  %v12524_v54 = vpack.c.bf16 %v4771_v16, %v4769_v42  ;;  %v4786_v42 = vld [vmem:[#allocation3 + $0x1108] sm:$0xff]  ;;  %v4788_v16 = vld [vmem:[#allocation3 + $0x1118] sm:$0xff] }
 0xca0   : > { %12513 = vmatpush1.bf16.msra.mxu0 %v12512_v2  ;;  %v12526_v2 = vpack.c.bf16 %v4776_v26, %v4774_v27  ;;  %v4785_v27 = vld [vmem:[#allocation3 + $0x1100] sm:$0xff]  ;;  %v4787_v26 = vld [vmem:[#allocation3 + $0x1110] sm:$0xff] }
 0xca1   : > { %12515 = vmatprep.subr.bf16.mxu0 %v12514_v6  ;;  %v12528_v6 = vpack.c.bf16 %v4775_v17, %v4773_v35  ;;  %v4790_v35 = vld [vmem:[#allocation3 + $0x1128] sm:$0xff]  ;;  %v4792_v17 = vld [vmem:[#allocation3 + $0x1138] sm:$0xff] }
 0xca4   : > { %12517 = vmatpush1.bf16.msra.mxu0 %v12516_v12  ;;  %v12530_v12 = vpack.c.bf16 %v4780_v50, %v4778_v62  ;;  %v4789_v62 = vld [vmem:[#allocation3 + $0x1120] sm:$0xff]  ;;  %v4791_v50 = vld [vmem:[#allocation3 + $0x1130] sm:$0xff] }
 0xca5   : > { %12519 = vmatprep.subr.bf16.mxu0 %v12518_v37  ;;  %v12532_v37 = vpack.c.bf16 %v4779_v63, %v4777_v59  ;;  %v4794_v59 = vld [vmem:[#allocation3 + $0x1148] sm:$0xff]  ;;  %v4796_v63 = vld [vmem:[#allocation3 + $0x1158] sm:$0xff] }
 0xca8   : > { %12521 = vmatpush1.bf16.msra.mxu0 %v12520_v47  ;;  %v12534_v47 = vpack.c.bf16 %v4784_v24, %v4782_v25  ;;  %v4793_v25 = vld [vmem:[#allocation3 + $0x1140] sm:$0xff]  ;;  %v4795_v24 = vld [vmem:[#allocation3 + $0x1150] sm:$0xff] }
 0xca9   : > { %12523 = vmatprep.subr.bf16.mxu0 %v12522_v60  ;;  %v12536_v60 = vpack.c.bf16 %v4783_v1, %v4781_v21  ;;  %v4798_v21 = vld [vmem:[#allocation3 + $0x1168] sm:$0xff]  ;;  %v4800_v1 = vld [vmem:[#allocation3 + $0x1178] sm:$0xff] }
 0xcac   : > { %12525 = vmatpush1.bf16.msra.mxu0 %v12524_v54  ;;  %v12538_v54 = vpack.c.bf16 %v4788_v16, %v4786_v42  ;;  %v4797_v42 = vld [vmem:[#allocation3 + $0x1160] sm:$0xff]  ;;  %v4799_v16 = vld [vmem:[#allocation3 + $0x1170] sm:$0xff] }
 0xcad   : > { %12527 = vmatprep.subr.bf16.mxu0 %v12526_v2  ;;  %v12540_v2 = vpack.c.bf16 %v4787_v26, %v4785_v27  ;;  %v4802_v27 = vld [vmem:[#allocation3 + $0x1188] sm:$0xff]  ;;  %v4804_v26 = vld [vmem:[#allocation3 + $0x1198] sm:$0xff] }
 0xcb0   : > { %12529 = vmatpush1.bf16.msra.mxu0 %v12528_v6  ;;  %v12542_v6 = vpack.c.bf16 %v4792_v17, %v4790_v35  ;;  %v4801_v35 = vld [vmem:[#allocation3 + $0x1180] sm:$0xff]  ;;  %v4803_v17 = vld [vmem:[#allocation3 + $0x1190] sm:$0xff] }
 0xcb1   : > { %12531 = vmatprep.subr.bf16.mxu0 %v12530_v12  ;;  %v12544_v12 = vpack.c.bf16 %v4791_v50, %v4789_v62  ;;  %v4806_v62 = vld [vmem:[#allocation3 + $0x11a8] sm:$0xff]  ;;  %v4808_v50 = vld [vmem:[#allocation3 + $0x11b8] sm:$0xff] }
 0xcb4   : > { %12533 = vmatpush1.bf16.msra.mxu0 %v12532_v37  ;;  %v12546_v37 = vpack.c.bf16 %v4796_v63, %v4794_v59  ;;  %v4805_v59 = vld [vmem:[#allocation3 + $0x11a0] sm:$0xff]  ;;  %v4807_v63 = vld [vmem:[#allocation3 + $0x11b0] sm:$0xff] }
 0xcb5   : > { %12535 = vmatprep.subr.bf16.mxu0 %v12534_v47  ;;  %v12548_v47 = vpack.c.bf16 %v4795_v24, %v4793_v25  ;;  %v12560_v25 = vpack.c.bf16 %v4807_v63, %v4805_v59  ;;  %v4812_v24 = vld [vmem:[#allocation3 + $0x11d8] sm:$0xff]  ;;  %v4315_v59 = vld [vmem:[#allocation3 + $0xc10] sm:$0xff]  ;;  %v4318_v63 = vld [vmem:[#allocation3 + $0xc28] sm:$0xff] }
 0xcb8   : > { %12537 = vmatpush1.bf16.msra.mxu0 %v12536_v60  ;;  %v12550_v60 = vpack.c.bf16 %v4800_v1, %v4798_v21  ;;  %v4811_v21 = vld [vmem:[#allocation3 + $0x11d0] sm:$0xff] }
 0xcb9   : > { %12539 = vmatprep.subr.bf16.mxu0 %v12538_v54  ;;  %v12552_v54 = vpack.c.bf16 %v4799_v16, %v4797_v42  ;;  %v4816_v42 = vld [vmem:[#allocation3 + $0x11f8] sm:$0xff] }
 0xcbc   : > { %12541 = vmatpush1.bf16.msra.mxu0 %v12540_v2  ;;  %v12554_v2 = vpack.c.bf16 %v4804_v26, %v4802_v27  ;;  %v4813_v27 = vld [vmem:[#allocation3 + $0x11e0] sm:$0xff]  ;;  %v4815_v26 = vld [vmem:[#allocation3 + $0x11f0] sm:$0xff] }
 0xcbd   : > { %12543 = vmatprep.subr.bf16.mxu0 %v12542_v6  ;;  %v12556_v6 = vpack.c.bf16 %v4803_v17, %v4801_v35  ;;  %v4314_v35 = vld [vmem:[#allocation3 + $0xc08] sm:$0xff]  ;;  %v4316_v17 = vld [vmem:[#allocation3 + $0xc18] sm:$0xff] }
 0xcc0   : > { %12545 = vmatpush1.bf16.msra.mxu0 %v12544_v12  ;;  %v12558_v12 = vpack.c.bf16 %v4808_v50, %v4806_v62  ;;  %v9903_v50 = vld [vmem:[%s16343_s9 + $0x10] sm:$0xf] }
 0xcc1   : > { %12547 = vmatprep.subr.bf16.mxu0 %v12546_v37  ;;  %v4810_v37 = vld [vmem:[#allocation3 + $0x11c8] sm:$0xff] }
 0xcc2   : > { %v12562_v1 = vpack.c.bf16 %v4812_v24, %v4810_v37  ;;  %v4320_v37 = vld [vmem:[#allocation3 + $0xc38] sm:$0xff] }
 0xcc4   : > { %12549 = vmatpush1.bf16.msra.mxu0 %v12548_v47  ;;  %v4809_v47 = vld [vmem:[#allocation3 + $0x11c0] sm:$0xff] }
 0xcc5   : > { %12551 = vmatprep.subr.bf16.mxu0 %v12550_v60  ;;  %v4814_v60 = vld [vmem:[#allocation3 + $0x11e8] sm:$0xff]  ;;  %v12564_v16 = vpack.c.bf16 %v4811_v21, %v4809_v47  ;;  %v12382_v47 = vpack.c.bf16 %v4320_v37, %v4318_v63  ;;  %v4317_v21 = vld [vmem:[#allocation3 + $0xc20] sm:$0xff]  ;;  %v4336_v37 = vld [vmem:[#allocation3 + $0xcb8] sm:$0xff] }
 0xcc6   : > { %v4334_v63 = vld [vmem:[#allocation3 + $0xca8] sm:$0xff] }
 0xcc8   : > { %12553 = vmatpush1.bf16.msra.mxu0 %v12552_v54  ;;  %v12566_v54 = vpack.c.bf16 %v4816_v42, %v4814_v60  ;;  %v4322_v60 = vld [vmem:[#allocation3 + $0xc48] sm:$0xff] }
 0xcc9   : > { %12555 = vmatprep.subr.bf16.mxu0 %v12554_v2  ;;  %v12568_v2 = vpack.c.bf16 %v4815_v26, %v4813_v27  ;;  %v4326_v27 = vld [vmem:[#allocation3 + $0xc68] sm:$0xff]  ;;  %v4328_v26 = vld [vmem:[#allocation3 + $0xc78] sm:$0xff] }
 0xccc   : > { %12557 = vmatpush1.bf16.msra.mxu0 %v12556_v6 }
 0xccd   : > { %12559 = vmatprep.subr.bf16.mxu0 %v12558_v12  ;;  %v12378_v12 = vpack.c.bf16 %v4316_v17, %v4314_v35  ;;  %v12390_v35 = vpack.c.bf16 %v4328_v26, %v4326_v27  ;;  %v4325_v17 = vld [vmem:[#allocation3 + $0xc60] sm:$0xff]  ;;  %v4344_v27 = vld [vmem:[#allocation3 + $0xcf8] sm:$0xff] }
 0xcd0   : > { %12561 = vmatpush1.bf16.msra.mxu0 %v12560_v25  ;;  %v9907_v25 = vld [vmem:[%s16343_s9 + $0x14] sm:$0xf] }
 0xcd1   : > { %12563 = vmatprep.subr.bf16.mxu0 %v12562_v1  ;;  %v4319_v1 = vld [vmem:[#allocation3 + $0xc30] sm:$0xff] }
 0xcd4   : > { %12565 = vmatpush1.bf16.msra.mxu0 %v12564_v16  ;;  %v4321_v16 = vld [vmem:[#allocation3 + $0xc40] sm:$0xff] }
 0xcd5   : > { %12567 = vmatprep.subr.bf16.mxu0 %v12566_v54  ;;  %v4323_v54 = vld [vmem:[#allocation3 + $0xc50] sm:$0xff] }
 0xcd8   : > { %12569 = vmatpush1.bf16.msra.mxu0 %v12568_v2  ;;  %v12388_v2 = vpack.c.bf16 %v4323_v54, %v4321_v16  ;;  %v4339_v16 = vld [vmem:[#allocation3 + $0xcd0] sm:$0xff]  ;;  %v4342_v54 = vld [vmem:[#allocation3 + $0xce8] sm:$0xff] }
 0xcdb   : > { %4882 = vmatmul.mubr.f32.vlgmr.msra.gmra.mrb[28].mxu0 %v15486_v32  ;;  %v4313_v32 = vld [vmem:[#allocation3 + $0xc00] sm:$0xff] }
 0xcdc   : > { %v12380_v24 = vpack.c.bf16 %v4315_v59, %v4313_v32  ;;  %v4329_v59 = vld [vmem:[#allocation3 + $0xc80] sm:$0xff] }
 0xd63   : > { %v4003_v6 = vpop.f32.mrb[22].mxu1 }
 0xd64   : > { %v4005_v62 = vpop.f32.mrb[23].mxu1 }
 0xd65   : > { %9904 = vmatprep.subr.msk.mxu1 %vm919_vm1, %v4005_v62  ;;  %v4330_v62 = vld [vmem:[#allocation3 + $0xc88] sm:$0xff] }
 0xd66   : > { %9905 = vmatpush1.msk.msra.mxu1 %vm919_vm1, %v4003_v6  ;;  %v4327_v6 = vld [vmem:[#allocation3 + $0xc70] sm:$0xff] }
 0xd67   : > { %9906 = vmatmul.mubr.msk.f32.vlgmr.msra.gmra.mrb[18].mxu1 %vm912_vm0, %v9903_v50  ;;  %9908 = vmatprep.subr.msk.mxu1 %vm919_vm1, %v15510_v44  ;;  %v4324_v44 = vld [vmem:[#allocation3 + $0xc58] sm:$0xff] }
 0xd68   : > { %9909 = vmatpush1.msk.msra.mxu1 %vm919_vm1, %v15508_v56  ;;  %4303 = vmatprep.mubr.f32.mxu1 %v13575_v41  ;;  %v12384_v56 = vpack.c.bf16 %v4319_v1, %v4317_v21  ;;  %v12386_v42 = vpack.c.bf16 %v4324_v44, %v4322_v60  ;;  %v4332_v50 = vld [vmem:[#allocation3 + $0xc98] sm:$0xff]  ;;  %v4335_v21 = vld [vmem:[#allocation3 + $0xcb0] sm:$0xff]  ;;  %v4338_v1 = vld [vmem:[#allocation3 + $0xcc8] sm:$0xff] }
 0xd69   : > { %12379 = vmatprep.subr.bf16.mxu1 %v12378_v12  ;;  %v12392_v12 = vpack.c.bf16 %v4327_v6, %v4325_v17  ;;  %v12394_v32 = vpack.c.bf16 %v4332_v50, %v4330_v62  ;;  %v4340_v60 = vld [vmem:[#allocation3 + $0xcd8] sm:$0xff]  ;;  %v4343_v17 = vld [vmem:[#allocation3 + $0xcf0] sm:$0xff]  ;;  %v4346_v6 = vld [vmem:[#allocation3 + $0xd08] sm:$0xff] }
 0xd6a   : > { %v4348_v62 = vld [vmem:[#allocation3 + $0xd18] sm:$0xff] }
 0xd6f   : > { %9910 = vmatmul.mubr.msk.f32.vlgmr.msra.gmra.mrb[18].mxu1 %vm912_vm0, %v9907_v25 }
 0xd70   : > { %12381 = vmatpush1.bf16.msra.mxu1 %v12380_v24  ;;  %4441 = vmatprep.mubr.f32.mxu1 %v15411_v49  ;;  %v4331_v49 = vld [vmem:[#allocation3 + $0xc90] sm:$0xff]  ;;  %v12398_v24 = vpack.c.bf16 %v4336_v37, %v4334_v63  ;;  %v4352_v63 = vld [vmem:[#allocation3 + $0xd38] sm:$0xff] }
 0xd71   : > { %12383 = vmatprep.subr.bf16.mxu1 %v12382_v47  ;;  %v12396_v25 = vpack.c.bf16 %v4331_v49, %v4329_v59  ;;  %v4333_v47 = vld [vmem:[#allocation3 + $0xca0] sm:$0xff]  ;;  %v4347_v59 = vld [vmem:[#allocation3 + $0xd10] sm:$0xff]  ;;  %v4350_v49 = vld [vmem:[#allocation3 + $0xd28] sm:$0xff] }
 0xd72   : > { %v12400_v44 = vpack.c.bf16 %v4335_v21, %v4333_v47  ;;  %v4351_v47 = vld [vmem:[#allocation3 + $0xd30] sm:$0xff]  ;;  %v4354_v21 = vld [vmem:[#allocation3 + $0xd48] sm:$0xff] }
 0xd74   : > { %12385 = vmatpush1.bf16.msra.mxu1 %v12384_v56  ;;  %v12402_v56 = vpack.c.bf16 %v4340_v60, %v4338_v1  ;;  %v4356_v1 = vld [vmem:[#allocation3 + $0xd58] sm:$0xff] }
 0xd75   : > { %12387 = vmatprep.subr.bf16.mxu1 %v12386_v42  ;;  %v4337_v42 = vld [vmem:[#allocation3 + $0xcc0] sm:$0xff] }
 0xd76   : > { %v12404_v26 = vpack.c.bf16 %v4339_v16, %v4337_v42  ;;  %v4355_v42 = vld [vmem:[#allocation3 + $0xd50] sm:$0xff]  ;;  %v4358_v16 = vld [vmem:[#allocation3 + $0xd68] sm:$0xff] }
 0xd78   : > { %12389 = vmatpush1.bf16.msra.mxu1 %v12388_v2  ;;  %v12406_v2 = vpack.c.bf16 %v4344_v27, %v4342_v54  ;;  %v4360_v54 = vld [vmem:[#allocation3 + $0xd78] sm:$0xff] }
 0xd79   : > { %12391 = vmatprep.subr.bf16.mxu1 %v12390_v35  ;;  %v4341_v35 = vld [vmem:[#allocation3 + $0xce0] sm:$0xff] }
 0xd7a   : > { %v12408_v50 = vpack.c.bf16 %v4343_v17, %v4341_v35  ;;  %v4359_v35 = vld [vmem:[#allocation3 + $0xd70] sm:$0xff]  ;;  %v4362_v17 = vld [vmem:[#allocation3 + $0xd88] sm:$0xff] }
 0xd7c   : > { %12393 = vmatpush1.bf16.msra.mxu1 %v12392_v12  ;;  %v12410_v12 = vpack.c.bf16 %v4348_v62, %v4346_v6  ;;  %v4364_v6 = vld [vmem:[#allocation3 + $0xd98] sm:$0xff] }
 0xd7d   : > { %12395 = vmatprep.subr.bf16.mxu1 %v12394_v32  ;;  %v4345_v32 = vld [vmem:[#allocation3 + $0xd00] sm:$0xff] }
 0xd7e   : > { %v12412_v37 = vpack.c.bf16 %v4347_v59, %v4345_v32  ;;  %v4363_v32 = vld [vmem:[#allocation3 + $0xd90] sm:$0xff]  ;;  %v4366_v59 = vld [vmem:[#allocation3 + $0xda8] sm:$0xff] }
 0xd80   : > { %12397 = vmatpush1.bf16.msra.mxu1 %v12396_v25  ;;  %v12414_v25 = vpack.c.bf16 %v4352_v63, %v4350_v49  ;;  %v4368_v49 = vld [vmem:[#allocation3 + $0xdb8] sm:$0xff] }
 0xd81   : > { %12399 = vmatprep.subr.bf16.mxu1 %v12398_v24  ;;  %v4349_v24 = vld [vmem:[#allocation3 + $0xd20] sm:$0xff] }
 0xd82   : > { %v12416_v60 = vpack.c.bf16 %v4351_v47, %v4349_v24  ;;  %v4367_v24 = vld [vmem:[#allocation3 + $0xdb0] sm:$0xff]  ;;  %v4370_v47 = vld [vmem:[#allocation3 + $0xdc8] sm:$0xff] }
 0xd84   : > { %12401 = vmatpush1.bf16.msra.mxu1 %v12400_v44  ;;  %v12418_v44 = vpack.c.bf16 %v4356_v1, %v4354_v21  ;;  %v4372_v21 = vld [vmem:[#allocation3 + $0xdd8] sm:$0xff] }
 0xd85   : > { %12403 = vmatprep.subr.bf16.mxu1 %v12402_v56  ;;  %v4353_v56 = vld [vmem:[#allocation3 + $0xd40] sm:$0xff] }
 0xd86   : > { %v12420_v27 = vpack.c.bf16 %v4355_v42, %v4353_v56  ;;  %v4371_v56 = vld [vmem:[#allocation3 + $0xdd0] sm:$0xff]  ;;  %v4374_v42 = vld [vmem:[#allocation3 + $0xde8] sm:$0xff] }
 0xd88   : > { %12405 = vmatpush1.bf16.msra.mxu1 %v12404_v26  ;;  %v12422_v26 = vpack.c.bf16 %v4360_v54, %v4358_v16  ;;  %v4376_v16 = vld [vmem:[#allocation3 + $0xdf8] sm:$0xff] }
 0xd89   : > { %12407 = vmatprep.subr.bf16.mxu1 %v12406_v2  ;;  %v4357_v2 = vld [vmem:[#allocation3 + $0xd60] sm:$0xff] }
 0xd8a   : > { %v12424_v62 = vpack.c.bf16 %v4359_v35, %v4357_v2  ;;  %v4375_v2 = vld [vmem:[#allocation3 + $0xdf0] sm:$0xff] }
 0xd8c   : > { %12409 = vmatpush1.bf16.msra.mxu1 %v12408_v50  ;;  %v12426_v50 = vpack.c.bf16 %v4364_v6, %v4362_v17  ;;  %v13404_v17 = vld [vmem:[%s15404_s0] sm:$0xff]  ;;  %v4663_v6 = vpop.f32.mrb[26].mxu0 }
 0xd8d   : > { %12411 = vmatprep.subr.bf16.mxu1 %v12410_v12  ;;  %v4361_v12 = vld [vmem:[#allocation3 + $0xd80] sm:$0xff] }
 0xd8e   : > { %v12428_v63 = vpack.c.bf16 %v4363_v32, %v4361_v12 }
 0xd90   : > { %12413 = vmatpush1.bf16.msra.mxu1 %v12412_v37  ;;  %v12430_v37 = vpack.c.bf16 %v4368_v49, %v4366_v59  ;;  %v9911_v49 = vld [vmem:[%s16343_s9 + $0x18] sm:$0xf] }
 0xd91   : > { %12415 = vmatprep.subr.bf16.mxu1 %v12414_v25  ;;  %v4365_v25 = vld [vmem:[#allocation3 + $0xda0] sm:$0xff] }
 0xd92   : > { %v12432_v1 = vpack.c.bf16 %v4367_v24, %v4365_v25  ;;  %v16642_v25 = vld [vmem:[#allocation61_spill] sm:$0xff]  ;;  %v16643_v24 = vld [vmem:[#allocation62_spill] sm:$0xff] }
 0xd94   : > { %12417 = vmatpush1.bf16.msra.mxu1 %v12416_v60  ;;  %v12434_v60 = vpack.c.bf16 %v4372_v21, %v4370_v47  ;;  %v16644_v47 = vld [vmem:[#allocation63_spill] sm:$0xff]  ;;  %v16645_v21 = vld [vmem:[#allocation64_spill] sm:$0xff] }
 0xd95   : > { %12419 = vmatprep.subr.bf16.mxu1 %v12418_v44  ;;  %v4369_v44 = vld [vmem:[#allocation3 + $0xdc0] sm:$0xff] }
 0xd96   : > { %v12436_v54 = vpack.c.bf16 %v4371_v56, %v4369_v44  ;;  %v16648_v44 = vld [vmem:[#allocation67_spill] sm:$0xff]  ;;  %v16649_v56 = vld [vmem:[#allocation68_spill] sm:$0xff] }
 0xd98   : > { %12421 = vmatpush1.bf16.msra.mxu1 %v12420_v27  ;;  %v12438_v27 = vpack.c.bf16 %v4376_v16, %v4374_v42  ;;  %v16650_v42 = vld [vmem:[#allocation69_spill] sm:$0xff]  ;;  %v16651_v16 = vld [vmem:[#allocation70_spill] sm:$0xff] }
 0xd99   : > { %12423 = vmatprep.subr.bf16.mxu1 %v12422_v26  ;;  %v4373_v26 = vld [vmem:[#allocation3 + $0xde0] sm:$0xff] }
 0xd9a   : > { %v12440_v35 = vpack.c.bf16 %v4375_v2, %v4373_v26  ;;  %v16654_v26 = vld [vmem:[#allocation72_spill] sm:$0xff]  ;;  %v16655_v2 = vld [vmem:[#allocation73_spill] sm:$0xff] }
 0xd9c   : > { %12425 = vmatpush1.bf16.msra.mxu1 %v12424_v62  ;;  %v4665_v62 = vpop.f32.mrb[27].mxu0 }
 0xd9d   : > { %12427 = vmatprep.subr.bf16.mxu1 %v12426_v50 }
 0xda0   : > { %12429 = vmatpush1.bf16.msra.mxu1 %v12428_v63  ;;  %v9915_v63 = vld [vmem:[%s16343_s9 + $0x1c] sm:$0xf] }
 0xda1   : > { %12431 = vmatprep.subr.bf16.mxu1 %v12430_v37  ;;  %v9919_v37 = vld [vmem:[%s16343_s9 + $0x20] sm:$0xf] }
 0xda4   : > { %12433 = vmatpush1.bf16.msra.mxu1 %v12432_v1  ;;  %v16646_v1 = vld [vmem:[#allocation65_spill] sm:$0xff] }
 0xda5   : > { %12435 = vmatprep.subr.bf16.mxu1 %v12434_v60  ;;  %v16647_v60 = vld [vmem:[#allocation66_spill] sm:$0xff] }
 0xda8   : > { %12437 = vmatpush1.bf16.msra.mxu1 %v12436_v54  ;;  %v16652_v54 = vld [vmem:[#allocation71_spill] sm:$0xff] }
 0xda9   : > { %12439 = vmatprep.subr.bf16.mxu1 %v12438_v27  ;;  %v9923_v27 = vld [vmem:[%s16653_s18 + $0x10] sm:$0xff] }
 0xdaa   : > { %11163 = vmatprep.mubr.msk.f32.mxu0 %vm912_vm0, %v9923_v27 }
 0xdac   : > { %12441 = vmatpush1.bf16.msra.mxu1 %v12440_v35  ;;  %v16656_v35 = vld [vmem:[#allocation74_spill] sm:$0xff] }
 0xdae   : > { %v4883_v50 = vpop.f32.mrb[28].mxu0 }
 0xdaf   : > { %4442 = vmatmul.mubr.f32.vlgmr.msra.gmra.mrb[24].mxu1 %v13404_v17  ;;  %v4885_v12 = vpop.f32.mrb[29].mxu0  ;;  %v16657_v17 = vld [vmem:[#allocation91_spill] sm:$0xff] }
 0xdb0   : > { %4523 = vmatprep.mubr.f32.mxu1 %v13575_v41 }
 0xe82   : > { %v4443_v32 = vpop.f32.mrb[24].mxu1 }
 0xe83   : > { %v4445_v59 = vpop.f32.mrb[25].mxu1 }
 0xe84   : > { %9912 = vmatprep.subr.msk.mxu1 %vm919_vm1, %v4445_v59  ;;  %v16663_v59 = vld [vmem:[#allocation97_spill] sm:$0xff] }
 0xe85   : > { %9913 = vmatpush1.msk.msra.mxu1 %vm919_vm1, %v4443_v32  ;;  %v16662_v32 = vld [vmem:[#allocation96_spill] sm:$0xff] }
 0xe86   : > { %9914 = vmatmul.mubr.msk.f32.vlgmr.msra.gmra.mrb[18].mxu1 %vm912_vm0, %v9911_v49  ;;  %9916 = vmatprep.subr.msk.mxu1 %vm919_vm1, %v4665_v62  ;;  %v16659_v62 = vld [vmem:[#allocation93_spill] sm:$0xff]  ;;  %v16664_v49 = vld [vmem:[#allocation98_spill] sm:$0xff] }
 0xe87   : > { %9917 = vmatpush1.msk.msra.mxu1 %vm919_vm1, %v4663_v6  ;;  %4743 = vmatprep.mubr.f32.mxu1 %v13575_v41  ;;  %v16658_v6 = vld [vmem:[#allocation92_spill] sm:$0xff] }
 0xe88   : > { %9920 = vmatprep.subr.msk.mxu1 %vm919_vm1, %v4885_v12  ;;  %v16661_v12 = vld [vmem:[#allocation95_spill] sm:$0xff] }
 0xe8e   : > { %9918 = vmatmul.mubr.msk.f32.vlgmr.msra.gmra.mrb[18].mxu1 %vm912_vm0, %v9915_v63  ;;  %v16665_v63 = vld [vmem:[#allocation99_spill] sm:$0xff] }
 0xe8f   : > { %9921 = vmatpush1.msk.msra.mxu1 %vm919_vm1, %v4883_v50  ;;  %4963 = vmatprep.mubr.f32.mxu1 %v13575_v41  ;;  %v16641_v41 = vld [vmem:[#allocation60_spill] sm:$0xff]  ;;  %v16660_v50 = vld [vmem:[#allocation94_spill] sm:$0xff] }
 0xe90   : > { %12571 = vmatprep.subr.bf16.mxu1 %v13956_v31  ;;  %v4976_v31 = vpop.permute.xlu1 %4975 }
 0xe96   : > { %9922 = vmatmul.mubr.msk.f32.vlgmr.msra.gmra.mrb[18].mxu1 %vm912_vm0, %v9919_v37  ;;  %v16666_v37 = vld [vmem:[#allocation100_spill] sm:$0xff] }
 0xe97   : > { %12573 = vmatpush3.bf16.msra.mxu1 %v13971_v36 }
 0xe98   : > { %12575 = vmatprep.subr.bf16.mxu1 %v14042_v58 }
 0xe9b   : > { %12577 = vmatpush3.bf16.msra.mxu1 %v14050_v61 }
 0xe9c   : > { %12579 = vmatprep.subr.bf16.mxu1 %v14060_v0 }
 0xe9f   : > { %12581 = vmatpush3.bf16.msra.mxu1 %v14071_v5 }
 0xea0   : > { %12583 = vmatprep.subr.bf16.mxu1 %v14082_v10 }
 0xea3   : > { %12585 = vmatpush3.bf16.msra.mxu1 %v14090_v15  ;;  %v16628_v15 = vld [vmem:[#allocation31_spill] sm:$0xff] }
 0xea4   : > { %12587 = vmatprep.subr.bf16.mxu1 %v14100_v18  ;;  %v16629_v18 = vld [vmem:[#allocation32_spill] sm:$0xff] }
 0xea7   : > { %12589 = vmatpush3.bf16.msra.mxu1 %v14108_v23  ;;  %v16630_v23 = vld [vmem:[#allocation33_spill] sm:$0xff] }
 0xea8   : > { %12591 = vmatprep.subr.bf16.mxu1 %v14118_v28  ;;  %v16631_v28 = vld [vmem:[#allocation34_spill] sm:$0xff] }
 0xeab   : > { %12593 = vmatpush3.bf16.msra.mxu1 %v14126_v34  ;;  %v16632_v34 = vld [vmem:[#allocation35_spill] sm:$0xff] }
 0xeac   : > { %12595 = vmatprep.subr.bf16.mxu1 %v14136_v38  ;;  %v16633_v38 = vld [vmem:[#allocation36_spill] sm:$0xff] }
 0xeaf   : > { %12597 = vmatpush3.bf16.msra.mxu1 %v14144_v43  ;;  %v16634_v43 = vld [vmem:[#allocation37_spill] sm:$0xff] }
 0xeb0   : > { %12599 = vmatprep.subr.bf16.mxu1 %v14154_v48  ;;  %v16635_v48 = vld [vmem:[#allocation38_spill] sm:$0xff] }
 0xeb3   : > { %12601 = vmatpush3.bf16.msra.mxu1 %v14162_v53  ;;  %v16636_v53 = vld [vmem:[#allocation39_spill] sm:$0xff] }
 0xeb4   : > { %12603 = vmatprep.subr.bf16.mxu1 %v13865_v3  ;;  %v16612_v3 = vld [vmem:[#allocation15_spill] sm:$0xff] }
 0xf69   : > { %v4965_v36 = vpop.f32.mrb[18].mxu1 }
 0xf6a   : > { %v4978_v58 = vadd.f32 %v4976_v31, %v4965_v36  ;;  %v4967_v61 = vpop.f32.mrb[19].mxu1  ;;  %v16668_v36 = vld [vmem:[#allocation102_spill] sm:$0xff] }
 0xf6b   : > { %v4979_v0 = vadd.f32 %v4976_v31, %v4967_v61  ;;  %v16667_v31 = vld [vmem:[#allocation101_spill] sm:$0xff]  ;;  %v16670_v61 = vld [vmem:[#allocation104_spill] sm:$0xff] }
 0xf6c   : > { %v15572_v10 = vmax.f32 %v4978_v58, 0.0  ;;  %v16669_v58 = vld [vmem:[#allocation103_spill] sm:$0xff] }
 0xf6d   : > { %v15570_v5 = vmax.f32 %v4979_v0, 0.0  ;;  %v16671_v0 = vld [vmem:[#allocation105_spill] sm:$0xff] }
 0xf6f   : > { %5046 = vmatprep.mubr.f32.mxu1 %v15570_v5 }
 0xf70   : > { %5047 = vmatmul.mubr.f32.vlgmr.msra.gmra.mrb[26].mxu1 %v15572_v10 }
 0xf71   : > { %12605 = vmatpush3.bf16.msra.mxu1 %v13876_v7  ;;  %5118 = vmatprep.mubr.f32.mxu1 %v15570_v5  ;;  %v16613_v7 = vld [vmem:[#allocation16_spill] sm:$0xff] }
 0xf72   : > { %12607 = vmatprep.subr.bf16.mxu1 %v13878_v8  ;;  %v16614_v8 = vld [vmem:[#allocation17_spill] sm:$0xff] }
 0xf75   : > { %12609 = vmatpush3.bf16.msra.mxu1 %v13894_v13  ;;  %v16615_v13 = vld [vmem:[#allocation18_spill] sm:$0xff] }
 0xf76   : > { %12611 = vmatprep.subr.bf16.mxu1 %v13898_v14  ;;  %v16616_v14 = vld [vmem:[#allocation19_spill] sm:$0xff] }
 0xf79   : > { %12613 = vmatpush3.bf16.msra.mxu1 %v13920_v19  ;;  %v16617_v19 = vld [vmem:[#allocation20_spill] sm:$0xff] }
 0xf7a   : > { %12615 = vmatprep.subr.bf16.mxu1 %v13923_v20  ;;  %v16618_v20 = vld [vmem:[#allocation21_spill] sm:$0xff] }
 0xf7d   : > { %12617 = vmatpush3.bf16.msra.mxu1 %v13954_v30  ;;  %v16619_v30 = vld [vmem:[#allocation22_spill] sm:$0xff] }
 0xf7e   : > { %12619 = vmatprep.subr.bf16.mxu1 %v13962_v33  ;;  %v16620_v33 = vld [vmem:[#allocation23_spill] sm:$0xff] }
 0xf81   : > { %12621 = vmatpush3.bf16.msra.mxu1 %v13983_v39  ;;  %v16621_v39 = vld [vmem:[#allocation24_spill] sm:$0xff] }
 0xf82   : > { %12623 = vmatprep.subr.bf16.mxu1 %v13986_v40  ;;  %v16622_v40 = vld [vmem:[#allocation25_spill] sm:$0xff] }
 0xf85   : > { %12625 = vmatpush3.bf16.msra.mxu1 %v14001_v45  ;;  %v16623_v45 = vld [vmem:[#allocation26_spill] sm:$0xff] }
 0xf86   : > { %12627 = vmatprep.subr.bf16.mxu1 %v14004_v46  ;;  %v16624_v46 = vld [vmem:[#allocation27_spill] sm:$0xff] }
 0xf89   : > { %12629 = vmatpush3.bf16.msra.mxu1 %v14019_v51  ;;  %v16625_v51 = vld [vmem:[#allocation28_spill] sm:$0xff] }
 0xf8a   : > { %12631 = vmatprep.subr.bf16.mxu1 %v14022_v52  ;;  %v16626_v52 = vld [vmem:[#allocation29_spill] sm:$0xff] }
 0xf8d   : > { %12633 = vmatpush3.bf16.msra.mxu1 %v14031_v55  ;;  %v16627_v55 = vld [vmem:[#allocation30_spill] sm:$0xff] }
 0xf8e   : > { %12635 = vmatprep.subr.bf16.mxu1 %v14185_v4  ;;  %v16637_v4 = vld [vmem:[#allocation40_spill] sm:$0xff] }
 0xf90   : > { %5119 = vmatmul.mubr.f32.vlgmr.msra.gmra.mrb[28].mxu1 %v15572_v10 }
 0xf91   : > { %12637 = vmatpush3.bf16.msra.mxu1 %v14190_v9  ;;  %5359 = vmatprep.mubr.f32.mxu1 %v15570_v5  ;;  %v16638_v9 = vld [vmem:[#allocation41_spill] sm:$0xff] }
 0xf92   : > { %12639 = vmatprep.subr.bf16.mxu1 %v14193_v11  ;;  %v16639_v11 = vld [vmem:[#allocation42_spill] sm:$0xff] }
 0xf95   : > { %12641 = vmatpush3.bf16.msra.mxu1 %v14211_v22  ;;  %v16640_v22 = vld [vmem:[#allocation59_spill] sm:$0xff] }
 0xf96   : > { %12643 = vmatprep.subr.bf16.mxu1 %v16612_v3  ;;  %v16672_v3 = vld [vmem:[#allocation106_spill] sm:$0xff] }
 0xf99   : > { %12645 = vmatpush3.bf16.msra.mxu1 %v16613_v7 }
 0xf9a   : > { %12647 = vmatprep.subr.bf16.mxu1 %v16614_v8 }
 0xf9d   : > { %12649 = vmatpush3.bf16.msra.mxu1 %v16615_v13 }
 0xf9e   : > { %12651 = vmatprep.subr.bf16.mxu1 %v16616_v14 }
 0xfa1   : > { %12653 = vmatpush3.bf16.msra.mxu1 %v16617_v19 }
 0xfa2   : > { %12655 = vmatprep.subr.bf16.mxu1 %v16618_v20 }
 0xfa5   : > { %12657 = vmatpush3.bf16.msra.mxu1 %v16619_v30  ;;  %v9924_v30 = vld [vmem:[%s16653_s18 + $0x18] sm:$0xff] }
 0xfa6   : > { %12659 = vmatprep.subr.bf16.mxu1 %v16620_v33  ;;  %v5052_v33 = vld [vmem:[%s16653_s18] sm:$0xff] }
 0xfa9   : > { %12661 = vmatpush3.bf16.msra.mxu1 %v16621_v39  ;;  %v5053_v39 = vld [vmem:[%s16653_s18 + $0x8] sm:$0xff] }
 0xfaa   : > { %12663 = vmatprep.subr.bf16.mxu1 %v16622_v40  ;;  %v9931_v40 = vld [vmem:[%s16653_s18 + $0x20] sm:$0xff] }
 0xfad   : > { %12665 = vmatpush3.bf16.msra.mxu1 %v16623_v45 }
 0xfae   : > { %12699 = vmatprep.subr.bf16.mxu1 %v16624_v46 }
 0xfb0   : > { %5360 = vmatmul.mubr.f32.vlgmr.msra.gmra.mrb[30].mxu1 %v15572_v10 }
 0xfb1   : > { %12701 = vmatpush3.bf16.msra.mxu1 %v16625_v51  ;;  %5677 = vmatprep.mubr.f32.mxu1 %v15570_v5 }
 0xfb2   : > { %12703 = vmatprep.subr.bf16.mxu1 %v16626_v52  ;;  %v9932_v52 = vld [vmem:[%s16653_s18 + $0x28] sm:$0xff] }
 0xfb5   : > { %12705 = vmatpush3.bf16.msra.mxu1 %v16627_v55  ;;  %v16673_v55 = vld [vmem:[#allocation43_spill] sm:$0xff] }
 0xfb6   : > { %12707 = vmatprep.subr.bf16.mxu1 %v16628_v15  ;;  %v16674_v15 = vld [vmem:[#allocation44_spill] sm:$0xff] }
 0xfb9   : > { %12709 = vmatpush3.bf16.msra.mxu1 %v16629_v18  ;;  %v16675_v18 = vld [vmem:[#allocation45_spill] sm:$0xff] }
 0xfba   : > { %12711 = vmatprep.subr.bf16.mxu1 %v16630_v23  ;;  %v16676_v23 = vld [vmem:[#allocation46_spill] sm:$0xff] }
 0xfbd   : > { %12713 = vmatpush3.bf16.msra.mxu1 %v16631_v28  ;;  %v16677_v28 = vld [vmem:[#allocation47_spill] sm:$0xff] }
 0xfbe   : > { %12715 = vmatprep.subr.bf16.mxu1 %v16632_v34  ;;  %v16678_v34 = vld [vmem:[#allocation48_spill] sm:$0xff] }
 0xfc1   : > { %12717 = vmatpush3.bf16.msra.mxu1 %v16633_v38  ;;  %v16679_v38 = vld [vmem:[#allocation49_spill] sm:$0xff] }
 0xfc2   : > { %12719 = vmatprep.subr.bf16.mxu1 %v16634_v43  ;;  %v16680_v43 = vld [vmem:[#allocation50_spill] sm:$0xff] }
 0xfc5   : > { %12721 = vmatpush3.bf16.msra.mxu1 %v16635_v48  ;;  %v16681_v48 = vld [vmem:[#allocation51_spill] sm:$0xff] }
 0xfc6   : > { %12723 = vmatprep.subr.bf16.mxu1 %v16636_v53  ;;  %v16682_v53 = vld [vmem:[#allocation52_spill] sm:$0xff] }
 0xfc9   : > { %12725 = vmatpush3.bf16.msra.mxu1 %v16637_v4  ;;  %v16683_v4 = vld [vmem:[#allocation53_spill] sm:$0xff] }
 0xfca   : > { %12727 = vmatprep.subr.bf16.mxu1 %v16638_v9  ;;  %v16684_v9 = vld [vmem:[#allocation54_spill] sm:$0xff] }
 0xfcd   : > { %12729 = vmatpush3.bf16.msra.mxu1 %v16639_v11  ;;  %v16685_v11 = vld [vmem:[#allocation55_spill] sm:$0xff] }
 0xfce   : > { %12763 = vmatprep.subr.bf16.mxu1 %v16640_v22  ;;  %v16686_v22 = vld [vmem:[#allocation56_spill] sm:$0xff] }
 0xfd0   : > { %5678 = vmatmul.mubr.f32.vlgmr.msra.gmra.mrb[32].mxu1 %v15572_v10 }
 0xfd1   : > { %12765 = vmatpush3.bf16.msra.mxu1 %v16641_v41  ;;  %5995 = vmatprep.mubr.f32.mxu1 %v15570_v5 }
 0xfd2   : > { %12767 = vmatprep.subr.bf16.mxu1 %v16642_v25  ;;  %v16687_v25 = vld [vmem:[#allocation57_spill] sm:$0xff] }
 0xfd5   : > { %12769 = vmatpush3.bf16.msra.mxu1 %v16643_v24 }
 0xfd6   : > { %12771 = vmatprep.subr.bf16.mxu1 %v16644_v47 }
 0xfd9   : > { %12773 = vmatpush3.bf16.msra.mxu1 %v16645_v21  ;;  %v16688_v21 = vld [vmem:[#allocation58_spill] sm:$0xff] }
 0xfda   : > { %12775 = vmatprep.subr.bf16.mxu1 %v16646_v1 }
 0xfdd   : > { %12777 = vmatpush3.bf16.msra.mxu1 %v16647_v60 }
 0xfde   : > { %12779 = vmatprep.subr.bf16.mxu1 %v16648_v44 }
 0xfe1   : > { %12781 = vmatpush3.bf16.msra.mxu1 %v16649_v56 }
 0xfe2   : > { %12783 = vmatprep.subr.bf16.mxu1 %v16650_v42 }
 0xfe5   : > { %12785 = vmatpush3.bf16.msra.mxu1 %v16651_v16 }
 0xfe6   : > { %12787 = vmatprep.subr.bf16.mxu1 %v16652_v54  ;;  %v9936_v54 = vld [vmem:[%s16653_s18 + $0x30] sm:$0xff] }
 0xfe9   : > { %12789 = vmatpush3.bf16.msra.mxu1 %v16654_v26 }
 0xfea   : > { %12791 = vmatprep.subr.bf16.mxu1 %v16655_v2 }
 0xfed   : > { %12793 = vmatpush3.bf16.msra.mxu1 %v16656_v35  ;;  %v9937_v35 = vld [vmem:[%s16653_s18 + $0x38] sm:$0xff] }
 0xfee   : > { %12827 = vmatprep.subr.bf16.mxu1 %v16657_v17  ;;  %v9941_v17 = vld [vmem:[%s16653_s18 + $0x40] sm:$0xff] }
 0xff0   : > { %5996 = vmatmul.mubr.f32.vlgmr.msra.gmra.mrb[34].mxu1 %v15572_v10 }
 0xff1   : > { %12829 = vmatpush3.bf16.msra.mxu1 %v16658_v6  ;;  %6313 = vmatprep.mubr.f32.mxu1 %v15570_v5  ;;  %v16689_v6 = vld [vmem:[#allocation75_spill] sm:$0xff] }
 0xff2   : > { %12831 = vmatprep.subr.bf16.mxu1 %v16659_v62  ;;  %v9942_v62 = vld [vmem:[%s16653_s18 + $0x48] sm:$0xff] }
 0xff5   : > { %12833 = vmatpush3.bf16.msra.mxu1 %v16660_v50  ;;  %v16690_v50 = vld [vmem:[#allocation76_spill] sm:$0xff] }
 0xff6   : > { %12835 = vmatprep.subr.bf16.mxu1 %v16661_v12  ;;  %v16691_v12 = vld [vmem:[#allocation77_spill] sm:$0xff] }
 0xff9   : > { %12837 = vmatpush3.bf16.msra.mxu1 %v16662_v32  ;;  %v16692_v32 = vld [vmem:[#allocation78_spill] sm:$0xff] }
 0xffa   : > { %12839 = vmatprep.subr.bf16.mxu1 %v16663_v59  ;;  %v16693_v59 = vld [vmem:[#allocation79_spill] sm:$0xff] }
 0xffd   : > { %12841 = vmatpush3.bf16.msra.mxu1 %v16664_v49  ;;  %v16694_v49 = vld [vmem:[#allocation80_spill] sm:$0xff] }
 0xffe   : > { %12843 = vmatprep.subr.bf16.mxu1 %v16665_v63  ;;  %v16695_v63 = vld [vmem:[#allocation81_spill] sm:$0xff] }
0x1001   : > { %12845 = vmatpush3.bf16.msra.mxu1 %v16666_v37  ;;  %v16696_v37 = vld [vmem:[#allocation82_spill] sm:$0xff] }
0x1002   : > { %12847 = vmatprep.subr.bf16.mxu1 %v16667_v31  ;;  %v16697_v31 = vld [vmem:[#allocation83_spill] sm:$0xff] }
0x1005   : > { %12849 = vmatpush3.bf16.msra.mxu1 %v16668_v36  ;;  %v16698_v36 = vld [vmem:[#allocation84_spill] sm:$0xff] }
0x1006   : > { %12851 = vmatprep.subr.bf16.mxu1 %v16669_v58  ;;  %v16699_v58 = vld [vmem:[#allocation85_spill] sm:$0xff] }
0x1009   : > { %12853 = vmatpush3.bf16.msra.mxu1 %v16670_v61  ;;  %v16700_v61 = vld [vmem:[#allocation86_spill] sm:$0xff] }
0x100a   : > { %12855 = vmatprep.subr.bf16.mxu1 %v16671_v0  ;;  %v16701_v0 = vld [vmem:[#allocation87_spill] sm:$0xff] }
0x100d   : > { %12857 = vmatpush3.bf16.msra.mxu1 %v16672_v3  ;;  %v16702_v3 = vld [vmem:[#allocation88_spill] sm:$0xff] }
0x1010   : > { %6314 = vmatmul.mubr.f32.vlgmr.msra.gmra.mrb[36].mxu1 %v15572_v10 }
0x1043   : > { %v10507_v7 = vpop.f32.mrb[26].mxu1 }
0x1044   : > { %v10508_v8 = vpop.f32.mrb[27].mxu1 }
0x1045   : > { %v10509_v13 = vadd.f32 %v10508_v8, %v10507_v7  ;;  %v16703_v7 = vld [vmem:[#allocation89_spill] sm:$0xff]  ;;  %v16704_v8 = vld [vmem:[#allocation90_spill] sm:$0xff] }
0x1063   : > { %v10542_v14 = vpop.f32.mrb[28].mxu1 }
0x1064   : > { %v10543_v19 = vpop.f32.mrb[29].mxu1 }
0x1065   : > { %v10544_v20 = vadd.f32 %v10543_v19, %v10542_v14 }
0x1067   : > { %11161 = vmatprep.subr.msk.mxu0 %vm919_vm1, %v10544_v20 }
0x1068   : > { %11162 = vmatpush3.msk.msra.mxu0 %vm919_vm1, %v10544_v20 }
0x1069   : > { %11166 = vmatprep.subr.msk.mxu0 %vm919_vm1, %v10509_v13  ;;  %11164 = vmatmul.mubr.msk.f32.vlgmr.msra.gmra.mrb[30].mxu0 %vm912_vm0, %v9924_v30  ;;  %v9947_v30 = vld [vmem:[%s16653_s18 + $0x58] sm:$0xff] }
0x106a   : > { %11167 = vmatpush3.msk.msra.mxu0 %vm919_vm1, %v10509_v13  ;;  %11168 = vmatprep.mubr.msk.f32.mxu0 %vm912_vm0, %v5052_v33  ;;  %v9946_v13 = vld [vmem:[%s16653_s18 + $0x50] sm:$0xff]  ;;  %v9951_v33 = vld [vmem:[%s16653_s18 + $0x60] sm:$0xff] }
0x1071   : > { %11169 = vmatmul.mubr.msk.f32.vlgmr.msra.gmra.mrb[30].mxu0 %vm912_vm0, %v5053_v39  ;;  %v16705_v39 = vld [vmem:[#allocation107_spill] sm:$0xff] }
0x1072   : > { %11173 = vmatprep.mubr.msk.f32.mxu0 %vm912_vm0, %v9931_v40  ;;  %v9952_v40 = vld [vmem:[%s16653_s18 + $0x68] sm:$0xff] }
0x1083   : > { %v10583_v45 = vpop.f32.mrb[30].mxu1 }
0x1084   : > { %v10584_v46 = vpop.f32.mrb[31].mxu1 }
0x1085   : > { %v10585_v51 = vadd.f32 %v10584_v46, %v10583_v45  ;;  %v16706_v45 = vld [vmem:[#allocation108_spill] sm:$0xff]  ;;  %v16707_v46 = vld [vmem:[#allocation109_spill] sm:$0xff] }
0x1087   : > { %11171 = vmatprep.subr.msk.mxu0 %vm919_vm1, %v10585_v51 }
0x1088   : > { %11172 = vmatpush3.msk.msra.mxu0 %vm919_vm1, %v10585_v51  ;;  %v16708_v51 = vld [vmem:[#allocation110_spill] sm:$0xff] }
0x1089   : > { %11174 = vmatmul.mubr.msk.f32.vlgmr.msra.gmra.mrb[30].mxu0 %vm912_vm0, %v9932_v52  ;;  %12667 = vmatprep.subr.bf16.mxu0 %v16673_v55  ;;  %v16709_v52 = vld [vmem:[#allocation111_spill] sm:$0xff]  ;;  %v16710_v55 = vld [vmem:[#allocation112_spill] sm:$0xff] }
0x108a   : > { %12669 = vmatpush3.bf16.msra.mxu0 %v16674_v15  ;;  %5518 = vmatprep.mubr.f32.mxu0 %v15570_v5  ;;  %v16711_v15 = vld [vmem:[#allocation113_spill] sm:$0xff] }
0x108b   : > { %12671 = vmatprep.subr.bf16.mxu0 %v16675_v18  ;;  %v16712_v18 = vld [vmem:[#allocation114_spill] sm:$0xff] }
0x108e   : > { %12673 = vmatpush3.bf16.msra.mxu0 %v16676_v23  ;;  %v16713_v23 = vld [vmem:[#allocation115_spill] sm:$0xff] }
0x108f   : > { %12675 = vmatprep.subr.bf16.mxu0 %v16677_v28  ;;  %v16714_v28 = vld [vmem:[#allocation116_spill] sm:$0xff] }
0x1092   : > { %12677 = vmatpush3.bf16.msra.mxu0 %v16678_v34  ;;  %v16715_v34 = vld [vmem:[#allocation117_spill] sm:$0xff] }
0x1093   : > { %12679 = vmatprep.subr.bf16.mxu0 %v16679_v38  ;;  %v16716_v38 = vld [vmem:[#allocation118_spill] sm:$0xff] }
0x1096   : > { %12681 = vmatpush3.bf16.msra.mxu0 %v16680_v43  ;;  %v16718_v43 = vld [vmem:[#allocation120_spill] sm:$0xff] }
0x1097   : > { %12683 = vmatprep.subr.bf16.mxu0 %v16681_v48  ;;  %v16719_v48 = vld [vmem:[#allocation121_spill] sm:$0xff] }
0x109a   : > { %12685 = vmatpush3.bf16.msra.mxu0 %v16682_v53  ;;  %v16720_v53 = vld [vmem:[#allocation122_spill] sm:$0xff] }
0x109b   : > { %12687 = vmatprep.subr.bf16.mxu0 %v16683_v4  ;;  %v9956_v4 = vld [vmem:[%s16653_s18 + $0x70] sm:$0xff] }
0x109e   : > { %12689 = vmatpush3.bf16.msra.mxu0 %v16684_v9  ;;  %v6424_v9 = vld [vmem:[%s16721_s23] sm:$0xff] }
0x109f   : > { %12691 = vmatprep.subr.bf16.mxu0 %v16685_v11  ;;  %v6425_v11 = vld [vmem:[%s16721_s23 + $0x8] sm:$0xff] }
0x10a2   : > { %12693 = vmatpush3.bf16.msra.mxu0 %v16686_v22  ;;  %v12858_v22 = vpack.c.bf16 %v6425_v11, %v6424_v9  ;;  %v10009_v9 = vld [vmem:[%s16721_s23 + $0xd8] sm:$0xff] }
0x10a3   : > { %v10659_v41 = vpop.f32.mrb[32].mxu1  ;;  %12695 = vmatprep.subr.bf16.mxu0 %v16687_v25 }
0x10a4   : > { %v10660_v24 = vpop.f32.mrb[33].mxu1  ;;  %12875 = vmatprep.subr.bf16.mxu1 %v12858_v22 }
0x10a5   : > { %v10661_v47 = vadd.f32 %v10660_v24, %v10659_v41  ;;  %12877 = vmatpush3.bf16.msra.mxu1 %v12858_v22  ;;  %v6427_v41 = vld [vmem:[%s16721_s23 + $0x18] sm:$0xff]  ;;  %v6428_v24 = vld [vmem:[%s16721_s23 + $0x20] sm:$0xff] }
0x10a6   : > { %12697 = vmatpush3.bf16.msra.mxu0 %v16688_v21 }
0x10a9   : > { %5519 = vmatmul.mubr.f32.vlgmr.msra.gmra.mrb[32].mxu0 %v15572_v10 }
0x10aa   : > { %11178 = vmatprep.mubr.msk.f32.mxu0 %vm912_vm0, %v9936_v54 }
0x10c3   : > { %v10735_v1 = vpop.f32.mrb[34].mxu1 }
0x10c4   : > { %v10736_v60 = vpop.f32.mrb[35].mxu1 }
0x10c5   : > { %v10737_v44 = vadd.f32 %v10736_v60, %v10735_v1  ;;  %v6430_v1 = vld [vmem:[%s16721_s23 + $0x30] sm:$0xff]  ;;  %v6431_v60 = vld [vmem:[%s16721_s23 + $0x38] sm:$0xff] }
0x10e3   : > { %v10811_v56 = vpop.f32.mrb[36].mxu1 }
0x10e4   : > { %v10812_v42 = vpop.f32.mrb[37].mxu1 }
0x10e5   : > { %v15713_v16 = vadd.f32 %v10812_v42, %v10811_v56 }
0x117c   : > { %v10621_v27 = vpop.f32.mrb[32].mxu0 }
0x117d   : > { %v10622_v26 = vpop.f32.mrb[33].mxu0 }
0x117e   : > { %v10623_v2 = vadd.f32 %v10622_v26, %v10621_v27  ;;  %v9957_v27 = vld [vmem:[%s16653_s18 + $0x78] sm:$0xff]  ;;  %v9961_v26 = vld [vmem:[%s16653_s18 + $0x80] sm:$0xff] }
0x1180   : > { %11176 = vmatprep.subr.msk.mxu0 %vm919_vm1, %v10623_v2 }
0x1181   : > { %11177 = vmatpush3.msk.msra.mxu0 %vm919_vm1, %v10623_v2  ;;  %v2990_v2 = vstv %s2442_s20 }
0x1182   : > { %11179 = vmatmul.mubr.msk.f32.vlgmr.msra.gmra.mrb[30].mxu0 %vm912_vm0, %v9937_v35  ;;  %11181 = vmatprep.subr.msk.mxu0 %vm919_vm1, %v10661_v47  ;;  %v2991_v35 = vmul.f32 %v2990_v2, %v15459_v29  ;;  %v16723_v29 = vld [vmem:[#allocation123_spill] sm:$0xff] }
0x1183   : > { %11182 = vmatpush3.msk.msra.mxu0 %vm919_vm1, %v10661_v47  ;;  %11183 = vmatprep.mubr.msk.f32.mxu0 %vm912_vm0, %v9941_v17  ;;  %v6429_v47 = vld [vmem:[%s16721_s23 + $0x28] sm:$0xff] }
0x1184   : > { %12731 = vmatprep.subr.bf16.mxu0 %v16689_v6  ;;  %v12866_v21 = vpack.c.bf16 %v6429_v47, %v6428_v24  ;;  %v9962_v17 = vld [vmem:[%s16653_s18 + $0x88] sm:$0xff]  ;;  %v10013_v24 = vld [vmem:[%s16721_s23 + $0xf8] sm:$0xff] }
0x1185   : > { %v16722_v6 = vld [vmem:[#allocation124_spill] sm:$0xff] }
0x118a   : > { %11184 = vmatmul.mubr.msk.f32.vlgmr.msra.gmra.mrb[30].mxu0 %vm912_vm0, %v9942_v62  ;;  %v15838_v62 = vadd.f32 %v2991_v35, %v16722_v6  ;;  %v10029_v35 = vld [vmem:[%s16721_s23 + $0x138] sm:$0xff]  ;;  %v10038_v6 = vld [vmem:[%s16721_s23 + $0x140] sm:$0xff] }
0x118b   : > { %12733 = vmatpush3.bf16.msra.mxu0 %v16690_v50  ;;  %5836 = vmatprep.mubr.f32.mxu0 %v15570_v5 }
0x118c   : > { %12735 = vmatprep.subr.bf16.mxu0 %v16691_v12  ;;  %v9974_v12 = vld [vmem:[%s16721_s23 + $0x40] sm:$0xff] }
0x118f   : > { %12737 = vmatpush3.bf16.msra.mxu0 %v16692_v32  ;;  %v9975_v32 = vld [vmem:[%s16721_s23 + $0x48] sm:$0xff] }
0x1190   : > { %12739 = vmatprep.subr.bf16.mxu0 %v16693_v59  ;;  %v15855_v59 = vpack.c.bf16 %v9975_v32, %v9974_v12  ;;  %v10040_v12 = vld [vmem:[%s16721_s23 + $0x150] sm:$0xff]  ;;  %v10041_v32 = vld [vmem:[%s16721_s23 + $0x158] sm:$0xff] }
0x1193   : > { %12741 = vmatpush3.bf16.msra.mxu0 %v16694_v49 }
0x1194   : > { %12743 = vmatprep.subr.bf16.mxu0 %v16695_v63 }
0x1197   : > { %12745 = vmatpush3.bf16.msra.mxu0 %v16696_v37 }
0x1198   : > { %12747 = vmatprep.subr.bf16.mxu0 %v16697_v31 }
0x119b   : > { %12749 = vmatpush3.bf16.msra.mxu0 %v16698_v36 }
0x119c   : > { %12751 = vmatprep.subr.bf16.mxu0 %v16699_v58  ;;  %v9976_v58 = vld [vmem:[%s16721_s23 + $0x50] sm:$0xff] }
0x119f   : > { %12753 = vmatpush3.bf16.msra.mxu0 %v16700_v61  ;;  %v9977_v61 = vld [vmem:[%s16721_s23 + $0x58] sm:$0xff] }
0x11a0   : > { %12755 = vmatprep.subr.bf16.mxu0 %v16701_v0 }
0x11a3   : > { %12757 = vmatpush3.bf16.msra.mxu0 %v16702_v3 }
0x11a4   : > { %12759 = vmatprep.subr.bf16.mxu0 %v16703_v7  ;;  %v15871_v7 = vpack.c.bf16 %v9977_v61, %v9976_v58  ;;  %v10054_v61 = vld [vmem:[%s16721_s23 + $0x180] sm:$0xff] }
0x11a7   : > { %12761 = vmatpush3.bf16.msra.mxu0 %v16704_v8  ;;  %v9978_v8 = vld [vmem:[%s16721_s23 + $0x60] sm:$0xff] }
0x11aa   : > { %5837 = vmatmul.mubr.f32.vlgmr.msra.gmra.mrb[34].mxu0 %v15572_v10 }
0x11ab   : > { %11188 = vmatprep.mubr.msk.f32.mxu0 %vm912_vm0, %v9946_v13  ;;  %v9979_v13 = vld [vmem:[%s16721_s23 + $0x68] sm:$0xff] }
0x127d   : > { %v10697_v14 = vpop.f32.mrb[34].mxu0 }
0x127e   : > { %v10698_v19 = vpop.f32.mrb[35].mxu0 }
0x127f   : > { %v10699_v20 = vadd.f32 %v10698_v19, %v10697_v14  ;;  %v15890_v14 = vpack.c.bf16 %v9979_v13, %v9978_v8  ;;  %v9980_v19 = vld [vmem:[%s16721_s23 + $0x70] sm:$0xff]  ;;  %v10055_v8 = vld [vmem:[%s16721_s23 + $0x188] sm:$0xff] }
0x1280   : > { %v6596_v13 = vld [vmem:[#allocation7] sm:$0xff] }
0x1281   : > { %11186 = vmatprep.subr.msk.mxu0 %vm919_vm1, %v10699_v20 }
0x1282   : > { %11187 = vmatpush3.msk.msra.mxu0 %vm919_vm1, %v10699_v20  ;;  %v9981_v20 = vld [vmem:[%s16721_s23 + $0x78] sm:$0xff] }
0x1283   : > { %11189 = vmatmul.mubr.msk.f32.vlgmr.msra.gmra.mrb[30].mxu0 %vm912_vm0, %v9947_v30  ;;  %11191 = vmatprep.subr.msk.mxu0 %vm919_vm1, %v10737_v44  ;;  %v15900_v30 = vpack.c.bf16 %v9981_v20, %v9980_v19  ;;  %v13098_v19 = vpack.c.bf16 %v10055_v8, %v10054_v61  ;;  %v10056_v20 = vld [vmem:[%s16721_s23 + $0x190] sm:$0xff] }
0x1284   : > { %11192 = vmatpush3.msk.msra.mxu0 %vm919_vm1, %v10737_v44  ;;  %11193 = vmatprep.mubr.msk.f32.mxu0 %vm912_vm0, %v9951_v33  ;;  %v12870_v44 = vpack.c.bf16 %v6431_v60, %v6430_v1  ;;  %v9990_v33 = vld [vmem:[%s16721_s23 + $0x80] sm:$0xff]  ;;  %v10023_v1 = vld [vmem:[%s16721_s23 + $0x108] sm:$0xff]  ;;  %v6845_v61 = vld [vmem:[#allocation5 + $0x10] sm:$0xff] }
0x1285   : > { %12795 = vmatprep.subr.bf16.mxu0 %v16705_v39  ;;  %v9991_v39 = vld [vmem:[%s16721_s23 + $0x88] sm:$0xff] }
0x128b   : > { %11194 = vmatmul.mubr.msk.f32.vlgmr.msra.gmra.mrb[30].mxu0 %vm912_vm0, %v9952_v40 }
0x128c   : > { %12797 = vmatpush3.bf16.msra.mxu0 %v16706_v45  ;;  %6154 = vmatprep.mubr.f32.mxu0 %v15570_v5  ;;  %v16717_v5 = vld [vmem:[#allocation119_spill] sm:$0xff] }
0x128d   : > { %12799 = vmatprep.subr.bf16.mxu0 %v16707_v46  ;;  %v12938_v46 = vpack.c.bf16 %v9991_v39, %v9990_v33  ;;  %v10057_v33 = vld [vmem:[%s16721_s23 + $0x198] sm:$0xff] }
0x128e   : > { %v13102_v39 = vpack.c.bf16 %v10057_v33, %v10056_v20  ;;  %v6846_v20 = vld [vmem:[#allocation5 + $0x18] sm:$0xff] }
0x1290   : > { %12801 = vmatpush3.bf16.msra.mxu0 %v16708_v51 }
0x1291   : > { %12803 = vmatprep.subr.bf16.mxu0 %v16709_v52  ;;  %v9992_v52 = vld [vmem:[%s16721_s23 + $0x90] sm:$0xff] }
0x1294   : > { %12805 = vmatpush3.bf16.msra.mxu0 %v16710_v55  ;;  %v9993_v55 = vld [vmem:[%s16721_s23 + $0x98] sm:$0xff] }
0x1295   : > { %12807 = vmatprep.subr.bf16.mxu0 %v16711_v15  ;;  %v12942_v15 = vpack.c.bf16 %v9993_v55, %v9992_v52  ;;  %v10060_v52 = vld [vmem:[%s16721_s23 + $0x1b0] sm:$0xff]  ;;  %v10061_v55 = vld [vmem:[%s16721_s23 + $0x1b8] sm:$0xff] }
0x1298   : > { %12809 = vmatpush3.bf16.msra.mxu0 %v16712_v18  ;;  %v9994_v18 = vld [vmem:[%s16721_s23 + $0xa0] sm:$0xff] }
0x1299   : > { %12811 = vmatprep.subr.bf16.mxu0 %v16713_v23  ;;  %v9995_v23 = vld [vmem:[%s16721_s23 + $0xa8] sm:$0xff] }
0x129c   : > { %12813 = vmatpush3.bf16.msra.mxu0 %v16714_v28  ;;  %v12946_v28 = vpack.c.bf16 %v9995_v23, %v9994_v18  ;;  %v10070_v18 = vld [vmem:[%s16721_s23 + $0x1c0] sm:$0xff]  ;;  %v10071_v23 = vld [vmem:[%s16721_s23 + $0x1c8] sm:$0xff] }
0x129d   : > { %12815 = vmatprep.subr.bf16.mxu0 %v16715_v34  ;;  %v9996_v34 = vld [vmem:[%s16721_s23 + $0xb0] sm:$0xff] }
0x12a0   : > { %12817 = vmatpush3.bf16.msra.mxu0 %v16716_v38  ;;  %v9997_v38 = vld [vmem:[%s16721_s23 + $0xb8] sm:$0xff] }
0x12a1   : > { %12819 = vmatprep.subr.bf16.mxu0 %v16717_v5  ;;  %v12950_v5 = vpack.c.bf16 %v9997_v38, %v9996_v34  ;;  %v10072_v34 = vld [vmem:[%s16721_s23 + $0x1d0] sm:$0xff]  ;;  %v10073_v38 = vld [vmem:[%s16721_s23 + $0x1d8] sm:$0xff] }
0x12a4   : > { %12821 = vmatpush3.bf16.msra.mxu0 %v16718_v43  ;;  %v10006_v43 = vld [vmem:[%s16721_s23 + $0xc0] sm:$0xff] }
0x12a5   : > { %12823 = vmatprep.subr.bf16.mxu0 %v16719_v48  ;;  %v10007_v48 = vld [vmem:[%s16721_s23 + $0xc8] sm:$0xff] }
0x12a8   : > { %12825 = vmatpush3.bf16.msra.mxu0 %v16720_v53  ;;  %v15945_v53 = vpack.c.bf16 %v10007_v48, %v10006_v43  ;;  %v10074_v43 = vld [vmem:[%s16721_s23 + $0x1e0] sm:$0xff]  ;;  %v10075_v48 = vld [vmem:[%s16721_s23 + $0x1e8] sm:$0xff] }
0x12ab   : > { %6155 = vmatmul.mubr.f32.vlgmr.msra.gmra.mrb[36].mxu0 %v15572_v10  ;;  %v6426_v10 = vld [vmem:[%s16721_s23 + $0x10] sm:$0xff] }
0x12ac   : > { %11198 = vmatprep.mubr.msk.f32.mxu0 %vm912_vm0, %v9956_v4  ;;  %v12862_v25 = vpack.c.bf16 %v6427_v41, %v6426_v10  ;;  %v10008_v4 = vld [vmem:[%s16721_s23 + $0xd0] sm:$0xff]  ;;  %v10011_v10 = vld [vmem:[%s16721_s23 + $0xe8] sm:$0xff] }
0x12ad   : > { %v15954_v11 = vpack.c.bf16 %v10009_v9, %v10008_v4  ;;  %v16133_v4 = vpack.c.bf16 %v10075_v48, %v10074_v43  ;;  %v10076_v9 = vld [vmem:[%s16721_s23 + $0x1f0] sm:$0xff] }
0x12ae   : > { %12879 = vmatprep.subr.bf16.mxu1 %v12862_v25 }
0x12af   : > { %12881 = vmatpush3.bf16.msra.mxu1 %v12862_v25 }
0x12b0   : > { %12883 = vmatprep.subr.bf16.mxu1 %v12866_v21 }
0x12b3   : > { %12885 = vmatpush3.bf16.msra.mxu1 %v12866_v21 }
0x12b4   : > { %12887 = vmatprep.subr.bf16.mxu1 %v12870_v44 }
0x12b7   : > { %12889 = vmatpush3.bf16.msra.mxu1 %v12870_v44 }
0x12b8   : > { %12899 = vmatprep.subr.bf16.mxu1 %v15855_v59 }
0x137e   : > { %v10773_v56 = vpop.f32.mrb[36].mxu0 }
0x137f   : > { %v10774_v42 = vpop.f32.mrb[37].mxu0 }
0x1380   : > { %v10775_v54 = vadd.f32 %v10774_v42, %v10773_v56  ;;  %v10025_v56 = vld [vmem:[%s16721_s23 + $0x118] sm:$0xff] }
0x1382   : > { %11196 = vmatprep.subr.msk.mxu0 %vm919_vm1, %v10775_v54 }
0x1383   : > { %11197 = vmatpush3.msk.msra.mxu0 %vm919_vm1, %v10775_v54  ;;  %v10026_v54 = vld [vmem:[%s16721_s23 + $0x120] sm:$0xff] }
0x1384   : > { %11199 = vmatmul.mubr.msk.f32.vlgmr.msra.gmra.mrb[30].mxu0 %vm912_vm0, %v9957_v27  ;;  %11201 = vmatprep.subr.msk.mxu0 %vm919_vm1, %v15713_v16  ;;  %v10027_v27 = vld [vmem:[%s16721_s23 + $0x128] sm:$0xff] }
0x1385   : > { %11202 = vmatpush3.msk.msra.mxu0 %vm919_vm1, %v15713_v16  ;;  %11203 = vmatprep.mubr.msk.f32.mxu0 %vm912_vm0, %v9961_v26  ;;  %v2992_v16 = vmul.f32 %v15457_v57, %v2990_v2  ;;  %v6413_v57 = vpop.permute.xlu1 %6412  ;;  %v16012_v26 = vpack.c.bf16 %v10027_v27, %v10026_v54  ;;  %v10028_v2 = vld [vmem:[%s16721_s23 + $0x130] sm:$0xff]  ;;  %v10090_v54 = vld [vmem:[%s16721_s23 + $0x220] sm:$0xff]  ;;  %v10091_v27 = vld [vmem:[%s16721_s23 + $0x228] sm:$0xff] }
0x1386   : > { %12859 = vmatprep.subr.bf16.mxu0 %v12858_v22 }
0x1387   : > { %v15845_v50 = vadd.f32 %v2992_v16, %v16723_v29  ;;  %v10039_v16 = vld [vmem:[%s16721_s23 + $0x148] sm:$0xff] }
0x1388   : > { %v16032_v29 = vpack.c.bf16 %v10039_v16, %v10038_v6  ;;  %v10093_v6 = vld [vmem:[%s16721_s23 + $0x238] sm:$0xff] }
0x1389   : > { %v6418_v49 = vpop.permute.xlu1 %6417 }
0x138c   : > { %11204 = vmatmul.mubr.msk.f32.vlgmr.msra.gmra.mrb[30].mxu0 %vm912_vm0, %v9962_v17  ;;  %v16022_v17 = vpack.c.bf16 %v10029_v35, %v10028_v2  ;;  %v16177_v2 = vpack.c.bf16 %v10091_v27, %v10090_v54  ;;  %v10092_v35 = vld [vmem:[%s16721_s23 + $0x230] sm:$0xff] }
0x138d   : > { %12861 = vmatpush3.bf16.msra.mxu0 %v12858_v22  ;;  %11222 = vmatprep.mubr.msk.f32.mxu0 %vm2701_vm3, %v15838_v62  ;;  %v10010_v22 = vld [vmem:[%s16721_s23 + $0xe0] sm:$0xff]  ;;  %v16187_v16 = vpack.c.bf16 %v10093_v6, %v10092_v35 }
0x138e   : > { %12863 = vmatprep.subr.bf16.mxu0 %v12862_v25  ;;  %v15968_v41 = vpack.c.bf16 %v10011_v10, %v10010_v22  ;;  %v10077_v22 = vld [vmem:[%s16721_s23 + $0x1f8] sm:$0xff] }
0x138f   : > { %v16143_v10 = vpack.c.bf16 %v10077_v22, %v10076_v9  ;;  %v7006_v22 = vld [vmem:[#allocation7 + $0x10] sm:$0xff] }
0x1391   : > { %12865 = vmatpush3.bf16.msra.mxu0 %v12862_v25  ;;  %v10012_v25 = vld [vmem:[%s16721_s23 + $0xf0] sm:$0xff] }
0x1392   : > { %12867 = vmatprep.subr.bf16.mxu0 %v12866_v21  ;;  %v15978_v47 = vpack.c.bf16 %v10013_v24, %v10012_v25  ;;  %v10086_v25 = vld [vmem:[%s16721_s23 + $0x200] sm:$0xff]  ;;  %v10087_v24 = vld [vmem:[%s16721_s23 + $0x208] sm:$0xff] }
0x1395   : > { %12869 = vmatpush3.bf16.msra.mxu0 %v12866_v21  ;;  %v10022_v21 = vld [vmem:[%s16721_s23 + $0x100] sm:$0xff] }
0x1396   : > { %12871 = vmatprep.subr.bf16.mxu0 %v12870_v44  ;;  %v15988_v60 = vpack.c.bf16 %v10023_v1, %v10022_v21  ;;  %v16153_v21 = vpack.c.bf16 %v10087_v24, %v10086_v25  ;;  %v10088_v1 = vld [vmem:[%s16721_s23 + $0x210] sm:$0xff] }
0x1399   : > { %12873 = vmatpush3.bf16.msra.mxu0 %v12870_v44  ;;  %v10024_v44 = vld [vmem:[%s16721_s23 + $0x110] sm:$0xff] }
0x139a   : > { %v15998_v42 = vpack.c.bf16 %v10025_v56, %v10024_v44  ;;  %v10089_v44 = vld [vmem:[%s16721_s23 + $0x218] sm:$0xff] }
0x139b   : > { %v16163_v56 = vpack.c.bf16 %v10089_v44, %v10088_v1 }
0x139c   : > { %11223 = vmatmul.mubr.msk.f32.vlgmr.msra.gmra.mrb[38].mxu0 %vm2701_vm3, %v15845_v50 }
0x139d   : > { %11248 = vmatprep.mubr.msk.f32.mxu0 %vm2457_vm2, %v6596_v13 }
0x145f   : > { %v11205_v63 = vpop.f32.mrb[30].mxu0 }
0x1460   : > { %v6421_v37 = vadd.f32 %v11205_v63, %v6418_v49  ;;  %v6397_v31 = vpop.f32.mrb[31].mxu0  ;;  %v10042_v49 = vld [vmem:[%s16721_s23 + $0x160] sm:$0xff]  ;;  %v10043_v63 = vld [vmem:[%s16721_s23 + $0x168] sm:$0xff] }
0x1461   : > { %v6420_v36 = vadd.f32 %v6413_v57, %v6397_v31  ;;  %v16042_v57 = vpack.c.bf16 %v10041_v32, %v10040_v12  ;;  %v10044_v31 = vld [vmem:[%s16721_s23 + $0x170] sm:$0xff] }
0x1462   : > { %v15864_v0 = vmax.f32 %v6421_v37, 0.0  ;;  %v16056_v37 = vpack.c.bf16 %v10043_v63, %v10042_v49  ;;  %v6597_v63 = vld [vmem:[#allocation7 + $0x8] sm:$0xff] }
0x1463   : > { %v15866_v3 = vmax.f32 %v6420_v36, 0.0  ;;  %v10045_v36 = vld [vmem:[%s16721_s23 + $0x178] sm:$0xff] }
0x1464   : > { %9427 = vst.msk [vmem:[%s15309_s25 + $0x18] sm:$0xff] %vm2701_vm3, %v15864_v0  ;;  %v16066_v58 = vpack.c.bf16 %v10045_v36, %v10044_v31  ;;  %v6513_v31 = vld [vmem:[#allocation5] sm:$0xff]  ;;  %v6514_v36 = vld [vmem:[#allocation5 + $0x8] sm:$0xff] }
0x1465   : > { %9426 = vst.msk [vmem:[%s15309_s25 + $0x10] sm:$0xff] %vm2701_vm3, %v15866_v3  ;;  %11241 = vmatprep.mubr.msk.f32.mxu1 %vm2701_vm3, %v15866_v3 }
0x1466   : > { %11242 = vmatmul.mubr.msk.f32.vlgmr.msra.gmra.mrb[38].mxu1 %vm2701_vm3, %v15864_v0 }
0x1467   : > { %12901 = vmatpush3.bf16.msra.mxu1 %v15855_v59  ;;  %11274 = vmatprep.mubr.msk.f32.mxu1 %vm2701_vm3, %v15838_v62 }
0x1468   : > { %12903 = vmatprep.subr.bf16.mxu1 %v15871_v7 }
0x146b   : > { %12905 = vmatpush3.bf16.msra.mxu1 %v15871_v7 }
0x146c   : > { %12907 = vmatprep.subr.bf16.mxu1 %v15890_v14 }
0x146f   : > { %v11224_v40 = vpop.f32.mrb[38].mxu0  ;;  %12909 = vmatpush3.bf16.msra.mxu1 %v15890_v14 }
0x1470   : > { %v6504_v45 = vpop.f32.mrb[39].mxu0  ;;  %12911 = vmatprep.subr.bf16.mxu1 %v15900_v30 }
0x1471   : > { %v15910_v51 = vpack.c.bf16 %v11224_v40, %v6504_v45  ;;  %v10058_v40 = vld [vmem:[%s16721_s23 + $0x1a0] sm:$0xff]  ;;  %v10059_v45 = vld [vmem:[%s16721_s23 + $0x1a8] sm:$0xff] }
0x1473   : > { %12913 = vmatpush3.bf16.msra.mxu1 %v15900_v30 }
0x1474   : > { %12939 = vmatprep.subr.bf16.mxu1 %v12938_v46 }
0x1476   : > { %11275 = vmatmul.mubr.msk.f32.vlgmr.msra.gmra.mrb[40].mxu1 %vm2701_vm3, %v15845_v50 }
0x1477   : > { %12941 = vmatpush3.bf16.msra.mxu1 %v12938_v46  ;;  %11326 = vmatprep.mubr.msk.f32.mxu1 %vm2701_vm3, %v15838_v62 }
0x1478   : > { %12943 = vmatprep.subr.bf16.mxu1 %v12942_v15 }
0x147b   : > { %12945 = vmatpush3.bf16.msra.mxu1 %v12942_v15 }
0x147c   : > { %12947 = vmatprep.subr.bf16.mxu1 %v12946_v28 }
0x147f   : > { %12949 = vmatpush3.bf16.msra.mxu1 %v12946_v28 }
0x1480   : > { %12951 = vmatprep.subr.bf16.mxu1 %v12950_v5 }
0x1483   : > { %12953 = vmatpush3.bf16.msra.mxu1 %v12950_v5 }
0x1484   : > { %12959 = vmatprep.subr.bf16.mxu1 %v12938_v46 }
0x1486   : > { %11327 = vmatmul.mubr.msk.f32.vlgmr.msra.gmra.mrb[42].mxu1 %vm2701_vm3, %v15845_v50 }
0x1487   : > { %12961 = vmatpush3.bf16.msra.mxu1 %v12938_v46  ;;  %11352 = vmatprep.mubr.msk.f32.mxu1 %vm2701_vm3, %v15866_v3  ;;  %v13106_v46 = vpack.c.bf16 %v10059_v45, %v10058_v40 }
0x1488   : > { %12963 = vmatprep.subr.bf16.mxu1 %v12942_v15 }
0x148b   : > { %12965 = vmatpush3.bf16.msra.mxu1 %v12942_v15  ;;  %v13110_v15 = vpack.c.bf16 %v10061_v55, %v10060_v52 }
0x148c   : > { %12967 = vmatprep.subr.bf16.mxu1 %v12946_v28 }
0x148f   : > { %12969 = vmatpush3.bf16.msra.mxu1 %v12946_v28  ;;  %v16110_v28 = vpack.c.bf16 %v10071_v23, %v10070_v18 }
0x1490   : > { %12971 = vmatprep.subr.bf16.mxu1 %v12950_v5 }
0x1493   : > { %12973 = vmatpush3.bf16.msra.mxu1 %v12950_v5  ;;  %v16119_v5 = vpack.c.bf16 %v10073_v38, %v10072_v34 }
0x1494   : > { %12999 = vmatprep.subr.bf16.mxu1 %v15945_v53 }
0x1496   : > { %11353 = vmatmul.mubr.msk.f32.vlgmr.msra.gmra.mrb[44].mxu1 %vm2701_vm3, %v15864_v0 }
0x1497   : > { %13001 = vmatpush3.bf16.msra.mxu1 %v15945_v53  ;;  %11404 = vmatprep.mubr.msk.f32.mxu1 %vm2701_vm3, %v15866_v3 }
0x1498   : > { %13003 = vmatprep.subr.bf16.mxu1 %v15954_v11 }
0x149b   : > { %13005 = vmatpush3.bf16.msra.mxu1 %v15954_v11 }
0x149c   : > { %13007 = vmatprep.subr.bf16.mxu1 %v15968_v41 }
0x149f   : > { %13009 = vmatpush3.bf16.msra.mxu1 %v15968_v41 }
0x14a0   : > { %13011 = vmatprep.subr.bf16.mxu1 %v15978_v47 }
0x14a3   : > { %13013 = vmatpush3.bf16.msra.mxu1 %v15978_v47 }
0x14a4   : > { %13039 = vmatprep.subr.bf16.mxu1 %v15988_v60 }
0x14a6   : > { %11405 = vmatmul.mubr.msk.f32.vlgmr.msra.gmra.mrb[46].mxu1 %vm2701_vm3, %v15864_v0 }
0x14a7   : > { %13041 = vmatpush3.bf16.msra.mxu1 %v15988_v60  ;;  %11456 = vmatprep.mubr.msk.f32.mxu1 %vm2701_vm3, %v15866_v3 }
0x14a8   : > { %13043 = vmatprep.subr.bf16.mxu1 %v15998_v42 }
0x14ab   : > { %13045 = vmatpush3.bf16.msra.mxu1 %v15998_v42 }
0x14ac   : > { %13047 = vmatprep.subr.bf16.mxu1 %v16012_v26 }
0x14af   : > { %13049 = vmatpush3.bf16.msra.mxu1 %v16012_v26 }
0x14b0   : > { %13051 = vmatprep.subr.bf16.mxu1 %v16022_v17 }
0x14b3   : > { %13053 = vmatpush3.bf16.msra.mxu1 %v16022_v17 }
0x14b4   : > { %13059 = vmatprep.subr.bf16.mxu1 %v16032_v29 }
0x14b6   : > { %11457 = vmatmul.mubr.msk.f32.vlgmr.msra.gmra.mrb[48].mxu1 %vm2701_vm3, %v15864_v0 }
0x14b7   : > { %13061 = vmatpush3.bf16.msra.mxu1 %v16032_v29  ;;  %11482 = vmatprep.mubr.msk.f32.mxu1 %vm2701_vm3, %v15838_v62 }
0x14b8   : > { %13063 = vmatprep.subr.bf16.mxu1 %v16042_v57 }
0x14bb   : > { %13065 = vmatpush3.bf16.msra.mxu1 %v16042_v57 }
0x14bc   : > { %13067 = vmatprep.subr.bf16.mxu1 %v16056_v37 }
0x14bf   : > { %13069 = vmatpush3.bf16.msra.mxu1 %v16056_v37 }
0x14c0   : > { %13071 = vmatprep.subr.bf16.mxu1 %v16066_v58 }
0x14c3   : > { %13073 = vmatpush3.bf16.msra.mxu1 %v16066_v58 }
0x14c4   : > { %13099 = vmatprep.subr.bf16.mxu1 %v13098_v19 }
0x14c6   : > { %11483 = vmatmul.mubr.msk.f32.vlgmr.msra.gmra.mrb[50].mxu1 %vm2701_vm3, %v15845_v50 }
0x14c7   : > { %13101 = vmatpush3.bf16.msra.mxu1 %v13098_v19  ;;  %11534 = vmatprep.mubr.msk.f32.mxu1 %vm2701_vm3, %v15838_v62 }
0x14c8   : > { %13103 = vmatprep.subr.bf16.mxu1 %v13102_v39 }
0x14cb   : > { %13105 = vmatpush3.bf16.msra.mxu1 %v13102_v39 }
0x14cc   : > { %13107 = vmatprep.subr.bf16.mxu1 %v13106_v46 }
0x14cf   : > { %13109 = vmatpush3.bf16.msra.mxu1 %v13106_v46 }
0x14d0   : > { %13111 = vmatprep.subr.bf16.mxu1 %v13110_v15 }
0x14d3   : > { %13113 = vmatpush3.bf16.msra.mxu1 %v13110_v15 }
0x14d4   : > { %13119 = vmatprep.subr.bf16.mxu1 %v13098_v19 }
0x14d6   : > { %11535 = vmatmul.mubr.msk.f32.vlgmr.msra.gmra.mrb[52].mxu1 %vm2701_vm3, %v15845_v50 }
0x14d7   : > { %13121 = vmatpush3.bf16.msra.mxu1 %v13098_v19  ;;  %11560 = vmatprep.mubr.msk.f32.mxu1 %vm2701_vm3, %v15866_v3 }
0x14d8   : > { %13123 = vmatprep.subr.bf16.mxu1 %v13102_v39 }
0x14db   : > { %13125 = vmatpush3.bf16.msra.mxu1 %v13102_v39 }
0x14dc   : > { %13127 = vmatprep.subr.bf16.mxu1 %v13106_v46 }
0x14df   : > { %13129 = vmatpush3.bf16.msra.mxu1 %v13106_v46 }
0x14e0   : > { %13131 = vmatprep.subr.bf16.mxu1 %v13110_v15 }
0x14e3   : > { %13133 = vmatpush3.bf16.msra.mxu1 %v13110_v15 }
0x14e4   : > { %13159 = vmatprep.subr.bf16.mxu1 %v16110_v28 }
0x14e6   : > { %11561 = vmatmul.mubr.msk.f32.vlgmr.msra.gmra.mrb[54].mxu1 %vm2701_vm3, %v15864_v0 }
0x14e7   : > { %13161 = vmatpush3.bf16.msra.mxu1 %v16110_v28  ;;  %11612 = vmatprep.mubr.msk.f32.mxu1 %vm2701_vm3, %v15866_v3 }
0x14e8   : > { %13163 = vmatprep.subr.bf16.mxu1 %v16119_v5 }
0x14eb   : > { %13165 = vmatpush3.bf16.msra.mxu1 %v16119_v5 }
0x14ec   : > { %13167 = vmatprep.subr.bf16.mxu1 %v16133_v4 }
0x14ef   : > { %13169 = vmatpush3.bf16.msra.mxu1 %v16133_v4 }
0x14f0   : > { %13171 = vmatprep.subr.bf16.mxu1 %v16143_v10 }
0x14f3   : > { %13173 = vmatpush3.bf16.msra.mxu1 %v16143_v10 }
0x14f4   : > { %13199 = vmatprep.subr.bf16.mxu1 %v16153_v21 }
0x14f6   : > { %11613 = vmatmul.mubr.msk.f32.vlgmr.msra.gmra.mrb[56].mxu1 %vm2701_vm3, %v15864_v0 }
0x14f7   : > { %13201 = vmatpush3.bf16.msra.mxu1 %v16153_v21  ;;  %11664 = vmatprep.mubr.msk.f32.mxu1 %vm2701_vm3, %v15866_v3 }
0x14f8   : > { %13203 = vmatprep.subr.bf16.mxu1 %v16163_v56 }
0x14fb   : > { %13205 = vmatpush3.bf16.msra.mxu1 %v16163_v56 }
0x14fc   : > { %13207 = vmatprep.subr.bf16.mxu1 %v16177_v2 }
0x14ff   : > { %13209 = vmatpush3.bf16.msra.mxu1 %v16177_v2 }
0x1500   : > { %13211 = vmatprep.subr.bf16.mxu1 %v16187_v16 }
0x1503   : > { %13213 = vmatpush3.bf16.msra.mxu1 %v16187_v16 }
0x1506   : > { %11665 = vmatmul.mubr.msk.f32.vlgmr.msra.gmra.mrb[58].mxu1 %vm2701_vm3, %v15864_v0 }
0x1539   : > { %v11243_v12 = vpop.f32.mrb[38].mxu1 }
0x153a   : > { %v6587_v32 = vpop.f32.mrb[39].mxu1 }
0x153b   : > { %v12890_v49 = vpack.c.bf16 %v11243_v12, %v6587_v32 }
0x153d   : > { %12891 = vmatprep.subr.bf16.mxu0 %v12890_v49 }
0x153e   : > { %12893 = vmatpush3.bf16.msra.mxu0 %v12890_v49  ;;  %v7007_v49 = vld [vmem:[#allocation7 + $0x18] sm:$0xff] }
0x153f   : > { %12895 = vmatprep.subr.bf16.mxu0 %v15910_v51 }
0x1541   : > { %11249 = vmatmul.mubr.msk.f32.vlgmr.msra.gmra.mrb[40].mxu0 %vm2457_vm2, %v6597_v63  ;;  %v7176_v63 = vld [vmem:[#allocation5 + $0x20] sm:$0xff] }
0x1542   : > { %12897 = vmatpush3.bf16.msra.mxu0 %v15910_v51  ;;  %11255 = vmatprep.mubr.msk.f32.mxu0 %vm2457_vm2, %v6513_v31  ;;  %v7177_v31 = vld [vmem:[#allocation5 + $0x28] sm:$0xff] }
0x1549   : > { %v11276_v8 = vpop.f32.mrb[40].mxu1  ;;  %11256 = vmatmul.mubr.msk.f32.vlgmr.msra.gmra.mrb[40].mxu0 %vm2457_vm2, %v6514_v36  ;;  %v7337_v36 = vld [vmem:[#allocation7 + $0x20] sm:$0xff] }
0x154a   : > { %v6835_v13 = vpop.f32.mrb[41].mxu1  ;;  %11281 = vmatprep.mubr.msk.f32.mxu0 %vm2457_vm2, %v6845_v61  ;;  %v7338_v61 = vld [vmem:[#allocation7 + $0x28] sm:$0xff] }
0x154b   : > { %v12914_v19 = vpack.c.bf16 %v11276_v8, %v6835_v13  ;;  %v7507_v8 = vld [vmem:[#allocation5 + $0x30] sm:$0xff] }
0x154d   : > { %12915 = vmatprep.subr.bf16.mxu0 %v12914_v19 }
0x154e   : > { %12917 = vmatpush3.bf16.msra.mxu0 %v12914_v19 }
0x154f   : > { %12919 = vmatprep.subr.bf16.mxu0 %v15855_v59 }
0x1551   : > { %11282 = vmatmul.mubr.msk.f32.vlgmr.msra.gmra.mrb[40].mxu0 %vm2457_vm2, %v6846_v20  ;;  %v7668_v20 = vld [vmem:[#allocation7 + $0x30] sm:$0xff] }
0x1552   : > { %12921 = vmatpush3.bf16.msra.mxu0 %v15855_v59  ;;  %11300 = vmatprep.mubr.msk.f32.mxu0 %vm2701_vm3, %v15866_v3 }
0x1553   : > { %12923 = vmatprep.subr.bf16.mxu0 %v15871_v7 }
0x1556   : > { %12925 = vmatpush3.bf16.msra.mxu0 %v15871_v7 }
0x1557   : > { %12927 = vmatprep.subr.bf16.mxu0 %v15890_v14 }
0x1559   : > { %v11328_v51 = vpop.f32.mrb[42].mxu1 }
0x155a   : > { %12929 = vmatpush3.bf16.msra.mxu0 %v15890_v14  ;;  %v7166_v33 = vpop.f32.mrb[43].mxu1 }
0x155b   : > { %v12954_v39 = vpack.c.bf16 %v11328_v51, %v7166_v33  ;;  %12931 = vmatprep.subr.bf16.mxu0 %v15900_v30 }
0x155e   : > { %12933 = vmatpush3.bf16.msra.mxu0 %v15900_v30 }
0x1561   : > { %11301 = vmatmul.mubr.msk.f32.vlgmr.msra.gmra.mrb[42].mxu0 %vm2701_vm3, %v15864_v0 }
0x1562   : > { %11307 = vmatprep.mubr.msk.f32.mxu0 %vm2457_vm2, %v7006_v22 }
0x1569   : > { %v11354_v59 = vpop.f32.mrb[44].mxu1 }
0x156a   : > { %v7327_v40 = vpop.f32.mrb[45].mxu1 }
0x156b   : > { %v12974_v45 = vpack.c.bf16 %v11354_v59, %v7327_v40  ;;  %v8170_v59 = vld [vmem:[#allocation5 + $0x58] sm:$0xff]  ;;  %v8330_v40 = vld [vmem:[#allocation7 + $0x50] sm:$0xff] }
0x1579   : > { %v11406_v46 = vpop.f32.mrb[46].mxu1 }
0x157a   : > { %v7658_v52 = vpop.f32.mrb[47].mxu1 }
0x157b   : > { %v13014_v7 = vpack.c.bf16 %v11406_v46, %v7658_v52  ;;  %v8500_v46 = vld [vmem:[#allocation5 + $0x60] sm:$0xff]  ;;  %v8831_v52 = vld [vmem:[#allocation5 + $0x70] sm:$0xff] }
0x1589   : > { %v11458_v55 = vpop.f32.mrb[48].mxu1 }
0x158a   : > { %v7989_v15 = vpop.f32.mrb[49].mxu1 }
0x158b   : > { %v16213_v18 = vpack.c.bf16 %v11458_v55, %v7989_v15  ;;  %v8992_v15 = vld [vmem:[#allocation7 + $0x70] sm:$0xff] }
0x1599   : > { %v11484_v14 = vpop.f32.mrb[50].mxu1 }
0x159a   : > { %v8159_v23 = vpop.f32.mrb[51].mxu1 }
0x159b   : > { %v16215_v34 = vpack.c.bf16 %v11484_v14, %v8159_v23  ;;  %v9413_v23 = vpop.permute.xlu1 %9412 }
0x15a9   : > { %v11536_v38 = vpop.f32.mrb[52].mxu1 }
0x15aa   : > { %v8490_v43 = vpop.f32.mrb[53].mxu1 }
0x15ab   : > { %v16217_v30 = vpack.c.bf16 %v11536_v38, %v8490_v43 }
0x15b9   : > { %v11562_v48 = vpop.f32.mrb[54].mxu1 }
0x15ba   : > { %v8651_v9 = vpop.f32.mrb[55].mxu1 }
0x15bb   : > { %v16219_v25 = vpack.c.bf16 %v11562_v48, %v8651_v9 }
0x15c9   : > { %v11614_v24 = vpop.f32.mrb[56].mxu1 }
0x15ca   : > { %v8982_v1 = vpop.f32.mrb[57].mxu1 }
0x15cb   : > { %v16222_v44 = vpack.c.bf16 %v11614_v24, %v8982_v1 }
0x15d9   : > { %v11666_v54 = vpop.f32.mrb[58].mxu1 }
0x15da   : > { %v9313_v27 = vpop.f32.mrb[59].mxu1 }
0x15db   : > { %v16224_v35 = vpack.c.bf16 %v11666_v54, %v9313_v27 }
0x1634   : > { %v11302_v6 = vpop.f32.mrb[42].mxu0 }
0x1635   : > { %v6996_v12 = vpop.f32.mrb[43].mxu0 }
0x1636   : > { %v12934_v32 = vpack.c.bf16 %v11302_v6, %v6996_v12 }
0x1638   : > { %12935 = vmatprep.subr.bf16.mxu0 %v12934_v32 }
0x1639   : > { %12937 = vmatpush3.bf16.msra.mxu0 %v12934_v32 }
0x163a   : > { %12955 = vmatprep.subr.bf16.mxu0 %v12954_v39 }
0x163c   : > { %11308 = vmatmul.mubr.msk.f32.vlgmr.msra.gmra.mrb[40].mxu0 %vm2457_vm2, %v7007_v49 }
0x163d   : > { %12957 = vmatpush3.bf16.msra.mxu0 %v12954_v39  ;;  %11333 = vmatprep.mubr.msk.f32.mxu0 %vm2457_vm2, %v7176_v63  ;;  %v7999_v39 = vld [vmem:[#allocation7 + $0x40] sm:$0xff] }
0x163e   : > { %12975 = vmatprep.subr.bf16.mxu0 %v12974_v45 }
0x1644   : > { %11334 = vmatmul.mubr.msk.f32.vlgmr.msra.gmra.mrb[40].mxu0 %vm2457_vm2, %v7177_v31 }
0x1645   : > { %12977 = vmatpush3.bf16.msra.mxu0 %v12974_v45  ;;  %11359 = vmatprep.mubr.msk.f32.mxu0 %vm2457_vm2, %v7337_v36 }
0x1646   : > { %12979 = vmatprep.subr.bf16.mxu0 %v15945_v53 }
0x164c   : > { %11360 = vmatmul.mubr.msk.f32.vlgmr.msra.gmra.mrb[40].mxu0 %vm2457_vm2, %v7338_v61 }
0x164d   : > { %12981 = vmatpush3.bf16.msra.mxu0 %v15945_v53  ;;  %11378 = vmatprep.mubr.msk.f32.mxu0 %vm2701_vm3, %v15838_v62 }
0x164e   : > { %12983 = vmatprep.subr.bf16.mxu0 %v15954_v11 }
0x1651   : > { %12985 = vmatpush3.bf16.msra.mxu0 %v15954_v11  ;;  %v7508_v11 = vld [vmem:[#allocation5 + $0x38] sm:$0xff] }
0x1652   : > { %12987 = vmatprep.subr.bf16.mxu0 %v15968_v41 }
0x1655   : > { %12989 = vmatpush3.bf16.msra.mxu0 %v15968_v41  ;;  %v7669_v41 = vld [vmem:[#allocation7 + $0x38] sm:$0xff] }
0x1656   : > { %12991 = vmatprep.subr.bf16.mxu0 %v15978_v47 }
0x1659   : > { %12993 = vmatpush3.bf16.msra.mxu0 %v15978_v47  ;;  %v7838_v47 = vld [vmem:[#allocation5 + $0x40] sm:$0xff] }
0x165c   : > { %11379 = vmatmul.mubr.msk.f32.vlgmr.msra.gmra.mrb[44].mxu0 %vm2701_vm3, %v15845_v50 }
0x165d   : > { %11385 = vmatprep.mubr.msk.f32.mxu0 %vm2457_vm2, %v7507_v8 }
0x172f   : > { %v11380_v53 = vpop.f32.mrb[44].mxu0 }
0x1730   : > { %v7497_v13 = vpop.f32.mrb[45].mxu0 }
0x1731   : > { %v12994_v19 = vpack.c.bf16 %v11380_v53, %v7497_v13 }
0x1733   : > { %12995 = vmatprep.subr.bf16.mxu0 %v12994_v19 }
0x1734   : > { %12997 = vmatpush3.bf16.msra.mxu0 %v12994_v19 }
0x1735   : > { %13015 = vmatprep.subr.bf16.mxu0 %v13014_v7 }
0x1737   : > { %11386 = vmatmul.mubr.msk.f32.vlgmr.msra.gmra.mrb[40].mxu0 %vm2457_vm2, %v7508_v11 }
0x1738   : > { %13017 = vmatpush3.bf16.msra.mxu0 %v13014_v7  ;;  %11411 = vmatprep.mubr.msk.f32.mxu0 %vm2457_vm2, %v7668_v20 }
0x1739   : > { %13019 = vmatprep.subr.bf16.mxu0 %v15988_v60 }
0x173f   : > { %11412 = vmatmul.mubr.msk.f32.vlgmr.msra.gmra.mrb[40].mxu0 %vm2457_vm2, %v7669_v41 }
0x1740   : > { %13021 = vmatpush3.bf16.msra.mxu0 %v15988_v60  ;;  %11430 = vmatprep.mubr.msk.f32.mxu0 %vm2701_vm3, %v15838_v62 }
0x1741   : > { %13023 = vmatprep.subr.bf16.mxu0 %v15998_v42 }
0x1744   : > { %13025 = vmatpush3.bf16.msra.mxu0 %v15998_v42  ;;  %v7839_v42 = vld [vmem:[#allocation5 + $0x48] sm:$0xff] }
0x1745   : > { %13027 = vmatprep.subr.bf16.mxu0 %v16012_v26 }
0x1748   : > { %13029 = vmatpush3.bf16.msra.mxu0 %v16012_v26  ;;  %v8000_v26 = vld [vmem:[#allocation7 + $0x48] sm:$0xff] }
0x1749   : > { %13031 = vmatprep.subr.bf16.mxu0 %v16022_v17 }
0x174c   : > { %13033 = vmatpush3.bf16.msra.mxu0 %v16022_v17  ;;  %v8169_v17 = vld [vmem:[#allocation5 + $0x50] sm:$0xff] }
0x174f   : > { %11431 = vmatmul.mubr.msk.f32.vlgmr.msra.gmra.mrb[46].mxu0 %vm2701_vm3, %v15845_v50 }
0x1750   : > { %11437 = vmatprep.mubr.msk.f32.mxu0 %vm2457_vm2, %v7838_v47 }
0x1822   : > { %v11432_v60 = vpop.f32.mrb[46].mxu0 }
0x1823   : > { %v7828_v51 = vpop.f32.mrb[47].mxu0 }
0x1824   : > { %v13034_v33 = vpack.c.bf16 %v11432_v60, %v7828_v51 }
0x1826   : > { %13035 = vmatprep.subr.bf16.mxu0 %v13034_v33 }
0x1827   : > { %13037 = vmatpush3.bf16.msra.mxu0 %v13034_v33 }
0x1828   : > { %13055 = vmatprep.subr.bf16.mxu0 %v16213_v18 }
0x182a   : > { %11438 = vmatmul.mubr.msk.f32.vlgmr.msra.gmra.mrb[40].mxu0 %vm2457_vm2, %v7839_v42 }
0x182b   : > { %13057 = vmatpush3.bf16.msra.mxu0 %v16213_v18  ;;  %11463 = vmatprep.mubr.msk.f32.mxu0 %vm2457_vm2, %v7999_v39 }
0x182c   : > { %13075 = vmatprep.subr.bf16.mxu0 %v16215_v34 }
0x1832   : > { %11464 = vmatmul.mubr.msk.f32.vlgmr.msra.gmra.mrb[40].mxu0 %vm2457_vm2, %v8000_v26 }
0x1833   : > { %13077 = vmatpush3.bf16.msra.mxu0 %v16215_v34  ;;  %11489 = vmatprep.mubr.msk.f32.mxu0 %vm2457_vm2, %v8169_v17 }
0x1834   : > { %13079 = vmatprep.subr.bf16.mxu0 %v16032_v29 }
0x183a   : > { %11490 = vmatmul.mubr.msk.f32.vlgmr.msra.gmra.mrb[40].mxu0 %vm2457_vm2, %v8170_v59 }
0x183b   : > { %13081 = vmatpush3.bf16.msra.mxu0 %v16032_v29  ;;  %11508 = vmatprep.mubr.msk.f32.mxu0 %vm2701_vm3, %v15866_v3 }
0x183c   : > { %13083 = vmatprep.subr.bf16.mxu0 %v16042_v57 }
0x183f   : > { %13085 = vmatpush3.bf16.msra.mxu0 %v16042_v57  ;;  %v8331_v57 = vld [vmem:[#allocation7 + $0x58] sm:$0xff] }
0x1840   : > { %13087 = vmatprep.subr.bf16.mxu0 %v16056_v37 }
0x1843   : > { %13089 = vmatpush3.bf16.msra.mxu0 %v16056_v37  ;;  %v8661_v37 = vld [vmem:[#allocation7 + $0x60] sm:$0xff] }
0x1844   : > { %13091 = vmatprep.subr.bf16.mxu0 %v16066_v58 }
0x1847   : > { %13093 = vmatpush3.bf16.msra.mxu0 %v16066_v58  ;;  %v8662_v58 = vld [vmem:[#allocation7 + $0x68] sm:$0xff] }
0x184a   : > { %11509 = vmatmul.mubr.msk.f32.vlgmr.msra.gmra.mrb[48].mxu0 %vm2701_vm3, %v15864_v0  ;;  %v8501_v0 = vld [vmem:[#allocation5 + $0x68] sm:$0xff] }
0x184b   : > { %11515 = vmatprep.mubr.msk.f32.mxu0 %vm2457_vm2, %v8330_v40 }
0x191d   : > { %v11510_v29 = vpop.f32.mrb[48].mxu0 }
0x191e   : > { %v8320_v3 = vpop.f32.mrb[49].mxu0 }
0x191f   : > { %v13094_v45 = vpack.c.bf16 %v11510_v29, %v8320_v3 }
0x1921   : > { %13095 = vmatprep.subr.bf16.mxu0 %v13094_v45 }
0x1922   : > { %13097 = vmatpush3.bf16.msra.mxu0 %v13094_v45 }
0x1923   : > { %13115 = vmatprep.subr.bf16.mxu0 %v16217_v30 }
0x1925   : > { %11516 = vmatmul.mubr.msk.f32.vlgmr.msra.gmra.mrb[40].mxu0 %vm2457_vm2, %v8331_v57 }
0x1926   : > { %13117 = vmatpush3.bf16.msra.mxu0 %v16217_v30  ;;  %11541 = vmatprep.mubr.msk.f32.mxu0 %vm2457_vm2, %v8500_v46 }
0x1927   : > { %13135 = vmatprep.subr.bf16.mxu0 %v16219_v25 }
0x192d   : > { %11542 = vmatmul.mubr.msk.f32.vlgmr.msra.gmra.mrb[40].mxu0 %vm2457_vm2, %v8501_v0 }
0x192e   : > { %13137 = vmatpush3.bf16.msra.mxu0 %v16219_v25  ;;  %11567 = vmatprep.mubr.msk.f32.mxu0 %vm2457_vm2, %v8661_v37 }
0x192f   : > { %13139 = vmatprep.subr.bf16.mxu0 %v16110_v28 }
0x1935   : > { %11568 = vmatmul.mubr.msk.f32.vlgmr.msra.gmra.mrb[40].mxu0 %vm2457_vm2, %v8662_v58 }
0x1936   : > { %13141 = vmatpush3.bf16.msra.mxu0 %v16110_v28  ;;  %11586 = vmatprep.mubr.msk.f32.mxu0 %vm2701_vm3, %v15838_v62 }
0x1937   : > { %13143 = vmatprep.subr.bf16.mxu0 %v16119_v5 }
0x193a   : > { %13145 = vmatpush3.bf16.msra.mxu0 %v16119_v5  ;;  %v8832_v5 = vld [vmem:[#allocation5 + $0x78] sm:$0xff] }
0x193b   : > { %13147 = vmatprep.subr.bf16.mxu0 %v16133_v4 }
0x193e   : > { %13149 = vmatpush3.bf16.msra.mxu0 %v16133_v4  ;;  %v8993_v4 = vld [vmem:[#allocation7 + $0x78] sm:$0xff] }
0x193f   : > { %13151 = vmatprep.subr.bf16.mxu0 %v16143_v10 }
0x1942   : > { %13153 = vmatpush3.bf16.msra.mxu0 %v16143_v10  ;;  %v9162_v10 = vld [vmem:[#allocation5 + $0x80] sm:$0xff] }
0x1945   : > { %11587 = vmatmul.mubr.msk.f32.vlgmr.msra.gmra.mrb[50].mxu0 %vm2701_vm3, %v15845_v50 }
0x1946   : > { %11593 = vmatprep.mubr.msk.f32.mxu0 %vm2457_vm2, %v8831_v52 }
0x1a18   : > { %v11588_v28 = vpop.f32.mrb[50].mxu0 }
0x1a19   : > { %v8821_v7 = vpop.f32.mrb[51].mxu0 }
0x1a1a   : > { %v13154_v55 = vpack.c.bf16 %v11588_v28, %v8821_v7 }
0x1a1c   : > { %13155 = vmatprep.subr.bf16.mxu0 %v13154_v55 }
0x1a1d   : > { %13157 = vmatpush3.bf16.msra.mxu0 %v13154_v55 }
0x1a1e   : > { %13175 = vmatprep.subr.bf16.mxu0 %v16222_v44 }
0x1a20   : > { %11594 = vmatmul.mubr.msk.f32.vlgmr.msra.gmra.mrb[40].mxu0 %vm2457_vm2, %v8832_v5 }
0x1a21   : > { %13177 = vmatpush3.bf16.msra.mxu0 %v16222_v44  ;;  %11619 = vmatprep.mubr.msk.f32.mxu0 %vm2457_vm2, %v8992_v15 }
0x1a22   : > { %13179 = vmatprep.subr.bf16.mxu0 %v16153_v21 }
0x1a28   : > { %11620 = vmatmul.mubr.msk.f32.vlgmr.msra.gmra.mrb[40].mxu0 %vm2457_vm2, %v8993_v4 }
0x1a29   : > { %13181 = vmatpush3.bf16.msra.mxu0 %v16153_v21  ;;  %11638 = vmatprep.mubr.msk.f32.mxu0 %vm2701_vm3, %v15838_v62 }
0x1a2a   : > { %13183 = vmatprep.subr.bf16.mxu0 %v16163_v56 }
0x1a2d   : > { %13185 = vmatpush3.bf16.msra.mxu0 %v16163_v56  ;;  %v9163_v56 = vld [vmem:[#allocation5 + $0x88] sm:$0xff] }
0x1a2e   : > { %13187 = vmatprep.subr.bf16.mxu0 %v16177_v2 }
0x1a31   : > { %13189 = vmatpush3.bf16.msra.mxu0 %v16177_v2  ;;  %v9323_v2 = vld [vmem:[#allocation7 + $0x80] sm:$0xff] }
0x1a32   : > { %13191 = vmatprep.subr.bf16.mxu0 %v16187_v16 }
0x1a35   : > { %13193 = vmatpush3.bf16.msra.mxu0 %v16187_v16  ;;  %v9418_v16 = vpop.permute.xlu0 %9417 }
0x1a38   : > { %11639 = vmatmul.mubr.msk.f32.vlgmr.msra.gmra.mrb[52].mxu0 %vm2701_vm3, %v15845_v50  ;;  %v9324_v50 = vld [vmem:[#allocation7 + $0x88] sm:$0xff] }
0x1a39   : > { %11645 = vmatprep.mubr.msk.f32.mxu0 %vm2457_vm2, %v9162_v10 }
0x1b0b   : > { %v11640_v21 = vpop.f32.mrb[52].mxu0 }
0x1b0c   : > { %v9152_v62 = vpop.f32.mrb[53].mxu0 }
0x1b0d   : > { %v13194_v18 = vpack.c.bf16 %v11640_v21, %v9152_v62 }
0x1b0f   : > { %13195 = vmatprep.subr.bf16.mxu0 %v13194_v18 }
0x1b10   : > { %13197 = vmatpush3.bf16.msra.mxu0 %v13194_v18 }
0x1b11   : > { %13215 = vmatprep.subr.bf16.mxu0 %v16224_v35 }
0x1b13   : > { %11646 = vmatmul.mubr.msk.f32.vlgmr.msra.gmra.mrb[40].mxu0 %vm2457_vm2, %v9163_v56 }
0x1b14   : > { %13217 = vmatpush3.bf16.msra.mxu0 %v16224_v35  ;;  %11671 = vmatprep.mubr.msk.f32.mxu0 %vm2457_vm2, %v9323_v2 }
0x1b1b   : > { %11672 = vmatmul.mubr.msk.f32.vlgmr.msra.gmra.mrb[40].mxu0 %vm2457_vm2, %v9324_v50 }
0x1bee   : > { %v11673_v14 = vpop.f32.mrb[40].mxu0 }
0x1bef   : > { %v9421_v34 = vadd.f32 %v11673_v14, %v9418_v16  ;;  %v9397_v38 = vpop.f32.mrb[41].mxu0 }
0x1bf0   : > { %v9420_v43 = vadd.f32 %v9413_v23, %v9397_v38 }
0x1bf1   : > { %v9423_v30 = vmax.f32 %v9421_v34, 0.0 }
0x1bf2   : > { %v9422_v48 = vmax.f32 %v9420_v43, 0.0 }
0x1bf3   : > { %9429 = vst.msk [vmem:[%s15309_s25 + $0x28] sm:$0xff] %vm2701_vm3, %v9423_v30 }
0x1bf4   : > { %9428 = vst.msk [vmem:[%s15309_s25 + $0x20] sm:$0xff] %vm2701_vm3, %v9422_v48 }
0x1bf5 PF: > { %s16724_s0 = sld [smem:[#allocation14_spill]] }
0x1bfb   : > { %s33_s20 = sadd.s32 1, %s16724_s0  }
0x1bfc   : > { %p30_p6 = scmp.ge.s32.totalorder %s33_s20, 4  }
0x1bfe   :  { %32 = sbr.rel (!%p30_p6) target bundleno = 12 (0xc), region = 214 }
0x1c05   :  { %9451 = vsyncpa [#allocation4], 1 }
0x1c06   :  { %9453 = vsyncpa [#allocation4 + $0x1], 1 }
0x1c07   :  { %9454 = vsyncpa [#allocation6], 1 }
0x1c08   :  { %9455 = vsyncpa [#allocation9], 1 }

</bundles_post_ra>
